<compile_context>
chip_gen: v5e
topology: v5e:2x2
jax: 0.10.0
libtpu: 0.0.40
codegen_flags: <defaults>
</compile_context>

<pallas_src>
import functools

import jax
import jax.numpy as jnp
from jax import lax
from jax.experimental import pallas as pl
from jax.experimental.pallas import tpu as pltpu


# --------------------------------------------------------------------------- #
# Fused kernel: one batch image per grid step.
# --------------------------------------------------------------------------- #

def _simplenet_kernel(p_ref, wdec_ref, wpc_ref, invm_ref,
                      lat_ref, out_ref, acc_ref, *, k, ho, wo):
    """Refs (per grid step):
      p_ref    (1, ho, wo, k*k)        bf16  im2col patches of the 1-ch input
      wdec_ref (k*k, 128)              bf16  decoder weights (taps x Cout)
      wpc_ref  (k*k, 128)              f32   weight-normed pconv weights (Cout=1)
      invm_ref (ho+k-1, wo+k-1)        f32   reciprocal of avgpool(ones) mask
      lat_ref  (1, ho, wo, 128)        f32   latent output
      out_ref  (1, ho+k-1, wo+k-1)     f32   final output
      acc_ref  (ho+k-1, wo+k-1, 128)   f32   scratch accumulator
    """
    # ---- decoder: Conv2d(1, 128, k, bias=False) as row-wise MXU matmuls -----
    wdec = wdec_ref[...]                                  # loaded once
    for i in range(ho):
        lat_ref[0, i] = jnp.dot(p_ref[0, i], wdec,
                                preferred_element_type=jnp.float32)
    lat = lat_ref[0]                                      # (ho, wo, 128) f32

    # ---- wn_pconv: Conv2d(128, 1, k, padding=k-1, bias=False) ---------------
    # out[a, b] = sum_{kh,kw,c} lat[a - pad + kh, b - pad + kw, c] * w[kh,kw,c]
    # 49 shift-and-accumulate VPU passes with channels on lanes, then a single
    # cross-lane (channel) reduction.  Each tap touches exactly a ho x wo
    # window of the (hf, wf) output -> no padded latent buffer needed.
    pad = k - 1
    wpc = wpc_ref[...]                                    # (k*k, 128), loaded once
    acc_ref[...] = jnp.zeros_like(acc_ref)
    for kh in range(k):
        for kw in range(k):
            t = kh * k + kw
            w_t = wpc[t:t + 1, :]                         # (1, 128) value slice
            acc_ref[pad - kh:pad - kh + ho, pad - kw:pad - kw + wo, :] += lat * w_t

    # channel reduce + fused reciprocal-mask multiply (replaces x / mask)
    out_ref[0] = jnp.sum(acc_ref[...], axis=-1) * invm_ref[...]


# --------------------------------------------------------------------------- #
# Static mask (avgpool of padded ones depends only on shapes).
# --------------------------------------------------------------------------- #

def _inv_partial_mask(hin, win, k):
    """1 / AvgPool2d(k, stride=1)(pad(ones(hin, win), k-1 on each side))."""
    p = k - 1
    i = jnp.arange(hin + p)
    j = jnp.arange(win + p)
    ch = jnp.clip(jnp.minimum(i + p, p + hin - 1) - jnp.maximum(i, p) + 1, 1, k)
    cw = jnp.clip(jnp.minimum(j + p, p + win - 1) - jnp.maximum(j, p) + 1, 1, k)
    mask = (ch[:, None] * cw[None, :]).astype(jnp.float32) / float(k * k)
    return 1.0 / mask                                     # never zero (min 1/k^2)


# --------------------------------------------------------------------------- #
# Forward wrapper (NCHW in / NCHW out, like the PyTorch module).
# --------------------------------------------------------------------------- #

def simplenet_forward(params, x_nchw):
    n, _, h, w = x_nchw.shape
    k = 7
    ho, wo = h - k + 1, w - k + 1                         # latent spatial
    hf, wf = ho + k - 1, wo + k - 1                       # final spatial (== h, w)

    # im2col for the 1-channel decoder input (tiny: k*k shifted copies of a
    # few-KB image), built directly in the (N, ho, wo, taps) order the kernel
    # wants; bf16 for full-rate MXU input with f32 accumulation.
    xs = x_nchw[:, 0, :, :].astype(jnp.float32)
    cols = [xs[:, kh:kh + ho, kw:kw + wo] for kh in range(k) for kw in range(k)]
    patches = jnp.stack(cols, axis=-1).astype(jnp.bfloat16)          # (N,ho,wo,49)

    w_dec = params["decoder_w"].reshape(k * k, 128).astype(jnp.bfloat16)  # (49,128)
    w_pc = params["pconv_w"].reshape(k * k, 128).astype(jnp.float32)      # (49,128)
    inv_mask = _inv_partial_mask(ho, wo, k)                               # (hf,wf)

    kern = functools.partial(_simplenet_kernel, k=k, ho=ho, wo=wo)
    latent, out = pl.pallas_call(
        kern,
        out_shape=(jax.ShapeDtypeStruct((n, ho, wo, 128), jnp.float32),
                   jax.ShapeDtypeStruct((n, hf, wf), jnp.float32)),
        grid=(n,),
        in_specs=[
            pl.BlockSpec((1, ho, wo, k * k), lambda b: (b, 0, 0, 0)),
            pl.BlockSpec((k * k, 128), lambda b: (0, 0)),
            pl.BlockSpec((k * k, 128), lambda b: (0, 0)),
            pl.BlockSpec((hf, wf), lambda b: (0, 0)),
        ],
        out_specs=(
            pl.BlockSpec((1, ho, wo, 128), lambda b: (b, 0, 0, 0)),
            pl.BlockSpec((1, hf, wf), lambda b: (b, 0, 0)),
        ),
        scratch_shapes=[pltpu.VMEM((hf, wf, 128), jnp.float32)],
        compiler_params=pltpu.CompilerParams(
            dimension_semantics=("parallel",)),   # batch splits across 2 TCs on v7x
    )(patches, w_dec, w_pc, inv_mask)

    out_nchw = out[:, None, :, :]                          # (N,1,H,W)  == x/mask
    latent_nchw = jnp.transpose(latent, (0, 3, 1, 2))      # (N,128,ho,wo) == latent
    return out_nchw, latent_nchw


# --------------------------------------------------------------------------- #
# Parameter init (weights stored as (KH, KW, Cin, Cout)).
# --------------------------------------------------------------------------- #

def init_params(key):
    k_dec, k_pc = jax.random.split(key)
    decoder_w = 0.05 * jax.random.normal(k_dec, (7, 7, 1, 128), jnp.float32)
    # weight_norm(dim=0) with weight_g frozen to ones and a single output
    # channel -> effective weight w = v / ||v|| (Frobenius norm over all of v).
    v = jax.random.normal(k_pc, (7, 7, 128, 1), jnp.float32)
    pconv_w = v / jnp.sqrt(jnp.sum(v * v))
    return {"decoder_w": decoder_w, "pconv_w": pconv_w}


# --------------------------------------------------------------------------- #
# Pure-XLA f32 reference for correctness checking.
# --------------------------------------------------------------------------- #

def reference_forward(params, x_nchw):
    k = 7
    dn = ("NCHW", "OIHW", "NCHW")
    w_dec = jnp.transpose(params["decoder_w"], (3, 2, 0, 1))       # (128,1,7,7)
    w_pc = jnp.transpose(params["pconv_w"], (3, 2, 0, 1))          # (1,128,7,7)
    lat = lax.conv_general_dilated(x_nchw, w_dec, (1, 1), "VALID",
                                   dimension_numbers=dn)
    conv = lax.conv_general_dilated(lat, w_pc, (1, 1),
                                    [(k - 1, k - 1), (k - 1, k - 1)],
                                    dimension_numbers=dn)
    n, _, ho, wo = lat.shape
    ones = jnp.ones((n, 1, ho, wo), jnp.float32)
    mask = lax.reduce_window(ones, 0.0, lax.add, (1, 1, k, k), (1, 1, 1, 1),
                             [(0, 0), (0, 0), (k - 1, k - 1), (k - 1, k - 1)])
    mask = mask / float(k * k)
    return conv / mask, lat


if __name__ == "__main__":
    key = jax.random.PRNGKey(0)
    pkey, xkey = jax.random.split(key)

    params = init_params(pkey)
    x = jax.random.normal(xkey, (2, 1, 16, 16), jnp.float32)   # NCHW, Cin=1 like PyTorch

    fwd = jax.jit(simplenet_forward)
    out, latent = fwd(params, x)
    jax.block_until_ready((out, latent))

    assert out.shape == (2, 1, 16, 16), out.shape
    assert latent.shape == (2, 128, 10, 10), latent.shape
    assert bool(jnp.all(jnp.isfinite(out))) and bool(jnp.all(jnp.isfinite(latent)))

    # Correctness vs pure-XLA f32 reference (loose tol: decoder matmul runs
    # with bf16 MXU inputs, f32 accumulate).
    ref_out, ref_lat = jax.jit(reference_forward)(params, x)
    jax.block_until_ready((ref_out, ref_lat))
    assert bool(jnp.allclose(latent, ref_lat, rtol=5e-2, atol=5e-2))
    assert bool(jnp.allclose(out, ref_out, rtol=5e-2, atol=5e-2))

    print("KERNEL_OK")
</pallas_src>

<mosaic_0001>
module attributes {stable_mosaic.version = 11 : i64} {
  func.func @_simplenet_kernel(%arg0: i32, %arg1: memref<1x10x10x49xbf16, #tpu.memory_space<vmem>>, %arg2: memref<49x128xbf16, #tpu.memory_space<vmem>>, %arg3: memref<49x128xf32, #tpu.memory_space<vmem>>, %arg4: memref<16x16xf32, #tpu.memory_space<vmem>>, %arg5: memref<1x10x10x128xf32, #tpu.memory_space<vmem>>, %arg6: memref<1x16x16xf32, #tpu.memory_space<vmem>>, %arg7: memref<16x16x128xf32, #tpu.memory_space<vmem>>) attributes {dimension_semantics = [#tpu.dimension_semantics<parallel>], iteration_bounds = array<i64: 2>, scalar_prefetch = 0 : i64, scratch_operands = 1 : i64, tpu.core_type = #tpu.core_type<tc>, window_params = [{transform_indices = @transform_0, window_bounds = array<i64: 1, 10, 10, 49>}, {pipeline_mode = #tpu.pipeline_mode<synchronous>, transform_indices = @transform_1, window_bounds = array<i64: 49, 128>}, {pipeline_mode = #tpu.pipeline_mode<synchronous>, transform_indices = @transform_2, window_bounds = array<i64: 49, 128>}, {pipeline_mode = #tpu.pipeline_mode<synchronous>, transform_indices = @transform_3, window_bounds = array<i64: 16, 16>}, {transform_indices = @transform_4, window_bounds = array<i64: 1, 10, 10, 128>}, {transform_indices = @transform_5, window_bounds = array<i64: 1, 16, 16>}]} {
    %c0 = arith.constant 0 : index
    %c0_0 = arith.constant 0 : index
    %0 = vector.load %arg2[%c0, %c0_0] : memref<49x128xbf16, #tpu.memory_space<vmem>>, vector<49x128xbf16>
    %c0_1 = arith.constant 0 : index
    %c0_2 = arith.constant 0 : index
    %c0_3 = arith.constant 0 : index
    %c0_4 = arith.constant 0 : index
    %1 = vector.load %arg1[%c0_1, %c0_2, %c0_3, %c0_4] : memref<1x10x10x49xbf16, #tpu.memory_space<vmem>>, vector<1x1x10x49xbf16>
    %2 = vector.shape_cast %1 : vector<1x1x10x49xbf16> to vector<10x49xbf16>
    %cst = arith.constant dense<0.000000e+00> : vector<10x128xf32>
    %3 = tpu.matmul %2, %0, %cst {dimension_numbers = #tpu.dot_dimension_numbers<[1], [0], [0], [1], [0, 0, 1, 1], [], []>} : vector<10x49xbf16>, vector<49x128xbf16>, vector<10x128xf32> -> vector<10x128xf32>
    %c0_5 = arith.constant 0 : index
    %c0_6 = arith.constant 0 : index
    %c0_7 = arith.constant 0 : index
    %c0_8 = arith.constant 0 : index
    %4 = vector.load %arg5[%c0_5, %c0_6, %c0_7, %c0_8] : memref<1x10x10x128xf32, #tpu.memory_space<vmem>>, vector<1x1x10x128xf32>
    %5 = vector.shape_cast %4 : vector<1x1x10x128xf32> to vector<10x128xf32>
    %6 = vector.shape_cast %3 : vector<10x128xf32> to vector<1x1x10x128xf32>
    tpu.vector_store %arg5[%c0_5, %c0_6, %c0_7, %c0_8], %6 {strides = array<i32>} : memref<1x10x10x128xf32, #tpu.memory_space<vmem>>, vector<1x1x10x128xf32>,
    %c0_9 = arith.constant 0 : index
    %c1 = arith.constant 1 : index
    %c0_10 = arith.constant 0 : index
    %c0_11 = arith.constant 0 : index
    %7 = vector.load %arg1[%c0_9, %c1, %c0_10, %c0_11] : memref<1x10x10x49xbf16, #tpu.memory_space<vmem>>, vector<1x1x10x49xbf16>
    %8 = vector.shape_cast %7 : vector<1x1x10x49xbf16> to vector<10x49xbf16>
    %cst_12 = arith.constant dense<0.000000e+00> : vector<10x128xf32>
    %9 = tpu.matmul %8, %0, %cst_12 {dimension_numbers = #tpu.dot_dimension_numbers<[1], [0], [0], [1], [0, 0, 1, 1], [], []>} : vector<10x49xbf16>, vector<49x128xbf16>, vector<10x128xf32> -> vector<10x128xf32>
    %c0_13 = arith.constant 0 : index
    %c1_14 = arith.constant 1 : index
    %c0_15 = arith.constant 0 : index
    %c0_16 = arith.constant 0 : index
    %10 = vector.load %arg5[%c0_13, %c1_14, %c0_15, %c0_16] : memref<1x10x10x128xf32, #tpu.memory_space<vmem>>, vector<1x1x10x128xf32>
    %11 = vector.shape_cast %10 : vector<1x1x10x128xf32> to vector<10x128xf32>
    %12 = vector.shape_cast %9 : vector<10x128xf32> to vector<1x1x10x128xf32>
    tpu.vector_store %arg5[%c0_13, %c1_14, %c0_15, %c0_16], %12 {strides = array<i32>} : memref<1x10x10x128xf32, #tpu.memory_space<vmem>>, vector<1x1x10x128xf32>,
    %c0_17 = arith.constant 0 : index
    %c2 = arith.constant 2 : index
    %c0_18 = arith.constant 0 : index
    %c0_19 = arith.constant 0 : index
    %13 = vector.load %arg1[%c0_17, %c2, %c0_18, %c0_19] : memref<1x10x10x49xbf16, #tpu.memory_space<vmem>>, vector<1x1x10x49xbf16>
    %14 = vector.shape_cast %13 : vector<1x1x10x49xbf16> to vector<10x49xbf16>
    %cst_20 = arith.constant dense<0.000000e+00> : vector<10x128xf32>
    %15 = tpu.matmul %14, %0, %cst_20 {dimension_numbers = #tpu.dot_dimension_numbers<[1], [0], [0], [1], [0, 0, 1, 1], [], []>} : vector<10x49xbf16>, vector<49x128xbf16>, vector<10x128xf32> -> vector<10x128xf32>
    %c0_21 = arith.constant 0 : index
    %c2_22 = arith.constant 2 : index
    %c0_23 = arith.constant 0 : index
    %c0_24 = arith.constant 0 : index
    %16 = vector.load %arg5[%c0_21, %c2_22, %c0_23, %c0_24] : memref<1x10x10x128xf32, #tpu.memory_space<vmem>>, vector<1x1x10x128xf32>
    %17 = vector.shape_cast %16 : vector<1x1x10x128xf32> to vector<10x128xf32>
    %18 = vector.shape_cast %15 : vector<10x128xf32> to vector<1x1x10x128xf32>
    tpu.vector_store %arg5[%c0_21, %c2_22, %c0_23, %c0_24], %18 {strides = array<i32>} : memref<1x10x10x128xf32, #tpu.memory_space<vmem>>, vector<1x1x10x128xf32>,
    %c0_25 = arith.constant 0 : index
    %c3 = arith.constant 3 : index
    %c0_26 = arith.constant 0 : index
    %c0_27 = arith.constant 0 : index
    %19 = vector.load %arg1[%c0_25, %c3, %c0_26, %c0_27] : memref<1x10x10x49xbf16, #tpu.memory_space<vmem>>, vector<1x1x10x49xbf16>
    %20 = vector.shape_cast %19 : vector<1x1x10x49xbf16> to vector<10x49xbf16>
    %cst_28 = arith.constant dense<0.000000e+00> : vector<10x128xf32>
    %21 = tpu.matmul %20, %0, %cst_28 {dimension_numbers = #tpu.dot_dimension_numbers<[1], [0], [0], [1], [0, 0, 1, 1], [], []>} : vector<10x49xbf16>, vector<49x128xbf16>, vector<10x128xf32> -> vector<10x128xf32>
    %c0_29 = arith.constant 0 : index
    %c3_30 = arith.constant 3 : index
    %c0_31 = arith.constant 0 : index
    %c0_32 = arith.constant 0 : index
    %22 = vector.load %arg5[%c0_29, %c3_30, %c0_31, %c0_32] : memref<1x10x10x128xf32, #tpu.memory_space<vmem>>, vector<1x1x10x128xf32>
    %23 = vector.shape_cast %22 : vector<1x1x10x128xf32> to vector<10x128xf32>
    %24 = vector.shape_cast %21 : vector<10x128xf32> to vector<1x1x10x128xf32>
    tpu.vector_store %arg5[%c0_29, %c3_30, %c0_31, %c0_32], %24 {strides = array<i32>} : memref<1x10x10x128xf32, #tpu.memory_space<vmem>>, vector<1x1x10x128xf32>,
    %c0_33 = arith.constant 0 : index
    %c4 = arith.constant 4 : index
    %c0_34 = arith.constant 0 : index
    %c0_35 = arith.constant 0 : index
    %25 = vector.load %arg1[%c0_33, %c4, %c0_34, %c0_35] : memref<1x10x10x49xbf16, #tpu.memory_space<vmem>>, vector<1x1x10x49xbf16>
    %26 = vector.shape_cast %25 : vector<1x1x10x49xbf16> to vector<10x49xbf16>
    %cst_36 = arith.constant dense<0.000000e+00> : vector<10x128xf32>
    %27 = tpu.matmul %26, %0, %cst_36 {dimension_numbers = #tpu.dot_dimension_numbers<[1], [0], [0], [1], [0, 0, 1, 1], [], []>} : vector<10x49xbf16>, vector<49x128xbf16>, vector<10x128xf32> -> vector<10x128xf32>
    %c0_37 = arith.constant 0 : index
    %c4_38 = arith.constant 4 : index
    %c0_39 = arith.constant 0 : index
    %c0_40 = arith.constant 0 : index
    %28 = vector.load %arg5[%c0_37, %c4_38, %c0_39, %c0_40] : memref<1x10x10x128xf32, #tpu.memory_space<vmem>>, vector<1x1x10x128xf32>
    %29 = vector.shape_cast %28 : vector<1x1x10x128xf32> to vector<10x128xf32>
    %30 = vector.shape_cast %27 : vector<10x128xf32> to vector<1x1x10x128xf32>
    tpu.vector_store %arg5[%c0_37, %c4_38, %c0_39, %c0_40], %30 {strides = array<i32>} : memref<1x10x10x128xf32, #tpu.memory_space<vmem>>, vector<1x1x10x128xf32>,
    %c0_41 = arith.constant 0 : index
    %c5 = arith.constant 5 : index
    %c0_42 = arith.constant 0 : index
    %c0_43 = arith.constant 0 : index
    %31 = vector.load %arg1[%c0_41, %c5, %c0_42, %c0_43] : memref<1x10x10x49xbf16, #tpu.memory_space<vmem>>, vector<1x1x10x49xbf16>
    %32 = vector.shape_cast %31 : vector<1x1x10x49xbf16> to vector<10x49xbf16>
    %cst_44 = arith.constant dense<0.000000e+00> : vector<10x128xf32>
    %33 = tpu.matmul %32, %0, %cst_44 {dimension_numbers = #tpu.dot_dimension_numbers<[1], [0], [0], [1], [0, 0, 1, 1], [], []>} : vector<10x49xbf16>, vector<49x128xbf16>, vector<10x128xf32> -> vector<10x128xf32>
    %c0_45 = arith.constant 0 : index
    %c5_46 = arith.constant 5 : index
    %c0_47 = arith.constant 0 : index
    %c0_48 = arith.constant 0 : index
    %34 = vector.load %arg5[%c0_45, %c5_46, %c0_47, %c0_48] : memref<1x10x10x128xf32, #tpu.memory_space<vmem>>, vector<1x1x10x128xf32>
    %35 = vector.shape_cast %34 : vector<1x1x10x128xf32> to vector<10x128xf32>
    %36 = vector.shape_cast %33 : vector<10x128xf32> to vector<1x1x10x128xf32>
    tpu.vector_store %arg5[%c0_45, %c5_46, %c0_47, %c0_48], %36 {strides = array<i32>} : memref<1x10x10x128xf32, #tpu.memory_space<vmem>>, vector<1x1x10x128xf32>,
    %c0_49 = arith.constant 0 : index
    %c6 = arith.constant 6 : index
    %c0_50 = arith.constant 0 : index
    %c0_51 = arith.constant 0 : index
    %37 = vector.load %arg1[%c0_49, %c6, %c0_50, %c0_51] : memref<1x10x10x49xbf16, #tpu.memory_space<vmem>>, vector<1x1x10x49xbf16>
    %38 = vector.shape_cast %37 : vector<1x1x10x49xbf16> to vector<10x49xbf16>
    %cst_52 = arith.constant dense<0.000000e+00> : vector<10x128xf32>
    %39 = tpu.matmul %38, %0, %cst_52 {dimension_numbers = #tpu.dot_dimension_numbers<[1], [0], [0], [1], [0, 0, 1, 1], [], []>} : vector<10x49xbf16>, vector<49x128xbf16>, vector<10x128xf32> -> vector<10x128xf32>
    %c0_53 = arith.constant 0 : index
    %c6_54 = arith.constant 6 : index
    %c0_55 = arith.constant 0 : index
    %c0_56 = arith.constant 0 : index
    %40 = vector.load %arg5[%c0_53, %c6_54, %c0_55, %c0_56] : memref<1x10x10x128xf32, #tpu.memory_space<vmem>>, vector<1x1x10x128xf32>
    %41 = vector.shape_cast %40 : vector<1x1x10x128xf32> to vector<10x128xf32>
    %42 = vector.shape_cast %39 : vector<10x128xf32> to vector<1x1x10x128xf32>
    tpu.vector_store %arg5[%c0_53, %c6_54, %c0_55, %c0_56], %42 {strides = array<i32>} : memref<1x10x10x128xf32, #tpu.memory_space<vmem>>, vector<1x1x10x128xf32>,
    %c0_57 = arith.constant 0 : index
    %c7 = arith.constant 7 : index
    %c0_58 = arith.constant 0 : index
    %c0_59 = arith.constant 0 : index
    %43 = vector.load %arg1[%c0_57, %c7, %c0_58, %c0_59] : memref<1x10x10x49xbf16, #tpu.memory_space<vmem>>, vector<1x1x10x49xbf16>
    %44 = vector.shape_cast %43 : vector<1x1x10x49xbf16> to vector<10x49xbf16>
    %cst_60 = arith.constant dense<0.000000e+00> : vector<10x128xf32>
    %45 = tpu.matmul %44, %0, %cst_60 {dimension_numbers = #tpu.dot_dimension_numbers<[1], [0], [0], [1], [0, 0, 1, 1], [], []>} : vector<10x49xbf16>, vector<49x128xbf16>, vector<10x128xf32> -> vector<10x128xf32>
    %c0_61 = arith.constant 0 : index
    %c7_62 = arith.constant 7 : index
    %c0_63 = arith.constant 0 : index
    %c0_64 = arith.constant 0 : index
    %46 = vector.load %arg5[%c0_61, %c7_62, %c0_63, %c0_64] : memref<1x10x10x128xf32, #tpu.memory_space<vmem>>, vector<1x1x10x128xf32>
    %47 = vector.shape_cast %46 : vector<1x1x10x128xf32> to vector<10x128xf32>
    %48 = vector.shape_cast %45 : vector<10x128xf32> to vector<1x1x10x128xf32>
    tpu.vector_store %arg5[%c0_61, %c7_62, %c0_63, %c0_64], %48 {strides = array<i32>} : memref<1x10x10x128xf32, #tpu.memory_space<vmem>>, vector<1x1x10x128xf32>,
    %c0_65 = arith.constant 0 : index
    %c8 = arith.constant 8 : index
    %c0_66 = arith.constant 0 : index
    %c0_67 = arith.constant 0 : index
    %49 = vector.load %arg1[%c0_65, %c8, %c0_66, %c0_67] : memref<1x10x10x49xbf16, #tpu.memory_space<vmem>>, vector<1x1x10x49xbf16>
    %50 = vector.shape_cast %49 : vector<1x1x10x49xbf16> to vector<10x49xbf16>
    %cst_68 = arith.constant dense<0.000000e+00> : vector<10x128xf32>
    %51 = tpu.matmul %50, %0, %cst_68 {dimension_numbers = #tpu.dot_dimension_numbers<[1], [0], [0], [1], [0, 0, 1, 1], [], []>} : vector<10x49xbf16>, vector<49x128xbf16>, vector<10x128xf32> -> vector<10x128xf32>
    %c0_69 = arith.constant 0 : index
    %c8_70 = arith.constant 8 : index
    %c0_71 = arith.constant 0 : index
    %c0_72 = arith.constant 0 : index
    %52 = vector.load %arg5[%c0_69, %c8_70, %c0_71, %c0_72] : memref<1x10x10x128xf32, #tpu.memory_space<vmem>>, vector<1x1x10x128xf32>
    %53 = vector.shape_cast %52 : vector<1x1x10x128xf32> to vector<10x128xf32>
    %54 = vector.shape_cast %51 : vector<10x128xf32> to vector<1x1x10x128xf32>
    tpu.vector_store %arg5[%c0_69, %c8_70, %c0_71, %c0_72], %54 {strides = array<i32>} : memref<1x10x10x128xf32, #tpu.memory_space<vmem>>, vector<1x1x10x128xf32>,
    %c0_73 = arith.constant 0 : index
    %c9 = arith.constant 9 : index
    %c0_74 = arith.constant 0 : index
    %c0_75 = arith.constant 0 : index
    %55 = vector.load %arg1[%c0_73, %c9, %c0_74, %c0_75] : memref<1x10x10x49xbf16, #tpu.memory_space<vmem>>, vector<1x1x10x49xbf16>
    %56 = vector.shape_cast %55 : vector<1x1x10x49xbf16> to vector<10x49xbf16>
    %cst_76 = arith.constant dense<0.000000e+00> : vector<10x128xf32>
    %57 = tpu.matmul %56, %0, %cst_76 {dimension_numbers = #tpu.dot_dimension_numbers<[1], [0], [0], [1], [0, 0, 1, 1], [], []>} : vector<10x49xbf16>, vector<49x128xbf16>, vector<10x128xf32> -> vector<10x128xf32>
    %c0_77 = arith.constant 0 : index
    %c9_78 = arith.constant 9 : index
    %c0_79 = arith.constant 0 : index
    %c0_80 = arith.constant 0 : index
    %58 = vector.load %arg5[%c0_77, %c9_78, %c0_79, %c0_80] : memref<1x10x10x128xf32, #tpu.memory_space<vmem>>, vector<1x1x10x128xf32>
    %59 = vector.shape_cast %58 : vector<1x1x10x128xf32> to vector<10x128xf32>
    %60 = vector.shape_cast %57 : vector<10x128xf32> to vector<1x1x10x128xf32>
    tpu.vector_store %arg5[%c0_77, %c9_78, %c0_79, %c0_80], %60 {strides = array<i32>} : memref<1x10x10x128xf32, #tpu.memory_space<vmem>>, vector<1x1x10x128xf32>,
    %c0_81 = arith.constant 0 : index
    %c0_82 = arith.constant 0 : index
    %c0_83 = arith.constant 0 : index
    %c0_84 = arith.constant 0 : index
    %61 = vector.load %arg5[%c0_81, %c0_82, %c0_83, %c0_84] : memref<1x10x10x128xf32, #tpu.memory_space<vmem>>, vector<1x10x10x128xf32>
    %62 = vector.shape_cast %61 : vector<1x10x10x128xf32> to vector<10x10x128xf32>
    %c0_85 = arith.constant 0 : index
    %c0_86 = arith.constant 0 : index
    %63 = vector.load %arg3[%c0_85, %c0_86] : memref<49x128xf32, #tpu.memory_space<vmem>>, vector<49x128xf32>
    %cst_87 = arith.constant 0.000000e+00 : f32
    %64 = vector.broadcast %cst_87 : f32 to vector<16x16x128xf32>
    %c0_88 = arith.constant 0 : index
    %c0_89 = arith.constant 0 : index
    %c0_90 = arith.constant 0 : index
    %65 = vector.load %arg7[%c0_88, %c0_89, %c0_90] : memref<16x16x128xf32, #tpu.memory_space<vmem>>, vector<16x16x128xf32>
    tpu.vector_store %arg7[%c0_88, %c0_89, %c0_90], %64 {strides = array<i32>} : memref<16x16x128xf32, #tpu.memory_space<vmem>>, vector<16x16x128xf32>,
    %66 = vector.extract_strided_slice %63 {offsets = [0, 0], sizes = [1, 128], strides = [1, 1]} : vector<49x128xf32> to vector<1x128xf32>
    %c6_91 = arith.constant 6 : index
    %c6_92 = arith.constant 6 : index
    %c0_93 = arith.constant 0 : index
    %67 = vector.load %arg7[%c6_91, %c6_92, %c0_93] : memref<16x16x128xf32, #tpu.memory_space<vmem>>, vector<10x10x128xf32>
    %68 = vector.shape_cast %66 : vector<1x128xf32> to vector<1x1x128xf32>
    %69 = vector.broadcast %68 : vector<1x1x128xf32> to vector<10x10x128xf32>
    %70 = arith.mulf %62, %69 : vector<10x10x128xf32>
    %71 = arith.addf %67, %70 : vector<10x10x128xf32>
    %c6_94 = arith.constant 6 : index
    %c6_95 = arith.constant 6 : index
    %c0_96 = arith.constant 0 : index
    %72 = vector.load %arg7[%c6_94, %c6_95, %c0_96] : memref<16x16x128xf32, #tpu.memory_space<vmem>>, vector<10x10x128xf32>
    tpu.vector_store %arg7[%c6_94, %c6_95, %c0_96], %71 {strides = array<i32>} : memref<16x16x128xf32, #tpu.memory_space<vmem>>, vector<10x10x128xf32>,
    %73 = vector.extract_strided_slice %63 {offsets = [1, 0], sizes = [1, 128], strides = [1, 1]} : vector<49x128xf32> to vector<1x128xf32>
    %c6_97 = arith.constant 6 : index
    %c5_98 = arith.constant 5 : index
    %c0_99 = arith.constant 0 : index
    %74 = vector.load %arg7[%c6_97, %c5_98, %c0_99] : memref<16x16x128xf32, #tpu.memory_space<vmem>>, vector<10x10x128xf32>
    %75 = vector.shape_cast %73 : vector<1x128xf32> to vector<1x1x128xf32>
    %76 = vector.broadcast %75 : vector<1x1x128xf32> to vector<10x10x128xf32>
    %77 = arith.mulf %62, %76 : vector<10x10x128xf32>
    %78 = arith.addf %74, %77 : vector<10x10x128xf32>
    %c6_100 = arith.constant 6 : index
    %c5_101 = arith.constant 5 : index
    %c0_102 = arith.constant 0 : index
    %79 = vector.load %arg7[%c6_100, %c5_101, %c0_102] : memref<16x16x128xf32, #tpu.memory_space<vmem>>, vector<10x10x128xf32>
    tpu.vector_store %arg7[%c6_100, %c5_101, %c0_102], %78 {strides = array<i32>} : memref<16x16x128xf32, #tpu.memory_space<vmem>>, vector<10x10x128xf32>,
    %80 = vector.extract_strided_slice %63 {offsets = [2, 0], sizes = [1, 128], strides = [1, 1]} : vector<49x128xf32> to vector<1x128xf32>
    %c6_103 = arith.constant 6 : index
    %c4_104 = arith.constant 4 : index
    %c0_105 = arith.constant 0 : index
    %81 = vector.load %arg7[%c6_103, %c4_104, %c0_105] : memref<16x16x128xf32, #tpu.memory_space<vmem>>, vector<10x10x128xf32>
    %82 = vector.shape_cast %80 : vector<1x128xf32> to vector<1x1x128xf32>
    %83 = vector.broadcast %82 : vector<1x1x128xf32> to vector<10x10x128xf32>
    %84 = arith.mulf %62, %83 : vector<10x10x128xf32>
    %85 = arith.addf %81, %84 : vector<10x10x128xf32>
    %c6_106 = arith.constant 6 : index
    %c4_107 = arith.constant 4 : index
    %c0_108 = arith.constant 0 : index
    %86 = vector.load %arg7[%c6_106, %c4_107, %c0_108] : memref<16x16x128xf32, #tpu.memory_space<vmem>>, vector<10x10x128xf32>
    tpu.vector_store %arg7[%c6_106, %c4_107, %c0_108], %85 {strides = array<i32>} : memref<16x16x128xf32, #tpu.memory_space<vmem>>, vector<10x10x128xf32>,
    %87 = vector.extract_strided_slice %63 {offsets = [3, 0], sizes = [1, 128], strides = [1, 1]} : vector<49x128xf32> to vector<1x128xf32>
    %c6_109 = arith.constant 6 : index
    %c3_110 = arith.constant 3 : index
    %c0_111 = arith.constant 0 : index
    %88 = vector.load %arg7[%c6_109, %c3_110, %c0_111] : memref<16x16x128xf32, #tpu.memory_space<vmem>>, vector<10x10x128xf32>
    %89 = vector.shape_cast %87 : vector<1x128xf32> to vector<1x1x128xf32>
    %90 = vector.broadcast %89 : vector<1x1x128xf32> to vector<10x10x128xf32>
    %91 = arith.mulf %62, %90 : vector<10x10x128xf32>
    %92 = arith.addf %88, %91 : vector<10x10x128xf32>
    %c6_112 = arith.constant 6 : index
    %c3_113 = arith.constant 3 : index
    %c0_114 = arith.constant 0 : index
    %93 = vector.load %arg7[%c6_112, %c3_113, %c0_114] : memref<16x16x128xf32, #tpu.memory_space<vmem>>, vector<10x10x128xf32>
    tpu.vector_store %arg7[%c6_112, %c3_113, %c0_114], %92 {strides = array<i32>} : memref<16x16x128xf32, #tpu.memory_space<vmem>>, vector<10x10x128xf32>,
    %94 = vector.extract_strided_slice %63 {offsets = [4, 0], sizes = [1, 128], strides = [1, 1]} : vector<49x128xf32> to vector<1x128xf32>
    %c6_115 = arith.constant 6 : index
    %c2_116 = arith.constant 2 : index
    %c0_117 = arith.constant 0 : index
    %95 = vector.load %arg7[%c6_115, %c2_116, %c0_117] : memref<16x16x128xf32, #tpu.memory_space<vmem>>, vector<10x10x128xf32>
    %96 = vector.shape_cast %94 : vector<1x128xf32> to vector<1x1x128xf32>
    %97 = vector.broadcast %96 : vector<1x1x128xf32> to vector<10x10x128xf32>
    %98 = arith.mulf %62, %97 : vector<10x10x128xf32>
    %99 = arith.addf %95, %98 : vector<10x10x128xf32>
    %c6_118 = arith.constant 6 : index
    %c2_119 = arith.constant 2 : index
    %c0_120 = arith.constant 0 : index
    %100 = vector.load %arg7[%c6_118, %c2_119, %c0_120] : memref<16x16x128xf32, #tpu.memory_space<vmem>>, vector<10x10x128xf32>
    tpu.vector_store %arg7[%c6_118, %c2_119, %c0_120], %99 {strides = array<i32>} : memref<16x16x128xf32, #tpu.memory_space<vmem>>, vector<10x10x128xf32>,
    %101 = vector.extract_strided_slice %63 {offsets = [5, 0], sizes = [1, 128], strides = [1, 1]} : vector<49x128xf32> to vector<1x128xf32>
    %c6_121 = arith.constant 6 : index
    %c1_122 = arith.constant 1 : index
    %c0_123 = arith.constant 0 : index
    %102 = vector.load %arg7[%c6_121, %c1_122, %c0_123] : memref<16x16x128xf32, #tpu.memory_space<vmem>>, vector<10x10x128xf32>
    %103 = vector.shape_cast %101 : vector<1x128xf32> to vector<1x1x128xf32>
    %104 = vector.broadcast %103 : vector<1x1x128xf32> to vector<10x10x128xf32>
    %105 = arith.mulf %62, %104 : vector<10x10x128xf32>
    %106 = arith.addf %102, %105 : vector<10x10x128xf32>
    %c6_124 = arith.constant 6 : index
    %c1_125 = arith.constant 1 : index
    %c0_126 = arith.constant 0 : index
    %107 = vector.load %arg7[%c6_124, %c1_125, %c0_126] : memref<16x16x128xf32, #tpu.memory_space<vmem>>, vector<10x10x128xf32>
    tpu.vector_store %arg7[%c6_124, %c1_125, %c0_126], %106 {strides = array<i32>} : memref<16x16x128xf32, #tpu.memory_space<vmem>>, vector<10x10x128xf32>,
    %108 = vector.extract_strided_slice %63 {offsets = [6, 0], sizes = [1, 128], strides = [1, 1]} : vector<49x128xf32> to vector<1x128xf32>
    %c6_127 = arith.constant 6 : index
    %c0_128 = arith.constant 0 : index
    %c0_129 = arith.constant 0 : index
    %109 = vector.load %arg7[%c6_127, %c0_128, %c0_129] : memref<16x16x128xf32, #tpu.memory_space<vmem>>, vector<10x10x128xf32>
    %110 = vector.shape_cast %108 : vector<1x128xf32> to vector<1x1x128xf32>
    %111 = vector.broadcast %110 : vector<1x1x128xf32> to vector<10x10x128xf32>
    %112 = arith.mulf %62, %111 : vector<10x10x128xf32>
    %113 = arith.addf %109, %112 : vector<10x10x128xf32>
    %c6_130 = arith.constant 6 : index
    %c0_131 = arith.constant 0 : index
    %c0_132 = arith.constant 0 : index
    %114 = vector.load %arg7[%c6_130, %c0_131, %c0_132] : memref<16x16x128xf32, #tpu.memory_space<vmem>>, vector<10x10x128xf32>
    tpu.vector_store %arg7[%c6_130, %c0_131, %c0_132], %113 {strides = array<i32>} : memref<16x16x128xf32, #tpu.memory_space<vmem>>, vector<10x10x128xf32>,
    %115 = vector.extract_strided_slice %63 {offsets = [7, 0], sizes = [1, 128], strides = [1, 1]} : vector<49x128xf32> to vector<1x128xf32>
    %c5_133 = arith.constant 5 : index
    %c6_134 = arith.constant 6 : index
    %c0_135 = arith.constant 0 : index
    %116 = vector.load %arg7[%c5_133, %c6_134, %c0_135] : memref<16x16x128xf32, #tpu.memory_space<vmem>>, vector<10x10x128xf32>
    %117 = vector.shape_cast %115 : vector<1x128xf32> to vector<1x1x128xf32>
    %118 = vector.broadcast %117 : vector<1x1x128xf32> to vector<10x10x128xf32>
    %119 = arith.mulf %62, %118 : vector<10x10x128xf32>
    %120 = arith.addf %116, %119 : vector<10x10x128xf32>
    %c5_136 = arith.constant 5 : index
    %c6_137 = arith.constant 6 : index
    %c0_138 = arith.constant 0 : index
    %121 = vector.load %arg7[%c5_136, %c6_137, %c0_138] : memref<16x16x128xf32, #tpu.memory_space<vmem>>, vector<10x10x128xf32>
    tpu.vector_store %arg7[%c5_136, %c6_137, %c0_138], %120 {strides = array<i32>} : memref<16x16x128xf32, #tpu.memory_space<vmem>>, vector<10x10x128xf32>,
    %122 = vector.extract_strided_slice %63 {offsets = [8, 0], sizes = [1, 128], strides = [1, 1]} : vector<49x128xf32> to vector<1x128xf32>
    %c5_139 = arith.constant 5 : index
    %c5_140 = arith.constant 5 : index
    %c0_141 = arith.constant 0 : index
    %123 = vector.load %arg7[%c5_139, %c5_140, %c0_141] : memref<16x16x128xf32, #tpu.memory_space<vmem>>, vector<10x10x128xf32>
    %124 = vector.shape_cast %122 : vector<1x128xf32> to vector<1x1x128xf32>
    %125 = vector.broadcast %124 : vector<1x1x128xf32> to vector<10x10x128xf32>
    %126 = arith.mulf %62, %125 : vector<10x10x128xf32>
    %127 = arith.addf %123, %126 : vector<10x10x128xf32>
    %c5_142 = arith.constant 5 : index
    %c5_143 = arith.constant 5 : index
    %c0_144 = arith.constant 0 : index
    %128 = vector.load %arg7[%c5_142, %c5_143, %c0_144] : memref<16x16x128xf32, #tpu.memory_space<vmem>>, vector<10x10x128xf32>
    tpu.vector_store %arg7[%c5_142, %c5_143, %c0_144], %127 {strides = array<i32>} : memref<16x16x128xf32, #tpu.memory_space<vmem>>, vector<10x10x128xf32>,
    %129 = vector.extract_strided_slice %63 {offsets = [9, 0], sizes = [1, 128], strides = [1, 1]} : vector<49x128xf32> to vector<1x128xf32>
    %c5_145 = arith.constant 5 : index
    %c4_146 = arith.constant 4 : index
    %c0_147 = arith.constant 0 : index
    %130 = vector.load %arg7[%c5_145, %c4_146, %c0_147] : memref<16x16x128xf32, #tpu.memory_space<vmem>>, vector<10x10x128xf32>
    %131 = vector.shape_cast %129 : vector<1x128xf32> to vector<1x1x128xf32>
    %132 = vector.broadcast %131 : vector<1x1x128xf32> to vector<10x10x128xf32>
    %133 = arith.mulf %62, %132 : vector<10x10x128xf32>
    %134 = arith.addf %130, %133 : vector<10x10x128xf32>
    %c5_148 = arith.constant 5 : index
    %c4_149 = arith.constant 4 : index
    %c0_150 = arith.constant 0 : index
    %135 = vector.load %arg7[%c5_148, %c4_149, %c0_150] : memref<16x16x128xf32, #tpu.memory_space<vmem>>, vector<10x10x128xf32>
    tpu.vector_store %arg7[%c5_148, %c4_149, %c0_150], %134 {strides = array<i32>} : memref<16x16x128xf32, #tpu.memory_space<vmem>>, vector<10x10x128xf32>,
    %136 = vector.extract_strided_slice %63 {offsets = [10, 0], sizes = [1, 128], strides = [1, 1]} : vector<49x128xf32> to vector<1x128xf32>
    %c5_151 = arith.constant 5 : index
    %c3_152 = arith.constant 3 : index
    %c0_153 = arith.constant 0 : index
    %137 = vector.load %arg7[%c5_151, %c3_152, %c0_153] : memref<16x16x128xf32, #tpu.memory_space<vmem>>, vector<10x10x128xf32>
    %138 = vector.shape_cast %136 : vector<1x128xf32> to vector<1x1x128xf32>
    %139 = vector.broadcast %138 : vector<1x1x128xf32> to vector<10x10x128xf32>
    %140 = arith.mulf %62, %139 : vector<10x10x128xf32>
    %141 = arith.addf %137, %140 : vector<10x10x128xf32>
    %c5_154 = arith.constant 5 : index
    %c3_155 = arith.constant 3 : index
    %c0_156 = arith.constant 0 : index
    %142 = vector.load %arg7[%c5_154, %c3_155, %c0_156] : memref<16x16x128xf32, #tpu.memory_space<vmem>>, vector<10x10x128xf32>
    tpu.vector_store %arg7[%c5_154, %c3_155, %c0_156], %141 {strides = array<i32>} : memref<16x16x128xf32, #tpu.memory_space<vmem>>, vector<10x10x128xf32>,
    %143 = vector.extract_strided_slice %63 {offsets = [11, 0], sizes = [1, 128], strides = [1, 1]} : vector<49x128xf32> to vector<1x128xf32>
    %c5_157 = arith.constant 5 : index
    %c2_158 = arith.constant 2 : index
    %c0_159 = arith.constant 0 : index
    %144 = vector.load %arg7[%c5_157, %c2_158, %c0_159] : memref<16x16x128xf32, #tpu.memory_space<vmem>>, vector<10x10x128xf32>
    %145 = vector.shape_cast %143 : vector<1x128xf32> to vector<1x1x128xf32>
    %146 = vector.broadcast %145 : vector<1x1x128xf32> to vector<10x10x128xf32>
    %147 = arith.mulf %62, %146 : vector<10x10x128xf32>
    %148 = arith.addf %144, %147 : vector<10x10x128xf32>
    %c5_160 = arith.constant 5 : index
    %c2_161 = arith.constant 2 : index
    %c0_162 = arith.constant 0 : index
    %149 = vector.load %arg7[%c5_160, %c2_161, %c0_162] : memref<16x16x128xf32, #tpu.memory_space<vmem>>, vector<10x10x128xf32>
    tpu.vector_store %arg7[%c5_160, %c2_161, %c0_162], %148 {strides = array<i32>} : memref<16x16x128xf32, #tpu.memory_space<vmem>>, vector<10x10x128xf32>,
    %150 = vector.extract_strided_slice %63 {offsets = [12, 0], sizes = [1, 128], strides = [1, 1]} : vector<49x128xf32> to vector<1x128xf32>
    %c5_163 = arith.constant 5 : index
    %c1_164 = arith.constant 1 : index
    %c0_165 = arith.constant 0 : index
    %151 = vector.load %arg7[%c5_163, %c1_164, %c0_165] : memref<16x16x128xf32, #tpu.memory_space<vmem>>, vector<10x10x128xf32>
    %152 = vector.shape_cast %150 : vector<1x128xf32> to vector<1x1x128xf32>
    %153 = vector.broadcast %152 : vector<1x1x128xf32> to vector<10x10x128xf32>
    %154 = arith.mulf %62, %153 : vector<10x10x128xf32>
    %155 = arith.addf %151, %154 : vector<10x10x128xf32>
    %c5_166 = arith.constant 5 : index
    %c1_167 = arith.constant 1 : index
    %c0_168 = arith.constant 0 : index
    %156 = vector.load %arg7[%c5_166, %c1_167, %c0_168] : memref<16x16x128xf32, #tpu.memory_space<vmem>>, vector<10x10x128xf32>
    tpu.vector_store %arg7[%c5_166, %c1_167, %c0_168], %155 {strides = array<i32>} : memref<16x16x128xf32, #tpu.memory_space<vmem>>, vector<10x10x128xf32>,
    %157 = vector.extract_strided_slice %63 {offsets = [13, 0], sizes = [1, 128], strides = [1, 1]} : vector<49x128xf32> to vector<1x128xf32>
    %c5_169 = arith.constant 5 : index
    %c0_170 = arith.constant 0 : index
    %c0_171 = arith.constant 0 : index
    %158 = vector.load %arg7[%c5_169, %c0_170, %c0_171] : memref<16x16x128xf32, #tpu.memory_space<vmem>>, vector<10x10x128xf32>
    %159 = vector.shape_cast %157 : vector<1x128xf32> to vector<1x1x128xf32>
    %160 = vector.broadcast %159 : vector<1x1x128xf32> to vector<10x10x128xf32>
    %161 = arith.mulf %62, %160 : vector<10x10x128xf32>
    %162 = arith.addf %158, %161 : vector<10x10x128xf32>
    %c5_172 = arith.constant 5 : index
    %c0_173 = arith.constant 0 : index
    %c0_174 = arith.constant 0 : index
    %163 = vector.load %arg7[%c5_172, %c0_173, %c0_174] : memref<16x16x128xf32, #tpu.memory_space<vmem>>, vector<10x10x128xf32>
    tpu.vector_store %arg7[%c5_172, %c0_173, %c0_174], %162 {strides = array<i32>} : memref<16x16x128xf32, #tpu.memory_space<vmem>>, vector<10x10x128xf32>,
    %164 = vector.extract_strided_slice %63 {offsets = [14, 0], sizes = [1, 128], strides = [1, 1]} : vector<49x128xf32> to vector<1x128xf32>
    %c4_175 = arith.constant 4 : index
    %c6_176 = arith.constant 6 : index
    %c0_177 = arith.constant 0 : index
    %165 = vector.load %arg7[%c4_175, %c6_176, %c0_177] : memref<16x16x128xf32, #tpu.memory_space<vmem>>, vector<10x10x128xf32>
    %166 = vector.shape_cast %164 : vector<1x128xf32> to vector<1x1x128xf32>
    %167 = vector.broadcast %166 : vector<1x1x128xf32> to vector<10x10x128xf32>
    %168 = arith.mulf %62, %167 : vector<10x10x128xf32>
    %169 = arith.addf %165, %168 : vector<10x10x128xf32>
    %c4_178 = arith.constant 4 : index
    %c6_179 = arith.constant 6 : index
    %c0_180 = arith.constant 0 : index
    %170 = vector.load %arg7[%c4_178, %c6_179, %c0_180] : memref<16x16x128xf32, #tpu.memory_space<vmem>>, vector<10x10x128xf32>
    tpu.vector_store %arg7[%c4_178, %c6_179, %c0_180], %169 {strides = array<i32>} : memref<16x16x128xf32, #tpu.memory_space<vmem>>, vector<10x10x128xf32>,
    %171 = vector.extract_strided_slice %63 {offsets = [15, 0], sizes = [1, 128], strides = [1, 1]} : vector<49x128xf32> to vector<1x128xf32>
    %c4_181 = arith.constant 4 : index
    %c5_182 = arith.constant 5 : index
    %c0_183 = arith.constant 0 : index
    %172 = vector.load %arg7[%c4_181, %c5_182, %c0_183] : memref<16x16x128xf32, #tpu.memory_space<vmem>>, vector<10x10x128xf32>
    %173 = vector.shape_cast %171 : vector<1x128xf32> to vector<1x1x128xf32>
    %174 = vector.broadcast %173 : vector<1x1x128xf32> to vector<10x10x128xf32>
    %175 = arith.mulf %62, %174 : vector<10x10x128xf32>
    %176 = arith.addf %172, %175 : vector<10x10x128xf32>
    %c4_184 = arith.constant 4 : index
    %c5_185 = arith.constant 5 : index
    %c0_186 = arith.constant 0 : index
    %177 = vector.load %arg7[%c4_184, %c5_185, %c0_186] : memref<16x16x128xf32, #tpu.memory_space<vmem>>, vector<10x10x128xf32>
    tpu.vector_store %arg7[%c4_184, %c5_185, %c0_186], %176 {strides = array<i32>} : memref<16x16x128xf32, #tpu.memory_space<vmem>>, vector<10x10x128xf32>,
    %178 = vector.extract_strided_slice %63 {offsets = [16, 0], sizes = [1, 128], strides = [1, 1]} : vector<49x128xf32> to vector<1x128xf32>
    %c4_187 = arith.constant 4 : index
    %c4_188 = arith.constant 4 : index
    %c0_189 = arith.constant 0 : index
    %179 = vector.load %arg7[%c4_187, %c4_188, %c0_189] : memref<16x16x128xf32, #tpu.memory_space<vmem>>, vector<10x10x128xf32>
    %180 = vector.shape_cast %178 : vector<1x128xf32> to vector<1x1x128xf32>
    %181 = vector.broadcast %180 : vector<1x1x128xf32> to vector<10x10x128xf32>
    %182 = arith.mulf %62, %181 : vector<10x10x128xf32>
    %183 = arith.addf %179, %182 : vector<10x10x128xf32>
    %c4_190 = arith.constant 4 : index
    %c4_191 = arith.constant 4 : index
    %c0_192 = arith.constant 0 : index
    %184 = vector.load %arg7[%c4_190, %c4_191, %c0_192] : memref<16x16x128xf32, #tpu.memory_space<vmem>>, vector<10x10x128xf32>
    tpu.vector_store %arg7[%c4_190, %c4_191, %c0_192], %183 {strides = array<i32>} : memref<16x16x128xf32, #tpu.memory_space<vmem>>, vector<10x10x128xf32>,
    %185 = vector.extract_strided_slice %63 {offsets = [17, 0], sizes = [1, 128], strides = [1, 1]} : vector<49x128xf32> to vector<1x128xf32>
    %c4_193 = arith.constant 4 : index
    %c3_194 = arith.constant 3 : index
    %c0_195 = arith.constant 0 : index
    %186 = vector.load %arg7[%c4_193, %c3_194, %c0_195] : memref<16x16x128xf32, #tpu.memory_space<vmem>>, vector<10x10x128xf32>
    %187 = vector.shape_cast %185 : vector<1x128xf32> to vector<1x1x128xf32>
    %188 = vector.broadcast %187 : vector<1x1x128xf32> to vector<10x10x128xf32>
    %189 = arith.mulf %62, %188 : vector<10x10x128xf32>
    %190 = arith.addf %186, %189 : vector<10x10x128xf32>
    %c4_196 = arith.constant 4 : index
    %c3_197 = arith.constant 3 : index
    %c0_198 = arith.constant 0 : index
    %191 = vector.load %arg7[%c4_196, %c3_197, %c0_198] : memref<16x16x128xf32, #tpu.memory_space<vmem>>, vector<10x10x128xf32>
    tpu.vector_store %arg7[%c4_196, %c3_197, %c0_198], %190 {strides = array<i32>} : memref<16x16x128xf32, #tpu.memory_space<vmem>>, vector<10x10x128xf32>,
    %192 = vector.extract_strided_slice %63 {offsets = [18, 0], sizes = [1, 128], strides = [1, 1]} : vector<49x128xf32> to vector<1x128xf32>
    %c4_199 = arith.constant 4 : index
    %c2_200 = arith.constant 2 : index
    %c0_201 = arith.constant 0 : index
    %193 = vector.load %arg7[%c4_199, %c2_200, %c0_201] : memref<16x16x128xf32, #tpu.memory_space<vmem>>, vector<10x10x128xf32>
    %194 = vector.shape_cast %192 : vector<1x128xf32> to vector<1x1x128xf32>
    %195 = vector.broadcast %194 : vector<1x1x128xf32> to vector<10x10x128xf32>
    %196 = arith.mulf %62, %195 : vector<10x10x128xf32>
    %197 = arith.addf %193, %196 : vector<10x10x128xf32>
    %c4_202 = arith.constant 4 : index
    %c2_203 = arith.constant 2 : index
    %c0_204 = arith.constant 0 : index
    %198 = vector.load %arg7[%c4_202, %c2_203, %c0_204] : memref<16x16x128xf32, #tpu.memory_space<vmem>>, vector<10x10x128xf32>
    tpu.vector_store %arg7[%c4_202, %c2_203, %c0_204], %197 {strides = array<i32>} : memref<16x16x128xf32, #tpu.memory_space<vmem>>, vector<10x10x128xf32>,
    %199 = vector.extract_strided_slice %63 {offsets = [19, 0], sizes = [1, 128], strides = [1, 1]} : vector<49x128xf32> to vector<1x128xf32>
    %c4_205 = arith.constant 4 : index
    %c1_206 = arith.constant 1 : index
    %c0_207 = arith.constant 0 : index
    %200 = vector.load %arg7[%c4_205, %c1_206, %c0_207] : memref<16x16x128xf32, #tpu.memory_space<vmem>>, vector<10x10x128xf32>
    %201 = vector.shape_cast %199 : vector<1x128xf32> to vector<1x1x128xf32>
    %202 = vector.broadcast %201 : vector<1x1x128xf32> to vector<10x10x128xf32>
    %203 = arith.mulf %62, %202 : vector<10x10x128xf32>
    %204 = arith.addf %200, %203 : vector<10x10x128xf32>
    %c4_208 = arith.constant 4 : index
    %c1_209 = arith.constant 1 : index
    %c0_210 = arith.constant 0 : index
    %205 = vector.load %arg7[%c4_208, %c1_209, %c0_210] : memref<16x16x128xf32, #tpu.memory_space<vmem>>, vector<10x10x128xf32>
    tpu.vector_store %arg7[%c4_208, %c1_209, %c0_210], %204 {strides = array<i32>} : memref<16x16x128xf32, #tpu.memory_space<vmem>>, vector<10x10x128xf32>,
    %206 = vector.extract_strided_slice %63 {offsets = [20, 0], sizes = [1, 128], strides = [1, 1]} : vector<49x128xf32> to vector<1x128xf32>
    %c4_211 = arith.constant 4 : index
    %c0_212 = arith.constant 0 : index
    %c0_213 = arith.constant 0 : index
    %207 = vector.load %arg7[%c4_211, %c0_212, %c0_213] : memref<16x16x128xf32, #tpu.memory_space<vmem>>, vector<10x10x128xf32>
    %208 = vector.shape_cast %206 : vector<1x128xf32> to vector<1x1x128xf32>
    %209 = vector.broadcast %208 : vector<1x1x128xf32> to vector<10x10x128xf32>
    %210 = arith.mulf %62, %209 : vector<10x10x128xf32>
    %211 = arith.addf %207, %210 : vector<10x10x128xf32>
    %c4_214 = arith.constant 4 : index
    %c0_215 = arith.constant 0 : index
    %c0_216 = arith.constant 0 : index
    %212 = vector.load %arg7[%c4_214, %c0_215, %c0_216] : memref<16x16x128xf32, #tpu.memory_space<vmem>>, vector<10x10x128xf32>
    tpu.vector_store %arg7[%c4_214, %c0_215, %c0_216], %211 {strides = array<i32>} : memref<16x16x128xf32, #tpu.memory_space<vmem>>, vector<10x10x128xf32>,
    %213 = vector.extract_strided_slice %63 {offsets = [21, 0], sizes = [1, 128], strides = [1, 1]} : vector<49x128xf32> to vector<1x128xf32>
    %c3_217 = arith.constant 3 : index
    %c6_218 = arith.constant 6 : index
    %c0_219 = arith.constant 0 : index
    %214 = vector.load %arg7[%c3_217, %c6_218, %c0_219] : memref<16x16x128xf32, #tpu.memory_space<vmem>>, vector<10x10x128xf32>
    %215 = vector.shape_cast %213 : vector<1x128xf32> to vector<1x1x128xf32>
    %216 = vector.broadcast %215 : vector<1x1x128xf32> to vector<10x10x128xf32>
    %217 = arith.mulf %62, %216 : vector<10x10x128xf32>
    %218 = arith.addf %214, %217 : vector<10x10x128xf32>
    %c3_220 = arith.constant 3 : index
    %c6_221 = arith.constant 6 : index
    %c0_222 = arith.constant 0 : index
    %219 = vector.load %arg7[%c3_220, %c6_221, %c0_222] : memref<16x16x128xf32, #tpu.memory_space<vmem>>, vector<10x10x128xf32>
    tpu.vector_store %arg7[%c3_220, %c6_221, %c0_222], %218 {strides = array<i32>} : memref<16x16x128xf32, #tpu.memory_space<vmem>>, vector<10x10x128xf32>,
    %220 = vector.extract_strided_slice %63 {offsets = [22, 0], sizes = [1, 128], strides = [1, 1]} : vector<49x128xf32> to vector<1x128xf32>
    %c3_223 = arith.constant 3 : index
    %c5_224 = arith.constant 5 : index
    %c0_225 = arith.constant 0 : index
    %221 = vector.load %arg7[%c3_223, %c5_224, %c0_225] : memref<16x16x128xf32, #tpu.memory_space<vmem>>, vector<10x10x128xf32>
    %222 = vector.shape_cast %220 : vector<1x128xf32> to vector<1x1x128xf32>
    %223 = vector.broadcast %222 : vector<1x1x128xf32> to vector<10x10x128xf32>
    %224 = arith.mulf %62, %223 : vector<10x10x128xf32>
    %225 = arith.addf %221, %224 : vector<10x10x128xf32>
    %c3_226 = arith.constant 3 : index
    %c5_227 = arith.constant 5 : index
    %c0_228 = arith.constant 0 : index
    %226 = vector.load %arg7[%c3_226, %c5_227, %c0_228] : memref<16x16x128xf32, #tpu.memory_space<vmem>>, vector<10x10x128xf32>
    tpu.vector_store %arg7[%c3_226, %c5_227, %c0_228], %225 {strides = array<i32>} : memref<16x16x128xf32, #tpu.memory_space<vmem>>, vector<10x10x128xf32>,
    %227 = vector.extract_strided_slice %63 {offsets = [23, 0], sizes = [1, 128], strides = [1, 1]} : vector<49x128xf32> to vector<1x128xf32>
    %c3_229 = arith.constant 3 : index
    %c4_230 = arith.constant 4 : index
    %c0_231 = arith.constant 0 : index
    %228 = vector.load %arg7[%c3_229, %c4_230, %c0_231] : memref<16x16x128xf32, #tpu.memory_space<vmem>>, vector<10x10x128xf32>
    %229 = vector.shape_cast %227 : vector<1x128xf32> to vector<1x1x128xf32>
    %230 = vector.broadcast %229 : vector<1x1x128xf32> to vector<10x10x128xf32>
    %231 = arith.mulf %62, %230 : vector<10x10x128xf32>
    %232 = arith.addf %228, %231 : vector<10x10x128xf32>
    %c3_232 = arith.constant 3 : index
    %c4_233 = arith.constant 4 : index
    %c0_234 = arith.constant 0 : index
    %233 = vector.load %arg7[%c3_232, %c4_233, %c0_234] : memref<16x16x128xf32, #tpu.memory_space<vmem>>, vector<10x10x128xf32>
    tpu.vector_store %arg7[%c3_232, %c4_233, %c0_234], %232 {strides = array<i32>} : memref<16x16x128xf32, #tpu.memory_space<vmem>>, vector<10x10x128xf32>,
    %234 = vector.extract_strided_slice %63 {offsets = [24, 0], sizes = [1, 128], strides = [1, 1]} : vector<49x128xf32> to vector<1x128xf32>
    %c3_235 = arith.constant 3 : index
    %c3_236 = arith.constant 3 : index
    %c0_237 = arith.constant 0 : index
    %235 = vector.load %arg7[%c3_235, %c3_236, %c0_237] : memref<16x16x128xf32, #tpu.memory_space<vmem>>, vector<10x10x128xf32>
    %236 = vector.shape_cast %234 : vector<1x128xf32> to vector<1x1x128xf32>
    %237 = vector.broadcast %236 : vector<1x1x128xf32> to vector<10x10x128xf32>
    %238 = arith.mulf %62, %237 : vector<10x10x128xf32>
    %239 = arith.addf %235, %238 : vector<10x10x128xf32>
    %c3_238 = arith.constant 3 : index
    %c3_239 = arith.constant 3 : index
    %c0_240 = arith.constant 0 : index
    %240 = vector.load %arg7[%c3_238, %c3_239, %c0_240] : memref<16x16x128xf32, #tpu.memory_space<vmem>>, vector<10x10x128xf32>
    tpu.vector_store %arg7[%c3_238, %c3_239, %c0_240], %239 {strides = array<i32>} : memref<16x16x128xf32, #tpu.memory_space<vmem>>, vector<10x10x128xf32>,
    %241 = vector.extract_strided_slice %63 {offsets = [25, 0], sizes = [1, 128], strides = [1, 1]} : vector<49x128xf32> to vector<1x128xf32>
    %c3_241 = arith.constant 3 : index
    %c2_242 = arith.constant 2 : index
    %c0_243 = arith.constant 0 : index
    %242 = vector.load %arg7[%c3_241, %c2_242, %c0_243] : memref<16x16x128xf32, #tpu.memory_space<vmem>>, vector<10x10x128xf32>
    %243 = vector.shape_cast %241 : vector<1x128xf32> to vector<1x1x128xf32>
    %244 = vector.broadcast %243 : vector<1x1x128xf32> to vector<10x10x128xf32>
    %245 = arith.mulf %62, %244 : vector<10x10x128xf32>
    %246 = arith.addf %242, %245 : vector<10x10x128xf32>
    %c3_244 = arith.constant 3 : index
    %c2_245 = arith.constant 2 : index
    %c0_246 = arith.constant 0 : index
    %247 = vector.load %arg7[%c3_244, %c2_245, %c0_246] : memref<16x16x128xf32, #tpu.memory_space<vmem>>, vector<10x10x128xf32>
    tpu.vector_store %arg7[%c3_244, %c2_245, %c0_246], %246 {strides = array<i32>} : memref<16x16x128xf32, #tpu.memory_space<vmem>>, vector<10x10x128xf32>,
    %248 = vector.extract_strided_slice %63 {offsets = [26, 0], sizes = [1, 128], strides = [1, 1]} : vector<49x128xf32> to vector<1x128xf32>
    %c3_247 = arith.constant 3 : index
    %c1_248 = arith.constant 1 : index
    %c0_249 = arith.constant 0 : index
    %249 = vector.load %arg7[%c3_247, %c1_248, %c0_249] : memref<16x16x128xf32, #tpu.memory_space<vmem>>, vector<10x10x128xf32>
    %250 = vector.shape_cast %248 : vector<1x128xf32> to vector<1x1x128xf32>
    %251 = vector.broadcast %250 : vector<1x1x128xf32> to vector<10x10x128xf32>
    %252 = arith.mulf %62, %251 : vector<10x10x128xf32>
    %253 = arith.addf %249, %252 : vector<10x10x128xf32>
    %c3_250 = arith.constant 3 : index
    %c1_251 = arith.constant 1 : index
    %c0_252 = arith.constant 0 : index
    %254 = vector.load %arg7[%c3_250, %c1_251, %c0_252] : memref<16x16x128xf32, #tpu.memory_space<vmem>>, vector<10x10x128xf32>
    tpu.vector_store %arg7[%c3_250, %c1_251, %c0_252], %253 {strides = array<i32>} : memref<16x16x128xf32, #tpu.memory_space<vmem>>, vector<10x10x128xf32>,
    %255 = vector.extract_strided_slice %63 {offsets = [27, 0], sizes = [1, 128], strides = [1, 1]} : vector<49x128xf32> to vector<1x128xf32>
    %c3_253 = arith.constant 3 : index
    %c0_254 = arith.constant 0 : index
    %c0_255 = arith.constant 0 : index
    %256 = vector.load %arg7[%c3_253, %c0_254, %c0_255] : memref<16x16x128xf32, #tpu.memory_space<vmem>>, vector<10x10x128xf32>
    %257 = vector.shape_cast %255 : vector<1x128xf32> to vector<1x1x128xf32>
    %258 = vector.broadcast %257 : vector<1x1x128xf32> to vector<10x10x128xf32>
    %259 = arith.mulf %62, %258 : vector<10x10x128xf32>
    %260 = arith.addf %256, %259 : vector<10x10x128xf32>
    %c3_256 = arith.constant 3 : index
    %c0_257 = arith.constant 0 : index
    %c0_258 = arith.constant 0 : index
    %261 = vector.load %arg7[%c3_256, %c0_257, %c0_258] : memref<16x16x128xf32, #tpu.memory_space<vmem>>, vector<10x10x128xf32>
    tpu.vector_store %arg7[%c3_256, %c0_257, %c0_258], %260 {strides = array<i32>} : memref<16x16x128xf32, #tpu.memory_space<vmem>>, vector<10x10x128xf32>,
    %262 = vector.extract_strided_slice %63 {offsets = [28, 0], sizes = [1, 128], strides = [1, 1]} : vector<49x128xf32> to vector<1x128xf32>
    %c2_259 = arith.constant 2 : index
    %c6_260 = arith.constant 6 : index
    %c0_261 = arith.constant 0 : index
    %263 = vector.load %arg7[%c2_259, %c6_260, %c0_261] : memref<16x16x128xf32, #tpu.memory_space<vmem>>, vector<10x10x128xf32>
    %264 = vector.shape_cast %262 : vector<1x128xf32> to vector<1x1x128xf32>
    %265 = vector.broadcast %264 : vector<1x1x128xf32> to vector<10x10x128xf32>
    %266 = arith.mulf %62, %265 : vector<10x10x128xf32>
    %267 = arith.addf %263, %266 : vector<10x10x128xf32>
    %c2_262 = arith.constant 2 : index
    %c6_263 = arith.constant 6 : index
    %c0_264 = arith.constant 0 : index
    %268 = vector.load %arg7[%c2_262, %c6_263, %c0_264] : memref<16x16x128xf32, #tpu.memory_space<vmem>>, vector<10x10x128xf32>
    tpu.vector_store %arg7[%c2_262, %c6_263, %c0_264], %267 {strides = array<i32>} : memref<16x16x128xf32, #tpu.memory_space<vmem>>, vector<10x10x128xf32>,
    %269 = vector.extract_strided_slice %63 {offsets = [29, 0], sizes = [1, 128], strides = [1, 1]} : vector<49x128xf32> to vector<1x128xf32>
    %c2_265 = arith.constant 2 : index
    %c5_266 = arith.constant 5 : index
    %c0_267 = arith.constant 0 : index
    %270 = vector.load %arg7[%c2_265, %c5_266, %c0_267] : memref<16x16x128xf32, #tpu.memory_space<vmem>>, vector<10x10x128xf32>
    %271 = vector.shape_cast %269 : vector<1x128xf32> to vector<1x1x128xf32>
    %272 = vector.broadcast %271 : vector<1x1x128xf32> to vector<10x10x128xf32>
    %273 = arith.mulf %62, %272 : vector<10x10x128xf32>
    %274 = arith.addf %270, %273 : vector<10x10x128xf32>
    %c2_268 = arith.constant 2 : index
    %c5_269 = arith.constant 5 : index
    %c0_270 = arith.constant 0 : index
    %275 = vector.load %arg7[%c2_268, %c5_269, %c0_270] : memref<16x16x128xf32, #tpu.memory_space<vmem>>, vector<10x10x128xf32>
    tpu.vector_store %arg7[%c2_268, %c5_269, %c0_270], %274 {strides = array<i32>} : memref<16x16x128xf32, #tpu.memory_space<vmem>>, vector<10x10x128xf32>,
    %276 = vector.extract_strided_slice %63 {offsets = [30, 0], sizes = [1, 128], strides = [1, 1]} : vector<49x128xf32> to vector<1x128xf32>
    %c2_271 = arith.constant 2 : index
    %c4_272 = arith.constant 4 : index
    %c0_273 = arith.constant 0 : index
    %277 = vector.load %arg7[%c2_271, %c4_272, %c0_273] : memref<16x16x128xf32, #tpu.memory_space<vmem>>, vector<10x10x128xf32>
    %278 = vector.shape_cast %276 : vector<1x128xf32> to vector<1x1x128xf32>
    %279 = vector.broadcast %278 : vector<1x1x128xf32> to vector<10x10x128xf32>
    %280 = arith.mulf %62, %279 : vector<10x10x128xf32>
    %281 = arith.addf %277, %280 : vector<10x10x128xf32>
    %c2_274 = arith.constant 2 : index
    %c4_275 = arith.constant 4 : index
    %c0_276 = arith.constant 0 : index
    %282 = vector.load %arg7[%c2_274, %c4_275, %c0_276] : memref<16x16x128xf32, #tpu.memory_space<vmem>>, vector<10x10x128xf32>
    tpu.vector_store %arg7[%c2_274, %c4_275, %c0_276], %281 {strides = array<i32>} : memref<16x16x128xf32, #tpu.memory_space<vmem>>, vector<10x10x128xf32>,
    %283 = vector.extract_strided_slice %63 {offsets = [31, 0], sizes = [1, 128], strides = [1, 1]} : vector<49x128xf32> to vector<1x128xf32>
    %c2_277 = arith.constant 2 : index
    %c3_278 = arith.constant 3 : index
    %c0_279 = arith.constant 0 : index
    %284 = vector.load %arg7[%c2_277, %c3_278, %c0_279] : memref<16x16x128xf32, #tpu.memory_space<vmem>>, vector<10x10x128xf32>
    %285 = vector.shape_cast %283 : vector<1x128xf32> to vector<1x1x128xf32>
    %286 = vector.broadcast %285 : vector<1x1x128xf32> to vector<10x10x128xf32>
    %287 = arith.mulf %62, %286 : vector<10x10x128xf32>
    %288 = arith.addf %284, %287 : vector<10x10x128xf32>
    %c2_280 = arith.constant 2 : index
    %c3_281 = arith.constant 3 : index
    %c0_282 = arith.constant 0 : index
    %289 = vector.load %arg7[%c2_280, %c3_281, %c0_282] : memref<16x16x128xf32, #tpu.memory_space<vmem>>, vector<10x10x128xf32>
    tpu.vector_store %arg7[%c2_280, %c3_281, %c0_282], %288 {strides = array<i32>} : memref<16x16x128xf32, #tpu.memory_space<vmem>>, vector<10x10x128xf32>,
    %290 = vector.extract_strided_slice %63 {offsets = [32, 0], sizes = [1, 128], strides = [1, 1]} : vector<49x128xf32> to vector<1x128xf32>
    %c2_283 = arith.constant 2 : index
    %c2_284 = arith.constant 2 : index
    %c0_285 = arith.constant 0 : index
    %291 = vector.load %arg7[%c2_283, %c2_284, %c0_285] : memref<16x16x128xf32, #tpu.memory_space<vmem>>, vector<10x10x128xf32>
    %292 = vector.shape_cast %290 : vector<1x128xf32> to vector<1x1x128xf32>
    %293 = vector.broadcast %292 : vector<1x1x128xf32> to vector<10x10x128xf32>
    %294 = arith.mulf %62, %293 : vector<10x10x128xf32>
    %295 = arith.addf %291, %294 : vector<10x10x128xf32>
    %c2_286 = arith.constant 2 : index
    %c2_287 = arith.constant 2 : index
    %c0_288 = arith.constant 0 : index
    %296 = vector.load %arg7[%c2_286, %c2_287, %c0_288] : memref<16x16x128xf32, #tpu.memory_space<vmem>>, vector<10x10x128xf32>
    tpu.vector_store %arg7[%c2_286, %c2_287, %c0_288], %295 {strides = array<i32>} : memref<16x16x128xf32, #tpu.memory_space<vmem>>, vector<10x10x128xf32>,
    %297 = vector.extract_strided_slice %63 {offsets = [33, 0], sizes = [1, 128], strides = [1, 1]} : vector<49x128xf32> to vector<1x128xf32>
    %c2_289 = arith.constant 2 : index
    %c1_290 = arith.constant 1 : index
    %c0_291 = arith.constant 0 : index
    %298 = vector.load %arg7[%c2_289, %c1_290, %c0_291] : memref<16x16x128xf32, #tpu.memory_space<vmem>>, vector<10x10x128xf32>
    %299 = vector.shape_cast %297 : vector<1x128xf32> to vector<1x1x128xf32>
    %300 = vector.broadcast %299 : vector<1x1x128xf32> to vector<10x10x128xf32>
    %301 = arith.mulf %62, %300 : vector<10x10x128xf32>
    %302 = arith.addf %298, %301 : vector<10x10x128xf32>
    %c2_292 = arith.constant 2 : index
    %c1_293 = arith.constant 1 : index
    %c0_294 = arith.constant 0 : index
    %303 = vector.load %arg7[%c2_292, %c1_293, %c0_294] : memref<16x16x128xf32, #tpu.memory_space<vmem>>, vector<10x10x128xf32>
    tpu.vector_store %arg7[%c2_292, %c1_293, %c0_294], %302 {strides = array<i32>} : memref<16x16x128xf32, #tpu.memory_space<vmem>>, vector<10x10x128xf32>,
    %304 = vector.extract_strided_slice %63 {offsets = [34, 0], sizes = [1, 128], strides = [1, 1]} : vector<49x128xf32> to vector<1x128xf32>
    %c2_295 = arith.constant 2 : index
    %c0_296 = arith.constant 0 : index
    %c0_297 = arith.constant 0 : index
    %305 = vector.load %arg7[%c2_295, %c0_296, %c0_297] : memref<16x16x128xf32, #tpu.memory_space<vmem>>, vector<10x10x128xf32>
    %306 = vector.shape_cast %304 : vector<1x128xf32> to vector<1x1x128xf32>
    %307 = vector.broadcast %306 : vector<1x1x128xf32> to vector<10x10x128xf32>
    %308 = arith.mulf %62, %307 : vector<10x10x128xf32>
    %309 = arith.addf %305, %308 : vector<10x10x128xf32>
    %c2_298 = arith.constant 2 : index
    %c0_299 = arith.constant 0 : index
    %c0_300 = arith.constant 0 : index
    %310 = vector.load %arg7[%c2_298, %c0_299, %c0_300] : memref<16x16x128xf32, #tpu.memory_space<vmem>>, vector<10x10x128xf32>
    tpu.vector_store %arg7[%c2_298, %c0_299, %c0_300], %309 {strides = array<i32>} : memref<16x16x128xf32, #tpu.memory_space<vmem>>, vector<10x10x128xf32>,
    %311 = vector.extract_strided_slice %63 {offsets = [35, 0], sizes = [1, 128], strides = [1, 1]} : vector<49x128xf32> to vector<1x128xf32>
    %c1_301 = arith.constant 1 : index
    %c6_302 = arith.constant 6 : index
    %c0_303 = arith.constant 0 : index
    %312 = vector.load %arg7[%c1_301, %c6_302, %c0_303] : memref<16x16x128xf32, #tpu.memory_space<vmem>>, vector<10x10x128xf32>
    %313 = vector.shape_cast %311 : vector<1x128xf32> to vector<1x1x128xf32>
    %314 = vector.broadcast %313 : vector<1x1x128xf32> to vector<10x10x128xf32>
    %315 = arith.mulf %62, %314 : vector<10x10x128xf32>
    %316 = arith.addf %312, %315 : vector<10x10x128xf32>
    %c1_304 = arith.constant 1 : index
    %c6_305 = arith.constant 6 : index
    %c0_306 = arith.constant 0 : index
    %317 = vector.load %arg7[%c1_304, %c6_305, %c0_306] : memref<16x16x128xf32, #tpu.memory_space<vmem>>, vector<10x10x128xf32>
    tpu.vector_store %arg7[%c1_304, %c6_305, %c0_306], %316 {strides = array<i32>} : memref<16x16x128xf32, #tpu.memory_space<vmem>>, vector<10x10x128xf32>,
    %318 = vector.extract_strided_slice %63 {offsets = [36, 0], sizes = [1, 128], strides = [1, 1]} : vector<49x128xf32> to vector<1x128xf32>
    %c1_307 = arith.constant 1 : index
    %c5_308 = arith.constant 5 : index
    %c0_309 = arith.constant 0 : index
    %319 = vector.load %arg7[%c1_307, %c5_308, %c0_309] : memref<16x16x128xf32, #tpu.memory_space<vmem>>, vector<10x10x128xf32>
    %320 = vector.shape_cast %318 : vector<1x128xf32> to vector<1x1x128xf32>
    %321 = vector.broadcast %320 : vector<1x1x128xf32> to vector<10x10x128xf32>
    %322 = arith.mulf %62, %321 : vector<10x10x128xf32>
    %323 = arith.addf %319, %322 : vector<10x10x128xf32>
    %c1_310 = arith.constant 1 : index
    %c5_311 = arith.constant 5 : index
    %c0_312 = arith.constant 0 : index
    %324 = vector.load %arg7[%c1_310, %c5_311, %c0_312] : memref<16x16x128xf32, #tpu.memory_space<vmem>>, vector<10x10x128xf32>
    tpu.vector_store %arg7[%c1_310, %c5_311, %c0_312], %323 {strides = array<i32>} : memref<16x16x128xf32, #tpu.memory_space<vmem>>, vector<10x10x128xf32>,
    %325 = vector.extract_strided_slice %63 {offsets = [37, 0], sizes = [1, 128], strides = [1, 1]} : vector<49x128xf32> to vector<1x128xf32>
    %c1_313 = arith.constant 1 : index
    %c4_314 = arith.constant 4 : index
    %c0_315 = arith.constant 0 : index
    %326 = vector.load %arg7[%c1_313, %c4_314, %c0_315] : memref<16x16x128xf32, #tpu.memory_space<vmem>>, vector<10x10x128xf32>
    %327 = vector.shape_cast %325 : vector<1x128xf32> to vector<1x1x128xf32>
    %328 = vector.broadcast %327 : vector<1x1x128xf32> to vector<10x10x128xf32>
    %329 = arith.mulf %62, %328 : vector<10x10x128xf32>
    %330 = arith.addf %326, %329 : vector<10x10x128xf32>
    %c1_316 = arith.constant 1 : index
    %c4_317 = arith.constant 4 : index
    %c0_318 = arith.constant 0 : index
    %331 = vector.load %arg7[%c1_316, %c4_317, %c0_318] : memref<16x16x128xf32, #tpu.memory_space<vmem>>, vector<10x10x128xf32>
    tpu.vector_store %arg7[%c1_316, %c4_317, %c0_318], %330 {strides = array<i32>} : memref<16x16x128xf32, #tpu.memory_space<vmem>>, vector<10x10x128xf32>,
    %332 = vector.extract_strided_slice %63 {offsets = [38, 0], sizes = [1, 128], strides = [1, 1]} : vector<49x128xf32> to vector<1x128xf32>
    %c1_319 = arith.constant 1 : index
    %c3_320 = arith.constant 3 : index
    %c0_321 = arith.constant 0 : index
    %333 = vector.load %arg7[%c1_319, %c3_320, %c0_321] : memref<16x16x128xf32, #tpu.memory_space<vmem>>, vector<10x10x128xf32>
    %334 = vector.shape_cast %332 : vector<1x128xf32> to vector<1x1x128xf32>
    %335 = vector.broadcast %334 : vector<1x1x128xf32> to vector<10x10x128xf32>
    %336 = arith.mulf %62, %335 : vector<10x10x128xf32>
    %337 = arith.addf %333, %336 : vector<10x10x128xf32>
    %c1_322 = arith.constant 1 : index
    %c3_323 = arith.constant 3 : index
    %c0_324 = arith.constant 0 : index
    %338 = vector.load %arg7[%c1_322, %c3_323, %c0_324] : memref<16x16x128xf32, #tpu.memory_space<vmem>>, vector<10x10x128xf32>
    tpu.vector_store %arg7[%c1_322, %c3_323, %c0_324], %337 {strides = array<i32>} : memref<16x16x128xf32, #tpu.memory_space<vmem>>, vector<10x10x128xf32>,
    %339 = vector.extract_strided_slice %63 {offsets = [39, 0], sizes = [1, 128], strides = [1, 1]} : vector<49x128xf32> to vector<1x128xf32>
    %c1_325 = arith.constant 1 : index
    %c2_326 = arith.constant 2 : index
    %c0_327 = arith.constant 0 : index
    %340 = vector.load %arg7[%c1_325, %c2_326, %c0_327] : memref<16x16x128xf32, #tpu.memory_space<vmem>>, vector<10x10x128xf32>
    %341 = vector.shape_cast %339 : vector<1x128xf32> to vector<1x1x128xf32>
    %342 = vector.broadcast %341 : vector<1x1x128xf32> to vector<10x10x128xf32>
    %343 = arith.mulf %62, %342 : vector<10x10x128xf32>
    %344 = arith.addf %340, %343 : vector<10x10x128xf32>
    %c1_328 = arith.constant 1 : index
    %c2_329 = arith.constant 2 : index
    %c0_330 = arith.constant 0 : index
    %345 = vector.load %arg7[%c1_328, %c2_329, %c0_330] : memref<16x16x128xf32, #tpu.memory_space<vmem>>, vector<10x10x128xf32>
    tpu.vector_store %arg7[%c1_328, %c2_329, %c0_330], %344 {strides = array<i32>} : memref<16x16x128xf32, #tpu.memory_space<vmem>>, vector<10x10x128xf32>,
    %346 = vector.extract_strided_slice %63 {offsets = [40, 0], sizes = [1, 128], strides = [1, 1]} : vector<49x128xf32> to vector<1x128xf32>
    %c1_331 = arith.constant 1 : index
    %c1_332 = arith.constant 1 : index
    %c0_333 = arith.constant 0 : index
    %347 = vector.load %arg7[%c1_331, %c1_332, %c0_333] : memref<16x16x128xf32, #tpu.memory_space<vmem>>, vector<10x10x128xf32>
    %348 = vector.shape_cast %346 : vector<1x128xf32> to vector<1x1x128xf32>
    %349 = vector.broadcast %348 : vector<1x1x128xf32> to vector<10x10x128xf32>
    %350 = arith.mulf %62, %349 : vector<10x10x128xf32>
    %351 = arith.addf %347, %350 : vector<10x10x128xf32>
    %c1_334 = arith.constant 1 : index
    %c1_335 = arith.constant 1 : index
    %c0_336 = arith.constant 0 : index
    %352 = vector.load %arg7[%c1_334, %c1_335, %c0_336] : memref<16x16x128xf32, #tpu.memory_space<vmem>>, vector<10x10x128xf32>
    tpu.vector_store %arg7[%c1_334, %c1_335, %c0_336], %351 {strides = array<i32>} : memref<16x16x128xf32, #tpu.memory_space<vmem>>, vector<10x10x128xf32>,
    %353 = vector.extract_strided_slice %63 {offsets = [41, 0], sizes = [1, 128], strides = [1, 1]} : vector<49x128xf32> to vector<1x128xf32>
    %c1_337 = arith.constant 1 : index
    %c0_338 = arith.constant 0 : index
    %c0_339 = arith.constant 0 : index
    %354 = vector.load %arg7[%c1_337, %c0_338, %c0_339] : memref<16x16x128xf32, #tpu.memory_space<vmem>>, vector<10x10x128xf32>
    %355 = vector.shape_cast %353 : vector<1x128xf32> to vector<1x1x128xf32>
    %356 = vector.broadcast %355 : vector<1x1x128xf32> to vector<10x10x128xf32>
    %357 = arith.mulf %62, %356 : vector<10x10x128xf32>
    %358 = arith.addf %354, %357 : vector<10x10x128xf32>
    %c1_340 = arith.constant 1 : index
    %c0_341 = arith.constant 0 : index
    %c0_342 = arith.constant 0 : index
    %359 = vector.load %arg7[%c1_340, %c0_341, %c0_342] : memref<16x16x128xf32, #tpu.memory_space<vmem>>, vector<10x10x128xf32>
    tpu.vector_store %arg7[%c1_340, %c0_341, %c0_342], %358 {strides = array<i32>} : memref<16x16x128xf32, #tpu.memory_space<vmem>>, vector<10x10x128xf32>,
    %360 = vector.extract_strided_slice %63 {offsets = [42, 0], sizes = [1, 128], strides = [1, 1]} : vector<49x128xf32> to vector<1x128xf32>
    %c0_343 = arith.constant 0 : index
    %c6_344 = arith.constant 6 : index
    %c0_345 = arith.constant 0 : index
    %361 = vector.load %arg7[%c0_343, %c6_344, %c0_345] : memref<16x16x128xf32, #tpu.memory_space<vmem>>, vector<10x10x128xf32>
    %362 = vector.shape_cast %360 : vector<1x128xf32> to vector<1x1x128xf32>
    %363 = vector.broadcast %362 : vector<1x1x128xf32> to vector<10x10x128xf32>
    %364 = arith.mulf %62, %363 : vector<10x10x128xf32>
    %365 = arith.addf %361, %364 : vector<10x10x128xf32>
    %c0_346 = arith.constant 0 : index
    %c6_347 = arith.constant 6 : index
    %c0_348 = arith.constant 0 : index
    %366 = vector.load %arg7[%c0_346, %c6_347, %c0_348] : memref<16x16x128xf32, #tpu.memory_space<vmem>>, vector<10x10x128xf32>
    tpu.vector_store %arg7[%c0_346, %c6_347, %c0_348], %365 {strides = array<i32>} : memref<16x16x128xf32, #tpu.memory_space<vmem>>, vector<10x10x128xf32>,
    %367 = vector.extract_strided_slice %63 {offsets = [43, 0], sizes = [1, 128], strides = [1, 1]} : vector<49x128xf32> to vector<1x128xf32>
    %c0_349 = arith.constant 0 : index
    %c5_350 = arith.constant 5 : index
    %c0_351 = arith.constant 0 : index
    %368 = vector.load %arg7[%c0_349, %c5_350, %c0_351] : memref<16x16x128xf32, #tpu.memory_space<vmem>>, vector<10x10x128xf32>
    %369 = vector.shape_cast %367 : vector<1x128xf32> to vector<1x1x128xf32>
    %370 = vector.broadcast %369 : vector<1x1x128xf32> to vector<10x10x128xf32>
    %371 = arith.mulf %62, %370 : vector<10x10x128xf32>
    %372 = arith.addf %368, %371 : vector<10x10x128xf32>
    %c0_352 = arith.constant 0 : index
    %c5_353 = arith.constant 5 : index
    %c0_354 = arith.constant 0 : index
    %373 = vector.load %arg7[%c0_352, %c5_353, %c0_354] : memref<16x16x128xf32, #tpu.memory_space<vmem>>, vector<10x10x128xf32>
    tpu.vector_store %arg7[%c0_352, %c5_353, %c0_354], %372 {strides = array<i32>} : memref<16x16x128xf32, #tpu.memory_space<vmem>>, vector<10x10x128xf32>,
    %374 = vector.extract_strided_slice %63 {offsets = [44, 0], sizes = [1, 128], strides = [1, 1]} : vector<49x128xf32> to vector<1x128xf32>
    %c0_355 = arith.constant 0 : index
    %c4_356 = arith.constant 4 : index
    %c0_357 = arith.constant 0 : index
    %375 = vector.load %arg7[%c0_355, %c4_356, %c0_357] : memref<16x16x128xf32, #tpu.memory_space<vmem>>, vector<10x10x128xf32>
    %376 = vector.shape_cast %374 : vector<1x128xf32> to vector<1x1x128xf32>
    %377 = vector.broadcast %376 : vector<1x1x128xf32> to vector<10x10x128xf32>
    %378 = arith.mulf %62, %377 : vector<10x10x128xf32>
    %379 = arith.addf %375, %378 : vector<10x10x128xf32>
    %c0_358 = arith.constant 0 : index
    %c4_359 = arith.constant 4 : index
    %c0_360 = arith.constant 0 : index
    %380 = vector.load %arg7[%c0_358, %c4_359, %c0_360] : memref<16x16x128xf32, #tpu.memory_space<vmem>>, vector<10x10x128xf32>
    tpu.vector_store %arg7[%c0_358, %c4_359, %c0_360], %379 {strides = array<i32>} : memref<16x16x128xf32, #tpu.memory_space<vmem>>, vector<10x10x128xf32>,
    %381 = vector.extract_strided_slice %63 {offsets = [45, 0], sizes = [1, 128], strides = [1, 1]} : vector<49x128xf32> to vector<1x128xf32>
    %c0_361 = arith.constant 0 : index
    %c3_362 = arith.constant 3 : index
    %c0_363 = arith.constant 0 : index
    %382 = vector.load %arg7[%c0_361, %c3_362, %c0_363] : memref<16x16x128xf32, #tpu.memory_space<vmem>>, vector<10x10x128xf32>
    %383 = vector.shape_cast %381 : vector<1x128xf32> to vector<1x1x128xf32>
    %384 = vector.broadcast %383 : vector<1x1x128xf32> to vector<10x10x128xf32>
    %385 = arith.mulf %62, %384 : vector<10x10x128xf32>
    %386 = arith.addf %382, %385 : vector<10x10x128xf32>
    %c0_364 = arith.constant 0 : index
    %c3_365 = arith.constant 3 : index
    %c0_366 = arith.constant 0 : index
    %387 = vector.load %arg7[%c0_364, %c3_365, %c0_366] : memref<16x16x128xf32, #tpu.memory_space<vmem>>, vector<10x10x128xf32>
    tpu.vector_store %arg7[%c0_364, %c3_365, %c0_366], %386 {strides = array<i32>} : memref<16x16x128xf32, #tpu.memory_space<vmem>>, vector<10x10x128xf32>,
    %388 = vector.extract_strided_slice %63 {offsets = [46, 0], sizes = [1, 128], strides = [1, 1]} : vector<49x128xf32> to vector<1x128xf32>
    %c0_367 = arith.constant 0 : index
    %c2_368 = arith.constant 2 : index
    %c0_369 = arith.constant 0 : index
    %389 = vector.load %arg7[%c0_367, %c2_368, %c0_369] : memref<16x16x128xf32, #tpu.memory_space<vmem>>, vector<10x10x128xf32>
    %390 = vector.shape_cast %388 : vector<1x128xf32> to vector<1x1x128xf32>
    %391 = vector.broadcast %390 : vector<1x1x128xf32> to vector<10x10x128xf32>
    %392 = arith.mulf %62, %391 : vector<10x10x128xf32>
    %393 = arith.addf %389, %392 : vector<10x10x128xf32>
    %c0_370 = arith.constant 0 : index
    %c2_371 = arith.constant 2 : index
    %c0_372 = arith.constant 0 : index
    %394 = vector.load %arg7[%c0_370, %c2_371, %c0_372] : memref<16x16x128xf32, #tpu.memory_space<vmem>>, vector<10x10x128xf32>
    tpu.vector_store %arg7[%c0_370, %c2_371, %c0_372], %393 {strides = array<i32>} : memref<16x16x128xf32, #tpu.memory_space<vmem>>, vector<10x10x128xf32>,
    %395 = vector.extract_strided_slice %63 {offsets = [47, 0], sizes = [1, 128], strides = [1, 1]} : vector<49x128xf32> to vector<1x128xf32>
    %c0_373 = arith.constant 0 : index
    %c1_374 = arith.constant 1 : index
    %c0_375 = arith.constant 0 : index
    %396 = vector.load %arg7[%c0_373, %c1_374, %c0_375] : memref<16x16x128xf32, #tpu.memory_space<vmem>>, vector<10x10x128xf32>
    %397 = vector.shape_cast %395 : vector<1x128xf32> to vector<1x1x128xf32>
    %398 = vector.broadcast %397 : vector<1x1x128xf32> to vector<10x10x128xf32>
    %399 = arith.mulf %62, %398 : vector<10x10x128xf32>
    %400 = arith.addf %396, %399 : vector<10x10x128xf32>
    %c0_376 = arith.constant 0 : index
    %c1_377 = arith.constant 1 : index
    %c0_378 = arith.constant 0 : index
    %401 = vector.load %arg7[%c0_376, %c1_377, %c0_378] : memref<16x16x128xf32, #tpu.memory_space<vmem>>, vector<10x10x128xf32>
    tpu.vector_store %arg7[%c0_376, %c1_377, %c0_378], %400 {strides = array<i32>} : memref<16x16x128xf32, #tpu.memory_space<vmem>>, vector<10x10x128xf32>,
    %402 = vector.extract_strided_slice %63 {offsets = [48, 0], sizes = [1, 128], strides = [1, 1]} : vector<49x128xf32> to vector<1x128xf32>
    %c0_379 = arith.constant 0 : index
    %c0_380 = arith.constant 0 : index
    %c0_381 = arith.constant 0 : index
    %403 = vector.load %arg7[%c0_379, %c0_380, %c0_381] : memref<16x16x128xf32, #tpu.memory_space<vmem>>, vector<10x10x128xf32>
    %404 = vector.shape_cast %402 : vector<1x128xf32> to vector<1x1x128xf32>
    %405 = vector.broadcast %404 : vector<1x1x128xf32> to vector<10x10x128xf32>
    %406 = arith.mulf %62, %405 : vector<10x10x128xf32>
    %407 = arith.addf %403, %406 : vector<10x10x128xf32>
    %c0_382 = arith.constant 0 : index
    %c0_383 = arith.constant 0 : index
    %c0_384 = arith.constant 0 : index
    %408 = vector.load %arg7[%c0_382, %c0_383, %c0_384] : memref<16x16x128xf32, #tpu.memory_space<vmem>>, vector<10x10x128xf32>
    tpu.vector_store %arg7[%c0_382, %c0_383, %c0_384], %407 {strides = array<i32>} : memref<16x16x128xf32, #tpu.memory_space<vmem>>, vector<10x10x128xf32>,
    %c0_385 = arith.constant 0 : index
    %c0_386 = arith.constant 0 : index
    %c0_387 = arith.constant 0 : index
    %409 = vector.load %arg7[%c0_385, %c0_386, %c0_387] : memref<16x16x128xf32, #tpu.memory_space<vmem>>, vector<16x16x128xf32>
    %cst_388 = arith.constant dense<0.000000e+00> : vector<16x16xf32>
    %410 = vector.multi_reduction <add>, %409, %cst_388 [2] : vector<16x16x128xf32> to vector<16x16xf32>
    %c0_389 = arith.constant 0 : index
    %c0_390 = arith.constant 0 : index
    %411 = vector.load %arg4[%c0_389, %c0_390] : memref<16x16xf32, #tpu.memory_space<vmem>>, vector<16x16xf32>
    %412 = arith.mulf %410, %411 : vector<16x16xf32>
    %c0_391 = arith.constant 0 : index
    %c0_392 = arith.constant 0 : index
    %c0_393 = arith.constant 0 : index
    %413 = vector.load %arg6[%c0_391, %c0_392, %c0_393] : memref<1x16x16xf32, #tpu.memory_space<vmem>>, vector<1x16x16xf32>
    %414 = vector.shape_cast %413 : vector<1x16x16xf32> to vector<16x16xf32>
    %415 = vector.shape_cast %412 : vector<16x16xf32> to vector<1x16x16xf32>
    tpu.vector_store %arg6[%c0_391, %c0_392, %c0_393], %415 {strides = array<i32>} : memref<1x16x16xf32, #tpu.memory_space<vmem>>, vector<1x16x16xf32>,
    return
  }
  func.func @transform_0(%arg0: i32) -> (i32, i32, i32, i32) {
    %c0_i32 = arith.constant 0 : i32
    %c0_i32_0 = arith.constant 0 : i32
    %c0_i32_1 = arith.constant 0 : i32
    %c0_i32_2 = arith.constant 0 : i32
    return %arg0, %c0_i32, %c0_i32_0, %c0_i32_1 : i32, i32, i32, i32
  }
  func.func @transform_1(%arg0: i32) -> (i32, i32) {
    %c0_i32 = arith.constant 0 : i32
    %c0_i32_0 = arith.constant 0 : i32
    %c0_i32_1 = arith.constant 0 : i32
    return %c0_i32, %c0_i32_0 : i32, i32
  }
  func.func @transform_2(%arg0: i32) -> (i32, i32) {
    %c0_i32 = arith.constant 0 : i32
    %c0_i32_0 = arith.constant 0 : i32
    %c0_i32_1 = arith.constant 0 : i32
    return %c0_i32, %c0_i32_0 : i32, i32
  }
  func.func @transform_3(%arg0: i32) -> (i32, i32) {
    %c0_i32 = arith.constant 0 : i32
    %c0_i32_0 = arith.constant 0 : i32
    %c0_i32_1 = arith.constant 0 : i32
    return %c0_i32, %c0_i32_0 : i32, i32
  }
  func.func @transform_4(%arg0: i32) -> (i32, i32, i32, i32) {
    %c0_i32 = arith.constant 0 : i32
    %c0_i32_0 = arith.constant 0 : i32
    %c0_i32_1 = arith.constant 0 : i32
    %c0_i32_2 = arith.constant 0 : i32
    return %arg0, %c0_i32, %c0_i32_0, %c0_i32_1 : i32, i32, i32, i32
  }
  func.func @transform_5(%arg0: i32) -> (i32, i32, i32) {
    %c0_i32 = arith.constant 0 : i32
    %c0_i32_0 = arith.constant 0 : i32
    %c0_i32_1 = arith.constant 0 : i32
    return %arg0, %c0_i32, %c0_i32_0 : i32, i32, i32
  }
}

</mosaic_0001>

<bundles_post_ra>
// kernel: simplenet_forward.1
= control target key start
LH: loop header
LB: loop body
LE: loop exit
PB: predicated region body
PF: predicated region fallthrough
CT: control target
= control target key end

     0   :  { %11 = vsyncpa [#allocation4], 0  ;;  %s8648_s0 = inlined_call_operand.vmem [shape: bf16[2,10,10,49], index: 0, kind: input, shape index: {}]   ;;  %s8649_s1 = inlined_call_operand.vmem [shape: bf16[49,128], index: 1, kind: input, shape index: {}]   ;;  %s8650_s2 = inlined_call_operand.vmem [shape: f32[49,128], index: 2, kind: input, shape index: {}]   ;;  %s8651_s3 = inlined_call_operand.vmem [shape: f32[16,16], index: 3, kind: input, shape index: {}]   ;;  %s8652_s4 = inlined_call_operand.vmem [shape: f32[2,10,10,128], index: 4, kind: output, shape index: {0}]   ;;  %s8653_s5 = inlined_call_operand.hbm [shape: f32[2,16,16], index: 5, kind: output, shape index: {1}]  }
   0x1   :  { %13 = vsyncpa [#allocation4 + $0x1], 0  ;;  %s5659_s18 = smov 0   ;;  %s5661_s19 = smov 0  }
   0x2   :  { %s5663_s20 = smov 0   ;;  %s5665_s21 = smov 0  }
   0x3 LB: > { %s5680_s22 = sadd.s32 4294967295, %s5623_s21   ;;  %s5273_s23 = sadd.s32 4294967294, %s5623_s21   ;;  %s5623_s21 = sphi %s5665_s21, %s8974_s21   ;;  %s5619_s20 = sphi %s5663_s20, %s8973_s20   ;;  %s5615_s19 = sphi %s5661_s19, %s8972_s19   ;;  %s5611_s18 = sphi %s5659_s18, %s8971_s18  }
   0x4   : > { %s5684_s24 = sadd.s32 1, %s5623_s21   ;;  %s141_s25 = sadd.s32 1, %s5619_s20 }
   0x5   : > { %s138_s26 = ssub.s32 %s5623_s21, %s5684_s24  ;;  %p151_p0 = scmp.ne.s32.totalorder %s5619_s20, %s5615_s19 }
   0x6   : > { %p139_p1 = scmp.eq.s32.totalorder %s138_s26, 0  ;;  %p152_p2 = scmp.eq.s32.totalorder %s5680_s22, 1 }
   0x7   : > { %p157_p3 = scmp.ne.s32.totalorder %s5615_s19, %s5611_s18  ;;  %p158_p4 = scmp.eq.s32.totalorder %s5273_s23, 1 }
   0x8   : > { %s5695_s27 = scalar_select %p139_p1, %s5619_s20, %s141_s25  }
   0x9   : > { %p5697_p5 = por %p152_p2, %p151_p0  ;;  %p5701_p6 = por %p158_p4, %p157_p3 }
   0xa   : > { %p5276_p7 = scmp.ge.s32.totalorder %s5623_s21, 1  ;;  %p193_p8 = scmp.lt.s32.totalorder %s5623_s21, 3 }
   0xc   : > { %p194_p9 = pnand %p5276_p7, %p193_p8 }
   0xe   : > { %197 = sbr.rel (%p194_p9) target bundleno = 1708 (0x6ac), region = 36 }
  0x13   : > { %v243_v0 = vld [vmem:[%s8649_s1 + $0x18] sm:$0x1]  ;;  %vm276_vm0 = vcmask 1040384   ;;  %p226_p10 = scmp.lt.s32.totalorder %s5680_s22, 1  ;;  %v5625_v2 = vmov 0   ;;  %v5722_v6 = vld [vmem:[%s8649_s1 + $0x10] sm:$0xff]  ;;  %v8654_v21 = vlaneseq }
  0x14   : > { %v264_v1 = vunpack.c.l.b16 %v243_v0  ;;  %v278_v3 = vsel %vm276_vm0, 65535, %v5625_v2  ;;  %v5732_v7 = vld [vmem:[%s8649_s1 + $0x8] sm:$0xff]  ;;  %v5744_v8 = vld [vmem:[%s8649_s1] sm:$0xff]  ;;  %vm272_vm1 = vcmask 400384   ;;  %v5626_v51 = vmov 0.0   ;;  %s5581_s26 = scalar_lea.hbm %s8653_s5, 32 }
  0x15   : > { %s5713_s7 = scalar_select %p226_p10, %s5680_s22, 1  ;;  %v5771_v22 = vshrl.u32 %v8654_v21, 7  ;;  %v5782_v23 = vld [vmem:[%s8651_s3] sm:$0xff]  ;;  %v5837_v49 = vld [vmem:[%s8651_s3 + $0x8] sm:$0xff]  ;;  %577 = vst [vmem:[#allocation2] sm:$0xff] %v5626_v51  ;;  %vm5089_vm2 = vcmask 130112  }
  0x16   : > { %v268_v4 = vpack.c.b16 %v264_v1, %v264_v1  ;;  %v4697_v30 = vperm.slane %v5782_v23, 1  ;;  %v4684_v38 = vperm.slane %v5782_v23, 0  ;;  %v4710_v43 = vperm.slane %v5782_v23, 2  ;;  %578 = vst [vmem:[#allocation2 + $0x8] sm:$0xff] %v5626_v51  ;;  %v5858_v57 = vld [vmem:[%s8650_s2 + $0x28] sm:$0xff]  ;;  %v5863_v58 = vld [vmem:[%s8650_s2 + $0x20] sm:$0xff] }
  0x17   : > { %s5397_s10 = smul.u32 80, %s5713_s7  ;;  %5444 = vset.pattern.permute.xlu1 %v5771_v22  ;;  %5442 = vset.pattern.permute.xlu2 %v5771_v22  ;;  %v5785_v24 = vadd.s32 8, %v5771_v22  ;;  %v4762_v44 = vperm.slane %v5782_v23, 6  ;;  %v4723_v47 = vperm.slane %v5782_v23, 3  ;;  %v4749_v48 = vperm.slane %v5782_v23, 5  ;;  %579 = vst [vmem:[#allocation2 + $0x10] sm:$0xff] %v5626_v51 }
  0x18   : > { %v5715_v5 = vand.u32 %v278_v3, %v268_v4  ;;  %v4827_v50 = vperm.slane %v5837_v49, 3  ;;  %580 = vst [vmem:[#allocation2 + $0x18] sm:$0xff] %v5626_v51  ;;  %v4775_v52 = vperm.slane %v5782_v23, 7  ;;  %v4736_v53 = vperm.slane %v5782_v23, 4  ;;  %s5398_s6 = smul.u32 160, %s5713_s7  ;;  %v5884_v1 = vld [vmem:[%s8650_s2 + $0x18] sm:$0xff] }
  0x19   : > { %s5737_s15 = scalar_lea.vmem %s8648_s0, %s5397_s10  ;;  %5443 = vset.pattern.permute.xlu0 %v5785_v24  ;;  %581 = vst [vmem:[#allocation2 + $0x20] sm:$0xff] %v5626_v51  ;;  %v4788_v54 = vperm.slane %v5837_v49, 0  ;;  %v4801_v55 = vperm.slane %v5837_v49, 1  ;;  %v4866_v56 = vperm.slane %v5837_v49, 6  ;;  %v5866_v59 = vperm.slane %v5858_v57, 2  ;;  %s5396_s10 = sshll.u32 %s5680_s22, 4 }
  0x1a   : > { %286 = vmatpush.bf16.msra.mxu0 %v5715_v5  ;;  %313 = vmatpush.bf16.msra.mxu1 %v5715_v5  ;;  %v5282_v9 = vld [vmem:[%s5737_s15] sm:$0xf]  ;;  %v5386_v10 = vld [vmem:[%s5737_s15] sm:$0x10]  ;;  %v5301_v11 = vld [vmem:[%s5737_s15 + $0x8] sm:$0xf]  ;;  %s5871_s13 = scalar_lea.vmem %s8652_s4, %s5398_s6  ;;  %s5182_s7 = scalar_lea.hbm %s8653_s5, %s5396_s10 }
  0x1b   : > { %341 = vmatpush.bf16.msra.mxu2 %v5715_v5  ;;  %369 = vmatpush.bf16.msra.mxu3 %v5715_v5  ;;  %v5387_v12 = vld [vmem:[%s5737_s15 + $0x8] sm:$0x10]  ;;  %v5310_v13 = vld [vmem:[%s5737_s15 + $0x10] sm:$0xf]  ;;  %v5388_v14 = vld [vmem:[%s5737_s15 + $0x10] sm:$0x10]  ;;  %v5283_v17 = vor.u32 %v5386_v10, %v5282_v9 }
  0x1c   : > { %v5319_v15 = vld [vmem:[%s5737_s15 + $0x18] sm:$0xf]  ;;  %v5389_v16 = vld [vmem:[%s5737_s15 + $0x18] sm:$0x10]  ;;  %v5302_v18 = vor.u32 %v5387_v12, %v5301_v11  ;;  %v5311_v19 = vor.u32 %v5388_v14, %v5310_v13  ;;  %v5328_v25 = vld [vmem:[%s5737_s15 + $0x20] sm:$0xf] }
  0x1d   : > { %v5320_v20 = vor.u32 %v5389_v16, %v5319_v15  ;;  %v5390_v26 = vld [vmem:[%s5737_s15 + $0x20] sm:$0x10]  ;;  %v5337_v27 = vld [vmem:[%s5737_s15 + $0x28] sm:$0xf]  ;;  %v5391_v28 = vld [vmem:[%s5737_s15 + $0x28] sm:$0x10] }
  0x1e   : > { %287 = vmatpush.bf16.msra.mxu0 %v5722_v6  ;;  %314 = vmatpush.bf16.msra.mxu1 %v5722_v6  ;;  %v5346_v29 = vld [vmem:[%s5737_s15 + $0x30] sm:$0xf]  ;;  %v5392_v31 = vld [vmem:[%s5737_s15 + $0x30] sm:$0x10]  ;;  %v5355_v32 = vld [vmem:[%s5737_s15 + $0x38] sm:$0xf]  ;;  %v5329_v34 = vor.u32 %v5390_v26, %v5328_v25  ;;  %v5338_v35 = vor.u32 %v5391_v28, %v5337_v27 }
  0x1f   : > { %342 = vmatpush.bf16.msra.mxu2 %v5722_v6  ;;  %370 = vmatpush.bf16.msra.mxu3 %v5722_v6  ;;  %v5393_v33 = vld [vmem:[%s5737_s15 + $0x38] sm:$0x10]  ;;  %v5347_v36 = vor.u32 %v5392_v31, %v5346_v29  ;;  %v5364_v39 = vld [vmem:[%s5737_s15 + $0x40] sm:$0xf]  ;;  %v5394_v40 = vld [vmem:[%s5737_s15 + $0x40] sm:$0x10] }
  0x20   : > { %v5356_v37 = vor.u32 %v5393_v33, %v5355_v32  ;;  %4702 = vperm.xlu1 %5444, %v4697_v30   ;;  %4689 = vperm.xlu2 %5442, %v4684_v38   ;;  %v5373_v41 = vld [vmem:[%s5737_s15 + $0x48] sm:$0xf]  ;;  %v5395_v42 = vld [vmem:[%s5737_s15 + $0x48] sm:$0x10]  ;;  %v5365_v45 = vor.u32 %v5394_v40, %v5364_v39  ;;  %582 = vst [vmem:[#allocation2 + $0x28] sm:$0xff] %v5626_v51  ;;  %v4814_v60 = vperm.slane %v5837_v49, 2 }
  0x21   : > { %4695 = vperm.xlu0 %5443, %v4684_v38   ;;  %v5374_v46 = vor.u32 %v5395_v42, %v5373_v41  ;;  %583 = vst [vmem:[#allocation2 + $0x30] sm:$0xff] %v5626_v51  ;;  %v5875_v61 = vperm.slane %v5863_v58, 3  ;;  %v4017_v0 = vld [vmem:[#allocation2 + $0x6] sm:$0xff]  ;;  %v3450_v4 = vld [vmem:[#allocation2 + $0x16] sm:$0xff]  ;;  %v5901_v12 = vperm.slane %v5858_v57, 3  ;;  %v5926_v33 = vperm.slane %v5858_v57, 4 }
  0x22   : > { %288 = vmatpush.bf16.msra.mxu0 %v5732_v7  ;;  %315 = vmatpush.bf16.msra.mxu1 %v5732_v7  ;;  %584 = vst [vmem:[#allocation2 + $0x38] sm:$0xff] %v5626_v51  ;;  %v4018_v32 = vld [vmem:[#allocation2 + $0xe] sm:$0x3]  ;;  %v3451_v40 = vld [vmem:[#allocation2 + $0x1e] sm:$0x3]  ;;  %v5938_v41 = vperm.slane %v5863_v58, 5 }
  0x23   : > { %343 = vmatpush.bf16.msra.mxu2 %v5732_v7  ;;  %371 = vmatpush.bf16.msra.mxu3 %v5732_v7  ;;  %585 = vst [vmem:[#allocation2 + $0x40] sm:$0xff] %v5626_v51  ;;  %vm5136_vm3 = vcmask 1041409   ;;  %vm5138_vm4 = vcmask 1042434   ;;  %vm5140_vm5 = vcmask 1043459   ;;  %vm5142_vm6 = vcmask 1044484   ;;  %s5185_s14 = sshll.u32 %s5182_s7, 4  ;;  %s5186_s14 = int_to_ptr.hbm [resolvable:$true] %s5185_s14 }
  0x24   : > { %586 = vst [vmem:[#allocation2 + $0x48] sm:$0xff] %v5626_v51  ;;  %vm5144_vm7 = vcmask 1045509   ;;  %vm5146_vm8 = vcmask 1046534   ;;  %vm5148_vm9 = vcmask 1047559   ;;  %vm5159_vm10 = vcmask 130048   ;;  %s5575_s16 = sshra.s32 %s5186_s14, 4  ;;  %s5576_s16 = int_to_ptr.hbm [resolvable:$true] %s5575_s16 }
  0x25   : > { %587 = vst [vmem:[#allocation2 + $0x50] sm:$0xff] %v5626_v51  ;;  %s5577_s17 = scalar_lea.hbm %s5576_s16, 16  ;;  %p5582_p0 = scmp.lt.s32.totalorder %s5576_s16, %s8653_s5 }
  0x26   : > { %289 = vmatpush.bf16.msra.mxu0 %v5744_v8  ;;  %316 = vmatpush.bf16.msra.mxu1 %v5744_v8  ;;  %588 = vst [vmem:[#allocation2 + $0x58] sm:$0xff] %v5626_v51  ;;  %p5578_p11 = scmp.ne.s32.totalorder %s5576_s16, %s5577_s17  ;;  %p5583_p1 = scmp.lt.s32.totalorder %s5581_s26, %s5577_s17 }
  0x27   : > { %344 = vmatpush.bf16.msra.mxu2 %v5744_v8  ;;  %372 = vmatpush.bf16.msra.mxu3 %v5744_v8  ;;  %589 = vst [vmem:[#allocation2 + $0x60] sm:$0xff] %v5626_v51  ;;  %v2882_v9 = vld [vmem:[#allocation2 + $0x26] sm:$0xff] }
  0x28   : > { %5447 = vset.pattern.permute.xlu1 %v5785_v24  ;;  %5445 = vset.pattern.permute.xlu2 %v5785_v24  ;;  %590 = vst [vmem:[#allocation2 + $0x68] sm:$0xff] %v5626_v51  ;;  %p5579_p12 = pnand %p5578_p11, %p5697_p5  ;;  %p5584_p2 = por %p5583_p1, %p5582_p0 }
  0x29   : > { %5296 = vmatmul.msk.bf16.vlgmr.msra.gmra.mxu0 %vm272_vm1, %v5283_v17  ;;  %5303 = vmatmul.msk.bf16.vlgmr.msra.gmra.mxu1 %vm272_vm1, %v5302_v18  ;;  %591 = vst [vmem:[#allocation2 + $0x70] sm:$0xff] %v5626_v51  ;;  %v5911_v17 = vperm.slane %v5863_v58, 4 }
  0x2a   : > { %397 = vmatpush.bf16.msrb.mxu0 %v5715_v5  ;;  %425 = vmatpush.bf16.msrb.mxu1 %v5715_v5  ;;  %592 = vst [vmem:[#allocation2 + $0x78] sm:$0xff] %v5626_v51  ;;  %p5580_p13 = pneg %p5579_p12 }
  0x2b   : > { %5312 = vmatmul.msk.bf16.vlgmr.msra.gmra.mxu2 %vm272_vm1, %v5311_v19  ;;  %5321 = vmatmul.msk.bf16.vlgmr.msra.gmra.mxu3 %vm272_vm1, %v5320_v20  ;;  %593 = vst [vmem:[#allocation2 + $0x80] sm:$0xff] %v5626_v51 }
  0x2c   : > { %453 = vmatpush.bf16.msrb.mxu2 %v5715_v5  ;;  %481 = vmatpush.bf16.msrb.mxu3 %v5715_v5  ;;  %594 = vst [vmem:[#allocation2 + $0x88] sm:$0xff] %v5626_v51  ;;  %p5585_p3 = pnand %p5584_p2, %p5580_p13 }
  0x2d   : > { %4773 = vperm.xlu0 %5443, %v4762_v44   ;;  %595 = vst [vmem:[#allocation2 + $0x90] sm:$0xff] %v5626_v51 }
  0x2e   : > { %398 = vmatpush.bf16.msrb.mxu0 %v5722_v6  ;;  %426 = vmatpush.bf16.msrb.mxu1 %v5722_v6  ;;  %596 = vst [vmem:[#allocation2 + $0x98] sm:$0xff] %v5626_v51 }
  0x2f   : > { %597 = vst [vmem:[#allocation2 + $0xa0] sm:$0xff] %v5626_v51 }
  0x30   : > { %454 = vmatpush.bf16.msrb.mxu2 %v5722_v6  ;;  %482 = vmatpush.bf16.msrb.mxu3 %v5722_v6  ;;  %598 = vst [vmem:[#allocation2 + $0xa8] sm:$0xff] %v5626_v51 }
  0x31   : > { %4721 = vperm.xlu1 %5447, %v4710_v43   ;;  %4708 = vperm.xlu2 %5445, %v4697_v30   ;;  %599 = vst [vmem:[#allocation2 + $0xb0] sm:$0xff] %v5626_v51 }
  0x32   : > { %399 = vmatpush.bf16.msrb.mxu0 %v5732_v7  ;;  %427 = vmatpush.bf16.msrb.mxu1 %v5732_v7  ;;  %600 = vst [vmem:[#allocation2 + $0xb8] sm:$0xff] %v5626_v51 }
  0x33   : > { %601 = vst [vmem:[#allocation2 + $0xc0] sm:$0xff] %v5626_v51 }
  0x34   : > { %455 = vmatpush.bf16.msrb.mxu2 %v5732_v7  ;;  %483 = vmatpush.bf16.msrb.mxu3 %v5732_v7  ;;  %602 = vst [vmem:[#allocation2 + $0xc8] sm:$0xff] %v5626_v51 }
  0x35   : > { %4838 = vperm.xlu0 %5443, %v4827_v50   ;;  %603 = vst [vmem:[#allocation2 + $0xd0] sm:$0xff] %v5626_v51 }
  0x36   : > { %400 = vmatpush.bf16.msrb.mxu0 %v5744_v8  ;;  %428 = vmatpush.bf16.msrb.mxu1 %v5744_v8  ;;  %604 = vst [vmem:[#allocation2 + $0xd8] sm:$0xff] %v5626_v51 }
  0x37   : > { %605 = vst [vmem:[#allocation2 + $0xe0] sm:$0xff] %v5626_v51 }
  0x38   : > { %456 = vmatpush.bf16.msrb.mxu2 %v5744_v8  ;;  %484 = vmatpush.bf16.msrb.mxu3 %v5744_v8  ;;  %606 = vst [vmem:[#allocation2 + $0xe8] sm:$0xff] %v5626_v51 }
  0x39   : > { %5330 = vmatmul.msk.bf16.vlgmr.msrb.gmra.mxu0 %vm272_vm1, %v5329_v34  ;;  %5339 = vmatmul.msk.bf16.vlgmr.msrb.gmra.mxu1 %vm272_vm1, %v5338_v35  ;;  %607 = vst [vmem:[#allocation2 + $0xf0] sm:$0xff] %v5626_v51 }
  0x3a   : > { %509 = vmatpush.bf16.msra.mxu0 %v5715_v5  ;;  %537 = vmatpush.bf16.msra.mxu1 %v5715_v5  ;;  %608 = vst [vmem:[#allocation2 + $0xf8] sm:$0xff] %v5626_v51 }
  0x3b   : > { %5348 = vmatmul.msk.bf16.vlgmr.msrb.gmra.mxu2 %vm272_vm1, %v5347_v36  ;;  %5357 = vmatmul.msk.bf16.vlgmr.msrb.gmra.mxu3 %vm272_vm1, %v5356_v37  ;;  %8780 = vst [vmem:[#allocation6_spill] sm:$0xff] %v5866_v59  ;;  %v4840_v36 = vperm.slane %v5837_v49, 4 }
  0x3c   : > { %4734 = vperm.xlu1 %5447, %v4723_v47   ;;  %5446 = vset.pattern.permute.xlu2 %v5771_v22  ;;  %8781 = vst [vmem:[#allocation7_spill] sm:$0xff] %v5875_v61 }
  0x3d   : > { %5454 = vset.pattern.permute.xlu0 %v5771_v22  ;;  %8783 = vst [vmem:[#allocation9_spill] sm:$0xff] %v5901_v12 }
  0x3e   : > { %510 = vmatpush.bf16.msra.mxu0 %v5722_v6  ;;  %538 = vmatpush.bf16.msra.mxu1 %v5722_v6  ;;  %8784 = vst [vmem:[#allocation10_spill] sm:$0xff] %v5911_v17 }
  0x3f   : > { %8785 = vst [vmem:[#allocation11_spill] sm:$0xff] %v5926_v33 }
  0x40   : > { %8786 = vst [vmem:[#allocation12_spill] sm:$0xff] %v5938_v41 }
  0x42   : > { %511 = vmatpush.bf16.msra.mxu0 %v5732_v7  ;;  %539 = vmatpush.bf16.msra.mxu1 %v5732_v7  ;;  %v5898_v7 = vperm.slane %v5884_v1, 4 }
  0x44   : > { %5449 = vset.pattern.permute.xlu1 %v5771_v22  ;;  %4715 = vperm.xlu2 %5446, %v4710_v43   ;;  %8782 = vst [vmem:[#allocation8_spill] sm:$0xff] %v5898_v7 }
  0x45   : > { %4741 = vperm.xlu0 %5454, %v4736_v53  }
  0x46   : > { %512 = vmatpush.bf16.msra.mxu0 %v5744_v8  ;;  %540 = vmatpush.bf16.msra.mxu1 %v5744_v8 }
  0x49   : > { %5366 = vmatmul.msk.bf16.vlgmr.msra.gmra.mxu0 %vm272_vm1, %v5365_v45  ;;  %5375 = vmatmul.msk.bf16.vlgmr.msra.gmra.mxu1 %vm272_vm1, %v5374_v46 }
  0x4c   : > { %4754 = vperm.xlu1 %5449, %v4749_v48   ;;  %4728 = vperm.xlu2 %5446, %v4723_v47   ;;  %v2883_v47 = vld [vmem:[#allocation2 + $0x2e] sm:$0x3] }
  0x4d   : > { %4806 = vperm.xlu0 %5454, %v4801_v55  }
  0x54   : > { %4767 = vperm.xlu1 %5449, %v4762_v44   ;;  %5448 = vset.pattern.permute.xlu2 %v5785_v24 }
  0x55   : > { %4871 = vperm.xlu0 %5454, %v4866_v56  }
  0x5c   : > { %5451 = vset.pattern.permute.xlu1 %v5785_v24  ;;  %4747 = vperm.xlu2 %5448, %v4736_v53  }
  0x5d   : > { %5460 = vset.pattern.permute.xlu0 %v5625_v2 }
  0x64   : > { %4786 = vperm.xlu1 %5451, %v4775_v52   ;;  %4760 = vperm.xlu2 %5448, %v4749_v48  }
  0x6c   : > { %4799 = vperm.xlu1 %5451, %v4788_v54   ;;  %5450 = vset.pattern.permute.xlu2 %v5771_v22 }
  0x74   : > { %5453 = vset.pattern.permute.xlu1 %v5771_v22  ;;  %4780 = vperm.xlu2 %5450, %v4775_v52  }
  0x7c   : > { %4819 = vperm.xlu1 %5453, %v4814_v60   ;;  %4793 = vperm.xlu2 %5450, %v4788_v54   ;;  %v5958_v54 = vld [vmem:[%s8650_s2] sm:$0xff] }
  0x84   : > { %4832 = vperm.xlu1 %5453, %v4827_v50   ;;  %5452 = vset.pattern.permute.xlu2 %v5785_v24 }
  0x8c   : > { %5456 = vset.pattern.permute.xlu1 %v5785_v24  ;;  %4812 = vperm.xlu2 %5452, %v4801_v55   ;;  %v5962_v55 = vperm.slane %v5858_v57, 5 }
  0x8e   : > { %8787 = vst [vmem:[#allocation13_spill] sm:$0xff] %v5962_v55 }
  0x94   : > { %4851 = vperm.xlu1 %5456, %v4840_v36   ;;  %4825 = vperm.xlu2 %5452, %v4814_v60   ;;  %v626_v60 = vld [vmem:[#allocation2 + $0xe6] sm:$0xff] }
  0x9c   : > { %5455 = vset.pattern.permute.xlu2 %v5771_v22 }
  0xa4   : > { %4845 = vperm.xlu2 %5455, %v4840_v36   ;;  %v6062_v36 = vperm.slane %v5858_v57, 0 }
  0xa6   : > { %v5877_v62 = vpop.f32.mrf.mxu0  ;;  %v5879_v63 = vpop.f32.mrf.mxu1  ;;  %8795 = vst [vmem:[#allocation21_spill] sm:$0xff] %v6062_v36 }
  0xa7   : > { %296 = vst [vmem:[%s5871_s13] sm:$0xff] %v5877_v62  ;;  %v4038_v3 = vmul.f32 %v5866_v59, %v5877_v62  ;;  %v3471_v6 = vmul.f32 %v5875_v61, %v5877_v62  ;;  %v2903_v13 = vmul.f32 %v5898_v7, %v5877_v62  ;;  %v4119_v18 = vmul.f32 %v5901_v12, %v5877_v62 }
  0xa8   : > { %5304 = vst [vmem:[%s5871_s13 + $0x10] sm:$0xff] %v5879_v63  ;;  %v3552_v25 = vmul.f32 %v5911_v17, %v5877_v62  ;;  %v4200_v39 = vmul.f32 %v5926_v33, %v5877_v62  ;;  %v3633_v51 = vmul.f32 %v5938_v41, %v5877_v62 }
  0xa9   : > { %v4058_v5 = vadd.f32 %v4038_v3, %v4017_v0  ;;  %v3491_v8 = vadd.f32 %v3471_v6, %v3450_v4  ;;  %v2923_v16 = vadd.f32 %v2903_v13, %v2882_v9  ;;  %v4853_v3 = vperm.slane %v5837_v49, 5 }
  0xaa   : > { %v5967_v9 = vperm.slane %v5958_v54, 0 }
  0xab   : > { %4078 = vst [vmem:[#allocation2 + $0x6] sm:$0xff] %v4058_v5  ;;  %4864 = vperm.xlu1 %5456, %v4853_v3  }
  0xac   : > { %3511 = vst [vmem:[#allocation2 + $0x16] sm:$0xff] %v3491_v8  ;;  %4858 = vperm.xlu2 %5455, %v4853_v3  }
  0xad   : > { %2943 = vst [vmem:[#allocation2 + $0x26] sm:$0xff] %v2923_v16 }
  0xae   : > { %v346_v10 = vpop.f32.mrf.mxu2  ;;  %v374_v11 = vpop.f32.mrf.mxu3  ;;  %8788 = vst [vmem:[#allocation14_spill] sm:$0xff] %v5967_v9 }
  0xaf   : > { %5313 = vst [vmem:[%s5871_s13 + $0x20] sm:$0xff] %v346_v10  ;;  %v293_v14 = vpop.f32.mrf.mxu0  ;;  %v320_v15 = vpop.f32.mrf.mxu1 }
  0xb0   : > { %5322 = vst [vmem:[%s5871_s13 + $0x30] sm:$0xff] %v374_v11 }
  0xb1   : > { %297 = vst [vmem:[%s5871_s13 + $0x8] sm:$0x3] %v293_v14  ;;  %v628_v14 = vld [vmem:[#allocation2 + $0xf6] sm:$0xff] }
  0xb2   : > { %5305 = vst [vmem:[%s5871_s13 + $0x18] sm:$0x3] %v320_v15  ;;  %v4098_v19 = vld [vmem:[#allocation2 + $0x5] sm:$0xff]  ;;  %v5975_v15 = vperm.slane %v5863_v58, 6 }
  0xb3   : > { %v4139_v20 = vadd.f32 %v4119_v18, %v4098_v19  ;;  %v3531_v23 = vld [vmem:[#allocation2 + $0x15] sm:$0xff]  ;;  %v4281_v18 = vmul.f32 %v5962_v55, %v5877_v62  ;;  %v5989_v19 = vperm.slane %v5884_v1, 5  ;;  %5458 = vset.pattern.permute.xlu1 %v5771_v22 }
  0xb4   : > { %v3572_v30 = vadd.f32 %v3552_v25, %v3531_v23  ;;  %8789 = vst [vmem:[#allocation15_spill] sm:$0xff] %v5975_v15  ;;  %5457 = vset.pattern.permute.xlu2 %v5785_v24 }
  0xb5   : > { %4159 = vst [vmem:[#allocation2 + $0x5] sm:$0xff] %v4139_v20 }
  0xb6   : > { %v348_v26 = vpop.f32.mrf.mxu2  ;;  %v376_v27 = vpop.f32.mrf.mxu3  ;;  %3592 = vst [vmem:[#allocation2 + $0x15] sm:$0xff] %v3572_v30 }
  0xb7   : > { %5314 = vst [vmem:[%s5871_s13 + $0x28] sm:$0x3] %v348_v26  ;;  %v402_v28 = vpop.f32.mrf.mxu0  ;;  %v430_v29 = vpop.f32.mrf.mxu1 }
  0xb8   : > { %v5920_v31 = vld [vmem:[%s5871_s13 + $0x8] sm:$0x3]  ;;  %5323 = vst [vmem:[%s5871_s13 + $0x38] sm:$0x3] %v376_v27 }
  0xb9   : > { %5331 = vst [vmem:[%s5871_s13 + $0x40] sm:$0xff] %v402_v28  ;;  %v4039_v34 = vmul.f32 %v5866_v59, %v5920_v31  ;;  %v3472_v37 = vmul.f32 %v5875_v61, %v5920_v31  ;;  %v2904_v48 = vmul.f32 %v5898_v7, %v5920_v31  ;;  %v4120_v5 = vmul.f32 %v5901_v12, %v5920_v31 }
  0xba   : > { %5340 = vst [vmem:[%s5871_s13 + $0x50] sm:$0xff] %v430_v29  ;;  %v3553_v25 = vmul.f32 %v5911_v17, %v5920_v31  ;;  %v3714_v29 = vmul.f32 %v5975_v15, %v5877_v62  ;;  %v3634_v22 = vmul.f32 %v5938_v41, %v5920_v31 }
  0xbb   : > { %v4059_v35 = vadd.f32 %v4039_v34, %v4018_v32  ;;  %v3492_v50 = vadd.f32 %v3472_v37, %v3451_v40  ;;  %v2924_v53 = vadd.f32 %v2904_v48, %v2883_v47  ;;  %8790 = vst [vmem:[#allocation16_spill] sm:$0xff] %v5989_v19  ;;  %v2963_v34 = vld [vmem:[#allocation2 + $0x25] sm:$0xff] }
  0xbc   : > { %v4179_v38 = vld [vmem:[#allocation2 + $0x4] sm:$0xff]  ;;  %4877 = vperm.xlu2 %5457, %v4866_v56  }
  0xbd   : > { %4079 = vst [vmem:[#allocation2 + $0xe] sm:$0x3] %v4059_v35  ;;  %v4220_v46 = vadd.f32 %v4200_v39, %v4179_v38  ;;  %v3612_v52 = vld [vmem:[#allocation2 + $0x14] sm:$0xff]  ;;  %v2984_v38 = vmul.f32 %v5989_v19, %v5877_v62  ;;  %v6002_v39 = vperm.slane %v5958_v54, 1 }
  0xbe   : > { %v458_v42 = vpop.f32.mrf.mxu2  ;;  %v5940_v43 = vpop.f32.mrf.mxu3  ;;  %v3653_v0 = vadd.f32 %v3633_v51, %v3612_v52  ;;  %3512 = vst [vmem:[#allocation2 + $0x1e] sm:$0x3] %v3492_v50  ;;  %v4201_v51 = vmul.f32 %v5926_v33, %v5920_v31  ;;  %v6018_v52 = vperm.slane %v5863_v58, 7 }
  0xbf   : > { %5349 = vst [vmem:[%s5871_s13 + $0x60] sm:$0xff] %v458_v42  ;;  %v404_v44 = vpop.f32.mrf.mxu0  ;;  %v432_v45 = vpop.f32.mrf.mxu1  ;;  %v2985_v42 = vmul.f32 %v5989_v19, %v5920_v31  ;;  %v3004_v47 = vadd.f32 %v2984_v38, %v2963_v34 }
  0xc0   : > { %5358 = vst [vmem:[%s5871_s13 + $0x70] sm:$0xff] %v5940_v43 }
  0xc1   : > { %5332 = vst [vmem:[%s5871_s13 + $0x48] sm:$0x3] %v404_v44 }
  0xc2   : > { %5341 = vst [vmem:[%s5871_s13 + $0x58] sm:$0x3] %v432_v45 }
  0xc3   : > { %4240 = vst [vmem:[#allocation2 + $0x4] sm:$0xff] %v4220_v46  ;;  %v6007_v46 = vperm.slane %v5858_v57, 6 }
  0xc4   : > { %v4099_v4 = vld [vmem:[#allocation2 + $0xd] sm:$0x3]  ;;  %3673 = vst [vmem:[#allocation2 + $0x14] sm:$0xff] %v3653_v0 }
  0xc5   : > { %2944 = vst [vmem:[#allocation2 + $0x2e] sm:$0x3] %v2924_v53  ;;  %v4140_v13 = vadd.f32 %v4120_v5, %v4099_v4  ;;  %v3532_v28 = vld [vmem:[#allocation2 + $0x1d] sm:$0x3]  ;;  %v4362_v0 = vmul.f32 %v6007_v46, %v5877_v62 }
  0xc6   : > { %v460_v6 = vpop.f32.mrf.mxu2  ;;  %v488_v8 = vpop.f32.mrf.mxu3  ;;  %v3573_v30 = vadd.f32 %v3553_v25, %v3532_v28  ;;  %8791 = vst [vmem:[#allocation17_spill] sm:$0xff] %v6007_v46 }
  0xc7   : > { %5350 = vst [vmem:[%s5871_s13 + $0x68] sm:$0x3] %v460_v6  ;;  %v5970_v10 = vpop.f32.mrf.mxu0  ;;  %v5972_v11 = vpop.f32.mrf.mxu1  ;;  %v6023_v6 = vld [vmem:[%s5871_s13 + $0x18] sm:$0x3] }
  0xc8   : > { %5359 = vst [vmem:[%s5871_s13 + $0x78] sm:$0x3] %v488_v8  ;;  %v649_v16 = vmul.f32 %v5967_v9, %v5972_v11  ;;  %v647_v26 = vmul.f32 %v5967_v9, %v5970_v10  ;;  %v730_v48 = vmul.f32 %v6002_v39, %v5972_v11  ;;  %v4879_v8 = vperm.slane %v5837_v49, 7 }
  0xc9   : > { %5367 = vst [vmem:[%s5871_s13 + $0x80] sm:$0xff] %v5970_v10  ;;  %v4041_v25 = vmul.f32 %v5866_v59, %v6023_v6  ;;  %v728_v34 = vmul.f32 %v6002_v39, %v5970_v10 }
  0xca   : > { %5376 = vst [vmem:[%s5871_s13 + $0x90] sm:$0xff] %v5972_v11  ;;  %v4260_v20 = vld [vmem:[#allocation2 + $0x3] sm:$0xff]  ;;  %v669_v23 = vadd.f32 %v649_v16, %v628_v14  ;;  %v667_v40 = vadd.f32 %v647_v26, %v626_v60  ;;  %4884 = vperm.xlu1 %5458, %v4879_v8   ;;  %4890 = vperm.xlu2 %5457, %v4879_v8  }
  0xcb   : > { %v4301_v27 = vadd.f32 %v4281_v18, %v4260_v20  ;;  %4160 = vst [vmem:[#allocation2 + $0xd] sm:$0x3] %v4140_v13  ;;  %v3693_v32 = vld [vmem:[#allocation2 + $0x13] sm:$0xff]  ;;  %v3795_v20 = vmul.f32 %v6018_v52, %v5877_v62 }
  0xcc   : > { %689 = vst [vmem:[#allocation2 + $0xf6] sm:$0xff] %v669_v23  ;;  %v3734_v35 = vadd.f32 %v3714_v29, %v3693_v32  ;;  %v2964_v37 = vld [vmem:[#allocation2 + $0x2d] sm:$0x3]  ;;  %v6036_v29 = vperm.slane %v5958_v54, 2 }
  0xcd   : > { %4321 = vst [vmem:[#allocation2 + $0x3] sm:$0xff] %v4301_v27  ;;  %v3005_v50 = vadd.f32 %v2985_v42, %v2964_v37  ;;  %v627_v32 = vld [vmem:[#allocation2 + $0xee] sm:$0x3]  ;;  %v629_v37 = vld [vmem:[#allocation2 + $0xfe] sm:$0x3] }
  0xce   : > { %3593 = vst [vmem:[#allocation2 + $0x1d] sm:$0x3] %v3573_v30 }
  0xcf   : > { %v516_v44 = vpop.f32.mrf.mxu0  ;;  %v544_v45 = vpop.f32.mrf.mxu1  ;;  %3754 = vst [vmem:[#allocation2 + $0x13] sm:$0xff] %v3734_v35 }
  0xd0   : > { %5368 = vst [vmem:[%s5871_s13 + $0x88] sm:$0x3] %v516_v44 }
  0xd1   : > { %5377 = vst [vmem:[%s5871_s13 + $0x98] sm:$0x3] %v544_v45  ;;  %v6055_v45 = vperm.slane %v5884_v1, 6 }
  0xd2   : > { %8792 = vst [vmem:[#allocation18_spill] sm:$0xff] %v6018_v52  ;;  %v4180_v53 = vld [vmem:[#allocation2 + $0xc] sm:$0x3]  ;;  %5459 = vset.pattern.permute.xlu1 %v5625_v2  ;;  %5461 = vset.pattern.permute.xlu2 %v5625_v2 }
  0xd3   : > { %687 = vst [vmem:[#allocation2 + $0xe6] sm:$0xff] %v667_v40  ;;  %v4221_v4 = vadd.f32 %v4201_v51, %v4180_v53  ;;  %v709_v5 = vld [vmem:[#allocation2 + $0xf5] sm:$0xff]  ;;  %v6048_v40 = vperm.slane %v5858_v57, 7 }
  0xd4   : > { %3024 = vst [vmem:[#allocation2 + $0x25] sm:$0xff] %v3004_v47  ;;  %v4341_v13 = vld [vmem:[#allocation2 + $0x2] sm:$0xff]  ;;  %v750_v14 = vadd.f32 %v730_v48, %v709_v5  ;;  %v811_v47 = vmul.f32 %v6036_v29, %v5972_v11 }
  0xd5   : > { %3025 = vst [vmem:[#allocation2 + $0x2d] sm:$0x3] %v3005_v50  ;;  %v4382_v16 = vadd.f32 %v4362_v0, %v4341_v13  ;;  %v3613_v18 = vld [vmem:[#allocation2 + $0x1c] sm:$0x3]  ;;  %v4020_v23 = vld [vmem:[#allocation2 + $0x1e] sm:$0x3]  ;;  %v4282_v50 = vmul.f32 %v5962_v55, %v5920_v31  ;;  %v4443_v5 = vmul.f32 %v6048_v40, %v5877_v62 }
  0xd6   : > { %4241 = vst [vmem:[#allocation2 + $0xc] sm:$0x3] %v4221_v4  ;;  %v3654_v26 = vadd.f32 %v3634_v22, %v3613_v18  ;;  %v3774_v27 = vld [vmem:[#allocation2 + $0x12] sm:$0xff]  ;;  %v4061_v30 = vadd.f32 %v4041_v25, %v4020_v23  ;;  %v3065_v22 = vmul.f32 %v6055_v45, %v5877_v62 }
  0xd7   : > { %770 = vst [vmem:[#allocation2 + $0xf5] sm:$0xff] %v750_v14  ;;  %v6033_v28 = vld [vmem:[%s5871_s13 + $0x88] sm:$0x3]  ;;  %v3815_v60 = vadd.f32 %v3795_v20, %v3774_v27  ;;  %v3715_v20 = vmul.f32 %v5975_v15, %v5920_v31  ;;  %v3066_v27 = vmul.f32 %v6055_v45, %v5920_v31 }
  0xd8   : > { %4402 = vst [vmem:[#allocation2 + $0x2] sm:$0xff] %v4382_v16  ;;  %v6041_v35 = vld [vmem:[%s5871_s13 + $0x98] sm:$0x3]  ;;  %v648_v38 = vmul.f32 %v5967_v9, %v6033_v28 }
  0xd9   : > { %3674 = vst [vmem:[#allocation2 + $0x1c] sm:$0x3] %v3654_v26  ;;  %v650_v42 = vmul.f32 %v5967_v9, %v6041_v35 }
  0xda   : > { %8793 = vst [vmem:[#allocation19_spill] sm:$0xff] %v6048_v40  ;;  %v707_v44 = vld [vmem:[#allocation2 + $0xe5] sm:$0xff]  ;;  %v668_v48 = vadd.f32 %v648_v38, %v627_v32  ;;  %v3876_v32 = vmul.f32 %v6062_v36, %v5877_v62 }
  0xdb   : > { %8794 = vst [vmem:[#allocation20_spill] sm:$0xff] %v6055_v45  ;;  %v670_v51 = vadd.f32 %v650_v42, %v629_v37  ;;  %v748_v53 = vadd.f32 %v728_v34, %v707_v44  ;;  %v3044_v4 = vld [vmem:[#allocation2 + $0x24] sm:$0xff]  ;;  %v729_v34 = vmul.f32 %v6002_v39, %v6033_v28  ;;  %v731_v37 = vmul.f32 %v6002_v39, %v6041_v35 }
  0xdc   : > { %3835 = vst [vmem:[#allocation2 + $0x12] sm:$0xff] %v3815_v60  ;;  %v3045_v23 = vld [vmem:[#allocation2 + $0x2c] sm:$0x3]  ;;  %v3085_v60 = vadd.f32 %v3065_v22, %v3044_v4 }
  0xdd   : > { %4081 = vst [vmem:[#allocation2 + $0x1e] sm:$0x3] %v4061_v30  ;;  %v4261_v0 = vld [vmem:[#allocation2 + $0xb] sm:$0x3]  ;;  %v3086_v42 = vadd.f32 %v3066_v27, %v3045_v23 }
  0xde   : > { %688 = vst [vmem:[#allocation2 + $0xee] sm:$0x3] %v668_v48  ;;  %v4302_v13 = vadd.f32 %v4282_v50, %v4261_v0  ;;  %v790_v14 = vld [vmem:[#allocation2 + $0xf4] sm:$0xff]  ;;  %v6086_v48 = vld [vmem:[%s8650_s2 + $0x30] ss:$0 sm:$0xff]  ;;  %v4363_v0 = vmul.f32 %v6007_v46, %v5920_v31 }
  0xdf   : > { %690 = vst [vmem:[#allocation2 + $0xfe] sm:$0x3] %v670_v51  ;;  %v4422_v16 = vld [vmem:[#allocation2 + $0x1] sm:$0xff]  ;;  %v831_v18 = vadd.f32 %v811_v47, %v790_v14  ;;  %v809_v47 = vmul.f32 %v6036_v29, %v5970_v10  ;;  %v6089_v51 = vperm.slane %v5958_v54, 3 }
  0xe0   : > { %768 = vst [vmem:[#allocation2 + $0xe5] sm:$0xff] %v748_v53  ;;  %v4463_v25 = vadd.f32 %v4443_v5, %v4422_v16  ;;  %v3694_v26 = vld [vmem:[#allocation2 + $0x1b] sm:$0x3]  ;;  %v6099_v16 = vperm.slane %v5858_v57, 1 }
  0xe1   : > { %4322 = vst [vmem:[#allocation2 + $0xb] sm:$0x3] %v4302_v13  ;;  %v3735_v30 = vadd.f32 %v3715_v20, %v3694_v26  ;;  %v6094_v13 = vperm.slane %v5884_v1, 7  ;;  %v892_v22 = vmul.f32 %v6089_v51, %v5972_v11  ;;  %v4524_v20 = vmul.f32 %v6086_v48, %v5877_v62 }
  0xe2   : > { %851 = vst [vmem:[#allocation2 + $0xf4] sm:$0xff] %v831_v18  ;;  %v891_v56 = vmul.f32 %v6089_v51, %v6033_v28 }
  0xe3   : > { %4483 = vst [vmem:[#allocation2 + $0x1] sm:$0xff] %v4463_v25  ;;  %v3855_v38 = vld [vmem:[#allocation2 + $0x11] sm:$0xff] }
  0xe4   : > { %3755 = vst [vmem:[#allocation2 + $0x1b] sm:$0x3] %v3735_v30  ;;  %v3896_v44 = vadd.f32 %v3876_v32, %v3855_v38  ;;  %v3146_v32 = vmul.f32 %v6094_v13, %v5877_v62  ;;  %v810_v38 = vmul.f32 %v6036_v29, %v6033_v28 }
  0xe5   : > { %v708_v50 = vld [vmem:[#allocation2 + $0xed] sm:$0x3]  ;;  %3105 = vst [vmem:[#allocation2 + $0x24] sm:$0xff] %v3085_v60  ;;  %v3796_v60 = vmul.f32 %v6018_v52, %v5920_v31 }
  0xe6   : > { %8796 = vst [vmem:[#allocation22_spill] sm:$0xff] %v6089_v51  ;;  %v710_v53 = vld [vmem:[#allocation2 + $0xfd] sm:$0x3]  ;;  %v749_v3 = vadd.f32 %v729_v34, %v708_v50 }
  0xe7   : > { %3916 = vst [vmem:[#allocation2 + $0x11] sm:$0xff] %v3896_v44  ;;  %v751_v4 = vadd.f32 %v731_v37, %v710_v53  ;;  %v788_v5 = vld [vmem:[#allocation2 + $0xe4] sm:$0xff]  ;;  %v3957_v37 = vmul.f32 %v6099_v16, %v5877_v62  ;;  %v890_v53 = vmul.f32 %v6089_v51, %v5970_v10 }
  0xe8   : > { %3106 = vst [vmem:[#allocation2 + $0x2c] sm:$0x3] %v3086_v42  ;;  %v4342_v14 = vld [vmem:[#allocation2 + $0xa] sm:$0x3]  ;;  %v829_v18 = vadd.f32 %v809_v47, %v788_v5  ;;  %v3147_v47 = vmul.f32 %v6094_v13, %v5920_v31  ;;  %v6119_v5 = vperm.slane %v5958_v54, 7 }
  0xe9   : > { %8797 = vst [vmem:[#allocation23_spill] sm:$0xff] %v6094_v13  ;;  %v4383_v23 = vadd.f32 %v4363_v0, %v4342_v14  ;;  %v871_v25 = vld [vmem:[#allocation2 + $0xf3] sm:$0xff]  ;;  %v812_v0 = vmul.f32 %v6036_v29, %v6041_v35 }
  0xea   : > { %8798 = vst [vmem:[#allocation24_spill] sm:$0xff] %v6099_v16  ;;  %v4503_v26 = vld [vmem:[#allocation2] sm:$0xff]  ;;  %v912_v27 = vadd.f32 %v892_v22, %v871_v25  ;;  %v6122_v22 = vperm.slane %v5958_v54, 4  ;;  %v4444_v25 = vmul.f32 %v6048_v40, %v5920_v31 }
  0xeb   : > { %769 = vst [vmem:[#allocation2 + $0xed] sm:$0x3] %v749_v3  ;;  %v4544_v30 = vadd.f32 %v4524_v20, %v4503_v26  ;;  %v3775_v57 = vld [vmem:[#allocation2 + $0x1a] sm:$0x3] }
  0xec   : > { %771 = vst [vmem:[#allocation2 + $0xfd] sm:$0x3] %v751_v4  ;;  %v3816_v34 = vadd.f32 %v3796_v60, %v3775_v57  ;;  %v3125_v42 = vld [vmem:[#allocation2 + $0x23] sm:$0xff] }
  0xed   : > { %849 = vst [vmem:[#allocation2 + $0xe4] sm:$0xff] %v829_v18  ;;  %4616 = vadd.xlane.f32.xlu0 %v4544_v30  ;;  %v3166_v24 = vadd.f32 %v3146_v32, %v3125_v42  ;;  %v973_v32 = vmul.f32 %v6122_v22, %v5972_v11 }
  0xee   : > { %4403 = vst [vmem:[#allocation2 + $0xa] sm:$0x3] %v4383_v23  ;;  %v3936_v44 = vld [vmem:[#allocation2 + $0x10] sm:$0xff] }
  0xef   : > { %932 = vst [vmem:[#allocation2 + $0xf3] sm:$0xff] %v912_v27  ;;  %v3977_v50 = vadd.f32 %v3957_v37, %v3936_v44  ;;  %v3126_v3 = vld [vmem:[#allocation2 + $0x2b] sm:$0x3]  ;;  %v6127_v27 = vperm.slane %v5863_v58, 0  ;;  %v3453_v44 = vld [vmem:[#allocation2 + $0x2e] sm:$0x3] }
  0xf0   : > { %4564 = vst [vmem:[#allocation2] sm:$0xff] %v4544_v30  ;;  %v3167_v14 = vadd.f32 %v3147_v47, %v3126_v3  ;;  %v1218_v30 = vmul.f32 %v6119_v5, %v6041_v35 }
  0xf1   : > { %3836 = vst [vmem:[#allocation2 + $0x1a] sm:$0x3] %v3816_v34 }
  0xf2   : > { %v789_v4 = vld [vmem:[#allocation2 + $0xec] sm:$0x3]  ;;  %3186 = vst [vmem:[#allocation2 + $0x23] sm:$0xff] %v3166_v24  ;;  %v1197_v23 = vld [vmem:[#allocation2 + $0xee] sm:$0x3]  ;;  %v3877_v24 = vmul.f32 %v6062_v36, %v5920_v31 }
  0xf3   : > { %8799 = vst [vmem:[#allocation25_spill] sm:$0xff] %v6122_v22  ;;  %v791_v18 = vld [vmem:[#allocation2 + $0xfc] sm:$0x3]  ;;  %v830_v20 = vadd.f32 %v810_v38, %v789_v4  ;;  %v1238_v42 = vadd.f32 %v1218_v30, %v1197_v23  ;;  %v971_v23 = vmul.f32 %v6122_v22, %v5970_v10  ;;  %v893_v30 = vmul.f32 %v6089_v51, %v6041_v35 }
  0xf4   : > { %3997 = vst [vmem:[#allocation2 + $0x10] sm:$0xff] %v3977_v50  ;;  %v832_v26 = vadd.f32 %v812_v0, %v791_v18  ;;  %v869_v60 = vld [vmem:[#allocation2 + $0xe3] sm:$0xff]  ;;  %v3474_v50 = vmul.f32 %v5875_v61, %v6023_v6  ;;  %v3228_v18 = vmul.f32 %v6127_v27, %v5920_v31 }
  0xf5   : > { %8800 = vst [vmem:[#allocation26_spill] sm:$0xff] %v6127_v27  ;;  %v4423_v57 = vld [vmem:[#allocation2 + $0x9] sm:$0x3]  ;;  %v910_v34 = vadd.f32 %v890_v53, %v869_v60  ;;  %v3227_v53 = vmul.f32 %v6127_v27, %v5877_v62  ;;  %v6151_v60 = vperm.slane %v5958_v54, 5 }
  0xf6   : > { %3187 = vst [vmem:[#allocation2 + $0x2b] sm:$0x3] %v3167_v14  ;;  %v4464_v37 = vadd.f32 %v4444_v25, %v4423_v57  ;;  %v952_v38 = vld [vmem:[#allocation2 + $0xf2] sm:$0xff]  ;;  %v3494_v14 = vadd.f32 %v3474_v50, %v3453_v44 }
  0xf7   : > { %850 = vst [vmem:[#allocation2 + $0xec] sm:$0x3] %v830_v20  ;;  %v993_v47 = vadd.f32 %v973_v32, %v952_v38  ;;  %v624_v44 = vld [vmem:[#allocation2 + $0xd6] sm:$0xff] }
  0xf8   : > { %852 = vst [vmem:[#allocation2 + $0xfc] sm:$0x3] %v832_v26  ;;  %v3856_v3 = vld [vmem:[#allocation2 + $0x19] sm:$0x3] }
  0xf9   : > { %930 = vst [vmem:[#allocation2 + $0xe3] sm:$0xff] %v910_v34  ;;  %v3897_v0 = vadd.f32 %v3877_v24, %v3856_v3  ;;  %v3206_v4 = vld [vmem:[#allocation2 + $0x22] sm:$0xff]  ;;  %v6148_v26 = vld [vmem:[%s5871_s13 + $0x78] sm:$0x3]  ;;  %v645_v34 = vmul.f32 %v5967_v9, %v5940_v43  ;;  %v6167_v3 = vperm.slane %v5863_v58, 1 }
  0xfa   : > { %4484 = vst [vmem:[#allocation2 + $0x9] sm:$0x3] %v4464_v37  ;;  %v3247_v20 = vadd.f32 %v3227_v53, %v3206_v4  ;;  %v646_v4 = vmul.f32 %v5967_v9, %v6148_v26 }
  0xfb   : > { %1013 = vst [vmem:[#allocation2 + $0xf2] sm:$0xff] %v993_v47  ;;  %v4525_v47 = vmul.f32 %v6086_v48, %v5920_v31  ;;  %v665_v49 = vadd.f32 %v645_v34, %v624_v44  ;;  %v3309_v44 = vmul.f32 %v6167_v3, %v5920_v31 }
  0xfc   : > { %1258 = vst [vmem:[#allocation2 + $0xee] sm:$0x3] %v1238_v42  ;;  %v6160_v42 = vld [vmem:[%s8650_s2 + $0x10] sm:$0xff] }
  0xfd   : > { %3917 = vst [vmem:[#allocation2 + $0x19] sm:$0x3] %v3897_v0  ;;  %v3207_v25 = vld [vmem:[#allocation2 + $0x2a] sm:$0x3]  ;;  %v1054_v0 = vmul.f32 %v6151_v60, %v5972_v11  ;;  %v6174_v8 = vperm.slane %v6160_v42, 5 }
  0xfe   : > { %8801 = vst [vmem:[#allocation27_spill] sm:$0xff] %v6151_v60  ;;  %v870_v57 = vld [vmem:[#allocation2 + $0xeb] sm:$0x3]  ;;  %v3248_v32 = vadd.f32 %v3228_v18, %v3207_v25 }
  0xff   : > { %3267 = vst [vmem:[#allocation2 + $0x22] sm:$0xff] %v3247_v20  ;;  %v872_v37 = vld [vmem:[#allocation2 + $0xfb] sm:$0x3]  ;;  %v911_v38 = vadd.f32 %v891_v56, %v870_v57  ;;  %v625_v20 = vld [vmem:[#allocation2 + $0xde] sm:$0x3] }
 0x100   : > { %3514 = vst [vmem:[#allocation2 + $0x2e] sm:$0x3] %v3494_v14  ;;  %v913_v24 = vadd.f32 %v893_v30, %v872_v37  ;;  %v950_v50 = vld [vmem:[#allocation2 + $0xe2] sm:$0xff]  ;;  %v3958_v30 = vmul.f32 %v6099_v16, %v5920_v31  ;;  %v972_v37 = vmul.f32 %v6122_v22, %v6033_v28  ;;  %v666_v34 = vadd.f32 %v646_v4, %v625_v20 }
 0x101   : > { %3268 = vst [vmem:[#allocation2 + $0x2a] sm:$0x3] %v3248_v32  ;;  %v4504_v53 = vld [vmem:[#allocation2 + $0x8] sm:$0x3]  ;;  %v991_v56 = vadd.f32 %v971_v23, %v950_v50  ;;  %v3308_v23 = vmul.f32 %v6167_v3, %v5877_v62  ;;  %v6190_v4 = vperm.slane %v5958_v54, 6 }
 0x102   : > { %8802 = vst [vmem:[#allocation28_spill] sm:$0xff] %v6167_v3  ;;  %v4545_v14 = vadd.f32 %v4525_v47, %v4504_v53  ;;  %v1033_v18 = vld [vmem:[#allocation2 + $0xf1] sm:$0xff] }
 0x103   : > { %931 = vst [vmem:[#allocation2 + $0xeb] sm:$0x3] %v911_v38  ;;  %v1074_v25 = vadd.f32 %v1054_v0, %v1033_v18  ;;  %v2314_v53 = vld [vmem:[#allocation2 + $0x36] sm:$0xff]  ;;  %v974_v0 = vmul.f32 %v6122_v22, %v6041_v35  ;;  %v1135_v54 = vmul.f32 %v6190_v4, %v5972_v11 }
 0x104   : > { %933 = vst [vmem:[#allocation2 + $0xfb] sm:$0x3] %v913_v24  ;;  %v3937_v57 = vld [vmem:[#allocation2 + $0x18] sm:$0x3]  ;;  %v2335_v24 = vmul.f32 %v6174_v8, %v5877_v62 }
 0x105   : > { %1011 = vst [vmem:[#allocation2 + $0xe2] sm:$0xff] %v991_v56  ;;  %v3978_v32 = vadd.f32 %v3958_v30, %v3937_v57  ;;  %v6195_v57 = vperm.slane %v5863_v58, 2 }
 0x106   : > { %4565 = vst [vmem:[#allocation2 + $0x8] sm:$0x3] %v4545_v14  ;;  %v3287_v38 = vld [vmem:[#allocation2 + $0x21] sm:$0xff] }
 0x107   : > { %1094 = vst [vmem:[#allocation2 + $0xf1] sm:$0xff] %v1074_v25  ;;  %v3328_v47 = vadd.f32 %v3308_v23, %v3287_v38  ;;  %v726_v23 = vmul.f32 %v6002_v39, %v5940_v43 }
 0x108   : > { %685 = vst [vmem:[#allocation2 + $0xd6] sm:$0xff] %v665_v49  ;;  %v3288_v50 = vld [vmem:[#allocation2 + $0x29] sm:$0x3]  ;;  %v1052_v49 = vmul.f32 %v6151_v60, %v5970_v10 }
 0x109   : > { %3998 = vst [vmem:[#allocation2 + $0x18] sm:$0x3] %v3978_v32  ;;  %v3329_v14 = vadd.f32 %v3309_v44, %v3288_v50  ;;  %v2355_v32 = vadd.f32 %v2335_v24, %v2314_v53  ;;  %v4040_v44 = vmul.f32 %v5866_v59, %v5879_v63  ;;  %v3389_v24 = vmul.f32 %v6195_v57, %v5877_v62 }
 0x10a   : > { %v951_v56 = vld [vmem:[#allocation2 + $0xea] sm:$0x3]  ;;  %3348 = vst [vmem:[#allocation2 + $0x21] sm:$0xff] %v3328_v47  ;;  %v727_v47 = vmul.f32 %v6002_v39, %v6148_v26 }
 0x10b   : > { %v953_v18 = vld [vmem:[#allocation2 + $0xfa] sm:$0x3]  ;;  %v992_v20 = vadd.f32 %v972_v37, %v951_v56  ;;  %686 = vst [vmem:[#allocation2 + $0xde] sm:$0x3] %v666_v34 }
 0x10c   : > { %v994_v25 = vadd.f32 %v974_v0, %v953_v18  ;;  %v1031_v30 = vld [vmem:[#allocation2 + $0xe1] sm:$0xff]  ;;  %3349 = vst [vmem:[#allocation2 + $0x29] sm:$0x3] %v3329_v14  ;;  %v2336_v14 = vmul.f32 %v6174_v8, %v5920_v31  ;;  %v3390_v18 = vmul.f32 %v6195_v57, %v5920_v31 }
 0x10d   : > { %8803 = vst [vmem:[#allocation29_spill] sm:$0xff] %v6195_v57  ;;  %v4585_v2 = vld [vmem:[#allocation2 + $0x8] sm:$0xff]  ;;  %v1072_v37 = vadd.f32 %v1052_v49, %v1031_v30  ;;  %v2315_v30 = vld [vmem:[#allocation2 + $0x3e] sm:$0x3] }
 0x10e   : > { %1012 = vst [vmem:[#allocation2 + $0xea] sm:$0x3] %v992_v20  ;;  %4618 = vadd.xlane.f32.xlu0 %v4585_v2  ;;  %v1114_v38 = vld [vmem:[#allocation2 + $0xf0] sm:$0xff] }
 0x10f   : > { %1014 = vst [vmem:[#allocation2 + $0xfa] sm:$0x3] %v994_v25  ;;  %v1155_v34 = vadd.f32 %v1135_v54, %v1114_v38  ;;  %v705_v58 = vld [vmem:[#allocation2 + $0xd5] sm:$0xff]  ;;  %v6212_v25 = vperm.slane %v6160_v42, 6  ;;  %v1055_v54 = vmul.f32 %v6151_v60, %v6041_v35 }
 0x110   : > { %1092 = vst [vmem:[#allocation2 + $0xe1] sm:$0xff] %v1072_v37  ;;  %v4019_v50 = vld [vmem:[#allocation2 + $0x16] sm:$0xff]  ;;  %v746_v53 = vadd.f32 %v726_v23, %v705_v58  ;;  %v1053_v23 = vmul.f32 %v6151_v60, %v6033_v28 }
 0x111   : > { %2375 = vst [vmem:[#allocation2 + $0x36] sm:$0xff] %v2355_v32  ;;  %v4060_v0 = vadd.f32 %v4040_v44, %v4019_v50  ;;  %v3368_v56 = vld [vmem:[#allocation2 + $0x20] sm:$0xff]  ;;  %v1133_v50 = vmul.f32 %v6190_v4, %v5970_v10  ;;  %v4121_v10 = vmul.f32 %v5901_v12, %v5879_v63 }
 0x112   : > { %1175 = vst [vmem:[#allocation2 + $0xf0] sm:$0xff] %v1155_v34  ;;  %v3409_v20 = vadd.f32 %v3389_v24, %v3368_v56  ;;  %v706_v49 = vld [vmem:[#allocation2 + $0xdd] sm:$0x3]  ;;  %v2356_v24 = vadd.f32 %v2336_v14, %v2315_v30  ;;  %v2416_v56 = vmul.f32 %v6212_v25, %v5877_v62  ;;  %v808_v30 = vmul.f32 %v6036_v29, %v6148_v26 }
 0x113   : > { %766 = vst [vmem:[#allocation2 + $0xd5] sm:$0xff] %v746_v53  ;;  %v3369_v32 = vld [vmem:[#allocation2 + $0x28] sm:$0x3]  ;;  %v747_v2 = vadd.f32 %v727_v47, %v706_v49  ;;  %v807_v47 = vmul.f32 %v6036_v29, %v5940_v43 }
 0x114   : > { %8804 = vst [vmem:[#allocation30_spill] sm:$0xff] %v6212_v25  ;;  %v3410_v38 = vadd.f32 %v3390_v18, %v3369_v32 }
 0x115   : > { %4080 = vst [vmem:[#allocation2 + $0x16] sm:$0xff] %v4060_v0  ;;  %v1032_v37 = vld [vmem:[#allocation2 + $0xe9] sm:$0x3] }
 0x116   : > { %3429 = vst [vmem:[#allocation2 + $0x20] sm:$0xff] %v3409_v20  ;;  %v1034_v44 = vld [vmem:[#allocation2 + $0xf9] sm:$0x3]  ;;  %v1073_v58 = vadd.f32 %v1053_v23, %v1032_v37  ;;  %4676 = vadd.xlane.f32.xlu0 %v1155_v34  ;;  %v4122_v34 = vmul.f32 %v5901_v12, %v6023_v6 }
 0x117   : > { %767 = vst [vmem:[#allocation2 + $0xdd] sm:$0x3] %v747_v2  ;;  %v1075_v53 = vadd.f32 %v1055_v54, %v1034_v44  ;;  %v1112_v0 = vld [vmem:[#allocation2 + $0xe0] sm:$0xff] }
 0x118   : > { %3430 = vst [vmem:[#allocation2 + $0x28] sm:$0x3] %v3410_v38  ;;  %v1153_v18 = vadd.f32 %v1133_v50, %v1112_v0  ;;  %v2395_v20 = vld [vmem:[#allocation2 + $0x35] sm:$0xff]  ;;  %v3473_v38 = vmul.f32 %v5875_v61, %v5879_v63  ;;  %v6235_v0 = vperm.slane %v6160_v42, 7 }
 0x119   : > { %1093 = vst [vmem:[#allocation2 + $0xe9] sm:$0x3] %v1073_v58  ;;  %v2436_v49 = vadd.f32 %v2416_v56, %v2395_v20  ;;  %v1134_v58 = vmul.f32 %v6190_v4, %v6033_v28 }
 0x11a   : > { %1095 = vst [vmem:[#allocation2 + $0xf9] sm:$0x3] %v1075_v53  ;;  %v786_v14 = vld [vmem:[#allocation2 + $0xd4] sm:$0xff] }
 0x11b   : > { %1173 = vst [vmem:[#allocation2 + $0xe0] sm:$0xff] %v1153_v18  ;;  %v827_v2 = vadd.f32 %v807_v47, %v786_v14 }
 0x11c   : > { %v4100_v23 = vld [vmem:[#allocation2 + $0x15] sm:$0xff]  ;;  %v4101_v32 = vld [vmem:[#allocation2 + $0x1d] sm:$0x3]  ;;  %2376 = vst [vmem:[#allocation2 + $0x3e] sm:$0x3] %v2356_v24  ;;  %v1136_v24 = vmul.f32 %v6190_v4, %v6041_v35 }
 0x11d   : > { %v4141_v54 = vadd.f32 %v4121_v10, %v4100_v23  ;;  %v4142_v37 = vadd.f32 %v4122_v34, %v4101_v32  ;;  %2456 = vst [vmem:[#allocation2 + $0x35] sm:$0xff] %v2436_v49  ;;  %v888_v10 = vmul.f32 %v6089_v51, %v5940_v43  ;;  %v2417_v34 = vmul.f32 %v6212_v25, %v5920_v31 }
 0x11e   : > { %v787_v44 = vld [vmem:[#allocation2 + $0xdc] sm:$0x3]  ;;  %847 = vst [vmem:[#allocation2 + $0xd4] sm:$0xff] %v827_v2  ;;  %v4202_v2 = vmul.f32 %v5926_v33, %v5879_v63 }
 0x11f   : > { %4161 = vst [vmem:[#allocation2 + $0x15] sm:$0xff] %v4141_v54  ;;  %v3452_v50 = vld [vmem:[#allocation2 + $0x26] sm:$0xff]  ;;  %v828_v53 = vadd.f32 %v808_v30, %v787_v44  ;;  %v2497_v30 = vmul.f32 %v6235_v0, %v5877_v62 }
 0x120   : > { %8805 = vst [vmem:[#allocation31_spill] sm:$0xff] %v6235_v0  ;;  %v1113_v47 = vld [vmem:[#allocation2 + $0xe8] sm:$0x3]  ;;  %v3493_v56 = vadd.f32 %v3473_v38, %v3452_v50 }
 0x121   : > { %4162 = vst [vmem:[#allocation2 + $0x1d] sm:$0x3] %v4142_v37  ;;  %v1115_v18 = vld [vmem:[#allocation2 + $0xf8] sm:$0x3]  ;;  %v1154_v20 = vadd.f32 %v1134_v58, %v1113_v47  ;;  %v889_v37 = vmul.f32 %v6089_v51, %v6148_v26  ;;  %v4203_v58 = vmul.f32 %v5926_v33, %v6023_v6  ;;  %v1216_v47 = vmul.f32 %v6119_v5, %v6033_v28 }
 0x122   : > { %848 = vst [vmem:[#allocation2 + $0xdc] sm:$0x3] %v828_v53  ;;  %v1156_v49 = vadd.f32 %v1136_v24, %v1115_v18  ;;  %v3554_v18 = vmul.f32 %v5911_v17, %v5879_v63 }
 0x123   : > { %3513 = vst [vmem:[#allocation2 + $0x26] sm:$0xff] %v3493_v56  ;;  %v2396_v14 = vld [vmem:[#allocation2 + $0x3d] sm:$0x3] }
 0x124   : > { %1174 = vst [vmem:[#allocation2 + $0xe8] sm:$0x3] %v1154_v20  ;;  %v2437_v23 = vadd.f32 %v2417_v34, %v2396_v14  ;;  %v2476_v32 = vld [vmem:[#allocation2 + $0x34] sm:$0xff]  ;;  %v3555_v20 = vmul.f32 %v5911_v17, %v6023_v6  ;;  %v1195_v34 = vld [vmem:[#allocation2 + $0xde] sm:$0x3]  ;;  %v6260_v14 = vperm.slane %v5884_v1, 0  ;;  %v2498_v1 = vmul.f32 %v6235_v0, %v5920_v31 }
 0x125   : > { %1176 = vst [vmem:[#allocation2 + $0xf8] sm:$0x3] %v1156_v49  ;;  %v867_v54 = vld [vmem:[#allocation2 + $0xd3] sm:$0xff]  ;;  %v2517_v38 = vadd.f32 %v2497_v30, %v2476_v32 }
 0x126   : > { %v4181_v44 = vld [vmem:[#allocation2 + $0x14] sm:$0xff]  ;;  %v908_v50 = vadd.f32 %v888_v10, %v867_v54  ;;  %2457 = vst [vmem:[#allocation2 + $0x3d] sm:$0x3] %v2437_v23  ;;  %v1217_v10 = vmul.f32 %v6119_v5, %v5972_v11 }
 0x127   : > { %v4222_v53 = vadd.f32 %v4202_v2, %v4181_v44  ;;  %2537 = vst [vmem:[#allocation2 + $0x34] sm:$0xff] %v2517_v38 }
 0x128   : > { %v4182_v24 = vld [vmem:[#allocation2 + $0x1c] sm:$0x3]  ;;  %928 = vst [vmem:[#allocation2 + $0xd3] sm:$0xff] %v908_v50  ;;  %v969_v50 = vmul.f32 %v6122_v22, %v5940_v43 }
 0x129   : > { %v4223_v56 = vadd.f32 %v4203_v58, %v4182_v24  ;;  %v868_v49 = vld [vmem:[#allocation2 + $0xdb] sm:$0x3]  ;;  %4242 = vst [vmem:[#allocation2 + $0x14] sm:$0xff] %v4222_v53  ;;  %v1236_v58 = vadd.f32 %v1216_v47, %v1195_v34  ;;  %v6271_v24 = vld [vmem:[%s8650_s2 + $0x8] sm:$0xff] }
 0x12a   : > { %8806 = vst [vmem:[#allocation32_spill] sm:$0xff] %v6260_v14  ;;  %v3533_v30 = vld [vmem:[#allocation2 + $0x25] sm:$0xff]  ;;  %v3534_v28 = vld [vmem:[#allocation2 + $0x2d] sm:$0x3]  ;;  %v909_v23 = vadd.f32 %v889_v37, %v868_v49  ;;  %v2578_v37 = vmul.f32 %v6260_v14, %v5877_v62 }
 0x12b   : > { %4243 = vst [vmem:[#allocation2 + $0x1c] sm:$0x3] %v4223_v56  ;;  %v1196_v32 = vld [vmem:[#allocation2 + $0xe6] sm:$0xff]  ;;  %v3574_v2 = vadd.f32 %v3554_v18, %v3533_v30  ;;  %v3575_v54 = vadd.f32 %v3555_v20, %v3534_v28  ;;  %v4283_v18 = vmul.f32 %v5962_v55, %v5879_v63 }
 0x12c   : > { %v4615_v38 = vld [vmem:[#allocation2 + $0xf8] sm:$0xff]  ;;  %v1237_v44 = vadd.f32 %v1217_v10, %v1196_v32  ;;  %929 = vst [vmem:[#allocation2 + $0xdb] sm:$0x3] %v909_v23  ;;  %v4284_v10 = vmul.f32 %v5962_v55, %v6023_v6  ;;  %v6278_v23 = vperm.slane %v6271_v24, 0  ;;  %v970_v32 = vmul.f32 %v6122_v22, %v6148_v26 }
 0x12d   : > { %4678 = vadd.xlane.f32.xlu1 %v4615_v38  ;;  %3594 = vst [vmem:[#allocation2 + $0x25] sm:$0xff] %v3574_v2  ;;  %v2477_v53 = vld [vmem:[#allocation2 + $0x3c] sm:$0x3] }
 0x12e   : > { %1257 = vst [vmem:[#allocation2 + $0xe6] sm:$0xff] %v1237_v44  ;;  %v2518_v47 = vadd.f32 %v2498_v1, %v2477_v53  ;;  %v2557_v56 = vld [vmem:[#allocation2 + $0x33] sm:$0xff]  ;;  %v6285_v44 = vld [vmem:[%s5871_s13 + $0x28] sm:$0x3] }
 0x12f   : > { %3595 = vst [vmem:[#allocation2 + $0x2d] sm:$0x3] %v3575_v54  ;;  %v948_v20 = vld [vmem:[#allocation2 + $0xd2] sm:$0xff]  ;;  %v2598_v49 = vadd.f32 %v2578_v37, %v2557_v56  ;;  %v3635_v54 = vmul.f32 %v5938_v41, %v5879_v63  ;;  %v3636_v56 = vmul.f32 %v5938_v41, %v6023_v6 }
 0x130   : > { %1256 = vst [vmem:[#allocation2 + $0xde] sm:$0x3] %v1236_v58  ;;  %v4262_v34 = vld [vmem:[#allocation2 + $0x13] sm:$0xff]  ;;  %v989_v62 = vadd.f32 %v969_v50, %v948_v20  ;;  %v1298_v58 = vmul.f32 %v6278_v23, %v5972_v11  ;;  %v1299_v50 = vmul.f32 %v6278_v23, %v6041_v35 }
 0x131   : > { %2538 = vst [vmem:[#allocation2 + $0x3c] sm:$0x3] %v2518_v47  ;;  %v4303_v30 = vadd.f32 %v4283_v18, %v4262_v34  ;;  %v4043_v18 = vmul.f32 %v5866_v59, %v6285_v44 }
 0x132   : > { %v4263_v28 = vld [vmem:[#allocation2 + $0x1b] sm:$0x3]  ;;  %2618 = vst [vmem:[#allocation2 + $0x33] sm:$0xff] %v2598_v49 }
 0x133   : > { %v4304_v2 = vadd.f32 %v4284_v10, %v4263_v28  ;;  %v949_v38 = vld [vmem:[#allocation2 + $0xda] sm:$0x3]  ;;  %1009 = vst [vmem:[#allocation2 + $0xd2] sm:$0xff] %v989_v62  ;;  %v2579_v28 = vmul.f32 %v6260_v14, %v5920_v31  ;;  %v1131_v14 = vmul.f32 %v6190_v4, %v5940_v43 }
 0x134   : > { %4323 = vst [vmem:[#allocation2 + $0x13] sm:$0xff] %v4303_v30  ;;  %v3614_v1 = vld [vmem:[#allocation2 + $0x24] sm:$0xff]  ;;  %v990_v53 = vadd.f32 %v970_v32, %v949_v38  ;;  %v6300_v38 = vld [vmem:[%s5871_s13 + $0x10] sm:$0xff] }
 0x135   : > { %4324 = vst [vmem:[#allocation2 + $0x1b] sm:$0x3] %v4304_v2  ;;  %v1277_v37 = vld [vmem:[#allocation2 + $0xe5] sm:$0xff]  ;;  %v1278_v47 = vld [vmem:[#allocation2 + $0xed] sm:$0x3]  ;;  %v3655_v63 = vadd.f32 %v3635_v54, %v3614_v1  ;;  %v1050_v2 = vmul.f32 %v6151_v60, %v5940_v43  ;;  %v1132_v43 = vmul.f32 %v6190_v4, %v6148_v26 }
 0x136   : > { %v1318_v20 = vadd.f32 %v1298_v58, %v1277_v37  ;;  %v1319_v49 = vadd.f32 %v1299_v50, %v1278_v47  ;;  %v3615_v34 = vld [vmem:[#allocation2 + $0x2c] sm:$0x3]  ;;  %v4022_v10 = vld [vmem:[#allocation2 + $0x2e] sm:$0x3]  ;;  %1010 = vst [vmem:[#allocation2 + $0xda] sm:$0x3] %v990_v53  ;;  %v4364_v58 = vmul.f32 %v6300_v38, %v6007_v46  ;;  %v4365_v53 = vmul.f32 %v6007_v46, %v6023_v6 }
 0x137   : > { %v3656_v62 = vadd.f32 %v3636_v56, %v3615_v34  ;;  %3675 = vst [vmem:[#allocation2 + $0x24] sm:$0xff] %v3655_v63  ;;  %v4063_v30 = vadd.f32 %v4043_v18, %v4022_v10  ;;  %v6309_v37 = vld [vmem:[%s8650_s2 + $0x18] sm:$0xff]  ;;  %v6315_v18 = vperm.slane %v6271_v24, 1  ;;  %v3716_v34 = vmul.f32 %v6300_v38, %v5975_v15 }
 0x138   : > { %1338 = vst [vmem:[#allocation2 + $0xe5] sm:$0xff] %v1318_v20  ;;  %v2558_v32 = vld [vmem:[#allocation2 + $0x3b] sm:$0x3]  ;;  %v6312_v47 = vperm.slane %v6309_v37, 1  ;;  %v1051_v20 = vmul.f32 %v6151_v60, %v6148_v26 }
 0x139   : > { %1339 = vst [vmem:[#allocation2 + $0xed] sm:$0x3] %v1319_v49  ;;  %v2599_v54 = vadd.f32 %v2579_v28, %v2558_v32  ;;  %v2638_v32 = vld [vmem:[#allocation2 + $0x32] sm:$0xff] }
 0x13a   : > { %3676 = vst [vmem:[#allocation2 + $0x2c] sm:$0x3] %v3656_v62  ;;  %v1029_v50 = vld [vmem:[#allocation2 + $0xd1] sm:$0xff]  ;;  %v1379_v62 = vmul.f32 %v6315_v18, %v5972_v11 }
 0x13b   : > { %v4343_v1 = vld [vmem:[#allocation2 + $0x12] sm:$0xff]  ;;  %4083 = vst [vmem:[#allocation2 + $0x2e] sm:$0x3] %v4063_v30  ;;  %v1070_v31 = vadd.f32 %v1050_v2, %v1029_v50  ;;  %v6326_v50 = vld [vmem:[%s5871_s13] sm:$0xff] }
 0x13c   : > { %8807 = vst [vmem:[#allocation33_spill] sm:$0xff] %v6312_v47  ;;  %v4384_v56 = vadd.f32 %v4364_v58, %v4343_v1  ;;  %v4344_v63 = vld [vmem:[#allocation2 + $0x1a] sm:$0x3]  ;;  %v1380_v58 = vmul.f32 %v6315_v18, %v6041_v35  ;;  %v2659_v1 = vmul.f32 %v6326_v50, %v6312_v47 }
 0x13d   : > { %8808 = vst [vmem:[#allocation34_spill] sm:$0xff] %v6315_v18  ;;  %v4385_v49 = vadd.f32 %v4365_v53, %v4344_v63  ;;  %v1030_v10 = vld [vmem:[#allocation2 + $0xd9] sm:$0x3]  ;;  %v6330_v53 = vpop.permute.xlu0 %4695  ;;  %v3717_v63 = vmul.f32 %v5975_v15, %v6023_v6  ;;  %v1746_v15 = vld [vmem:[#allocation2 + $0x46] sm:$0xff] }
 0x13e   : > { %2619 = vst [vmem:[#allocation2 + $0x3b] sm:$0x3] %v2599_v54  ;;  %v3695_v30 = vld [vmem:[#allocation2 + $0x23] sm:$0xff]  ;;  %v1071_v28 = vadd.f32 %v1051_v20, %v1030_v10  ;;  %v2679_v10 = vadd.f32 %v2659_v1, %v2638_v32  ;;  %v4446_v32 = vmul.f32 %v6048_v40, %v6023_v6 }
 0x13f   : > { %1090 = vst [vmem:[#allocation2 + $0xd1] sm:$0xff] %v1070_v31  ;;  %v1358_v2 = vld [vmem:[#allocation2 + $0xe4] sm:$0xff]  ;;  %v3736_v54 = vadd.f32 %v3716_v34, %v3695_v30 }
 0x140   : > { %4404 = vst [vmem:[#allocation2 + $0x12] sm:$0xff] %v4384_v56  ;;  %v1359_v31 = vld [vmem:[#allocation2 + $0xec] sm:$0x3]  ;;  %v1399_v56 = vadd.f32 %v1379_v62, %v1358_v2  ;;  %v6335_v34 = vld [vmem:[%s5871_s13 + $0x8] sm:$0x3]  ;;  %v4445_v2 = vmul.f32 %v6300_v38, %v6048_v40 }
 0x141   : > { %4405 = vst [vmem:[#allocation2 + $0x1a] sm:$0x3] %v4385_v49  ;;  %v1400_v20 = vadd.f32 %v1380_v58, %v1359_v31  ;;  %v3696_v49 = vld [vmem:[#allocation2 + $0x2b] sm:$0x3]  ;;  %v2660_v30 = vmul.f32 %v6335_v34, %v6312_v47 }
 0x142   : > { %1091 = vst [vmem:[#allocation2 + $0xd9] sm:$0x3] %v1071_v28  ;;  %v3737_v21 = vadd.f32 %v3717_v63, %v3696_v49  ;;  %v6346_v63 = vperm.slane %v6271_v24, 2 }
 0x143   : > { %3756 = vst [vmem:[#allocation2 + $0x23] sm:$0xff] %v3736_v54 }
 0x144   : > { %1419 = vst [vmem:[#allocation2 + $0xe4] sm:$0xff] %v1399_v56 }
 0x145   : > { %1420 = vst [vmem:[#allocation2 + $0xec] sm:$0x3] %v1400_v20  ;;  %v2639_v62 = vld [vmem:[#allocation2 + $0x3a] sm:$0x3] }
 0x146   : > { %3757 = vst [vmem:[#allocation2 + $0x2b] sm:$0x3] %v3737_v21  ;;  %v1110_v28 = vld [vmem:[#allocation2 + $0xd0] sm:$0xff]  ;;  %v2680_v58 = vadd.f32 %v2660_v30, %v2639_v62  ;;  %v3797_v21 = vmul.f32 %v6300_v38, %v6018_v52  ;;  %v6353_v30 = vperm.slane %v6309_v37, 2 }
 0x147   : > { %v4424_v54 = vld [vmem:[#allocation2 + $0x11] sm:$0xff]  ;;  %v1151_v1 = vadd.f32 %v1131_v14, %v1110_v28  ;;  %2699 = vst [vmem:[#allocation2 + $0x32] sm:$0xff] %v2679_v10  ;;  %v1460_v14 = vmul.f32 %v6346_v63, %v5972_v11  ;;  %v1461_v28 = vmul.f32 %v6346_v63, %v6041_v35 }
 0x148   : > { %v4465_v31 = vadd.f32 %v4445_v2, %v4424_v54  ;;  %v4425_v56 = vld [vmem:[#allocation2 + $0x19] sm:$0x3]  ;;  %8809 = vst [vmem:[#allocation35_spill] sm:$0xff] %v6346_v63  ;;  %v6359_v54 = vpop.permute.xlu0 %4773  ;;  %v2740_v11 = vmul.f32 %v6326_v50, %v6353_v30 }
 0x149   : > { %2700 = vst [vmem:[#allocation2 + $0x3a] sm:$0x3] %v2680_v58  ;;  %v4466_v20 = vadd.f32 %v4446_v32, %v4425_v56  ;;  %v1111_v49 = vld [vmem:[#allocation2 + $0xd8] sm:$0x3] }
 0x14a   : > { %1171 = vst [vmem:[#allocation2 + $0xd0] sm:$0xff] %v1151_v1  ;;  %v3776_v10 = vld [vmem:[#allocation2 + $0x22] sm:$0xff]  ;;  %v1152_v62 = vadd.f32 %v1132_v43, %v1111_v49  ;;  %v3798_v1 = vmul.f32 %v6018_v52, %v6023_v6  ;;  %v2906_v43 = vmul.f32 %v5898_v7, %v6023_v6  ;;  %v2741_v49 = vmul.f32 %v6335_v34, %v6353_v30  ;;  %v623_v52 = vld [vmem:[#allocation2 + $0xce] sm:$0x3] }
 0x14b   : > { %8810 = vst [vmem:[#allocation36_spill] sm:$0xff] %v6353_v30  ;;  %v1439_v2 = vld [vmem:[#allocation2 + $0xe3] sm:$0xff]  ;;  %v3817_v58 = vadd.f32 %v3797_v21, %v3776_v10  ;;  %v6407_v30 = vld [vmem:[%s5871_s13 + $0x18] sm:$0x3] }
 0x14c   : > { %4485 = vst [vmem:[#allocation2 + $0x11] sm:$0xff] %v4465_v31  ;;  %v1440_v32 = vld [vmem:[#allocation2 + $0xeb] sm:$0x3]  ;;  %v1480_v56 = vadd.f32 %v1460_v14, %v1439_v2  ;;  %v2885_v31 = vld [vmem:[#allocation2 + $0x3e] sm:$0x3]  ;;  %v4526_v2 = vmul.f32 %v6300_v38, %v6086_v48 }
 0x14d   : > { %4486 = vst [vmem:[#allocation2 + $0x19] sm:$0x3] %v4466_v20  ;;  %v1481_v47 = vadd.f32 %v1461_v28, %v1440_v32  ;;  %v3777_v0 = vld [vmem:[#allocation2 + $0x2a] sm:$0x3]  ;;  %v4527_v32 = vmul.f32 %v6086_v48, %v6023_v6  ;;  %v3878_v48 = vmul.f32 %v6300_v38, %v6062_v36 }
 0x14e   : > { %8811 = vst [vmem:[#allocation37_spill] sm:$0xff] %v6359_v54  ;;  %v3818_v20 = vadd.f32 %v3798_v1, %v3777_v0  ;;  %v2719_v21 = vld [vmem:[#allocation2 + $0x31] sm:$0xff]  ;;  %v6374_v1 = vperm.slane %v6271_v24, 3 }
 0x14f   : > { %1172 = vst [vmem:[#allocation2 + $0xd8] sm:$0x3] %v1152_v62  ;;  %v2760_v10 = vadd.f32 %v2740_v11, %v2719_v21  ;;  %v2926_v62 = vadd.f32 %v2906_v43, %v2885_v31  ;;  %v6382_v11 = vperm.slane %v6271_v24, 6  ;;  %v6385_v43 = vld [vmem:[%s5871_s13 + $0x68] sm:$0x3]  ;;  %v6390_v21 = vperm.slane %v6309_v37, 3 }
 0x150   : > { %3837 = vst [vmem:[#allocation2 + $0x22] sm:$0xff] %v3817_v58  ;;  %v2720_v14 = vld [vmem:[#allocation2 + $0x39] sm:$0x3] }
 0x151   : > { %1500 = vst [vmem:[#allocation2 + $0xe3] sm:$0xff] %v1480_v56  ;;  %v2761_v28 = vadd.f32 %v2741_v49, %v2720_v14  ;;  %v6393_v49 = vld [vmem:[%s5871_s13 + $0x90] sm:$0xff] }
 0x152   : > { %1501 = vst [vmem:[#allocation2 + $0xeb] sm:$0x3] %v1481_v47  ;;  %v6377_v47 = vld [vmem:[%s5871_s13 + $0x80] sm:$0xff]  ;;  %v1541_v14 = vmul.f32 %v6393_v49, %v6374_v1 }
 0x153   : > { %3838 = vst [vmem:[#allocation2 + $0x2a] sm:$0x3] %v3818_v20  ;;  %v4505_v58 = vld [vmem:[#allocation2 + $0x10] sm:$0xff]  ;;  %v1215_v31 = vmul.f32 %v6377_v47, %v6119_v5 }
 0x154   : > { %2780 = vst [vmem:[#allocation2 + $0x31] sm:$0xff] %v2760_v10  ;;  %v4546_v0 = vadd.f32 %v4526_v2, %v4505_v58  ;;  %v4506_v56 = vld [vmem:[#allocation2 + $0x18] sm:$0x3]  ;;  %v1542_v58 = vmul.f32 %v6374_v1, %v6041_v35  ;;  %v644_v35 = vmul.f32 %v5967_v9, %v6385_v43 }
 0x155   : > { %2781 = vst [vmem:[#allocation2 + $0x39] sm:$0x3] %v2761_v28  ;;  %v4547_v6 = vadd.f32 %v4527_v32, %v4506_v56  ;;  %v6400_v56 = vld [vmem:[%s5871_s13 + $0x60] sm:$0xff] }
 0x156   : > { %v1194_v20 = vld [vmem:[#allocation2 + $0xd6] sm:$0xff]  ;;  %8812 = vst [vmem:[#allocation38_spill] sm:$0xff] %v6390_v21  ;;  %4620 = vadd.xlane.f32.xlu1 %v4546_v0  ;;  %v643_v37 = vmul.f32 %v6400_v56, %v5967_v9  ;;  %v664_v41 = vadd.f32 %v644_v35, %v623_v52 }
 0x157   : > { %2946 = vst [vmem:[#allocation2 + $0x3e] sm:$0x3] %v2926_v62  ;;  %v3857_v10 = vld [vmem:[#allocation2 + $0x21] sm:$0xff]  ;;  %v1235_v2 = vadd.f32 %v1215_v31, %v1194_v20  ;;  %v6404_v62 = vpop.permute.xlu0 %4838  ;;  %v3879_v31 = vmul.f32 %v6407_v30, %v6062_v36  ;;  %v6431_v35 = vld [vmem:[%s5871_s13 + $0x98] sm:$0x3] }
 0x158   : > { %4566 = vst [vmem:[#allocation2 + $0x10] sm:$0xff] %v4546_v0  ;;  %v1520_v28 = vld [vmem:[#allocation2 + $0xe2] sm:$0xff]  ;;  %v3898_v32 = vadd.f32 %v3878_v48, %v3857_v10  ;;  %v2821_v10 = vmul.f32 %v6326_v50, %v6390_v21 }
 0x159   : > { %4567 = vst [vmem:[#allocation2 + $0x18] sm:$0x3] %v4547_v6  ;;  %v1521_v0 = vld [vmem:[#allocation2 + $0xea] sm:$0x3]  ;;  %v1561_v54 = vadd.f32 %v1541_v14, %v1520_v28  ;;  %v1767_v14 = vmul.f32 %v6326_v50, %v6382_v11  ;;  %v6417_v28 = vpop.permute.xlu1 %4702 }
 0x15a   : > { %8813 = vst [vmem:[#allocation39_spill] sm:$0xff] %v6404_v62  ;;  %v622_v6 = vld [vmem:[#allocation2 + $0xc6] sm:$0xff]  ;;  %v1562_v48 = vadd.f32 %v1542_v58, %v1521_v0 }
 0x15b   : > { %1255 = vst [vmem:[#allocation2 + $0xd6] sm:$0xff] %v1235_v2  ;;  %v3858_v20 = vld [vmem:[#allocation2 + $0x29] sm:$0x3]  ;;  %v2800_v36 = vld [vmem:[#allocation2 + $0x30] sm:$0xff]  ;;  %v2822_v2 = vmul.f32 %v6335_v34, %v6390_v21  ;;  %v1787_v17 = vadd.f32 %v1767_v14, %v1746_v15 }
 0x15c   : > { %3918 = vst [vmem:[#allocation2 + $0x21] sm:$0xff] %v3898_v32  ;;  %v3899_v62 = vadd.f32 %v3879_v31, %v3858_v20  ;;  %v2801_v58 = vld [vmem:[#allocation2 + $0x38] sm:$0x3]  ;;  %v2841_v0 = vadd.f32 %v2821_v10, %v2800_v36  ;;  %v663_v32 = vadd.f32 %v643_v37, %v622_v6  ;;  %v3959_v36 = vmul.f32 %v6300_v38, %v6099_v16 }
 0x15d   : > { %8814 = vst [vmem:[#allocation40_spill] sm:$0xff] %v6417_v28  ;;  %v2842_v25 = vadd.f32 %v2822_v2, %v2801_v58  ;;  %v6422_v28 = vperm.slane %v6271_v24, 4  ;;  %v6445_v58 = vperm.slane %v6271_v24, 7 }
 0x15e   : > { %1581 = vst [vmem:[#allocation2 + $0xe2] sm:$0xff] %v1561_v54  ;;  %v1296_v54 = vmul.f32 %v6377_v47, %v6278_v23 }
 0x15f   : > { %1582 = vst [vmem:[#allocation2 + $0xea] sm:$0x3] %v1562_v48  ;;  %v1622_v52 = vmul.f32 %v6393_v49, %v6422_v28  ;;  %v1623_v48 = vmul.f32 %v6431_v35, %v6422_v28  ;;  %v6440_v10 = vpop.permute.xlu0 %4741 }
 0x160   : > { %3919 = vst [vmem:[#allocation2 + $0x29] sm:$0x3] %v3899_v62  ;;  %v4587_v57 = vld [vmem:[#allocation2 + $0x18] sm:$0xff] }
 0x161   : > { %2861 = vst [vmem:[#allocation2 + $0x30] sm:$0xff] %v2841_v0  ;;  %4622 = vadd.xlane.f32.xlu1 %v4587_v57  ;;  %v6436_v57 = vld [vmem:[%s5871_s13 + $0x88] sm:$0x3] }
 0x162   : > { %2862 = vst [vmem:[#allocation2 + $0x38] sm:$0x3] %v2842_v25  ;;  %v1275_v37 = vld [vmem:[#allocation2 + $0xd5] sm:$0xff]  ;;  %v1276_v15 = vld [vmem:[#allocation2 + $0xdd] sm:$0x3]  ;;  %v1297_v20 = vmul.f32 %v6436_v57, %v6278_v23 }
 0x163   : > { %683 = vst [vmem:[#allocation2 + $0xc6] sm:$0xff] %v663_v32  ;;  %v3938_v62 = vld [vmem:[#allocation2 + $0x20] sm:$0xff]  ;;  %v1316_v31 = vadd.f32 %v1296_v54, %v1275_v37  ;;  %v6451_v37 = vpop.permute.xlu1 %4721 }
 0x164   : > { %684 = vst [vmem:[#allocation2 + $0xce] sm:$0x3] %v664_v41  ;;  %v3979_v25 = vadd.f32 %v3959_v36, %v3938_v62  ;;  %v3960_v41 = vmul.f32 %v6407_v30, %v6099_v16  ;;  %v1317_v54 = vadd.f32 %v1297_v20, %v1276_v15  ;;  %v724_v36 = vmul.f32 %v6400_v56, %v6002_v39 }
 0x165   : > { %v1601_v6 = vld [vmem:[#allocation2 + $0xe1] sm:$0xff]  ;;  %1807 = vst [vmem:[#allocation2 + $0x46] sm:$0xff] %v1787_v17  ;;  %v1768_v17 = vmul.f32 %v6335_v34, %v6382_v11  ;;  %v2905_v62 = vmul.f32 %v6300_v38, %v5898_v7 }
 0x166   : > { %8815 = vst [vmem:[#allocation41_spill] sm:$0xff] %v6440_v10  ;;  %v1602_v14 = vld [vmem:[#allocation2 + $0xe9] sm:$0x3]  ;;  %v1642_v2 = vadd.f32 %v1622_v52, %v1601_v6  ;;  %v1747_v6 = vld [vmem:[#allocation2 + $0x4e] sm:$0x3] }
 0x167   : > { %1336 = vst [vmem:[#allocation2 + $0xd5] sm:$0xff] %v1316_v31  ;;  %v1643_v0 = vadd.f32 %v1623_v48, %v1602_v14  ;;  %v3939_v32 = vld [vmem:[#allocation2 + $0x28] sm:$0x3]  ;;  %v725_v31 = vmul.f32 %v6002_v39, %v6385_v43  ;;  %v1788_v10 = vadd.f32 %v1768_v17, %v1747_v6  ;;  %v6468_v6 = vpop.permute.xlu0 %4806 }
 0x168   : > { %8816 = vst [vmem:[#allocation42_spill] sm:$0xff] %v6445_v58  ;;  %v3980_v52 = vadd.f32 %v3960_v41, %v3939_v32  ;;  %v6460_v41 = vperm.slane %v6271_v24, 5  ;;  %v1377_v32 = vmul.f32 %v6377_v47, %v6315_v18 }
 0x169   : > { %3999 = vst [vmem:[#allocation2 + $0x20] sm:$0xff] %v3979_v25  ;;  %v2884_v48 = vld [vmem:[#allocation2 + $0x36] sm:$0xff] }
 0x16a   : > { %8817 = vst [vmem:[#allocation43_spill] sm:$0xff] %v6451_v37  ;;  %v2925_v15 = vadd.f32 %v2905_v62, %v2884_v48  ;;  %v703_v25 = vld [vmem:[#allocation2 + $0xc5] sm:$0xff]  ;;  %v1704_v17 = vmul.f32 %v6431_v35, %v6460_v41 }
 0x16b   : > { %1662 = vst [vmem:[#allocation2 + $0xe1] sm:$0xff] %v1642_v2  ;;  %v704_v20 = vld [vmem:[#allocation2 + $0xcd] sm:$0x3]  ;;  %v744_v14 = vadd.f32 %v724_v36, %v703_v25  ;;  %v1848_v2 = vmul.f32 %v6326_v50, %v6445_v58 }
 0x16c   : > { %1663 = vst [vmem:[#allocation2 + $0xe9] sm:$0x3] %v1643_v0  ;;  %v745_v0 = vadd.f32 %v725_v31, %v704_v20  ;;  %v1827_v37 = vld [vmem:[#allocation2 + $0x45] sm:$0xff] }
 0x16d   : > { %4000 = vst [vmem:[#allocation2 + $0x28] sm:$0x3] %v3980_v52  ;;  %v1868_v62 = vadd.f32 %v1848_v2, %v1827_v37  ;;  %v1786_v2 = vmul.f32 %v6431_v35, %v6382_v11 }
 0x16e   : > { %1337 = vst [vmem:[#allocation2 + $0xdd] sm:$0x3] %v1317_v54  ;;  %v1356_v52 = vld [vmem:[#allocation2 + $0xd4] sm:$0xff]  ;;  %v1703_v54 = vmul.f32 %v6393_v49, %v6460_v41 }
 0x16f   : > { %2945 = vst [vmem:[#allocation2 + $0x36] sm:$0xff] %v2925_v15  ;;  %v1397_v36 = vadd.f32 %v1377_v32, %v1356_v52  ;;  %v6471_v15 = vld [vmem:[%s5871_s13 + $0x20] sm:$0xff]  ;;  %v6481_v32 = vpop.permute.xlu1 %4734 }
 0x170   : > { %764 = vst [vmem:[#allocation2 + $0xc5] sm:$0xff] %v744_v14  ;;  %v4042_v31 = vmul.f32 %v6471_v15, %v5866_v59  ;;  %v1378_v14 = vmul.f32 %v6436_v57, %v6315_v18  ;;  %v1458_v59 = vmul.f32 %v6377_v47, %v6346_v63 }
 0x171   : > { %765 = vst [vmem:[#allocation2 + $0xcd] sm:$0x3] %v745_v0 }
 0x172   : > { %v1682_v24 = vld [vmem:[#allocation2 + $0xe0] sm:$0xff]  ;;  %1808 = vst [vmem:[#allocation2 + $0x4e] sm:$0x3] %v1788_v10  ;;  %v805_v10 = vmul.f32 %v6400_v56, %v6036_v29 }
 0x173   : > { %8818 = vst [vmem:[#allocation44_spill] sm:$0xff] %v6468_v6  ;;  %v1683_v48 = vld [vmem:[#allocation2 + $0xe8] sm:$0x3]  ;;  %v1723_v25 = vadd.f32 %v1703_v54, %v1682_v24 }
 0x174   : > { %1417 = vst [vmem:[#allocation2 + $0xd4] sm:$0xff] %v1397_v36  ;;  %v1724_v37 = vadd.f32 %v1704_v17, %v1683_v48  ;;  %v4021_v20 = vld [vmem:[#allocation2 + $0x26] sm:$0xff]  ;;  %v2986_v36 = vmul.f32 %v6300_v38, %v5989_v19  ;;  %v2987_v17 = vmul.f32 %v6407_v30, %v5989_v19 }
 0x175   : > { %1888 = vst [vmem:[#allocation2 + $0x45] sm:$0xff] %v1868_v62  ;;  %4672 = vadd.xlane.f32.xlu1 %v1723_v25  ;;  %v4062_v0 = vadd.f32 %v4042_v31, %v4021_v20  ;;  %v1357_v52 = vld [vmem:[#allocation2 + $0xdc] sm:$0x3]  ;;  %v1765_v54 = vld [vmem:[#allocation2 + $0xde] sm:$0x3]  ;;  %v806_v62 = vmul.f32 %v6036_v29, %v6385_v43 }
 0x176   : > { %8819 = vst [vmem:[#allocation45_spill] sm:$0xff] %v6481_v32  ;;  %v1398_v24 = vadd.f32 %v1378_v14, %v1357_v52  ;;  %v1806_v48 = vadd.f32 %v1786_v2, %v1765_v54  ;;  %v2965_v6 = vld [vmem:[#allocation2 + $0x35] sm:$0xff]  ;;  %v2966_v21 = vld [vmem:[#allocation2 + $0x3d] sm:$0x3] }
 0x177   : > { %1743 = vst [vmem:[#allocation2 + $0xe0] sm:$0xff] %v1723_v25  ;;  %v3006_v32 = vadd.f32 %v2986_v36, %v2965_v6  ;;  %v3007_v25 = vadd.f32 %v2987_v17, %v2966_v21  ;;  %v784_v31 = vld [vmem:[#allocation2 + $0xc4] sm:$0xff]  ;;  %v1214_v21 = vmul.f32 %v6119_v5, %v6148_v26  ;;  %v6495_v6 = vpop.permute.xlu1 %4754  ;;  %v4123_v36 = vmul.f32 %v6471_v15, %v5901_v12 }
 0x178   : > { %1744 = vst [vmem:[#allocation2 + $0xe8] sm:$0x3] %v1724_v37  ;;  %v785_v20 = vld [vmem:[#allocation2 + $0xcc] sm:$0x3]  ;;  %v825_v16 = vadd.f32 %v805_v10, %v784_v31  ;;  %v1849_v37 = vmul.f32 %v6335_v34, %v6445_v58  ;;  %v6497_v10 = vpop.permute.xlu0 %4871  ;;  %v4124_v17 = vmul.f32 %v5901_v12, %v6285_v44  ;;  %v6506_v31 = vperm.slane %v6160_v42, 0 }
 0x179   : > { %4082 = vst [vmem:[#allocation2 + $0x26] sm:$0xff] %v4062_v0  ;;  %v1828_v19 = vld [vmem:[#allocation2 + $0x4d] sm:$0x3]  ;;  %v826_v2 = vadd.f32 %v806_v62, %v785_v20  ;;  %v3067_v20 = vmul.f32 %v6300_v38, %v6055_v45 }
 0x17a   : > { %1418 = vst [vmem:[#allocation2 + $0xdc] sm:$0x3] %v1398_v24  ;;  %v1869_v0 = vadd.f32 %v1849_v37, %v1828_v19  ;;  %v886_v37 = vmul.f32 %v6400_v56, %v6089_v51 }
 0x17b   : > { %1826 = vst [vmem:[#allocation2 + $0xde] sm:$0x3] %v1806_v48  ;;  %v1437_v14 = vld [vmem:[#allocation2 + $0xd3] sm:$0xff] }
 0x17c   : > { %3026 = vst [vmem:[#allocation2 + $0x35] sm:$0xff] %v3006_v32  ;;  %v1478_v52 = vadd.f32 %v1458_v59, %v1437_v14  ;;  %v1193_v32 = vld [vmem:[#allocation2 + $0xce] sm:$0x3] }
 0x17d   : > { %3027 = vst [vmem:[#allocation2 + $0x3d] sm:$0x3] %v3007_v25  ;;  %v1234_v26 = vadd.f32 %v1214_v21, %v1193_v32 }
 0x17e   : > { %845 = vst [vmem:[#allocation2 + $0xc4] sm:$0xff] %v825_v16  ;;  %v1459_v16 = vmul.f32 %v6436_v57, %v6346_v63 }
 0x17f   : > { %8820 = vst [vmem:[#allocation46_spill] sm:$0xff] %v6495_v6  ;;  %v4613_v54 = vld [vmem:[#allocation2 + $0xe8] sm:$0xff] }
 0x180   : > { %1498 = vst [vmem:[#allocation2 + $0xd3] sm:$0xff] %v1478_v52  ;;  %4674 = vadd.xlane.f32.xlu2 %v4613_v54  ;;  %v4102_v59 = vld [vmem:[#allocation2 + $0x25] sm:$0xff]  ;;  %v4103_v19 = vld [vmem:[#allocation2 + $0x2d] sm:$0x3]  ;;  %v3476_v52 = vmul.f32 %v5875_v61, %v6285_v44  ;;  %v887_v54 = vmul.f32 %v6089_v51, %v6385_v43  ;;  %v4617_v6 = vpop.xlane.xlu0 %4616 }
 0x181   : > { %846 = vst [vmem:[#allocation2 + $0xcc] sm:$0x3] %v826_v2  ;;  %v4143_v24 = vadd.f32 %v4123_v36, %v4102_v59  ;;  %v4144_v48 = vadd.f32 %v4124_v17, %v4103_v19  ;;  %v1438_v62 = vld [vmem:[#allocation2 + $0xdb] sm:$0x3]  ;;  %v3068_v2 = vmul.f32 %v6407_v30, %v6055_v45  ;;  %v1539_v36 = vmul.f32 %v6377_v47, %v6374_v1  ;;  %v1908_v19 = vld [vmem:[#allocation2 + $0x44] sm:$0xff] }
 0x182   : > { %1889 = vst [vmem:[#allocation2 + $0x4d] sm:$0x3] %v1869_v0  ;;  %v1479_v25 = vadd.f32 %v1459_v16, %v1438_v62 }
 0x183   : > { %8821 = vst [vmem:[#allocation47_spill] sm:$0xff] %v6506_v31  ;;  %v3046_v14 = vld [vmem:[#allocation2 + $0x34] sm:$0xff] }
 0x184   : > { %1254 = vst [vmem:[#allocation2 + $0xce] sm:$0x3] %v1234_v26  ;;  %v3047_v0 = vld [vmem:[#allocation2 + $0x3c] sm:$0x3]  ;;  %v3087_v21 = vadd.f32 %v3067_v20, %v3046_v14  ;;  %v3455_v42 = vld [vmem:[#allocation2 + $0x3e] sm:$0x3] }
 0x185   : > { %4163 = vst [vmem:[#allocation2 + $0x25] sm:$0xff] %v4143_v24  ;;  %v3088_v17 = vadd.f32 %v3068_v2, %v3047_v0  ;;  %v3496_v32 = vadd.f32 %v3476_v52, %v3455_v42  ;;  %v865_v59 = vld [vmem:[#allocation2 + $0xc3] sm:$0xff]  ;;  %v1929_v24 = vmul.f32 %v6326_v50, %v6506_v31  ;;  %v4204_v2 = vmul.f32 %v6471_v15, %v5926_v33 }
 0x186   : > { %4164 = vst [vmem:[#allocation2 + $0x2d] sm:$0x3] %v4144_v48  ;;  %v906_v26 = vadd.f32 %v886_v37, %v865_v59  ;;  %v4205_v37 = vmul.f32 %v5926_v33, %v6285_v44  ;;  %v1540_v42 = vmul.f32 %v6436_v57, %v6374_v1  ;;  %v1930_v59 = vmul.f32 %v6335_v34, %v6506_v31 }
 0x187   : > { %1499 = vst [vmem:[#allocation2 + $0xdb] sm:$0x3] %v1479_v25  ;;  %v1518_v16 = vld [vmem:[#allocation2 + $0xd2] sm:$0xff]  ;;  %v1949_v14 = vadd.f32 %v1929_v24, %v1908_v19  ;;  %v6522_v25 = vpop.permute.xlu1 %4767  ;;  %v4690_v19 = vpop.permute.xlu2 %4689 }
 0x188   : > { %3107 = vst [vmem:[#allocation2 + $0x34] sm:$0xff] %v3087_v21  ;;  %v1559_v48 = vadd.f32 %v1539_v36, %v1518_v16  ;;  %v866_v62 = vld [vmem:[#allocation2 + $0xcb] sm:$0x3] }
 0x189   : > { %3108 = vst [vmem:[#allocation2 + $0x3c] sm:$0x3] %v3088_v17  ;;  %v907_v20 = vadd.f32 %v887_v54, %v866_v62  ;;  %v1909_v54 = vld [vmem:[#allocation2 + $0x4c] sm:$0x3]  ;;  %v3149_v62 = vmul.f32 %v6407_v30, %v6094_v13 }
 0x18a   : > { %3516 = vst [vmem:[#allocation2 + $0x3e] sm:$0x3] %v3496_v32  ;;  %v3148_v32 = vmul.f32 %v6300_v38, %v6094_v13 }
 0x18b   : > { %8822 = vst [vmem:[#allocation48_spill] sm:$0xff] %v6522_v25 }
 0x18c   : > { %1579 = vst [vmem:[#allocation2 + $0xd2] sm:$0xff] %v1559_v48  ;;  %v4183_v52 = vld [vmem:[#allocation2 + $0x24] sm:$0xff] }
 0x18d   : > { %926 = vst [vmem:[#allocation2 + $0xc3] sm:$0xff] %v906_v26  ;;  %v4224_v0 = vadd.f32 %v4204_v2, %v4183_v52  ;;  %v4184_v21 = vld [vmem:[#allocation2 + $0x2c] sm:$0x3]  ;;  %v6537_v26 = vld [vmem:[%s8650_s2 + $0x10] sm:$0xff] }
 0x18e   : > { %927 = vst [vmem:[#allocation2 + $0xcb] sm:$0x3] %v907_v20  ;;  %v4225_v36 = vadd.f32 %v4205_v37, %v4184_v21  ;;  %v1519_v17 = vld [vmem:[#allocation2 + $0xda] sm:$0x3]  ;;  %v6540_v24 = vperm.slane %v6537_v26, 1  ;;  %v4924_v20 = vmul.f32 %v4690_v19, %v4617_v6  ;;  %v1950_v37 = vadd.f32 %v1930_v59, %v1909_v54  ;;  %v4619_v6 = vpop.xlane.xlu0 %4618 }
 0x18f   : > { %1969 = vst [vmem:[#allocation2 + $0x44] sm:$0xff] %v1949_v14  ;;  %v1560_v16 = vadd.f32 %v1540_v42, %v1519_v17  ;;  %v3127_v48 = vld [vmem:[#allocation2 + $0x33] sm:$0xff]  ;;  %v967_v14 = vmul.f32 %v6400_v56, %v6122_v22  ;;  %v968_v42 = vmul.f32 %v6122_v22, %v6385_v43  ;;  %v6550_v25 = vpop.permute.xlu1 %4786  ;;  %v4925_v19 = vmul.f32 %v6330_v53, %v4619_v6 }
 0x190   : > { %4244 = vst [vmem:[#allocation2 + $0x24] sm:$0xff] %v4224_v0  ;;  %v3128_v2 = vld [vmem:[#allocation2 + $0x3b] sm:$0x3]  ;;  %v3168_v52 = vadd.f32 %v3148_v32, %v3127_v48  ;;  %v1620_v0 = vmul.f32 %v6377_v47, %v6422_v28  ;;  %4989 = vperm.xlu1 %5459, %v4924_v20   ;;  %v4285_v48 = vmul.f32 %v6471_v15, %v5962_v55 }
 0x191   : > { %8823 = vst [vmem:[#allocation49_spill] sm:$0xff] %v6540_v24  ;;  %v3169_v21 = vadd.f32 %v3149_v62, %v3128_v2  ;;  %4992 = vperm.xlu0 %5460, %v4925_v19   ;;  %v3229_v6 = vmul.f32 %v6300_v38, %v6127_v27  ;;  %v6566_v19 = vperm.slane %v6537_v26, 2 }
 0x192   : > { %4245 = vst [vmem:[#allocation2 + $0x2c] sm:$0x3] %v4225_v36 }
 0x193   : > { %1580 = vst [vmem:[#allocation2 + $0xda] sm:$0x3] %v1560_v16  ;;  %v1599_v17 = vld [vmem:[#allocation2 + $0xd1] sm:$0xff]  ;;  %v2010_v16 = vmul.f32 %v6326_v50, %v6540_v24 }
 0x194   : > { %3188 = vst [vmem:[#allocation2 + $0x33] sm:$0xff] %v3168_v52  ;;  %v1640_v36 = vadd.f32 %v1620_v0, %v1599_v17  ;;  %v946_v32 = vld [vmem:[#allocation2 + $0xc2] sm:$0xff]  ;;  %v4286_v52 = vmul.f32 %v5962_v55, %v6285_v44 }
 0x195   : > { %8824 = vst [vmem:[#allocation50_spill] sm:$0xff] %v6550_v25  ;;  %v947_v54 = vld [vmem:[#allocation2 + $0xca] sm:$0x3]  ;;  %v987_v59 = vadd.f32 %v967_v14, %v946_v32  ;;  %v1621_v14 = vmul.f32 %v6436_v57, %v6422_v28  ;;  %v3230_v32 = vmul.f32 %v6407_v30, %v6127_v27 }
 0x196   : > { %3189 = vst [vmem:[#allocation2 + $0x3b] sm:$0x3] %v3169_v21  ;;  %v988_v62 = vadd.f32 %v968_v42, %v947_v54  ;;  %v1989_v20 = vld [vmem:[#allocation2 + $0x43] sm:$0xff] }
 0x197   : > { %1970 = vst [vmem:[#allocation2 + $0x4c] sm:$0x3] %v1950_v37  ;;  %v4264_v2 = vld [vmem:[#allocation2 + $0x23] sm:$0xff]  ;;  %v2030_v0 = vadd.f32 %v2010_v16, %v1989_v20  ;;  %v1048_v16 = vmul.f32 %v6400_v56, %v6151_v60 }
 0x198   : > { %1660 = vst [vmem:[#allocation2 + $0xd1] sm:$0xff] %v1640_v36  ;;  %v4305_v53 = vadd.f32 %v4285_v48, %v4264_v2  ;;  %v2011_v48 = vmul.f32 %v6335_v34, %v6540_v24 }
 0x199   : > { %1007 = vst [vmem:[#allocation2 + $0xc2] sm:$0xff] %v987_v59  ;;  %v4265_v21 = vld [vmem:[#allocation2 + $0x2b] sm:$0x3] }
 0x19a   : > { %1008 = vst [vmem:[#allocation2 + $0xca] sm:$0x3] %v988_v62  ;;  %v4306_v37 = vadd.f32 %v4286_v52, %v4265_v21  ;;  %v1600_v17 = vld [vmem:[#allocation2 + $0xd9] sm:$0x3]  ;;  %v1701_v62 = vmul.f32 %v6377_v47, %v6460_v41  ;;  %v4366_v47 = vmul.f32 %v6471_v15, %v6007_v46 }
 0x19b   : > { %2050 = vst [vmem:[#allocation2 + $0x43] sm:$0xff] %v2030_v0  ;;  %v1641_v42 = vadd.f32 %v1621_v14, %v1600_v17  ;;  %v3208_v36 = vld [vmem:[#allocation2 + $0x32] sm:$0xff] }
 0x19c   : > { %4325 = vst [vmem:[#allocation2 + $0x23] sm:$0xff] %v4305_v53  ;;  %v3249_v59 = vadd.f32 %v3229_v6, %v3208_v36  ;;  %v6574_v53 = vpop.permute.xlu1 %4799 }
 0x19d   : > { %4326 = vst [vmem:[#allocation2 + $0x2b] sm:$0x3] %v4306_v37  ;;  %v3209_v54 = vld [vmem:[#allocation2 + $0x3a] sm:$0x3]  ;;  %v1049_v37 = vmul.f32 %v6151_v60, %v6385_v43 }
 0x19e   : > { %8825 = vst [vmem:[#allocation51_spill] sm:$0xff] %v6566_v19  ;;  %v3250_v20 = vadd.f32 %v3230_v32, %v3209_v54  ;;  %v1990_v2 = vld [vmem:[#allocation2 + $0x4b] sm:$0x3] }
 0x19f   : > { %1661 = vst [vmem:[#allocation2 + $0xd9] sm:$0x3] %v1641_v42  ;;  %v1680_v52 = vld [vmem:[#allocation2 + $0xd0] sm:$0xff]  ;;  %v2031_v0 = vadd.f32 %v2011_v48, %v1990_v2  ;;  %v2091_v42 = vmul.f32 %v6326_v50, %v6566_v19 }
 0x1a0   : > { %3269 = vst [vmem:[#allocation2 + $0x32] sm:$0xff] %v3249_v59  ;;  %v1721_v21 = vadd.f32 %v1701_v62, %v1680_v52  ;;  %v1027_v14 = vld [vmem:[#allocation2 + $0xc1] sm:$0xff]  ;;  %v4367_v59 = vmul.f32 %v6007_v46, %v6285_v44 }
 0x1a1   : > { %8826 = vst [vmem:[#allocation52_spill] sm:$0xff] %v6574_v53  ;;  %v1028_v17 = vld [vmem:[#allocation2 + $0xc9] sm:$0x3]  ;;  %v1068_v6 = vadd.f32 %v1048_v16, %v1027_v14  ;;  %v1702_v16 = vmul.f32 %v6436_v57, %v6460_v41  ;;  %v620_v53 = vld [vmem:[#allocation2 + $0xb6] sm:$0xff] }
 0x1a2   : > { %3270 = vst [vmem:[#allocation2 + $0x3a] sm:$0x3] %v3250_v20  ;;  %v1069_v36 = vadd.f32 %v1049_v37, %v1028_v17  ;;  %v2070_v32 = vld [vmem:[#allocation2 + $0x42] sm:$0xff]  ;;  %v3311_v17 = vmul.f32 %v6407_v30, %v6167_v3 }
 0x1a3   : > { %2051 = vst [vmem:[#allocation2 + $0x4b] sm:$0x3] %v2031_v0  ;;  %v4345_v54 = vld [vmem:[#allocation2 + $0x22] sm:$0xff]  ;;  %v2111_v48 = vadd.f32 %v2091_v42, %v2070_v32  ;;  %v3310_v0 = vmul.f32 %v6300_v38, %v6167_v3  ;;  %v6593_v42 = vperm.slane %v6537_v26, 3  ;;  %v2092_v32 = vmul.f32 %v6335_v34, %v6566_v19 }
 0x1a4   : > { %1741 = vst [vmem:[#allocation2 + $0xd0] sm:$0xff] %v1721_v21  ;;  %v4386_v62 = vadd.f32 %v4366_v47, %v4345_v54  ;;  %v4346_v20 = vld [vmem:[#allocation2 + $0x2a] sm:$0x3]  ;;  %v2317_v21 = vld [vmem:[#allocation2 + $0x4e] sm:$0x3]  ;;  %v6597_v54 = vpop.permute.xlu1 %4819 }
 0x1a5   : > { %1088 = vst [vmem:[#allocation2 + $0xc1] sm:$0xff] %v1068_v6  ;;  %v4387_v2 = vadd.f32 %v4367_v59, %v4346_v20  ;;  %v2338_v6 = vmul.f32 %v6407_v30, %v6174_v8  ;;  %v1129_v20 = vmul.f32 %v6400_v56, %v6190_v4 }
 0x1a6   : > { %1089 = vst [vmem:[#allocation2 + $0xc9] sm:$0x3] %v1069_v36  ;;  %v1681_v52 = vld [vmem:[#allocation2 + $0xd8] sm:$0x3] }
 0x1a7   : > { %2131 = vst [vmem:[#allocation2 + $0x42] sm:$0xff] %v2111_v48  ;;  %v1722_v14 = vadd.f32 %v1702_v16, %v1681_v52  ;;  %v3289_v37 = vld [vmem:[#allocation2 + $0x31] sm:$0xff]  ;;  %v1130_v52 = vmul.f32 %v6190_v4, %v6385_v43 }
 0x1a8   : > { %4406 = vst [vmem:[#allocation2 + $0x22] sm:$0xff] %v4386_v62  ;;  %v3330_v36 = vadd.f32 %v3310_v0, %v3289_v37  ;;  %v2358_v62 = vadd.f32 %v2338_v6, %v2317_v21  ;;  %v4447_v21 = vmul.f32 %v6471_v15, %v6048_v40 }
 0x1a9   : > { %4407 = vst [vmem:[#allocation2 + $0x2a] sm:$0x3] %v4387_v2  ;;  %v3290_v47 = vld [vmem:[#allocation2 + $0x39] sm:$0x3] }
 0x1aa   : > { %8827 = vst [vmem:[#allocation53_spill] sm:$0xff] %v6593_v42  ;;  %v3331_v59 = vadd.f32 %v3311_v17, %v3290_v47  ;;  %v2071_v48 = vld [vmem:[#allocation2 + $0x4a] sm:$0x3]  ;;  %v6606_v17 = vld [vmem:[%s5871_s13 + $0x58] sm:$0x3] }
 0x1ab   : > { %8828 = vst [vmem:[#allocation54_spill] sm:$0xff] %v6597_v54  ;;  %v2112_v16 = vadd.f32 %v2092_v32, %v2071_v48  ;;  %v1785_v48 = vmul.f32 %v6393_v49, %v6382_v11 }
 0x1ac   : > { %1742 = vst [vmem:[#allocation2 + $0xd8] sm:$0x3] %v1722_v14  ;;  %v1108_v2 = vld [vmem:[#allocation2 + $0xc0] sm:$0xff]  ;;  %v2172_v14 = vmul.f32 %v6326_v50, %v6593_v42 }
 0x1ad   : > { %3350 = vst [vmem:[#allocation2 + $0x31] sm:$0xff] %v3330_v36  ;;  %v1109_v0 = vld [vmem:[#allocation2 + $0xc8] sm:$0x3]  ;;  %v1149_v37 = vadd.f32 %v1129_v20, %v1108_v2  ;;  %v4448_v36 = vmul.f32 %v6048_v40, %v6285_v44  ;;  %v6615_v20 = vld [vmem:[%s5871_s13 + $0x50] sm:$0xff] }
 0x1ae   : > { %3351 = vst [vmem:[#allocation2 + $0x39] sm:$0x3] %v3331_v59  ;;  %v1150_v6 = vadd.f32 %v1130_v52, %v1109_v0  ;;  %v2151_v56 = vld [vmem:[#allocation2 + $0x41] sm:$0xff] }
 0x1af   : > { %2132 = vst [vmem:[#allocation2 + $0x4a] sm:$0x3] %v2112_v16  ;;  %v4426_v47 = vld [vmem:[#allocation2 + $0x21] sm:$0xff]  ;;  %v2192_v43 = vadd.f32 %v2172_v14, %v2151_v56  ;;  %v641_v16 = vmul.f32 %v6615_v20, %v5967_v9  ;;  %v621_v56 = vld [vmem:[#allocation2 + $0xbe] sm:$0x3] }
 0x1b0   : > { %2378 = vst [vmem:[#allocation2 + $0x4e] sm:$0x3] %v2358_v62  ;;  %v4467_v32 = vadd.f32 %v4447_v21, %v4426_v47  ;;  %v4427_v59 = vld [vmem:[#allocation2 + $0x29] sm:$0x3]  ;;  %v8829_v62 = vld [vmem:[#allocation29_spill] sm:$0xff]  ;;  %v6626_v47 = vperm.slane %v6537_v26, 4 }
 0x1b1   : > { %1169 = vst [vmem:[#allocation2 + $0xc0] sm:$0xff] %v1149_v37  ;;  %v4468_v2 = vadd.f32 %v4448_v36, %v4427_v59  ;;  %v3391_v0 = vmul.f32 %v6300_v38, %v8829_v62  ;;  %v642_v37 = vmul.f32 %v5967_v9, %v6606_v17  ;;  %v2173_v38 = vmul.f32 %v6335_v34, %v6593_v42 }
 0x1b2   : > { %1170 = vst [vmem:[#allocation2 + $0xc8] sm:$0x3] %v1150_v6  ;;  %v3392_v6 = vmul.f32 %v6407_v30, %v8829_v62  ;;  %v6633_v62 = vld [vmem:[%s5871_s13 + $0x70] sm:$0xff] }
 0x1b3   : > { %v1764_v52 = vld [vmem:[#allocation2 + $0xd6] sm:$0xff]  ;;  %2212 = vst [vmem:[#allocation2 + $0x41] sm:$0xff] %v2192_v43  ;;  %v6630_v43 = vpop.permute.xlu1 %4832  ;;  %v662_v25 = vadd.f32 %v642_v37, %v621_v56  ;;  %v1213_v26 = vmul.f32 %v6633_v62, %v6119_v5 }
 0x1b4   : > { %4487 = vst [vmem:[#allocation2 + $0x21] sm:$0xff] %v4467_v32  ;;  %v1805_v14 = vadd.f32 %v1785_v48, %v1764_v52  ;;  %v3370_v21 = vld [vmem:[#allocation2 + $0x30] sm:$0xff]  ;;  %v661_v52 = vadd.f32 %v641_v16, %v620_v53 }
 0x1b5   : > { %4488 = vst [vmem:[#allocation2 + $0x29] sm:$0x3] %v4468_v2  ;;  %v3371_v36 = vld [vmem:[#allocation2 + $0x38] sm:$0x3]  ;;  %v3411_v59 = vadd.f32 %v3391_v0, %v3370_v21  ;;  %v2253_v0 = vmul.f32 %v6326_v50, %v6626_v47 }
 0x1b6   : > { %8830 = vst [vmem:[#allocation55_spill] sm:$0xff] %v6626_v47  ;;  %v3412_v32 = vadd.f32 %v3392_v6, %v3371_v36  ;;  %v2152_v48 = vld [vmem:[#allocation2 + $0x49] sm:$0x3] }
 0x1b7   : > { %8831 = vst [vmem:[#allocation56_spill] sm:$0xff] %v6630_v43  ;;  %v2193_v54 = vadd.f32 %v2173_v38, %v2152_v48  ;;  %v1867_v38 = vmul.f32 %v6431_v35, %v6445_v58 }
 0x1b8   : > { %1825 = vst [vmem:[#allocation2 + $0xd6] sm:$0xff] %v1805_v14  ;;  %v5477_v14 = vld [vmem:[%s8650_s2 + $0x30] ss:$0 sm:$0xff] }
 0x1b9   : > { %3431 = vst [vmem:[#allocation2 + $0x30] sm:$0xff] %v3411_v59  ;;  %v1192_v2 = vld [vmem:[#allocation2 + $0xc6] sm:$0xff]  ;;  %v4528_v53 = vmul.f32 %v5477_v14, %v6471_v15  ;;  %v4529_v6 = vmul.f32 %v5477_v14, %v6285_v44  ;;  %v2254_v14 = vmul.f32 %v6335_v34, %v6626_v47 }
 0x1ba   : > { %3432 = vst [vmem:[#allocation2 + $0x38] sm:$0x3] %v3412_v32  ;;  %v1233_v16 = vadd.f32 %v1213_v26, %v1192_v2  ;;  %v2232_v21 = vld [vmem:[#allocation2 + $0x40] sm:$0xff]  ;;  %v722_v2 = vmul.f32 %v6615_v20, %v6002_v39 }
 0x1bb   : > { %2213 = vst [vmem:[#allocation2 + $0x49] sm:$0x3] %v2193_v54  ;;  %v4507_v37 = vld [vmem:[#allocation2 + $0x20] sm:$0xff]  ;;  %v2273_v56 = vadd.f32 %v2253_v0, %v2232_v21  ;;  %v1866_v54 = vmul.f32 %v6393_v49, %v6445_v58  ;;  %v6650_v26 = vpop.permute.xlu1 %4851 }
 0x1bc   : > { %681 = vst [vmem:[#allocation2 + $0xb6] sm:$0xff] %v661_v52  ;;  %v4548_v36 = vadd.f32 %v4528_v53, %v4507_v37  ;;  %v4508_v59 = vld [vmem:[#allocation2 + $0x28] sm:$0x3]  ;;  %v3475_v52 = vmul.f32 %v6471_v15, %v5875_v61  ;;  %v723_v53 = vmul.f32 %v6002_v39, %v6606_v17  ;;  %v1199_v37 = vmul.f32 %v6326_v50, %v6119_v5 }
 0x1bd   : > { %682 = vst [vmem:[#allocation2 + $0xbe] sm:$0x3] %v662_v25  ;;  %v4549_v32 = vadd.f32 %v4529_v6, %v4508_v59  ;;  %v1294_v59 = vmul.f32 %v6633_v62, %v6278_v23 }
 0x1be   : > { %1253 = vst [vmem:[#allocation2 + $0xc6] sm:$0xff] %v1233_v16  ;;  %4624 = vadd.xlane.f32.xlu2 %v4548_v36 }
 0x1bf   : > { %v1845_v48 = vld [vmem:[#allocation2 + $0xd5] sm:$0xff]  ;;  %v1846_v43 = vld [vmem:[#allocation2 + $0xdd] sm:$0x3]  ;;  %2293 = vst [vmem:[#allocation2 + $0x40] sm:$0xff] %v2273_v56 }
 0x1c0   : > { %8832 = vst [vmem:[#allocation57_spill] sm:$0xff] %v6650_v26  ;;  %v1886_v44 = vadd.f32 %v1866_v54, %v1845_v48  ;;  %v1887_v25 = vadd.f32 %v1867_v38, %v1846_v43  ;;  %v1178_v56 = vld [vmem:[#allocation2 + $0x56] sm:$0xff]  ;;  %v1947_v26 = vmul.f32 %v6393_v49, %v6506_v31 }
 0x1c1   : > { %4568 = vst [vmem:[#allocation2 + $0x20] sm:$0xff] %v4548_v36  ;;  %v3454_v0 = vld [vmem:[#allocation2 + $0x36] sm:$0xff]  ;;  %v1200_v36 = vmul.f32 %v6335_v34, %v6119_v5  ;;  %v1219_v34 = vadd.f32 %v1199_v37, %v1178_v56  ;;  %v6678_v56 = vld [vmem:[%s5871_s13 + $0x28] sm:$0x3] }
 0x1c2   : > { %4569 = vst [vmem:[#allocation2 + $0x28] sm:$0x3] %v4549_v32  ;;  %v3495_v16 = vadd.f32 %v3475_v52, %v3454_v0  ;;  %v2233_v21 = vld [vmem:[#allocation2 + $0x48] sm:$0x3]  ;;  %v6665_v54 = vld [vmem:[%s5871_s13 + $0x78] sm:$0x3] }
 0x1c3   : > { %1906 = vst [vmem:[#allocation2 + $0xd5] sm:$0xff] %v1886_v44  ;;  %v2274_v43 = vadd.f32 %v2254_v14, %v2233_v21  ;;  %v701_v6 = vld [vmem:[#allocation2 + $0xb5] sm:$0xff]  ;;  %v1295_v38 = vmul.f32 %v6665_v54, %v6278_v23  ;;  %v1179_v52 = vld [vmem:[#allocation2 + $0x5e] sm:$0x3] }
 0x1c4   : > { %1907 = vst [vmem:[#allocation2 + $0xdd] sm:$0x3] %v1887_v25  ;;  %v702_v32 = vld [vmem:[#allocation2 + $0xbd] sm:$0x3]  ;;  %v742_v48 = vadd.f32 %v722_v2, %v701_v6  ;;  %v1948_v6 = vmul.f32 %v6431_v35, %v6506_v31 }
 0x1c5   : > { %3515 = vst [vmem:[#allocation2 + $0x36] sm:$0xff] %v3495_v16  ;;  %v1273_v50 = vld [vmem:[#allocation2 + $0xc5] sm:$0xff]  ;;  %v1274_v44 = vld [vmem:[#allocation2 + $0xcd] sm:$0x3]  ;;  %v743_v25 = vadd.f32 %v723_v53, %v702_v32  ;;  %v1220_v16 = vadd.f32 %v1200_v36, %v1179_v52  ;;  %v6673_v53 = vpop.permute.xlu1 %4864  ;;  %v803_v32 = vmul.f32 %v6615_v20, %v6036_v29 }
 0x1c6   : > { %2294 = vst [vmem:[#allocation2 + $0x48] sm:$0x3] %v2274_v43  ;;  %v1314_v0 = vadd.f32 %v1294_v59, %v1273_v50  ;;  %v1315_v14 = vadd.f32 %v1295_v38, %v1274_v44  ;;  %v8834_v38 = vld [vmem:[#allocation10_spill] sm:$0xff]  ;;  %v6685_v44 = vld [vmem:[%s5871_s13 + $0x10] sm:$0xff] }
 0x1c7   : > { %762 = vst [vmem:[#allocation2 + $0xb5] sm:$0xff] %v742_v48  ;;  %v3556_v37 = vmul.f32 %v6471_v15, %v8834_v38  ;;  %v3557_v36 = vmul.f32 %v6678_v56, %v8834_v38  ;;  %v1376_v38 = vmul.f32 %v6665_v54, %v6315_v18 }
 0x1c8   : > { %763 = vst [vmem:[#allocation2 + $0xbd] sm:$0x3] %v743_v25 }
 0x1c9   : > { %v4589_v21 = vld [vmem:[#allocation2 + $0x28] sm:$0xff]  ;;  %1334 = vst [vmem:[#allocation2 + $0xc5] sm:$0xff] %v1314_v0 }
 0x1ca   : > { %4626 = vadd.xlane.f32.xlu2 %v4589_v21  ;;  %v1926_v2 = vld [vmem:[#allocation2 + $0xd4] sm:$0xff]  ;;  %1335 = vst [vmem:[#allocation2 + $0xcd] sm:$0x3] %v1315_v14 }
 0x1cb   : > { %8833 = vst [vmem:[#allocation58_spill] sm:$0xff] %v6673_v53  ;;  %v1927_v43 = vld [vmem:[#allocation2 + $0xdc] sm:$0x3]  ;;  %v1967_v59 = vadd.f32 %v1947_v26, %v1926_v2  ;;  %v2337_v26 = vmul.f32 %v6685_v44, %v6174_v8 }
 0x1cc   : > { %1239 = vst [vmem:[#allocation2 + $0x56] sm:$0xff] %v1219_v34  ;;  %v1968_v48 = vadd.f32 %v1948_v6, %v1927_v43  ;;  %v3535_v52 = vld [vmem:[#allocation2 + $0x35] sm:$0xff]  ;;  %v3536_v50 = vld [vmem:[#allocation2 + $0x3d] sm:$0x3]  ;;  %v1375_v34 = vmul.f32 %v6633_v62, %v6315_v18 }
 0x1cd   : > { %1240 = vst [vmem:[#allocation2 + $0x5e] sm:$0x3] %v1220_v16  ;;  %v3576_v25 = vadd.f32 %v3556_v37, %v3535_v52  ;;  %v3577_v0 = vadd.f32 %v3557_v36, %v3536_v50  ;;  %v2316_v14 = vld [vmem:[#allocation2 + $0x46] sm:$0xff]  ;;  %v1784_v16 = vmul.f32 %v6436_v57, %v6382_v11  ;;  %v2029_v57 = vmul.f32 %v6431_v35, %v6540_v24 }
 0x1ce   : > { %1987 = vst [vmem:[#allocation2 + $0xd4] sm:$0xff] %v1967_v59  ;;  %v2357_v21 = vadd.f32 %v2337_v26, %v2316_v14  ;;  %v782_v2 = vld [vmem:[#allocation2 + $0xb4] sm:$0xff]  ;;  %v804_v59 = vmul.f32 %v6036_v29, %v6606_v17 }
 0x1cf   : > { %1988 = vst [vmem:[#allocation2 + $0xdc] sm:$0x3] %v1968_v48  ;;  %v783_v6 = vld [vmem:[#allocation2 + $0xbc] sm:$0x3]  ;;  %v823_v43 = vadd.f32 %v803_v32, %v782_v2  ;;  %v6697_v32 = vpop.permute.xlu1 %4884 }
 0x1d0   : > { %3596 = vst [vmem:[#allocation2 + $0x35] sm:$0xff] %v3576_v25  ;;  %v1354_v53 = vld [vmem:[#allocation2 + $0xc4] sm:$0xff]  ;;  %v824_v26 = vadd.f32 %v804_v59, %v783_v6  ;;  %v2028_v25 = vmul.f32 %v6393_v49, %v6540_v24 }
 0x1d1   : > { %3597 = vst [vmem:[#allocation2 + $0x3d] sm:$0x3] %v3577_v0  ;;  %v1355_v37 = vld [vmem:[#allocation2 + $0xcc] sm:$0x3]  ;;  %v1395_v36 = vadd.f32 %v1375_v34, %v1354_v53  ;;  %v1763_v48 = vld [vmem:[#allocation2 + $0xce] sm:$0x3] }
 0x1d2   : > { %2377 = vst [vmem:[#allocation2 + $0x46] sm:$0xff] %v2357_v21  ;;  %v1396_v52 = vadd.f32 %v1376_v38, %v1355_v37  ;;  %v1804_v50 = vadd.f32 %v1784_v16, %v1763_v48  ;;  %v8836_v53 = vld [vmem:[#allocation12_spill] sm:$0xff]  ;;  %v8837_v59 = vld [vmem:[#allocation30_spill] sm:$0xff] }
 0x1d3   : > { %843 = vst [vmem:[#allocation2 + $0xb4] sm:$0xff] %v823_v43  ;;  %v3637_v21 = vmul.f32 %v6471_v15, %v8836_v53  ;;  %v3638_v6 = vmul.f32 %v6678_v56, %v8836_v53  ;;  %v2418_v37 = vmul.f32 %v6685_v44, %v8837_v59 }
 0x1d4   : > { %8835 = vst [vmem:[#allocation59_spill] sm:$0xff] %v6697_v32 }
 0x1d5   : > { %1415 = vst [vmem:[#allocation2 + $0xc4] sm:$0xff] %v1395_v36  ;;  %v2007_v0 = vld [vmem:[#allocation2 + $0xd3] sm:$0xff]  ;;  %v2419_v36 = vmul.f32 %v6407_v30, %v8837_v59 }
 0x1d6   : > { %1416 = vst [vmem:[#allocation2 + $0xcc] sm:$0x3] %v1396_v52  ;;  %v2008_v14 = vld [vmem:[#allocation2 + $0xdb] sm:$0x3]  ;;  %v2048_v2 = vadd.f32 %v2028_v25, %v2007_v0 }
 0x1d7   : > { %1824 = vst [vmem:[#allocation2 + $0xce] sm:$0x3] %v1804_v50  ;;  %v2049_v38 = vadd.f32 %v2029_v57, %v2008_v14  ;;  %v3616_v34 = vld [vmem:[#allocation2 + $0x34] sm:$0xff]  ;;  %v1456_v50 = vmul.f32 %v6633_v62, %v6346_v63  ;;  %v884_v14 = vmul.f32 %v6615_v20, %v6089_v51 }
 0x1d8   : > { %844 = vst [vmem:[#allocation2 + $0xbc] sm:$0x3] %v824_v26  ;;  %v3617_v43 = vld [vmem:[#allocation2 + $0x3c] sm:$0x3]  ;;  %v3657_v16 = vadd.f32 %v3637_v21, %v3616_v34  ;;  %v1457_v21 = vmul.f32 %v6665_v54, %v6346_v63  ;;  %v6717_v34 = vpop.xlane.xlu1 %4678  ;;  %v4024_v3 = vld [vmem:[#allocation2 + $0x3e] sm:$0x3] }
 0x1d9   : > { %2068 = vst [vmem:[#allocation2 + $0xd3] sm:$0xff] %v2048_v2  ;;  %v3658_v48 = vadd.f32 %v3638_v6, %v3617_v43  ;;  %v2397_v52 = vld [vmem:[#allocation2 + $0x45] sm:$0xff]  ;;  %v2398_v25 = vld [vmem:[#allocation2 + $0x4d] sm:$0x3] }
 0x1da   : > { %2069 = vst [vmem:[#allocation2 + $0xdb] sm:$0x3] %v2049_v38  ;;  %v2438_v0 = vadd.f32 %v2418_v37, %v2397_v52  ;;  %v2439_v57 = vadd.f32 %v2419_v36, %v2398_v25  ;;  %v863_v26 = vld [vmem:[#allocation2 + $0xb3] sm:$0xff]  ;;  %v885_v37 = vmul.f32 %v6089_v51, %v6606_v17  ;;  %v2109_v36 = vmul.f32 %v6393_v49, %v6566_v19 }
 0x1db   : > { %3677 = vst [vmem:[#allocation2 + $0x34] sm:$0xff] %v3657_v16  ;;  %v904_v43 = vadd.f32 %v884_v14, %v863_v26  ;;  %v2110_v25 = vmul.f32 %v6431_v35, %v6566_v19 }
 0x1dc   : > { %3678 = vst [vmem:[#allocation2 + $0x3c] sm:$0x3] %v3658_v48  ;;  %v1435_v2 = vld [vmem:[#allocation2 + $0xc3] sm:$0xff] }
 0x1dd   : > { %8838 = vst [vmem:[#allocation60_spill] sm:$0xff] %v6717_v34  ;;  %v1436_v38 = vld [vmem:[#allocation2 + $0xcb] sm:$0x3]  ;;  %v1476_v6 = vadd.f32 %v1456_v50, %v1435_v2 }
 0x1de   : > { %2458 = vst [vmem:[#allocation2 + $0x45] sm:$0xff] %v2438_v0  ;;  %v1477_v16 = vadd.f32 %v1457_v21, %v1436_v38  ;;  %v8839_v0 = vld [vmem:[#allocation15_spill] sm:$0xff] }
 0x1df   : > { %2459 = vst [vmem:[#allocation2 + $0x4d] sm:$0x3] %v2439_v57  ;;  %v864_v48 = vld [vmem:[#allocation2 + $0xbb] sm:$0x3]  ;;  %v3718_v26 = vmul.f32 %v6471_v15, %v8839_v0  ;;  %v3719_v2 = vmul.f32 %v6678_v56, %v8839_v0  ;;  %v8840_v38 = vld [vmem:[#allocation31_spill] sm:$0xff] }
 0x1e0   : > { %1496 = vst [vmem:[#allocation2 + $0xc3] sm:$0xff] %v1476_v6  ;;  %v2088_v52 = vld [vmem:[#allocation2 + $0xd2] sm:$0xff]  ;;  %v905_v34 = vadd.f32 %v885_v37, %v864_v48  ;;  %v2499_v6 = vmul.f32 %v6685_v44, %v8840_v38  ;;  %v6733_v48 = vpop.xlane.xlu1 %4620 }
 0x1e1   : > { %1497 = vst [vmem:[#allocation2 + $0xcb] sm:$0x3] %v1477_v16  ;;  %v2089_v32 = vld [vmem:[#allocation2 + $0xda] sm:$0x3]  ;;  %v2129_v50 = vadd.f32 %v2109_v36, %v2088_v52  ;;  %v2500_v36 = vmul.f32 %v6407_v30, %v8840_v38 }
 0x1e2   : > { %924 = vst [vmem:[#allocation2 + $0xb3] sm:$0xff] %v904_v43  ;;  %v2130_v57 = vadd.f32 %v2110_v25, %v2089_v32  ;;  %v3697_v14 = vld [vmem:[#allocation2 + $0x33] sm:$0xff]  ;;  %v1537_v32 = vmul.f32 %v6633_v62, %v6374_v1  ;;  %v2908_v25 = vmul.f32 %v6678_v56, %v5898_v7 }
 0x1e3   : > { %925 = vst [vmem:[#allocation2 + $0xbb] sm:$0x3] %v905_v34  ;;  %v3698_v49 = vld [vmem:[#allocation2 + $0x3b] sm:$0x3]  ;;  %v3738_v21 = vadd.f32 %v3718_v26, %v3697_v14  ;;  %v1538_v26 = vmul.f32 %v6665_v54, %v6374_v1 }
 0x1e4   : > { %2149 = vst [vmem:[#allocation2 + $0xd2] sm:$0xff] %v2129_v50  ;;  %v3739_v16 = vadd.f32 %v3719_v2, %v3698_v49  ;;  %v965_v49 = vmul.f32 %v6615_v20, %v6122_v22 }
 0x1e5   : > { %2150 = vst [vmem:[#allocation2 + $0xda] sm:$0x3] %v2130_v57  ;;  %v2478_v37 = vld [vmem:[#allocation2 + $0x44] sm:$0xff] }
 0x1e6   : > { %3758 = vst [vmem:[#allocation2 + $0x33] sm:$0xff] %v3738_v21  ;;  %v2479_v43 = vld [vmem:[#allocation2 + $0x4c] sm:$0x3]  ;;  %v2519_v34 = vadd.f32 %v2499_v6, %v2478_v37  ;;  %v2887_v52 = vld [vmem:[#allocation2 + $0x4e] sm:$0x3]  ;;  %v6744_v37 = vld [vmem:[%s5871_s13 + $0x90] sm:$0xff] }
 0x1e7   : > { %3759 = vst [vmem:[#allocation2 + $0x3b] sm:$0x3] %v3739_v16  ;;  %v1516_v50 = vld [vmem:[#allocation2 + $0xc2] sm:$0xff]  ;;  %v2520_v57 = vadd.f32 %v2500_v36, %v2479_v43  ;;  %v2928_v2 = vadd.f32 %v2908_v25, %v2887_v52  ;;  %v2190_v16 = vmul.f32 %v6744_v37, %v6593_v42  ;;  %v2191_v36 = vmul.f32 %v6431_v35, %v6593_v42 }
 0x1e8   : > { %v1517_v30 = vld [vmem:[#allocation2 + $0xca] sm:$0x3]  ;;  %v1557_v14 = vadd.f32 %v1537_v32, %v1516_v50  ;;  %2539 = vst [vmem:[#allocation2 + $0x44] sm:$0xff] %v2519_v34  ;;  %v8842_v34 = vld [vmem:[#allocation18_spill] sm:$0xff] }
 0x1e9   : > { %v1558_v21 = vadd.f32 %v1538_v26, %v1517_v30  ;;  %2540 = vst [vmem:[#allocation2 + $0x4c] sm:$0x3] %v2520_v57  ;;  %v944_v6 = vld [vmem:[#allocation2 + $0xb2] sm:$0xff]  ;;  %v3799_v52 = vmul.f32 %v6471_v15, %v8842_v34  ;;  %v3800_v26 = vmul.f32 %v6678_v56, %v8842_v34  ;;  %v4709_v57 = vpop.permute.xlu2 %4708 }
 0x1ea   : > { %8841 = vst [vmem:[#allocation61_spill] sm:$0xff] %v6744_v37  ;;  %v985_v0 = vadd.f32 %v965_v49, %v944_v6  ;;  %v8843_v49 = vld [vmem:[#allocation32_spill] sm:$0xff]  ;;  %v945_v34 = vld [vmem:[#allocation2 + $0xba] sm:$0x3] }
 0x1eb   : > { %1577 = vst [vmem:[#allocation2 + $0xc2] sm:$0xff] %v1557_v14  ;;  %v2169_v53 = vld [vmem:[#allocation2 + $0xd1] sm:$0xff]  ;;  %v2580_v35 = vmul.f32 %v6685_v44, %v8843_v49 }
 0x1ec   : > { %1578 = vst [vmem:[#allocation2 + $0xca] sm:$0x3] %v1558_v21  ;;  %v2170_v32 = vld [vmem:[#allocation2 + $0xd9] sm:$0x3]  ;;  %v2210_v43 = vadd.f32 %v2190_v16, %v2169_v53 }
 0x1ed   : > { %2948 = vst [vmem:[#allocation2 + $0x4e] sm:$0x3] %v2928_v2  ;;  %v2211_v25 = vadd.f32 %v2191_v36, %v2170_v32  ;;  %v3778_v50 = vld [vmem:[#allocation2 + $0x32] sm:$0xff]  ;;  %v4623_v36 = vpop.xlane.xlu1 %4622  ;;  %v8844_v32 = vld [vmem:[#allocation6_spill] sm:$0xff] }
 0x1ee   : > { %1005 = vst [vmem:[#allocation2 + $0xb2] sm:$0xff] %v985_v0  ;;  %v3779_v30 = vld [vmem:[#allocation2 + $0x3a] sm:$0x3]  ;;  %v3819_v14 = vadd.f32 %v3799_v52, %v3778_v50  ;;  %v6757_v21 = vld [vmem:[%s5871_s13 + $0x38] sm:$0x3]  ;;  %v1618_v0 = vmul.f32 %v6633_v62, %v6422_v28  ;;  %v4927_v38 = vmul.f32 %v4709_v57, %v4623_v36  ;;  %v2271_v57 = vmul.f32 %v6744_v37, %v6626_v47  ;;  %v6847_v37 = vld [vmem:[%s5871_s13 + $0x30] sm:$0xff] }
 0x1ef   : > { %2230 = vst [vmem:[#allocation2 + $0xd1] sm:$0xff] %v2210_v43  ;;  %v3820_v53 = vadd.f32 %v3800_v26, %v3779_v30  ;;  %v2559_v6 = vld [vmem:[#allocation2 + $0x43] sm:$0xff]  ;;  %v6760_v16 = vld [vmem:[%s5871_s13 + $0x18] sm:$0x3]  ;;  %v4045_v43 = vmul.f32 %v8844_v32, %v6757_v21  ;;  %v1619_v26 = vmul.f32 %v6665_v54, %v6422_v28 }
 0x1f0   : > { %2231 = vst [vmem:[#allocation2 + $0xd9] sm:$0x3] %v2211_v25  ;;  %v2581_v2 = vmul.f32 %v6760_v16, %v8843_v49  ;;  %v2560_v52 = vld [vmem:[#allocation2 + $0x4b] sm:$0x3]  ;;  %v2600_v50 = vadd.f32 %v2580_v35, %v2559_v6  ;;  %4998 = vperm.xlu1 %5459, %v4927_v38  }
 0x1f1   : > { %3839 = vst [vmem:[#allocation2 + $0x32] sm:$0xff] %v3819_v14  ;;  %v966_v14 = vmul.f32 %v6122_v22, %v6606_v17  ;;  %v4065_v27 = vadd.f32 %v4045_v43, %v4024_v3 }
 0x1f2   : > { %3840 = vst [vmem:[#allocation2 + $0x3a] sm:$0x3] %v3820_v53  ;;  %v1597_v25 = vld [vmem:[#allocation2 + $0xc1] sm:$0xff]  ;;  %v2601_v30 = vadd.f32 %v2581_v2, %v2560_v52  ;;  %v6775_v53 = vld [vmem:[%s5871_s13 + $0x98] sm:$0x3] }
 0x1f3   : > { %v1598_v49 = vld [vmem:[#allocation2 + $0xc9] sm:$0x3]  ;;  %v1638_v59 = vadd.f32 %v1618_v0, %v1597_v25  ;;  %2620 = vst [vmem:[#allocation2 + $0x43] sm:$0xff] %v2600_v50  ;;  %v986_v35 = vadd.f32 %v966_v14, %v945_v34  ;;  %v2272_v6 = vmul.f32 %v6775_v53, %v6626_v47  ;;  %v8845_v52 = vld [vmem:[#allocation21_spill] sm:$0xff]  ;;  %v1699_v14 = vmul.f32 %v6633_v62, %v6460_v41 }
 0x1f4   : > { %v1639_v51 = vadd.f32 %v1619_v26, %v1598_v49  ;;  %2621 = vst [vmem:[#allocation2 + $0x4b] sm:$0x3] %v2601_v30  ;;  %v3880_v38 = vmul.f32 %v6471_v15, %v8845_v52  ;;  %v3881_v34 = vmul.f32 %v6678_v56, %v8845_v52  ;;  %v6803_v52 = vld [vmem:[%s5871_s13] sm:$0xff] }
 0x1f5   : > { %1658 = vst [vmem:[#allocation2 + $0xc1] sm:$0xff] %v1638_v59  ;;  %v6783_v59 = vpop.permute.xlu2 %4715  ;;  %v1025_v30 = vld [vmem:[#allocation2 + $0xb1] sm:$0xff] }
 0x1f6   : > { %v2250_v2 = vld [vmem:[#allocation2 + $0xd0] sm:$0xff]  ;;  %1659 = vst [vmem:[#allocation2 + $0xc9] sm:$0x3] %v1639_v51  ;;  %v8847_v51 = vld [vmem:[#allocation33_spill] sm:$0xff] }
 0x1f7   : > { %v2251_v36 = vld [vmem:[#allocation2 + $0xd8] sm:$0x3]  ;;  %v2291_v0 = vadd.f32 %v2271_v57, %v2250_v2  ;;  %4085 = vst [vmem:[#allocation2 + $0x3e] sm:$0x3] %v4065_v27  ;;  %v2661_v25 = vmul.f32 %v6685_v44, %v8847_v51  ;;  %v2662_v27 = vmul.f32 %v6760_v16, %v8847_v51  ;;  %v6794_v2 = vld [vmem:[%s5871_s13 + $0x68] sm:$0x3] }
 0x1f8   : > { %v2292_v3 = vadd.f32 %v2272_v6, %v2251_v36  ;;  %v3859_v49 = vld [vmem:[#allocation2 + $0x31] sm:$0xff]  ;;  %1006 = vst [vmem:[#allocation2 + $0xba] sm:$0x3] %v986_v35  ;;  %v1046_v6 = vmul.f32 %v6615_v20, %v6151_v60  ;;  %v1212_v36 = vmul.f32 %v6794_v2, %v6119_v5  ;;  %v6834_v51 = vld [vmem:[%s5871_s13 + $0x80] sm:$0xff] }
 0x1f9   : > { %8846 = vst [vmem:[#allocation62_spill] sm:$0xff] %v6783_v59  ;;  %4668 = vadd.xlane.f32.xlu2 %v2291_v0  ;;  %v3860_v43 = vld [vmem:[#allocation2 + $0x39] sm:$0x3]  ;;  %v3900_v50 = vadd.f32 %v3880_v38, %v3859_v49  ;;  %v1700_v38 = vmul.f32 %v6665_v54, %v6460_v41  ;;  %v1191_v49 = vld [vmem:[#allocation2 + $0xbe] sm:$0x3] }
 0x1fa   : > { %2311 = vst [vmem:[#allocation2 + $0xd0] sm:$0xff] %v2291_v0  ;;  %v3901_v26 = vadd.f32 %v3881_v34, %v3860_v43  ;;  %v2640_v15 = vld [vmem:[#allocation2 + $0x42] sm:$0xff]  ;;  %v1066_v43 = vadd.f32 %v1046_v6, %v1025_v30  ;;  %v8848_v6 = vld [vmem:[#allocation24_spill] sm:$0xff] }
 0x1fb   : > { %2312 = vst [vmem:[#allocation2 + $0xd8] sm:$0x3] %v2292_v3  ;;  %v2641_v35 = vld [vmem:[#allocation2 + $0x4a] sm:$0x3]  ;;  %v2681_v57 = vadd.f32 %v2661_v25, %v2640_v15  ;;  %v1047_v15 = vmul.f32 %v6151_v60, %v6606_v17  ;;  %v6808_v30 = vld [vmem:[%s5871_s13 + $0x20] sm:$0xff] }
 0x1fc   : > { %3920 = vst [vmem:[#allocation2 + $0x31] sm:$0xff] %v3900_v50  ;;  %v1678_v0 = vld [vmem:[#allocation2 + $0xc0] sm:$0xff]  ;;  %v2682_v3 = vadd.f32 %v2662_v27, %v2641_v35  ;;  %v1259_v50 = vld [vmem:[#allocation2 + $0x55] sm:$0xff]  ;;  %v1232_v27 = vadd.f32 %v1212_v36, %v1191_v49 }
 0x1fd   : > { %3921 = vst [vmem:[#allocation2 + $0x39] sm:$0x3] %v3901_v26  ;;  %v1679_v34 = vld [vmem:[#allocation2 + $0xc8] sm:$0x3]  ;;  %v1719_v62 = vadd.f32 %v1699_v14, %v1678_v0  ;;  %v1280_v26 = vmul.f32 %v6803_v52, %v6278_v23  ;;  %v3961_v0 = vmul.f32 %v6808_v30, %v8848_v6  ;;  %v6814_v36 = vpop.permute.xlu2 %4728 }
 0x1fe   : > { %2701 = vst [vmem:[#allocation2 + $0x42] sm:$0xff] %v2681_v57  ;;  %v1720_v25 = vadd.f32 %v1700_v38, %v1679_v34  ;;  %v1260_v34 = vld [vmem:[#allocation2 + $0x5d] sm:$0x3]  ;;  %v618_v60 = vld [vmem:[#allocation2 + $0xa6] sm:$0xff] }
 0x1ff   : > { %2702 = vst [vmem:[#allocation2 + $0x4a] sm:$0x3] %v2682_v3  ;;  %v1026_v59 = vld [vmem:[#allocation2 + $0xb9] sm:$0x3]  ;;  %v1300_v14 = vadd.f32 %v1280_v26, %v1259_v50  ;;  %v3962_v3 = vmul.f32 %v6678_v56, %v8848_v6  ;;  %v6829_v6 = vld [vmem:[%s5871_s13 + $0x40] sm:$0xff] }
 0x200   : > { %1739 = vst [vmem:[#allocation2 + $0xc0] sm:$0xff] %v1719_v62  ;;  %v1067_v35 = vadd.f32 %v1047_v15, %v1026_v59  ;;  %v8850_v62 = vld [vmem:[#allocation36_spill] sm:$0xff]  ;;  %v6824_v15 = vld [vmem:[%s5871_s13 + $0x48] sm:$0x3] }
 0x201   : > { %1740 = vst [vmem:[#allocation2 + $0xc8] sm:$0x3] %v1720_v25  ;;  %v2742_v50 = vmul.f32 %v6685_v44, %v8850_v62  ;;  %v6819_v25 = vld [vmem:[%s5871_s13 + $0x8] sm:$0x3] }
 0x202   : > { %v4611_v57 = vld [vmem:[#allocation2 + $0xd8] sm:$0xff]  ;;  %1086 = vst [vmem:[#allocation2 + $0xb1] sm:$0xff] %v1066_v43  ;;  %v1281_v43 = vmul.f32 %v6819_v25, %v6278_v23 }
 0x203   : > { %4670 = vadd.xlane.f32.xlu0 %v4611_v57  ;;  %v3940_v38 = vld [vmem:[#allocation2 + $0x30] sm:$0xff]  ;;  %1087 = vst [vmem:[#allocation2 + $0xb9] sm:$0x3] %v1067_v35  ;;  %v2743_v57 = vmul.f32 %v6760_v16, %v8850_v62 }
 0x204   : > { %8849 = vst [vmem:[#allocation63_spill] sm:$0xff] %v6814_v36  ;;  %v3941_v59 = vld [vmem:[#allocation2 + $0x38] sm:$0x3]  ;;  %v3981_v49 = vadd.f32 %v3961_v0, %v3940_v38  ;;  %v1301_v36 = vadd.f32 %v1281_v43, %v1260_v34  ;;  %v640_v34 = vmul.f32 %v5967_v9, %v6824_v15  ;;  %v1128_v43 = vmul.f32 %v6190_v4, %v6606_v17 }
 0x205   : > { %1252 = vst [vmem:[#allocation2 + $0xbe] sm:$0x3] %v1232_v27  ;;  %v3982_v26 = vadd.f32 %v3962_v3, %v3941_v59  ;;  %v2721_v35 = vld [vmem:[#allocation2 + $0x41] sm:$0xff]  ;;  %v639_v27 = vmul.f32 %v6829_v6, %v5967_v9  ;;  %v1783_v3 = vmul.f32 %v6834_v51, %v6382_v11 }
 0x206   : > { %1320 = vst [vmem:[#allocation2 + $0x55] sm:$0xff] %v1300_v14  ;;  %v2722_v0 = vld [vmem:[#allocation2 + $0x49] sm:$0x3]  ;;  %v2762_v38 = vadd.f32 %v2742_v50, %v2721_v35  ;;  %v1127_v14 = vmul.f32 %v6615_v20, %v6190_v4  ;;  %v1361_v20 = vmul.f32 %v6803_v52, %v6315_v18 }
 0x207   : > { %4001 = vst [vmem:[#allocation2 + $0x30] sm:$0xff] %v3981_v49  ;;  %v2763_v59 = vadd.f32 %v2743_v57, %v2722_v0  ;;  %v659_v57 = vadd.f32 %v639_v27, %v618_v60  ;;  %v8852_v60 = vld [vmem:[#allocation40_spill] sm:$0xff] }
 0x208   : > { %4002 = vst [vmem:[#allocation2 + $0x38] sm:$0x3] %v3982_v26  ;;  %v1762_v22 = vld [vmem:[#allocation2 + $0xc6] sm:$0xff]  ;;  %v619_v26 = vld [vmem:[#allocation2 + $0xae] sm:$0x3] }
 0x209   : > { %2782 = vst [vmem:[#allocation2 + $0x41] sm:$0xff] %v2762_v38  ;;  %v1803_v49 = vadd.f32 %v1783_v3, %v1762_v22  ;;  %v1106_v50 = vld [vmem:[#allocation2 + $0xb0] sm:$0xff]  ;;  %v660_v9 = vadd.f32 %v640_v34, %v619_v26  ;;  %v4044_v22 = vmul.f32 %v6847_v37, %v8844_v32  ;;  %v6851_v3 = vpop.permute.xlu2 %4747  ;;  %v1362_v26 = vmul.f32 %v6819_v25, %v6315_v18 }
 0x20a   : > { %2783 = vst [vmem:[#allocation2 + $0x49] sm:$0x3] %v2763_v59  ;;  %v1107_v35 = vld [vmem:[#allocation2 + $0xb8] sm:$0x3]  ;;  %v1147_v62 = vadd.f32 %v1127_v14, %v1106_v50  ;;  %v8853_v59 = vld [vmem:[#allocation38_spill] sm:$0xff] }
 0x20b   : > { %1321 = vst [vmem:[#allocation2 + $0x5d] sm:$0x3] %v1301_v36  ;;  %v1148_v0 = vadd.f32 %v1128_v43, %v1107_v35  ;;  %v4926_v36 = vmul.f32 %v8852_v60, %v6733_v48  ;;  %v2823_v14 = vmul.f32 %v6685_v44, %v8853_v59  ;;  %v1864_v48 = vmul.f32 %v6834_v51, %v6445_v58  ;;  %v6864_v35 = vld [vmem:[%s5871_s13 + $0x88] sm:$0x3] }
 0x20c   : > { %1823 = vst [vmem:[#allocation2 + $0xc6] sm:$0xff] %v1803_v49  ;;  %v2824_v49 = vmul.f32 %v6760_v16, %v8853_v59 }
 0x20d   : > { %1167 = vst [vmem:[#allocation2 + $0xb0] sm:$0xff] %v1147_v62  ;;  %v1340_v38 = vld [vmem:[#allocation2 + $0x54] sm:$0xff] }
 0x20e   : > { %1168 = vst [vmem:[#allocation2 + $0xb8] sm:$0x3] %v1148_v0  ;;  %v1381_v17 = vadd.f32 %v1361_v20, %v1340_v38 }
 0x20f   : > { %8851 = vst [vmem:[#allocation64_spill] sm:$0xff] %v6851_v3  ;;  %v4023_v27 = vld [vmem:[#allocation2 + $0x36] sm:$0xff] }
 0x210   : > { %679 = vst [vmem:[#allocation2 + $0xa6] sm:$0xff] %v659_v57  ;;  %v4064_v62 = vadd.f32 %v4044_v22, %v4023_v27  ;;  %v2802_v34 = vld [vmem:[#allocation2 + $0x40] sm:$0xff]  ;;  %v1865_v57 = vmul.f32 %v6864_v35, %v6445_v58  ;;  %v720_v27 = vmul.f32 %v6829_v6, %v6002_v39 }
 0x211   : > { %1401 = vst [vmem:[#allocation2 + $0x54] sm:$0xff] %v1381_v17  ;;  %v2803_v50 = vld [vmem:[#allocation2 + $0x48] sm:$0x3]  ;;  %v2843_v43 = vadd.f32 %v2823_v14, %v2802_v34  ;;  %4995 = vperm.xlu2 %5461, %v4926_v36   ;;  %v6873_v34 = vld [vmem:[%s5871_s13 + $0x60] sm:$0xff] }
 0x212   : > { %680 = vst [vmem:[#allocation2 + $0xae] sm:$0x3] %v660_v9  ;;  %v2844_v0 = vadd.f32 %v2824_v49, %v2803_v50  ;;  %v1341_v20 = vld [vmem:[#allocation2 + $0x5c] sm:$0x3]  ;;  %v1749_v38 = vld [vmem:[#allocation2 + $0x5e] sm:$0x3]  ;;  %v1770_v9 = vmul.f32 %v6760_v16, %v6382_v11  ;;  %v1211_v49 = vmul.f32 %v6873_v34, %v6119_v5 }
 0x213   : > { %4084 = vst [vmem:[#allocation2 + $0x36] sm:$0xff] %v4064_v62  ;;  %v1843_v22 = vld [vmem:[#allocation2 + $0xc5] sm:$0xff]  ;;  %v1844_v17 = vld [vmem:[#allocation2 + $0xcd] sm:$0x3]  ;;  %v1382_v60 = vadd.f32 %v1362_v26, %v1341_v20  ;;  %v1442_v20 = vmul.f32 %v6803_v52, %v6346_v63 }
 0x214   : > { %2863 = vst [vmem:[#allocation2 + $0x40] sm:$0xff] %v2843_v43  ;;  %v1884_v14 = vadd.f32 %v1864_v48, %v1843_v22  ;;  %v1885_v62 = vadd.f32 %v1865_v57, %v1844_v17  ;;  %v1790_v36 = vadd.f32 %v1770_v9, %v1749_v38  ;;  %v721_v43 = vmul.f32 %v6002_v39, %v6824_v15 }
 0x215   : > { %2864 = vst [vmem:[#allocation2 + $0x48] sm:$0x3] %v2844_v0  ;;  %v1190_v50 = vld [vmem:[#allocation2 + $0xb6] sm:$0xff]  ;;  %v4125_v0 = vmul.f32 %v6847_v37, %v5901_v12 }
 0x216   : > { %1402 = vst [vmem:[#allocation2 + $0x5c] sm:$0x3] %v1382_v60  ;;  %v1231_v26 = vadd.f32 %v1211_v49, %v1190_v50  ;;  %v6883_v60 = vpop.permute.xlu2 %4760  ;;  %v2907_v49 = vmul.f32 %v6808_v30, %v5898_v7  ;;  %v801_v7 = vmul.f32 %v6829_v6, %v6036_v29 }
 0x217   : > { %1904 = vst [vmem:[#allocation2 + $0xc5] sm:$0xff] %v1884_v14  ;;  %v699_v3 = vld [vmem:[#allocation2 + $0xa5] sm:$0xff] }
 0x218   : > { %1905 = vst [vmem:[#allocation2 + $0xcd] sm:$0x3] %v1885_v62  ;;  %v1421_v48 = vld [vmem:[#allocation2 + $0x53] sm:$0xff]  ;;  %v740_v57 = vadd.f32 %v720_v27, %v699_v3  ;;  %v1443_v3 = vmul.f32 %v6819_v25, %v6346_v63  ;;  %v1945_v27 = vmul.f32 %v6834_v51, %v6506_v31 }
 0x219   : > { %1251 = vst [vmem:[#allocation2 + $0xb6] sm:$0xff] %v1231_v26  ;;  %v1462_v22 = vadd.f32 %v1442_v20, %v1421_v48  ;;  %v700_v17 = vld [vmem:[#allocation2 + $0xad] sm:$0x3] }
 0x21a   : > { %8854 = vst [vmem:[#allocation40_spill] sm:$0xff] %v6883_v60  ;;  %v4104_v38 = vld [vmem:[#allocation2 + $0x35] sm:$0xff]  ;;  %v741_v9 = vadd.f32 %v721_v43, %v700_v17  ;;  %v2354_v43 = vmul.f32 %v6775_v53, %v6174_v8 }
 0x21b   : > { %1810 = vst [vmem:[#allocation2 + $0x5e] sm:$0x3] %v1790_v36  ;;  %v4145_v14 = vadd.f32 %v4125_v0, %v4104_v38  ;;  %v1946_v36 = vmul.f32 %v6864_v35, %v6506_v31  ;;  %v1293_v38 = vmul.f32 %v6794_v2, %v6278_v23 }
 0x21c   : > { %1482 = vst [vmem:[#allocation2 + $0x53] sm:$0xff] %v1462_v22  ;;  %v2886_v50 = vld [vmem:[#allocation2 + $0x46] sm:$0xff] }
 0x21d   : > { %760 = vst [vmem:[#allocation2 + $0xa5] sm:$0xff] %v740_v57  ;;  %v2927_v62 = vadd.f32 %v2907_v49, %v2886_v50  ;;  %v1422_v26 = vld [vmem:[#allocation2 + $0x5b] sm:$0x3]  ;;  %v1292_v57 = vmul.f32 %v6873_v34, %v6278_v23 }
 0x21e   : > { %4165 = vst [vmem:[#allocation2 + $0x35] sm:$0xff] %v4145_v14  ;;  %v1924_v20 = vld [vmem:[#allocation2 + $0xc4] sm:$0xff]  ;;  %v1463_v48 = vadd.f32 %v1443_v3, %v1422_v26  ;;  %v4206_v26 = vmul.f32 %v6847_v37, %v5926_v33 }
 0x21f   : > { %761 = vst [vmem:[#allocation2 + $0xad] sm:$0x3] %v741_v9  ;;  %v1925_v0 = vld [vmem:[#allocation2 + $0xcc] sm:$0x3]  ;;  %v1965_v22 = vadd.f32 %v1945_v27, %v1924_v20  ;;  %v2333_v17 = vld [vmem:[#allocation2 + $0xce] sm:$0x3]  ;;  %v1523_v27 = vmul.f32 %v6803_v52, %v6374_v1 }
 0x220   : > { %2947 = vst [vmem:[#allocation2 + $0x46] sm:$0xff] %v2927_v62  ;;  %v1966_v14 = vadd.f32 %v1946_v36, %v1925_v0  ;;  %v2374_v49 = vadd.f32 %v2354_v43, %v2333_v17  ;;  %v1271_v50 = vld [vmem:[#allocation2 + $0xb5] sm:$0xff]  ;;  %v1272_v60 = vld [vmem:[#allocation2 + $0xbd] sm:$0x3]  ;;  %v6905_v43 = vpop.permute.xlu2 %4780 }
 0x221   : > { %1483 = vst [vmem:[#allocation2 + $0x5b] sm:$0x3] %v1463_v48  ;;  %v1312_v9 = vadd.f32 %v1292_v57, %v1271_v50  ;;  %v1313_v3 = vadd.f32 %v1293_v38, %v1272_v60 }
 0x222   : > { %1985 = vst [vmem:[#allocation2 + $0xc4] sm:$0xff] %v1965_v22  ;;  %v8856_v22 = vld [vmem:[#allocation16_spill] sm:$0xff] }
 0x223   : > { %1986 = vst [vmem:[#allocation2 + $0xcc] sm:$0x3] %v1966_v14  ;;  %v1502_v62 = vld [vmem:[#allocation2 + $0x52] sm:$0xff]  ;;  %v2988_v60 = vmul.f32 %v6808_v30, %v8856_v22  ;;  %v2989_v57 = vmul.f32 %v6678_v56, %v8856_v22  ;;  %v610_v22 = vld [vmem:[#allocation2 + $0x66] sm:$0xff] }
 0x224   : > { %2394 = vst [vmem:[#allocation2 + $0xce] sm:$0x3] %v2374_v49  ;;  %v1543_v20 = vadd.f32 %v1523_v27, %v1502_v62  ;;  %v780_v36 = vld [vmem:[#allocation2 + $0xa4] sm:$0xff]  ;;  %v2026_v49 = vmul.f32 %v6834_v51, %v6540_v24 }
 0x225   : > { %8855 = vst [vmem:[#allocation38_spill] sm:$0xff] %v6905_v43  ;;  %v4185_v48 = vld [vmem:[#allocation2 + $0x34] sm:$0xff]  ;;  %v821_v0 = vadd.f32 %v801_v7, %v780_v36  ;;  %v1524_v7 = vmul.f32 %v6819_v25, %v6374_v1 }
 0x226   : > { %1332 = vst [vmem:[#allocation2 + $0xb5] sm:$0xff] %v1312_v9  ;;  %v4226_v17 = vadd.f32 %v4206_v26, %v4185_v48  ;;  %v2027_v26 = vmul.f32 %v6864_v35, %v6540_v24 }
 0x227   : > { %1333 = vst [vmem:[#allocation2 + $0xbd] sm:$0x3] %v1313_v3  ;;  %v2967_v38 = vld [vmem:[#allocation2 + $0x45] sm:$0xff]  ;;  %v2968_v14 = vld [vmem:[#allocation2 + $0x4d] sm:$0x3] }
 0x228   : > { %1563 = vst [vmem:[#allocation2 + $0x52] sm:$0xff] %v1543_v20  ;;  %v3008_v50 = vadd.f32 %v2988_v60, %v2967_v38  ;;  %v3009_v27 = vadd.f32 %v2989_v57, %v2968_v14  ;;  %v1503_v62 = vld [vmem:[#allocation2 + $0x5a] sm:$0x3]  ;;  %v1374_v57 = vmul.f32 %v6794_v2, %v6315_v18  ;;  %v1782_v38 = vmul.f32 %v6665_v54, %v6382_v11 }
 0x229   : > { %4246 = vst [vmem:[#allocation2 + $0x34] sm:$0xff] %v4226_v17  ;;  %v2005_v9 = vld [vmem:[#allocation2 + $0xc3] sm:$0xff]  ;;  %v1544_v48 = vadd.f32 %v1524_v7, %v1503_v62  ;;  %v1373_v17 = vmul.f32 %v6873_v34, %v6315_v18 }
 0x22a   : > { %841 = vst [vmem:[#allocation2 + $0xa4] sm:$0xff] %v821_v0  ;;  %v2006_v36 = vld [vmem:[#allocation2 + $0xcb] sm:$0x3]  ;;  %v2046_v3 = vadd.f32 %v2026_v49, %v2005_v9  ;;  %v1604_v49 = vmul.f32 %v6803_v52, %v6422_v28  ;;  %v6927_v9 = vpop.permute.xlu2 %4793 }
 0x22b   : > { %3028 = vst [vmem:[#allocation2 + $0x45] sm:$0xff] %v3008_v50  ;;  %v2047_v20 = vadd.f32 %v2027_v26, %v2006_v36  ;;  %v4287_v50 = vmul.f32 %v6847_v37, %v5962_v55 }
 0x22c   : > { %3029 = vst [vmem:[#allocation2 + $0x4d] sm:$0x3] %v3009_v27 }
 0x22d   : > { %2066 = vst [vmem:[#allocation2 + $0xc3] sm:$0xff] %v2046_v3  ;;  %v1352_v60 = vld [vmem:[#allocation2 + $0xb4] sm:$0xff]  ;;  %v4673_v3 = vpop.xlane.xlu1 %4672 }
 0x22e   : > { %2067 = vst [vmem:[#allocation2 + $0xcb] sm:$0x3] %v2047_v20  ;;  %v1353_v14 = vld [vmem:[#allocation2 + $0xbc] sm:$0x3]  ;;  %v1393_v0 = vadd.f32 %v1373_v17, %v1352_v60  ;;  %v1761_v43 = vld [vmem:[#allocation2 + $0xbe] sm:$0x3]  ;;  %v3069_v20 = vmul.f32 %v6808_v30, %v6055_v45  ;;  %v4952_v17 = vmul.f32 %v6497_v10, %v4673_v3  ;;  %v2108_v10 = vmul.f32 %v6864_v35, %v6566_v19 }
 0x22f   : > { %v1394_v27 = vadd.f32 %v1374_v57, %v1353_v14  ;;  %v1802_v62 = vadd.f32 %v1782_v38, %v1761_v43  ;;  %1564 = vst [vmem:[#allocation2 + $0x5a] sm:$0x3] %v1544_v48  ;;  %v1583_v7 = vld [vmem:[#allocation2 + $0x51] sm:$0xff]  ;;  %v3070_v57 = vmul.f32 %v6678_v56, %v6055_v45  ;;  %v2107_v43 = vmul.f32 %v6834_v51, %v6566_v19 }
 0x230   : > { %8857 = vst [vmem:[#allocation65_spill] sm:$0xff] %v6927_v9  ;;  %v4266_v26 = vld [vmem:[#allocation2 + $0x33] sm:$0xff]  ;;  %v1624_v36 = vadd.f32 %v1604_v49, %v1583_v7  ;;  %v4126_v48 = vmul.f32 %v5901_v12, %v6757_v21  ;;  %5073 = vperm.xlu2 %5461, %v4952_v17  }
 0x231   : > { %1413 = vst [vmem:[#allocation2 + $0xb4] sm:$0xff] %v1393_v0  ;;  %v4307_v54 = vadd.f32 %v4287_v50, %v4266_v26  ;;  %v4105_v50 = vld [vmem:[#allocation2 + $0x3d] sm:$0x3] }
 0x232   : > { %1414 = vst [vmem:[#allocation2 + $0xbc] sm:$0x3] %v1394_v27  ;;  %v3048_v60 = vld [vmem:[#allocation2 + $0x44] sm:$0xff] }
 0x233   : > { %1822 = vst [vmem:[#allocation2 + $0xbe] sm:$0x3] %v1802_v62  ;;  %v3049_v38 = vld [vmem:[#allocation2 + $0x4c] sm:$0x3]  ;;  %v3089_v14 = vadd.f32 %v3069_v20, %v3048_v60  ;;  %v3457_v0 = vld [vmem:[#allocation2 + $0x4e] sm:$0x3]  ;;  %v3478_v62 = vmul.f32 %v5875_v61, %v6757_v21  ;;  %v1454_v20 = vmul.f32 %v6873_v34, %v6346_v63  ;;  %v1455_v60 = vmul.f32 %v6794_v2, %v6346_v63 }
 0x234   : > { %4327 = vst [vmem:[#allocation2 + $0x33] sm:$0xff] %v4307_v54  ;;  %v2086_v49 = vld [vmem:[#allocation2 + $0xc2] sm:$0xff]  ;;  %v3090_v27 = vadd.f32 %v3070_v57, %v3049_v38  ;;  %v4146_v54 = vadd.f32 %v4126_v48, %v4105_v50  ;;  %v3150_v50 = vmul.f32 %v6808_v30, %v6094_v13 }
 0x235   : > { %1644 = vst [vmem:[#allocation2 + $0x51] sm:$0xff] %v1624_v36  ;;  %v2087_v7 = vld [vmem:[#allocation2 + $0xca] sm:$0x3]  ;;  %v2127_v26 = vadd.f32 %v2107_v43, %v2086_v49  ;;  %v3498_v9 = vadd.f32 %v3478_v62, %v3457_v0  ;;  %v1605_v36 = vmul.f32 %v6819_v25, %v6422_v28  ;;  %v4368_v43 = vmul.f32 %v6847_v37, %v6007_v46 }
 0x236   : > { %3109 = vst [vmem:[#allocation2 + $0x44] sm:$0xff] %v3089_v14  ;;  %v2128_v3 = vadd.f32 %v2108_v10, %v2087_v7  ;;  %v1584_v57 = vld [vmem:[#allocation2 + $0x59] sm:$0x3]  ;;  %v6950_v14 = vpop.permute.xlu2 %4812  ;;  %v3151_v62 = vmul.f32 %v6678_v56, %v6094_v13  ;;  %v2188_v7 = vmul.f32 %v6834_v51, %v6593_v42  ;;  %v7051_v13 = vld [vmem:[%s5871_s13 + $0x70] sm:$0xff] }
 0x237   : > { %3110 = vst [vmem:[#allocation2 + $0x4c] sm:$0x3] %v3090_v27  ;;  %v1625_v49 = vadd.f32 %v1605_v36, %v1584_v57 }
 0x238   : > { %2147 = vst [vmem:[#allocation2 + $0xc2] sm:$0xff] %v2127_v26  ;;  %v1433_v17 = vld [vmem:[#allocation2 + $0xb3] sm:$0xff] }
 0x239   : > { %2148 = vst [vmem:[#allocation2 + $0xca] sm:$0x3] %v2128_v3  ;;  %v1434_v38 = vld [vmem:[#allocation2 + $0xbb] sm:$0x3]  ;;  %v1474_v45 = vadd.f32 %v1454_v20, %v1433_v17 }
 0x23a   : > { %4166 = vst [vmem:[#allocation2 + $0x3d] sm:$0x3] %v4146_v54  ;;  %v1475_v48 = vadd.f32 %v1455_v60, %v1434_v38  ;;  %v4207_v38 = vmul.f32 %v5926_v33, %v6757_v21 }
 0x23b   : > { %8858 = vst [vmem:[#allocation66_spill] sm:$0xff] %v6950_v14  ;;  %v4347_v0 = vld [vmem:[#allocation2 + $0x32] sm:$0xff] }
 0x23c   : > { %3518 = vst [vmem:[#allocation2 + $0x4e] sm:$0x3] %v3498_v9  ;;  %v4388_v10 = vadd.f32 %v4368_v43, %v4347_v0  ;;  %v1664_v3 = vld [vmem:[#allocation2 + $0x50] sm:$0xff]  ;;  %v2189_v9 = vmul.f32 %v6864_v35, %v6593_v42 }
 0x23d   : > { %1494 = vst [vmem:[#allocation2 + $0xb3] sm:$0xff] %v1474_v45  ;;  %v3129_v27 = vld [vmem:[#allocation2 + $0x43] sm:$0xff]  ;;  %v1685_v45 = vmul.f32 %v6803_v52, %v6460_v41 }
 0x23e   : > { %1495 = vst [vmem:[#allocation2 + $0xbb] sm:$0x3] %v1475_v48  ;;  %v3130_v26 = vld [vmem:[#allocation2 + $0x4b] sm:$0x3]  ;;  %v3170_v54 = vadd.f32 %v3150_v50, %v3129_v27  ;;  %v1536_v50 = vmul.f32 %v6794_v2, %v6374_v1  ;;  %v4449_v27 = vmul.f32 %v6847_v37, %v6048_v40 }
 0x23f   : > { %4408 = vst [vmem:[#allocation2 + $0x32] sm:$0xff] %v4388_v10  ;;  %v2167_v20 = vld [vmem:[#allocation2 + $0xc1] sm:$0xff]  ;;  %v3171_v17 = vadd.f32 %v3151_v62, %v3130_v26  ;;  %v1705_v48 = vadd.f32 %v1685_v45, %v1664_v3  ;;  %v1535_v10 = vmul.f32 %v6873_v34, %v6374_v1  ;;  %v6970_v26 = vpop.permute.xlu2 %4825 }
 0x240   : > { %1645 = vst [vmem:[#allocation2 + $0x59] sm:$0x3] %v1625_v49  ;;  %v2168_v60 = vld [vmem:[#allocation2 + $0xc9] sm:$0x3]  ;;  %v2208_v57 = vadd.f32 %v2188_v7, %v2167_v20  ;;  %v1686_v20 = vmul.f32 %v6819_v25, %v6460_v41  ;;  %v2269_v25 = vmul.f32 %v6834_v51, %v6626_v47 }
 0x241   : > { %3190 = vst [vmem:[#allocation2 + $0x43] sm:$0xff] %v3170_v54  ;;  %v2209_v36 = vadd.f32 %v2189_v9, %v2168_v60  ;;  %v4186_v43 = vld [vmem:[#allocation2 + $0x3c] sm:$0x3] }
 0x242   : > { %3191 = vst [vmem:[#allocation2 + $0x4b] sm:$0x3] %v3171_v17  ;;  %v4227_v0 = vadd.f32 %v4207_v38, %v4186_v43  ;;  %v8860_v17 = vld [vmem:[#allocation26_spill] sm:$0xff]  ;;  %v802_v43 = vmul.f32 %v6036_v29, %v6824_v15 }
 0x243   : > { %2228 = vst [vmem:[#allocation2 + $0xc1] sm:$0xff] %v2208_v57  ;;  %v3231_v45 = vmul.f32 %v6808_v30, %v8860_v17  ;;  %v3232_v38 = vmul.f32 %v6678_v56, %v8860_v17 }
 0x244   : > { %2229 = vst [vmem:[#allocation2 + $0xc9] sm:$0x3] %v2209_v36  ;;  %v1514_v49 = vld [vmem:[#allocation2 + $0xb2] sm:$0xff] }
 0x245   : > { %4247 = vst [vmem:[#allocation2 + $0x3c] sm:$0x3] %v4227_v0  ;;  %v1515_v62 = vld [vmem:[#allocation2 + $0xba] sm:$0x3]  ;;  %v1555_v7 = vadd.f32 %v1535_v10, %v1514_v49  ;;  %v781_v10 = vld [vmem:[#allocation2 + $0xac] sm:$0x3] }
 0x246   : > { %8859 = vst [vmem:[#allocation67_spill] sm:$0xff] %v6970_v26  ;;  %v4428_v54 = vld [vmem:[#allocation2 + $0x31] sm:$0xff]  ;;  %v1556_v3 = vadd.f32 %v1536_v50, %v1515_v62  ;;  %v2270_v50 = vmul.f32 %v6864_v35, %v6626_v47  ;;  %v4369_v26 = vmul.f32 %v6007_v46, %v6757_v21 }
 0x247   : > { %1725 = vst [vmem:[#allocation2 + $0x50] sm:$0xff] %v1705_v48  ;;  %v4469_v9 = vadd.f32 %v4449_v27, %v4428_v54  ;;  %v1665_v60 = vld [vmem:[#allocation2 + $0x58] sm:$0x3] }
 0x248   : > { %1575 = vst [vmem:[#allocation2 + $0xb2] sm:$0xff] %v1555_v7  ;;  %v3210_v57 = vld [vmem:[#allocation2 + $0x42] sm:$0xff]  ;;  %v1706_v36 = vadd.f32 %v1686_v20, %v1665_v60  ;;  %v4288_v7 = vmul.f32 %v5962_v55, %v6757_v21  ;;  %v822_v20 = vadd.f32 %v802_v43, %v781_v10  ;;  %v1617_v60 = vmul.f32 %v6794_v2, %v6422_v28 }
 0x249   : > { %1576 = vst [vmem:[#allocation2 + $0xba] sm:$0x3] %v1556_v3  ;;  %v3211_v48 = vld [vmem:[#allocation2 + $0x4a] sm:$0x3]  ;;  %v3251_v0 = vadd.f32 %v3231_v45, %v3210_v57  ;;  %v6993_v57 = vld [vmem:[%s8650_s2 + $0x30] ss:$0 sm:$0xff] }
 0x24a   : > { %4489 = vst [vmem:[#allocation2 + $0x31] sm:$0xff] %v4469_v9  ;;  %v2248_v49 = vld [vmem:[#allocation2 + $0xc0] sm:$0xff]  ;;  %v3252_v27 = vadd.f32 %v3232_v38, %v3211_v48  ;;  %v1616_v9 = vmul.f32 %v6873_v34, %v6422_v28  ;;  %v4530_v38 = vmul.f32 %v6993_v57, %v6847_v37 }
 0x24b   : > { %1726 = vst [vmem:[#allocation2 + $0x58] sm:$0x3] %v1706_v36  ;;  %v2249_v62 = vld [vmem:[#allocation2 + $0xc8] sm:$0x3]  ;;  %v2289_v56 = vadd.f32 %v2269_v25, %v2248_v49  ;;  %v8861_v25 = vld [vmem:[#allocation22_spill] sm:$0xff] }
 0x24c   : > { %3271 = vst [vmem:[#allocation2 + $0x42] sm:$0xff] %v3251_v0  ;;  %v2290_v54 = vadd.f32 %v2270_v50, %v2249_v62  ;;  %v4267_v3 = vld [vmem:[#allocation2 + $0x3b] sm:$0x3]  ;;  %v882_v48 = vmul.f32 %v6829_v6, %v8861_v25  ;;  %v6999_v0 = vpop.permute.xlu2 %4845  ;;  %v1769_v50 = vmul.f32 %v6685_v44, %v6382_v11 }
 0x24d   : > { %3272 = vst [vmem:[#allocation2 + $0x4a] sm:$0x3] %v3252_v27  ;;  %v4308_v51 = vadd.f32 %v4288_v7, %v4267_v3  ;;  %v861_v27 = vld [vmem:[#allocation2 + $0xa3] sm:$0xff] }
 0x24e   : > { %2309 = vst [vmem:[#allocation2 + $0xc0] sm:$0xff] %v2289_v56  ;;  %v8863_v56 = vld [vmem:[#allocation28_spill] sm:$0xff] }
 0x24f   : > { %2310 = vst [vmem:[#allocation2 + $0xc8] sm:$0x3] %v2290_v54  ;;  %v1595_v45 = vld [vmem:[#allocation2 + $0xb1] sm:$0xff]  ;;  %v3312_v7 = vmul.f32 %v6808_v30, %v8863_v56 }
 0x250   : > { %4328 = vst [vmem:[#allocation2 + $0x3b] sm:$0x3] %v4308_v51  ;;  %v1596_v36 = vld [vmem:[#allocation2 + $0xb9] sm:$0x3]  ;;  %v1636_v43 = vadd.f32 %v1616_v9, %v1595_v45  ;;  %v7006_v51 = vld [vmem:[%s5871_s13 + $0x28] sm:$0x3] }
 0x251   : > { %8862 = vst [vmem:[#allocation22_spill] sm:$0xff] %v6999_v0  ;;  %v4509_v10 = vld [vmem:[#allocation2 + $0x30] sm:$0xff]  ;;  %v1637_v49 = vadd.f32 %v1617_v60, %v1596_v36  ;;  %v3313_v9 = vmul.f32 %v7006_v51, %v8863_v56 }
 0x252   : > { %842 = vst [vmem:[#allocation2 + $0xac] sm:$0x3] %v822_v20  ;;  %v4550_v62 = vadd.f32 %v4530_v38, %v4509_v10  ;;  %v1748_v54 = vld [vmem:[#allocation2 + $0x56] sm:$0xff]  ;;  %v902_v20 = vadd.f32 %v882_v48, %v861_v27  ;;  %v1697_v48 = vmul.f32 %v6873_v34, %v6460_v41 }
 0x253   : > { %1656 = vst [vmem:[#allocation2 + $0xb1] sm:$0xff] %v1636_v43  ;;  %v3291_v3 = vld [vmem:[#allocation2 + $0x41] sm:$0xff]  ;;  %v1789_v45 = vadd.f32 %v1769_v50, %v1748_v54  ;;  %v8864_v38 = vld [vmem:[#allocation61_spill] sm:$0xff]  ;;  %v883_v43 = vmul.f32 %v8861_v25, %v6824_v15 }
 0x254   : > { %1657 = vst [vmem:[#allocation2 + $0xb9] sm:$0x3] %v1637_v49  ;;  %4628 = vadd.xlane.f32.xlu0 %v4550_v62  ;;  %v3292_v60 = vld [vmem:[#allocation2 + $0x49] sm:$0x3]  ;;  %v3332_v44 = vadd.f32 %v3312_v7, %v3291_v3  ;;  %v2353_v36 = vmul.f32 %v8864_v38, %v6174_v8  ;;  %v7019_v54 = vld [vmem:[%s5871_s13 + $0x58] sm:$0x3] }
 0x255   : > { %4570 = vst [vmem:[#allocation2 + $0x30] sm:$0xff] %v4550_v62  ;;  %v3333_v10 = vadd.f32 %v3313_v9, %v3292_v60  ;;  %v1189_v62 = vld [vmem:[#allocation2 + $0xae] sm:$0x3]  ;;  %v1210_v3 = vmul.f32 %v7019_v54, %v6119_v5 }
 0x256   : > { %1809 = vst [vmem:[#allocation2 + $0x56] sm:$0xff] %v1789_v45  ;;  %v2332_v14 = vld [vmem:[#allocation2 + $0xc6] sm:$0xff] }
 0x257   : > { %3352 = vst [vmem:[#allocation2 + $0x41] sm:$0xff] %v3332_v44  ;;  %v2373_v49 = vadd.f32 %v2353_v36, %v2332_v14  ;;  %v4348_v50 = vld [vmem:[#allocation2 + $0x3a] sm:$0x3]  ;;  %v1698_v14 = vmul.f32 %v6794_v2, %v6460_v41  ;;  %v1230_v44 = vadd.f32 %v1210_v3, %v1189_v62  ;;  %v7025_v36 = vpop.permute.xlu2 %4858 }
 0x258   : > { %3353 = vst [vmem:[#allocation2 + $0x49] sm:$0x3] %v3333_v10  ;;  %v4389_v7 = vadd.f32 %v4369_v26, %v4348_v50  ;;  %v7028_v10 = vld [vmem:[%s5871_s13 + $0x10] sm:$0xff]  ;;  %v8865_v50 = vld [vmem:[#allocation29_spill] sm:$0xff] }
 0x259   : > { %v862_v27 = vld [vmem:[#allocation2 + $0xab] sm:$0x3]  ;;  %922 = vst [vmem:[#allocation2 + $0xa3] sm:$0xff] %v902_v20  ;;  %v1850_v20 = vmul.f32 %v7028_v10, %v6445_v58  ;;  %v3394_v62 = vmul.f32 %v7006_v51, %v8865_v50 }
 0x25a   : > { %2393 = vst [vmem:[#allocation2 + $0xc6] sm:$0xff] %v2373_v49  ;;  %v1676_v9 = vld [vmem:[#allocation2 + $0xb0] sm:$0xff]  ;;  %v903_v45 = vadd.f32 %v883_v43, %v862_v27  ;;  %v3393_v49 = vmul.f32 %v6808_v30, %v8865_v50  ;;  %v1851_v43 = vmul.f32 %v6760_v16, %v6445_v58  ;;  %v8867_v30 = vld [vmem:[#allocation30_spill] sm:$0xff] }
 0x25b   : > { %4409 = vst [vmem:[#allocation2 + $0x3a] sm:$0x3] %v4389_v7  ;;  %v1677_v60 = vld [vmem:[#allocation2 + $0xb8] sm:$0x3]  ;;  %v1717_v26 = vadd.f32 %v1697_v48, %v1676_v9 }
 0x25c   : > { %v1718_v34 = vadd.f32 %v1698_v14, %v1677_v60  ;;  %923 = vst [vmem:[#allocation2 + $0xab] sm:$0x3] %v903_v45  ;;  %v8866_v14 = vld [vmem:[#allocation25_spill] sm:$0xff]  ;;  %v2434_v60 = vmul.f32 %v8864_v38, %v8867_v30 }
 0x25d   : > { %1737 = vst [vmem:[#allocation2 + $0xb0] sm:$0xff] %v1717_v26  ;;  %v1829_v0 = vld [vmem:[#allocation2 + $0x55] sm:$0xff]  ;;  %v1830_v2 = vld [vmem:[#allocation2 + $0x5d] sm:$0x3]  ;;  %v963_v45 = vmul.f32 %v6829_v6, %v8866_v14  ;;  %v2435_v26 = vmul.f32 %v6775_v53, %v8867_v30 }
 0x25e   : > { %v3372_v7 = vld [vmem:[#allocation2 + $0x40] sm:$0xff]  ;;  %1738 = vst [vmem:[#allocation2 + $0xb8] sm:$0x3] %v1718_v34  ;;  %v1870_v48 = vadd.f32 %v1850_v20, %v1829_v0  ;;  %v1871_v9 = vadd.f32 %v1851_v43, %v1830_v2  ;;  %v4450_v0 = vmul.f32 %v6048_v40, %v6757_v21  ;;  %v964_v20 = vmul.f32 %v8866_v14, %v6824_v15 }
 0x25f   : > { %v3373_v27 = vld [vmem:[#allocation2 + $0x48] sm:$0x3]  ;;  %v3413_v3 = vadd.f32 %v3393_v49, %v3372_v7  ;;  %1250 = vst [vmem:[#allocation2 + $0xae] sm:$0x3] %v1230_v44 }
 0x260   : > { %v3414_v56 = vadd.f32 %v3394_v62, %v3373_v27  ;;  %1890 = vst [vmem:[#allocation2 + $0x55] sm:$0xff] %v1870_v48  ;;  %v942_v17 = vld [vmem:[#allocation2 + $0xa2] sm:$0xff] }
 0x261   : > { %v2413_v50 = vld [vmem:[#allocation2 + $0xc5] sm:$0xff]  ;;  %v2414_v34 = vld [vmem:[#allocation2 + $0xcd] sm:$0x3]  ;;  %3433 = vst [vmem:[#allocation2 + $0x40] sm:$0xff] %v3413_v3  ;;  %v983_v62 = vadd.f32 %v963_v45, %v942_v17  ;;  %v1781_v3 = vmul.f32 %v7051_v13, %v6382_v11  ;;  %v1931_v17 = vmul.f32 %v7028_v10, %v6506_v31  ;;  %v3477_v45 = vmul.f32 %v6847_v37, %v5875_v61 }
 0x262   : > { %v2454_v44 = vadd.f32 %v2434_v60, %v2413_v50  ;;  %v4429_v49 = vld [vmem:[#allocation2 + $0x39] sm:$0x3]  ;;  %v2455_v2 = vadd.f32 %v2435_v26, %v2414_v34  ;;  %3434 = vst [vmem:[#allocation2 + $0x48] sm:$0x3] %v3414_v56  ;;  %v8868_v48 = vld [vmem:[#allocation14_spill] sm:$0xff]  ;;  %v7055_v60 = vpop.permute.xlu2 %4877  ;;  %v1932_v34 = vmul.f32 %v6760_v16, %v6506_v31 }
 0x263   : > { %v4470_v43 = vadd.f32 %v4450_v0, %v4429_v49  ;;  %1891 = vst [vmem:[#allocation2 + $0x5d] sm:$0x3] %v1871_v9  ;;  %v943_v7 = vld [vmem:[#allocation2 + $0xaa] sm:$0x3]  ;;  %v631_v27 = vmul.f32 %v6803_v52, %v8868_v48 }
 0x264   : > { %2474 = vst [vmem:[#allocation2 + $0xc5] sm:$0xff] %v2454_v44  ;;  %v984_v50 = vadd.f32 %v964_v20, %v943_v7  ;;  %v8870_v20 = vld [vmem:[#allocation31_spill] sm:$0xff] }
 0x265   : > { %4490 = vst [vmem:[#allocation2 + $0x39] sm:$0x3] %v4470_v43  ;;  %v1760_v40 = vld [vmem:[#allocation2 + $0xb6] sm:$0xff]  ;;  %v651_v52 = vadd.f32 %v631_v27, %v610_v22  ;;  %v2515_v44 = vmul.f32 %v8864_v38, %v8870_v20  ;;  %v4531_v22 = vmul.f32 %v6993_v57, %v6757_v21  ;;  %v1862_v21 = vmul.f32 %v7051_v13, %v6445_v58 }
 0x266   : > { %8869 = vst [vmem:[#allocation61_spill] sm:$0xff] %v7055_v60  ;;  %v1801_v56 = vadd.f32 %v1781_v3, %v1760_v40  ;;  %v2516_v3 = vmul.f32 %v6775_v53, %v8870_v20  ;;  %v7074_v57 = vld [vmem:[%s5871_s13 + $0x78] sm:$0x3] }
 0x267   : > { %2475 = vst [vmem:[#allocation2 + $0xcd] sm:$0x3] %v2455_v2  ;;  %v1910_v9 = vld [vmem:[#allocation2 + $0x54] sm:$0xff] }
 0x268   : > { %1003 = vst [vmem:[#allocation2 + $0xa2] sm:$0xff] %v983_v62  ;;  %v1951_v26 = vadd.f32 %v1931_v17, %v1910_v9  ;;  %v2340_v62 = vmul.f32 %v7006_v51, %v6174_v8  ;;  %v1863_v9 = vmul.f32 %v7074_v57, %v6445_v58 }
 0x269   : > { %1821 = vst [vmem:[#allocation2 + $0xb6] sm:$0xff] %v1801_v56  ;;  %v3456_v0 = vld [vmem:[#allocation2 + $0x46] sm:$0xff] }
 0x26a   : > { %1004 = vst [vmem:[#allocation2 + $0xaa] sm:$0x3] %v984_v50  ;;  %v3497_v40 = vadd.f32 %v3477_v45, %v3456_v0  ;;  %v1911_v49 = vld [vmem:[#allocation2 + $0x5c] sm:$0x3]  ;;  %v2319_v2 = vld [vmem:[#allocation2 + $0x5e] sm:$0x3] }
 0x26b   : > { %1971 = vst [vmem:[#allocation2 + $0x54] sm:$0xff] %v1951_v26  ;;  %v2494_v43 = vld [vmem:[#allocation2 + $0xc4] sm:$0xff]  ;;  %v1952_v7 = vadd.f32 %v1932_v34, %v1911_v49  ;;  %v2360_v56 = vadd.f32 %v2340_v62, %v2319_v2  ;;  %v2012_v2 = vmul.f32 %v7028_v10, %v6540_v24 }
 0x26c   : > { %671 = vst [vmem:[#allocation2 + $0x66] sm:$0xff] %v651_v52  ;;  %v2535_v27 = vadd.f32 %v2515_v44, %v2494_v43  ;;  %v4510_v16 = vld [vmem:[#allocation2 + $0x38] sm:$0x3]  ;;  %v8871_v0 = vld [vmem:[#allocation27_spill] sm:$0xff]  ;;  %v7080_v44 = vpop.permute.xlu2 %4890 }
 0x26d   : > { %3517 = vst [vmem:[#allocation2 + $0x46] sm:$0xff] %v3497_v40  ;;  %v4551_v38 = vadd.f32 %v4531_v22, %v4510_v16  ;;  %v1044_v34 = vmul.f32 %v6829_v6, %v8871_v0 }
 0x26e   : > { %v2495_v50 = vld [vmem:[#allocation2 + $0xcc] sm:$0x3]  ;;  %1972 = vst [vmem:[#allocation2 + $0x5c] sm:$0x3] %v1952_v7  ;;  %v8873_v7 = vld [vmem:[#allocation10_spill] sm:$0xff] }
 0x26f   : > { %2555 = vst [vmem:[#allocation2 + $0xc4] sm:$0xff] %v2535_v27  ;;  %v2536_v17 = vadd.f32 %v2516_v3, %v2495_v50  ;;  %v1023_v52 = vld [vmem:[#allocation2 + $0xa1] sm:$0xff]  ;;  %v3558_v62 = vmul.f32 %v6847_v37, %v8873_v7  ;;  %v7087_v27 = vld [vmem:[%s5871_s13 + $0x38] sm:$0x3] }
 0x270   : > { %4571 = vst [vmem:[#allocation2 + $0x38] sm:$0x3] %v4551_v38  ;;  %v1841_v45 = vld [vmem:[#allocation2 + $0xb5] sm:$0xff]  ;;  %v1842_v26 = vld [vmem:[#allocation2 + $0xbd] sm:$0x3]  ;;  %v1064_v22 = vadd.f32 %v1044_v34, %v1023_v52  ;;  %v3559_v16 = vmul.f32 %v7087_v27, %v8873_v7 }
 0x271   : > { %8872 = vst [vmem:[#allocation25_spill] sm:$0xff] %v7080_v44  ;;  %v1882_v40 = vadd.f32 %v1862_v21, %v1841_v45  ;;  %v1883_v49 = vadd.f32 %v1863_v9, %v1842_v26  ;;  %v8874_v9 = vld [vmem:[#allocation32_spill] sm:$0xff]  ;;  %v1024_v60 = vld [vmem:[#allocation2 + $0xa9] sm:$0x3] }
 0x272   : > { %2556 = vst [vmem:[#allocation2 + $0xcc] sm:$0x3] %v2536_v17  ;;  %v1991_v43 = vld [vmem:[#allocation2 + $0x53] sm:$0xff]  ;;  %v2597_v7 = vmul.f32 %v6775_v53, %v8874_v9 }
 0x273   : > { %2380 = vst [vmem:[#allocation2 + $0x5e] sm:$0x3] %v2360_v56  ;;  %v2032_v3 = vadd.f32 %v2012_v2, %v1991_v43  ;;  %v7092_v17 = vld [vmem:[%s5871_s13 + $0x18] sm:$0x3]  ;;  %v7097_v56 = vld [vmem:[%s5871_s13 + $0x90] sm:$0xff] }
 0x274   : > { %1902 = vst [vmem:[#allocation2 + $0xb5] sm:$0xff] %v1882_v40  ;;  %v3537_v38 = vld [vmem:[#allocation2 + $0x45] sm:$0xff]  ;;  %v3538_v50 = vld [vmem:[#allocation2 + $0x4d] sm:$0x3]  ;;  %v2013_v21 = vmul.f32 %v7092_v17, %v6540_v24  ;;  %v2596_v52 = vmul.f32 %v7097_v56, %v8874_v9 }
 0x275   : > { %1903 = vst [vmem:[#allocation2 + $0xbd] sm:$0x3] %v1883_v49  ;;  %v3578_v45 = vadd.f32 %v3558_v62, %v3537_v38  ;;  %v3579_v26 = vadd.f32 %v3559_v16, %v3538_v50  ;;  %v1992_v34 = vld [vmem:[#allocation2 + $0x5b] sm:$0x3]  ;;  %v1045_v49 = vmul.f32 %v8871_v0, %v6824_v15  ;;  %v7105_v16 = vpop.xlane.xlu2 %4674  ;;  %v1943_v38 = vmul.f32 %v7051_v13, %v6506_v31 }
 0x276   : > { %2052 = vst [vmem:[#allocation2 + $0x53] sm:$0xff] %v2032_v3  ;;  %v2575_v40 = vld [vmem:[#allocation2 + $0xc3] sm:$0xff]  ;;  %v2033_v2 = vadd.f32 %v2013_v21, %v1992_v34  ;;  %v2352_v21 = vmul.f32 %v6864_v35, %v6174_v8 }
 0x277   : > { %1084 = vst [vmem:[#allocation2 + $0xa1] sm:$0xff] %v1064_v22  ;;  %v2616_v43 = vadd.f32 %v2596_v52, %v2575_v40  ;;  %v4591_v44 = vld [vmem:[#allocation2 + $0x38] sm:$0xff]  ;;  %v1065_v62 = vadd.f32 %v1045_v49, %v1024_v60  ;;  %v1944_v22 = vmul.f32 %v7074_v57, %v6506_v31  ;;  %v2093_v60 = vmul.f32 %v7028_v10, %v6566_v19 }
 0x278   : > { %3598 = vst [vmem:[#allocation2 + $0x45] sm:$0xff] %v3578_v45  ;;  %4630 = vadd.xlane.f32.xlu1 %v4591_v44 }
 0x279   : > { %v2576_v61 = vld [vmem:[#allocation2 + $0xcb] sm:$0x3]  ;;  %3599 = vst [vmem:[#allocation2 + $0x4d] sm:$0x3] %v3579_v26  ;;  %v8876_v26 = vld [vmem:[#allocation12_spill] sm:$0xff] }
 0x27a   : > { %8875 = vst [vmem:[#allocation14_spill] sm:$0xff] %v7105_v16  ;;  %v2617_v3 = vadd.f32 %v2597_v7, %v2576_v61  ;;  %v3639_v34 = vmul.f32 %v6847_v37, %v8876_v26  ;;  %v3640_v35 = vmul.f32 %v7087_v27, %v8876_v26 }
 0x27b   : > { %2636 = vst [vmem:[#allocation2 + $0xc3] sm:$0xff] %v2616_v43  ;;  %v1922_v50 = vld [vmem:[#allocation2 + $0xb4] sm:$0xff] }
 0x27c   : > { %2053 = vst [vmem:[#allocation2 + $0x5b] sm:$0x3] %v2033_v2  ;;  %v1923_v53 = vld [vmem:[#allocation2 + $0xbc] sm:$0x3]  ;;  %v1963_v44 = vadd.f32 %v1943_v38, %v1922_v50  ;;  %v2331_v52 = vld [vmem:[#allocation2 + $0xbe] sm:$0x3]  ;;  %v4047_v2 = vmul.f32 %v8844_v32, %v6824_v15 }
 0x27d   : > { %2637 = vst [vmem:[#allocation2 + $0xcb] sm:$0x3] %v2617_v3  ;;  %v1964_v45 = vadd.f32 %v1944_v22, %v1923_v53  ;;  %v2372_v61 = vadd.f32 %v2352_v21, %v2331_v52  ;;  %v2072_v7 = vld [vmem:[#allocation2 + $0x52] sm:$0xff] }
 0x27e   : > { %1085 = vst [vmem:[#allocation2 + $0xa9] sm:$0x3] %v1065_v62  ;;  %v2113_v40 = vadd.f32 %v2093_v60, %v2072_v7  ;;  %v8877_v43 = vld [vmem:[#allocation33_spill] sm:$0xff] }
 0x27f   : > { %1983 = vst [vmem:[#allocation2 + $0xb4] sm:$0xff] %v1963_v44  ;;  %v3618_v49 = vld [vmem:[#allocation2 + $0x44] sm:$0xff]  ;;  %v2677_v3 = vmul.f32 %v7097_v56, %v8877_v43  ;;  %v2094_v44 = vmul.f32 %v7092_v17, %v6566_v19  ;;  %v7126_v60 = vld [vmem:[%s5871_s13 + $0x98] sm:$0x3] }
 0x280   : > { %1984 = vst [vmem:[#allocation2 + $0xbc] sm:$0x3] %v1964_v45  ;;  %v3619_v38 = vld [vmem:[#allocation2 + $0x4c] sm:$0x3]  ;;  %v3659_v50 = vadd.f32 %v3639_v34, %v3618_v49  ;;  %v4026_v62 = vld [vmem:[#allocation2 + $0x4e] sm:$0x3]  ;;  %v2678_v15 = vmul.f32 %v7126_v60, %v8877_v43  ;;  %v4625_v45 = vpop.xlane.xlu2 %4624 }
 0x281   : > { %2392 = vst [vmem:[#allocation2 + $0xbe] sm:$0x3] %v2372_v61  ;;  %v3660_v21 = vadd.f32 %v3640_v35, %v3619_v38  ;;  %v4067_v53 = vadd.f32 %v4047_v2, %v4026_v62  ;;  %v8878_v34 = vld [vmem:[#allocation62_spill] sm:$0xff] }
 0x282   : > { %v2656_v22 = vld [vmem:[#allocation2 + $0xc2] sm:$0xff]  ;;  %2133 = vst [vmem:[#allocation2 + $0x52] sm:$0xff] %v2113_v40  ;;  %v4928_v49 = vmul.f32 %v8878_v34, %v4625_v45  ;;  %v2024_v40 = vmul.f32 %v7051_v13, %v6540_v24 }
 0x283   : > { %v2697_v52 = vadd.f32 %v2677_v3, %v2656_v22  ;;  %3679 = vst [vmem:[#allocation2 + $0x44] sm:$0xff] %v3659_v50  ;;  %v2073_v7 = vld [vmem:[#allocation2 + $0x5a] sm:$0x3]  ;;  %v1104_v35 = vld [vmem:[#allocation2 + $0xa0] sm:$0xff]  ;;  %v1125_v3 = vmul.f32 %v6829_v6, %v6190_v4  ;;  %v2025_v50 = vmul.f32 %v7074_v57, %v6540_v24 }
 0x284   : > { %v2657_v16 = vld [vmem:[#allocation2 + $0xca] sm:$0x3]  ;;  %3680 = vst [vmem:[#allocation2 + $0x4c] sm:$0x3] %v3660_v21  ;;  %v2114_v61 = vadd.f32 %v2094_v44, %v2073_v7  ;;  %5001 = vperm.xlu2 %5461, %v4928_v49   ;;  %v7144_v49 = vld [vmem:[%s5871_s13 + $0x48] sm:$0x3] }
 0x285   : > { %2717 = vst [vmem:[#allocation2 + $0xc2] sm:$0xff] %v2697_v52  ;;  %v2698_v2 = vadd.f32 %v2678_v15, %v2657_v16  ;;  %v1145_v21 = vadd.f32 %v1125_v3, %v1104_v35  ;;  %v2174_v16 = vmul.f32 %v7028_v10, %v6593_v42  ;;  %v8879_v52 = vld [vmem:[#allocation15_spill] sm:$0xff]  ;;  %v8880_v35 = vld [vmem:[#allocation36_spill] sm:$0xff] }
 0x286   : > { %4087 = vst [vmem:[#allocation2 + $0x4e] sm:$0x3] %v4067_v53  ;;  %v2003_v38 = vld [vmem:[#allocation2 + $0xb3] sm:$0xff]  ;;  %v3720_v15 = vmul.f32 %v6847_v37, %v8879_v52  ;;  %v1105_v53 = vld [vmem:[#allocation2 + $0xa8] sm:$0x3]  ;;  %v3721_v7 = vmul.f32 %v7087_v27, %v8879_v52 }
 0x287   : > { %2718 = vst [vmem:[#allocation2 + $0xca] sm:$0x3] %v2698_v2  ;;  %v2004_v62 = vld [vmem:[#allocation2 + $0xbb] sm:$0x3]  ;;  %v2044_v22 = vadd.f32 %v2024_v40, %v2003_v38  ;;  %v2758_v2 = vmul.f32 %v7097_v56, %v8880_v35 }
 0x288   : > { %v2045_v44 = vadd.f32 %v2025_v50, %v2004_v62  ;;  %2134 = vst [vmem:[#allocation2 + $0x5a] sm:$0x3] %v2114_v61  ;;  %v1126_v61 = vmul.f32 %v7144_v49, %v6190_v4 }
 0x289   : > { %2064 = vst [vmem:[#allocation2 + $0xb3] sm:$0xff] %v2044_v22  ;;  %v2153_v6 = vld [vmem:[#allocation2 + $0x51] sm:$0xff]  ;;  %v2759_v22 = vmul.f32 %v7126_v60, %v8880_v35 }
 0x28a   : > { %v3699_v45 = vld [vmem:[#allocation2 + $0x43] sm:$0xff]  ;;  %2065 = vst [vmem:[#allocation2 + $0xbb] sm:$0x3] %v2045_v44  ;;  %v2194_v34 = vadd.f32 %v2174_v16, %v2153_v6  ;;  %v1146_v50 = vadd.f32 %v1126_v61, %v1105_v53  ;;  %v2105_v53 = vmul.f32 %v7051_v13, %v6566_v19  ;;  %v2106_v61 = vmul.f32 %v7074_v57, %v6566_v19 }
 0x28b   : > { %v3700_v40 = vld [vmem:[#allocation2 + $0x4b] sm:$0x3]  ;;  %v3740_v37 = vadd.f32 %v3720_v15, %v3699_v45  ;;  %1165 = vst [vmem:[#allocation2 + $0xa0] sm:$0xff] %v1145_v21  ;;  %v7153_v44 = vld [vmem:[%s5871_s13 + $0x8] sm:$0x3]  ;;  %v2175_v15 = vmul.f32 %v7092_v17, %v6593_v42 }
 0x28c   : > { %v2737_v3 = vld [vmem:[#allocation2 + $0xc1] sm:$0xff]  ;;  %v3741_v38 = vadd.f32 %v3721_v7, %v3700_v40  ;;  %2214 = vst [vmem:[#allocation2 + $0x51] sm:$0xff] %v2194_v34  ;;  %v632_v16 = vmul.f32 %v7153_v44, %v8868_v48  ;;  %v611_v21 = vld [vmem:[#allocation2 + $0x6e] sm:$0x3] }
 0x28d   : > { %v2778_v62 = vadd.f32 %v2758_v2, %v2737_v3  ;;  %3760 = vst [vmem:[#allocation2 + $0x43] sm:$0xff] %v3740_v37 }
 0x28e   : > { %v2738_v6 = vld [vmem:[#allocation2 + $0xc9] sm:$0x3]  ;;  %3761 = vst [vmem:[#allocation2 + $0x4b] sm:$0x3] %v3741_v38  ;;  %v652_v3 = vadd.f32 %v632_v16, %v611_v21  ;;  %v2839_v16 = vmul.f32 %v7097_v56, %v8853_v59 }
 0x28f   : > { %2798 = vst [vmem:[#allocation2 + $0xc1] sm:$0xff] %v2778_v62  ;;  %v2779_v45 = vadd.f32 %v2759_v22, %v2738_v6  ;;  %v2154_v7 = vld [vmem:[#allocation2 + $0x59] sm:$0x3]  ;;  %v2255_v62 = vmul.f32 %v7028_v10, %v6626_v47  ;;  %v7166_v22 = vld [vmem:[%s5871_s13 + $0x30] sm:$0xff]  ;;  %v8881_v6 = vld [vmem:[#allocation18_spill] sm:$0xff] }
 0x290   : > { %v2084_v34 = vld [vmem:[#allocation2 + $0xb2] sm:$0xff]  ;;  %v2195_v2 = vadd.f32 %v2175_v15, %v2154_v7  ;;  %1166 = vst [vmem:[#allocation2 + $0xa8] sm:$0x3] %v1146_v50  ;;  %v3801_v52 = vmul.f32 %v7166_v22, %v8881_v6  ;;  %v3802_v50 = vmul.f32 %v7087_v27, %v8881_v6 }
 0x291   : > { %2799 = vst [vmem:[#allocation2 + $0xc9] sm:$0x3] %v2779_v45  ;;  %v2085_v40 = vld [vmem:[#allocation2 + $0xba] sm:$0x3]  ;;  %v2125_v37 = vadd.f32 %v2105_v53, %v2084_v34  ;;  %v7175_v34 = vld [vmem:[%s5871_s13 + $0x50] sm:$0xff] }
 0x292   : > { %v2126_v38 = vadd.f32 %v2106_v61, %v2085_v40  ;;  %2215 = vst [vmem:[#allocation2 + $0x59] sm:$0x3] %v2195_v2  ;;  %v1209_v61 = vmul.f32 %v7175_v34, %v6119_v5  ;;  %v2840_v40 = vmul.f32 %v7126_v60, %v8853_v59 }
 0x293   : > { %2145 = vst [vmem:[#allocation2 + $0xb2] sm:$0xff] %v2125_v37  ;;  %v2234_v26 = vld [vmem:[#allocation2 + $0x50] sm:$0xff] }
 0x294   : > { %v3780_v19 = vld [vmem:[#allocation2 + $0x42] sm:$0xff]  ;;  %2146 = vst [vmem:[#allocation2 + $0xba] sm:$0x3] %v2126_v38  ;;  %v2275_v15 = vadd.f32 %v2255_v62, %v2234_v26  ;;  %v2186_v38 = vmul.f32 %v7051_v13, %v6593_v42 }
 0x295   : > { %v3781_v21 = vld [vmem:[#allocation2 + $0x4a] sm:$0x3]  ;;  %v3821_v45 = vadd.f32 %v3801_v52, %v3780_v19  ;;  %672 = vst [vmem:[#allocation2 + $0x6e] sm:$0x3] %v652_v3  ;;  %v2256_v19 = vmul.f32 %v7092_v17, %v6626_v47 }
 0x296   : > { %v2818_v53 = vld [vmem:[#allocation2 + $0xc0] sm:$0xff]  ;;  %v3822_v7 = vadd.f32 %v3802_v50, %v3781_v21  ;;  %2295 = vst [vmem:[#allocation2 + $0x50] sm:$0xff] %v2275_v15  ;;  %v2187_v21 = vmul.f32 %v7074_v57, %v6593_v42 }
 0x297   : > { %v2859_v2 = vadd.f32 %v2839_v16, %v2818_v53  ;;  %3841 = vst [vmem:[#allocation2 + $0x42] sm:$0xff] %v3821_v45  ;;  %v1188_v26 = vld [vmem:[#allocation2 + $0xa6] sm:$0xff] }
 0x298   : > { %v2819_v37 = vld [vmem:[#allocation2 + $0xc8] sm:$0x3]  ;;  %3842 = vst [vmem:[#allocation2 + $0x4a] sm:$0x3] %v3822_v7  ;;  %v1229_v56 = vadd.f32 %v1209_v61, %v1188_v26  ;;  %v7186_v50 = vld [vmem:[%s5871_s13] sm:$0xff]  ;;  %v713_v61 = vmul.f32 %v7153_v44, %v6002_v39 }
 0x299   : > { %v691_v52 = vld [vmem:[#allocation2 + $0x65] sm:$0xff]  ;;  %2879 = vst [vmem:[#allocation2 + $0xc0] sm:$0xff] %v2859_v2  ;;  %4664 = vadd.xlane.f32.xlu0 %v2859_v2  ;;  %v2860_v3 = vadd.f32 %v2840_v40, %v2819_v37  ;;  %v2235_v62 = vld [vmem:[#allocation2 + $0x58] sm:$0x3]  ;;  %v712_v15 = vmul.f32 %v7186_v50, %v6002_v39 }
 0x29a   : > { %v2165_v16 = vld [vmem:[#allocation2 + $0xb1] sm:$0xff]  ;;  %v2276_v45 = vadd.f32 %v2256_v19, %v2235_v62  ;;  %1249 = vst [vmem:[#allocation2 + $0xa6] sm:$0xff] %v1229_v56  ;;  %v1291_v62 = vmul.f32 %v7019_v54, %v6278_v23 }
 0x29b   : > { %2880 = vst [vmem:[#allocation2 + $0xc8] sm:$0x3] %v2860_v3  ;;  %v2166_v53 = vld [vmem:[#allocation2 + $0xb9] sm:$0x3]  ;;  %v2206_v7 = vadd.f32 %v2186_v38, %v2165_v16  ;;  %v732_v2 = vadd.f32 %v712_v15, %v691_v52  ;;  %v1290_v52 = vmul.f32 %v7175_v34, %v6278_v23 }
 0x29c   : > { %v2207_v40 = vadd.f32 %v2187_v21, %v2166_v53  ;;  %2296 = vst [vmem:[#allocation2 + $0x58] sm:$0x3] %v2276_v45  ;;  %v692_v26 = vld [vmem:[#allocation2 + $0x6d] sm:$0x3]  ;;  %v8882_v37 = vld [vmem:[#allocation21_spill] sm:$0xff]  ;;  %v7203_v45 = vld [vmem:[%s5871_s13 + $0x20] sm:$0xff] }
 0x29d   : > { %v3882_v6 = vmul.f32 %v7166_v22, %v8882_v37  ;;  %2226 = vst [vmem:[#allocation2 + $0xb1] sm:$0xff] %v2206_v7  ;;  %v733_v24 = vadd.f32 %v713_v61, %v692_v26  ;;  %v3883_v19 = vmul.f32 %v7087_v27, %v8882_v37  ;;  %v2339_v53 = vmul.f32 %v7203_v45, %v6174_v8  ;;  %v612_v37 = vld [vmem:[#allocation2 + $0x76] sm:$0xff] }
 0x29e   : > { %v3861_v31 = vld [vmem:[#allocation2 + $0x41] sm:$0xff]  ;;  %2227 = vst [vmem:[#allocation2 + $0xb9] sm:$0x3] %v2207_v40  ;;  %v2267_v7 = vmul.f32 %v7051_v13, %v6626_v47  ;;  %v8883_v13 = vld [vmem:[#allocation24_spill] sm:$0xff] }
 0x29f   : > { %v3862_v56 = vld [vmem:[#allocation2 + $0x49] sm:$0x3]  ;;  %v3902_v3 = vadd.f32 %v3882_v6, %v3861_v31  ;;  %752 = vst [vmem:[#allocation2 + $0x65] sm:$0xff] %v732_v2 }
 0x2a0   : > { %v3903_v38 = vadd.f32 %v3883_v19, %v3862_v56  ;;  %753 = vst [vmem:[#allocation2 + $0x6d] sm:$0x3] %v733_v24  ;;  %v2268_v24 = vmul.f32 %v7074_v57, %v6626_v47  ;;  %v793_v56 = vmul.f32 %v7186_v50, %v6036_v29 }
 0x2a1   : > { %3922 = vst [vmem:[#allocation2 + $0x41] sm:$0xff] %v3902_v3  ;;  %v1269_v15 = vld [vmem:[#allocation2 + $0xa5] sm:$0xff]  ;;  %v1270_v16 = vld [vmem:[#allocation2 + $0xad] sm:$0x3] }
 0x2a2   : > { %v4609_v21 = vld [vmem:[#allocation2 + $0xc8] sm:$0xff]  ;;  %3923 = vst [vmem:[#allocation2 + $0x49] sm:$0x3] %v3903_v38  ;;  %v1310_v31 = vadd.f32 %v1290_v52, %v1269_v15  ;;  %v1311_v6 = vadd.f32 %v1291_v62, %v1270_v16  ;;  %v794_v52 = vmul.f32 %v7153_v44, %v6036_v29  ;;  %v3963_v62 = vmul.f32 %v7166_v22, %v8883_v13 }
 0x2a3   : > { %4666 = vadd.xlane.f32.xlu1 %v4609_v21  ;;  %v2318_v61 = vld [vmem:[#allocation2 + $0x56] sm:$0xff]  ;;  %v1202_v21 = vmul.f32 %v7092_v17, %v6119_v5 }
 0x2a4   : > { %v2246_v2 = vld [vmem:[#allocation2 + $0xb0] sm:$0xff]  ;;  %v2359_v40 = vadd.f32 %v2339_v53, %v2318_v61  ;;  %1330 = vst [vmem:[#allocation2 + $0xa5] sm:$0xff] %v1310_v31  ;;  %v3964_v31 = vmul.f32 %v7087_v27, %v8883_v13  ;;  %v875_v13 = vmul.f32 %v7153_v44, %v8861_v25 }
 0x2a5   : > { %v2247_v26 = vld [vmem:[#allocation2 + $0xb8] sm:$0x3]  ;;  %v2287_v19 = vadd.f32 %v2267_v7, %v2246_v2  ;;  %1331 = vst [vmem:[#allocation2 + $0xad] sm:$0x3] %v1311_v6 }
 0x2a6   : > { %v2288_v3 = vadd.f32 %v2268_v24, %v2247_v26  ;;  %2379 = vst [vmem:[#allocation2 + $0x56] sm:$0xff] %v2359_v40  ;;  %v772_v38 = vld [vmem:[#allocation2 + $0x64] sm:$0xff]  ;;  %v1371_v40 = vmul.f32 %v7175_v34, %v6315_v18 }
 0x2a7   : > { %2307 = vst [vmem:[#allocation2 + $0xb0] sm:$0xff] %v2287_v19  ;;  %v773_v15 = vld [vmem:[#allocation2 + $0x6c] sm:$0x3]  ;;  %v813_v57 = vadd.f32 %v793_v56, %v772_v38  ;;  %v1181_v16 = vld [vmem:[#allocation2 + $0x6e] sm:$0x3]  ;;  %v1372_v19 = vmul.f32 %v7019_v54, %v6315_v18  ;;  %v2420_v56 = vmul.f32 %v7203_v45, %v8867_v30 }
 0x2a8   : > { %v3942_v53 = vld [vmem:[#allocation2 + $0x40] sm:$0xff]  ;;  %2308 = vst [vmem:[#allocation2 + $0xb8] sm:$0x3] %v2288_v3  ;;  %v814_v6 = vadd.f32 %v794_v52, %v773_v15  ;;  %v1222_v2 = vadd.f32 %v1202_v21, %v1181_v16  ;;  %v2421_v3 = vmul.f32 %v7006_v51, %v8867_v30  ;;  %v7230_v21 = vld [vmem:[%s5871_s13 + $0x68] sm:$0x3] }
 0x2a9   : > { %v3943_v7 = vld [vmem:[#allocation2 + $0x48] sm:$0x3]  ;;  %v3983_v61 = vadd.f32 %v3963_v62, %v3942_v53  ;;  %833 = vst [vmem:[#allocation2 + $0x64] sm:$0xff] %v813_v57  ;;  %v1780_v53 = vmul.f32 %v7230_v21, %v6382_v11 }
 0x2aa   : > { %v3984_v24 = vadd.f32 %v3964_v31, %v3943_v7  ;;  %834 = vst [vmem:[#allocation2 + $0x6c] sm:$0x3] %v814_v6  ;;  %v7235_v31 = vld [vmem:[%s5871_s13 + $0x80] sm:$0xff] }
 0x2ab   : > { %4003 = vst [vmem:[#allocation2 + $0x40] sm:$0xff] %v3983_v61  ;;  %v1350_v26 = vld [vmem:[#allocation2 + $0xa4] sm:$0xff]  ;;  %v2351_v6 = vmul.f32 %v7235_v31, %v6174_v8 }
 0x2ac   : > { %4004 = vst [vmem:[#allocation2 + $0x48] sm:$0x3] %v3984_v24  ;;  %v1351_v38 = vld [vmem:[#allocation2 + $0xac] sm:$0x3]  ;;  %v1391_v52 = vadd.f32 %v1371_v40, %v1350_v26  ;;  %v1759_v62 = vld [vmem:[#allocation2 + $0xae] sm:$0x3]  ;;  %v874_v26 = vmul.f32 %v7186_v50, %v8861_v25 }
 0x2ad   : > { %v2399_v15 = vld [vmem:[#allocation2 + $0x55] sm:$0xff]  ;;  %v2400_v57 = vld [vmem:[#allocation2 + $0x5d] sm:$0x3]  ;;  %v1392_v16 = vadd.f32 %v1372_v19, %v1351_v38  ;;  %1242 = vst [vmem:[#allocation2 + $0x6e] sm:$0x3] %v1222_v2  ;;  %v1800_v40 = vadd.f32 %v1780_v53, %v1759_v62  ;;  %v633_v19 = vmul.f32 %v7028_v10, %v8868_v48  ;;  %v1452_v53 = vmul.f32 %v7175_v34, %v6346_v63 }
 0x2ae   : > { %v2440_v7 = vadd.f32 %v2420_v56, %v2399_v15  ;;  %v2441_v61 = vadd.f32 %v2421_v3, %v2400_v57  ;;  %1411 = vst [vmem:[#allocation2 + $0xa4] sm:$0xff] %v1391_v52  ;;  %v7246_v52 = vld [vmem:[%s5871_s13 + $0x40] sm:$0xff] }
 0x2af   : > { %v2330_v24 = vld [vmem:[#allocation2 + $0xb6] sm:$0xff]  ;;  %1412 = vst [vmem:[#allocation2 + $0xac] sm:$0x3] %v1392_v16  ;;  %v4046_v62 = vmul.f32 %v7246_v52, %v8844_v32  ;;  %v653_v10 = vadd.f32 %v633_v19, %v612_v37  ;;  %v2502_v37 = vmul.f32 %v7006_v51, %v8870_v20 }
 0x2b0   : > { %v2371_v38 = vadd.f32 %v2351_v6, %v2330_v24  ;;  %2460 = vst [vmem:[#allocation2 + $0x55] sm:$0xff] %v2440_v7  ;;  %v853_v2 = vld [vmem:[#allocation2 + $0x63] sm:$0xff]  ;;  %v4627_v6 = vpop.xlane.xlu2 %4626  ;;  %v2501_v24 = vmul.f32 %v7203_v45, %v8870_v20 }
 0x2b1   : > { %2461 = vst [vmem:[#allocation2 + $0x5d] sm:$0x3] %v2441_v61  ;;  %v854_v56 = vld [vmem:[#allocation2 + $0x6b] sm:$0x3]  ;;  %v894_v3 = vadd.f32 %v874_v26, %v853_v2  ;;  %v1453_v61 = vmul.f32 %v7019_v54, %v6346_v63  ;;  %v7261_v2 = vld [vmem:[%s5871_s13 + $0x88] sm:$0x3] }
 0x2b2   : > { %2391 = vst [vmem:[#allocation2 + $0xb6] sm:$0xff] %v2371_v38  ;;  %v895_v15 = vadd.f32 %v875_v13, %v854_v56  ;;  %v2432_v38 = vmul.f32 %v7235_v31, %v8867_v30  ;;  %v2433_v56 = vmul.f32 %v7261_v2, %v8867_v30 }
 0x2b3   : > { %v4025_v57 = vld [vmem:[#allocation2 + $0x46] sm:$0xff]  ;;  %1820 = vst [vmem:[#allocation2 + $0xae] sm:$0x3] %v1800_v40 }
 0x2b4   : > { %v4066_v16 = vadd.f32 %v4046_v62, %v4025_v57  ;;  %914 = vst [vmem:[#allocation2 + $0x63] sm:$0xff] %v894_v3  ;;  %v8884_v57 = vld [vmem:[#allocation8_spill] sm:$0xff] }
 0x2b5   : > { %v1431_v7 = vld [vmem:[#allocation2 + $0xa3] sm:$0xff]  ;;  %915 = vst [vmem:[#allocation2 + $0x6b] sm:$0x3] %v895_v15 }
 0x2b6   : > { %4086 = vst [vmem:[#allocation2 + $0x46] sm:$0xff] %v4066_v16  ;;  %v1432_v13 = vld [vmem:[#allocation2 + $0xab] sm:$0x3]  ;;  %v1472_v26 = vadd.f32 %v1452_v53, %v1431_v7  ;;  %v2910_v16 = vmul.f32 %v7087_v27, %v8884_v57  ;;  %v4127_v27 = vmul.f32 %v7246_v52, %v5901_v12 }
 0x2b7   : > { %v2480_v40 = vld [vmem:[#allocation2 + $0x54] sm:$0xff]  ;;  %v1473_v19 = vadd.f32 %v1453_v61, %v1432_v13  ;;  %673 = vst [vmem:[#allocation2 + $0x76] sm:$0xff] %v653_v10  ;;  %v955_v10 = vmul.f32 %v7186_v50, %v8866_v14  ;;  %v8885_v61 = vld [vmem:[#allocation43_spill] sm:$0xff] }
 0x2b8   : > { %v2481_v3 = vld [vmem:[#allocation2 + $0x5c] sm:$0x3]  ;;  %v2521_v62 = vadd.f32 %v2501_v24, %v2480_v40  ;;  %v2889_v15 = vld [vmem:[#allocation2 + $0x5e] sm:$0x3]  ;;  %1492 = vst [vmem:[#allocation2 + $0xa3] sm:$0xff] %v1472_v26  ;;  %v4929_v13 = vmul.f32 %v8885_v61, %v4627_v6  ;;  %v4128_v26 = vmul.f32 %v7144_v49, %v5901_v12 }
 0x2b9   : > { %v2411_v53 = vld [vmem:[#allocation2 + $0xb5] sm:$0xff]  ;;  %v2412_v7 = vld [vmem:[#allocation2 + $0xbd] sm:$0x3]  ;;  %v2522_v32 = vadd.f32 %v2502_v37, %v2481_v3  ;;  %1493 = vst [vmem:[#allocation2 + $0xab] sm:$0x3] %v1473_v19  ;;  %v2930_v30 = vadd.f32 %v2910_v16, %v2889_v15  ;;  %v4669_v37 = vpop.xlane.xlu2 %4668 }
 0x2ba   : > { %v2452_v47 = vadd.f32 %v2432_v38, %v2411_v53  ;;  %v2453_v42 = vadd.f32 %v2433_v56, %v2412_v7  ;;  %2541 = vst [vmem:[#allocation2 + $0x54] sm:$0xff] %v2521_v62  ;;  %v1534_v62 = vmul.f32 %v7019_v54, %v6374_v1  ;;  %v4950_v15 = vmul.f32 %v7025_v36, %v4669_v37 }
 0x2bb   : > { %2542 = vst [vmem:[#allocation2 + $0x5c] sm:$0x3] %v2522_v32  ;;  %v934_v24 = vld [vmem:[#allocation2 + $0x62] sm:$0xff]  ;;  %v1533_v32 = vmul.f32 %v7175_v34, %v6374_v1  ;;  %v956_v37 = vmul.f32 %v7153_v44, %v8866_v14 }
 0x2bc   : > { %5004 = vperm.xlu1 %5459, %v4929_v13   ;;  %2472 = vst [vmem:[#allocation2 + $0xb5] sm:$0xff] %v2452_v47  ;;  %v975_v40 = vadd.f32 %v955_v10, %v934_v24  ;;  %v2582_v47 = vmul.f32 %v7203_v45, %v8874_v9  ;;  %v2513_v10 = vmul.f32 %v7235_v31, %v8870_v20  ;;  %v935_v24 = vld [vmem:[#allocation2 + $0x6a] sm:$0x3] }
 0x2bd   : > { %v4106_v19 = vld [vmem:[#allocation2 + $0x45] sm:$0xff]  ;;  %v4107_v3 = vld [vmem:[#allocation2 + $0x4d] sm:$0x3]  ;;  %2473 = vst [vmem:[#allocation2 + $0xbd] sm:$0x3] %v2453_v42 }
 0x2be   : > { %v4147_v6 = vadd.f32 %v4127_v27, %v4106_v19  ;;  %v4148_v38 = vadd.f32 %v4128_v26, %v4107_v3  ;;  %2950 = vst [vmem:[#allocation2 + $0x5e] sm:$0x3] %v2930_v30  ;;  %v2583_v30 = vmul.f32 %v7006_v51, %v8874_v9  ;;  %v2514_v27 = vmul.f32 %v7261_v2, %v8870_v20 }
 0x2bf   : > { %v1512_v56 = vld [vmem:[#allocation2 + $0xa2] sm:$0xff]  ;;  %995 = vst [vmem:[#allocation2 + $0x62] sm:$0xff] %v975_v40  ;;  %v2922_v26 = vmul.f32 %v7126_v60, %v8884_v57 }
 0x2c0   : > { %4167 = vst [vmem:[#allocation2 + $0x45] sm:$0xff] %v4147_v6  ;;  %v1513_v16 = vld [vmem:[#allocation2 + $0xaa] sm:$0x3]  ;;  %v1553_v53 = vadd.f32 %v1533_v32, %v1512_v56  ;;  %v976_v56 = vadd.f32 %v956_v37, %v935_v24  ;;  %v2594_v37 = vmul.f32 %v7235_v31, %v8874_v9 }
 0x2c1   : > { %4168 = vst [vmem:[#allocation2 + $0x4d] sm:$0x3] %v4148_v38  ;;  %v2561_v42 = vld [vmem:[#allocation2 + $0x53] sm:$0xff]  ;;  %v1554_v7 = vadd.f32 %v1534_v62, %v1513_v16  ;;  %v4208_v62 = vmul.f32 %v7246_v52, %v5926_v33  ;;  %v4209_v16 = vmul.f32 %v7144_v49, %v5926_v33 }
 0x2c2   : > { %v2562_v61 = vld [vmem:[#allocation2 + $0x5b] sm:$0x3]  ;;  %v2602_v13 = vadd.f32 %v2582_v47, %v2561_v42  ;;  %1573 = vst [vmem:[#allocation2 + $0xa2] sm:$0xff] %v1553_v53 }
 0x2c3   : > { %v2492_v36 = vld [vmem:[#allocation2 + $0xb4] sm:$0xff]  ;;  %v2603_v40 = vadd.f32 %v2583_v30, %v2562_v61  ;;  %1574 = vst [vmem:[#allocation2 + $0xaa] sm:$0x3] %v1554_v7  ;;  %v2663_v61 = vmul.f32 %v7203_v45, %v8877_v43 }
 0x2c4   : > { %5067 = vperm.xlu1 %5459, %v4950_v15   ;;  %v2493_v19 = vld [vmem:[#allocation2 + $0xbc] sm:$0x3]  ;;  %v2533_v3 = vadd.f32 %v2513_v10, %v2492_v36  ;;  %v2901_v6 = vld [vmem:[#allocation2 + $0xbe] sm:$0x3]  ;;  %2622 = vst [vmem:[#allocation2 + $0x53] sm:$0xff] %v2602_v13  ;;  %v1614_v15 = vmul.f32 %v7175_v34, %v6422_v28  ;;  %v1615_v10 = vmul.f32 %v7019_v54, %v6422_v28 }
 0x2c5   : > { %v2534_v38 = vadd.f32 %v2514_v27, %v2493_v19  ;;  %v2942_v32 = vadd.f32 %v2922_v26, %v2901_v6  ;;  %2623 = vst [vmem:[#allocation2 + $0x5b] sm:$0x3] %v2603_v40  ;;  %v2664_v27 = vmul.f32 %v7006_v51, %v8877_v43  ;;  %v1036_v6 = vmul.f32 %v7186_v50, %v8871_v0 }
 0x2c6   : > { %2553 = vst [vmem:[#allocation2 + $0xb4] sm:$0xff] %v2533_v3  ;;  %v1015_v40 = vld [vmem:[#allocation2 + $0x61] sm:$0xff] }
 0x2c7   : > { %v4187_v47 = vld [vmem:[#allocation2 + $0x44] sm:$0xff]  ;;  %2554 = vst [vmem:[#allocation2 + $0xbc] sm:$0x3] %v2534_v38  ;;  %v1056_v51 = vadd.f32 %v1036_v6, %v1015_v40  ;;  %v2744_v40 = vmul.f32 %v7203_v45, %v8880_v35 }
 0x2c8   : > { %v4188_v53 = vld [vmem:[#allocation2 + $0x4c] sm:$0x3]  ;;  %v4228_v42 = vadd.f32 %v4208_v62, %v4187_v47  ;;  %2962 = vst [vmem:[#allocation2 + $0xbe] sm:$0x3] %v2942_v32  ;;  %v2595_v32 = vmul.f32 %v7261_v2, %v8874_v9  ;;  %v7322_v6 = vld [vmem:[%s5871_s13 + $0x28] sm:$0x3] }
 0x2c9   : > { %v4229_v30 = vadd.f32 %v4209_v16, %v4188_v53  ;;  %v1593_v7 = vld [vmem:[#allocation2 + $0xa1] sm:$0xff]  ;;  %996 = vst [vmem:[#allocation2 + $0x6a] sm:$0x3] %v976_v56  ;;  %v1037_v53 = vmul.f32 %v7153_v44, %v8871_v0 }
 0x2ca   : > { %4248 = vst [vmem:[#allocation2 + $0x44] sm:$0xff] %v4228_v42  ;;  %v1594_v13 = vld [vmem:[#allocation2 + $0xa9] sm:$0x3]  ;;  %v1634_v24 = vadd.f32 %v1614_v15, %v1593_v7  ;;  %v4289_v42 = vmul.f32 %v7246_v52, %v5962_v55  ;;  %v4290_v7 = vmul.f32 %v7144_v49, %v5962_v55 }
 0x2cb   : > { %4249 = vst [vmem:[#allocation2 + $0x4c] sm:$0x3] %v4229_v30  ;;  %v2642_v36 = vld [vmem:[#allocation2 + $0x52] sm:$0xff]  ;;  %v1635_v26 = vadd.f32 %v1615_v10, %v1594_v13 }
 0x2cc   : > { %v2643_v19 = vld [vmem:[#allocation2 + $0x5a] sm:$0x3]  ;;  %v2683_v3 = vadd.f32 %v2663_v61, %v2642_v36  ;;  %1654 = vst [vmem:[#allocation2 + $0xa1] sm:$0xff] %v1634_v24  ;;  %v1695_v24 = vmul.f32 %v7175_v34, %v6460_v41  ;;  %v2745_v34 = vmul.f32 %v7322_v6, %v8880_v35 }
 0x2cd   : > { %v2573_v38 = vld [vmem:[#allocation2 + $0xb3] sm:$0xff]  ;;  %v2684_v56 = vadd.f32 %v2664_v27, %v2643_v19  ;;  %1655 = vst [vmem:[#allocation2 + $0xa9] sm:$0x3] %v1635_v26  ;;  %v1696_v26 = vmul.f32 %v7019_v54, %v6460_v41 }
 0x2ce   : > { %v2574_v62 = vld [vmem:[#allocation2 + $0xbb] sm:$0x3]  ;;  %v2614_v47 = vadd.f32 %v2594_v37, %v2573_v38  ;;  %2703 = vst [vmem:[#allocation2 + $0x52] sm:$0xff] %v2683_v3 }
 0x2cf   : > { %v2615_v16 = vadd.f32 %v2595_v32, %v2574_v62  ;;  %2704 = vst [vmem:[#allocation2 + $0x5a] sm:$0x3] %v2684_v56  ;;  %v2675_v32 = vmul.f32 %v7235_v31, %v8877_v43 }
 0x2d0   : > { %2634 = vst [vmem:[#allocation2 + $0xb3] sm:$0xff] %v2614_v47  ;;  %v1016_v15 = vld [vmem:[#allocation2 + $0x69] sm:$0x3]  ;;  %v2676_v47 = vmul.f32 %v7261_v2, %v8877_v43 }
 0x2d1   : > { %v4268_v30 = vld [vmem:[#allocation2 + $0x43] sm:$0xff]  ;;  %2635 = vst [vmem:[#allocation2 + $0xbb] sm:$0x3] %v2615_v16  ;;  %v1057_v10 = vadd.f32 %v1037_v53, %v1016_v15  ;;  %v634_v15 = vmul.f32 %v7092_v17, %v8868_v48 }
 0x2d2   : > { %v4269_v61 = vld [vmem:[#allocation2 + $0x4b] sm:$0x3]  ;;  %v4309_v13 = vadd.f32 %v4289_v42, %v4268_v30  ;;  %1076 = vst [vmem:[#allocation2 + $0x61] sm:$0xff] %v1056_v51  ;;  %v1117_v42 = vmul.f32 %v7186_v50, %v6190_v4  ;;  %v4371_v50 = vmul.f32 %v7144_v49, %v6007_v46 }
 0x2d3   : > { %v4310_v36 = vadd.f32 %v4290_v7, %v4269_v61  ;;  %v1674_v27 = vld [vmem:[#allocation2 + $0xa0] sm:$0xff]  ;;  %1077 = vst [vmem:[#allocation2 + $0x69] sm:$0x3] %v1057_v10  ;;  %v1118_v10 = vmul.f32 %v7153_v44, %v6190_v4  ;;  %v613_v61 = vld [vmem:[#allocation2 + $0x7e] sm:$0x3] }
 0x2d4   : > { %4329 = vst [vmem:[#allocation2 + $0x43] sm:$0xff] %v4309_v13  ;;  %v1675_v37 = vld [vmem:[#allocation2 + $0xa8] sm:$0x3]  ;;  %v1715_v19 = vadd.f32 %v1695_v24, %v1674_v27  ;;  %v4370_v13 = vmul.f32 %v7246_v52, %v6007_v46  ;;  %v7341_v44 = vld [vmem:[%s5871_s13 + $0x60] sm:$0xff] }
 0x2d5   : > { %4330 = vst [vmem:[#allocation2 + $0x4b] sm:$0x3] %v4310_v36  ;;  %v2723_v3 = vld [vmem:[#allocation2 + $0x51] sm:$0xff]  ;;  %v1716_v38 = vadd.f32 %v1696_v26, %v1675_v37 }
 0x2d6   : > { %v2724_v56 = vld [vmem:[#allocation2 + $0x59] sm:$0x3]  ;;  %v2764_v54 = vadd.f32 %v2744_v40, %v2723_v3  ;;  %1735 = vst [vmem:[#allocation2 + $0xa0] sm:$0xff] %v1715_v19  ;;  %v654_v19 = vadd.f32 %v634_v15, %v613_v61 }
 0x2d7   : > { %v2654_v62 = vld [vmem:[#allocation2 + $0xb2] sm:$0xff]  ;;  %v2765_v51 = vadd.f32 %v2745_v34, %v2724_v56  ;;  %1736 = vst [vmem:[#allocation2 + $0xa8] sm:$0x3] %v1716_v38  ;;  %v1779_v34 = vmul.f32 %v7341_v44, %v6382_v11  ;;  %v2825_v38 = vmul.f32 %v7203_v45, %v8853_v59 }
 0x2d8   : > { %v2655_v16 = vld [vmem:[#allocation2 + $0xba] sm:$0x3]  ;;  %v2695_v53 = vadd.f32 %v2675_v32, %v2654_v62  ;;  %2784 = vst [vmem:[#allocation2 + $0x51] sm:$0xff] %v2764_v54  ;;  %v7348_v56 = vld [vmem:[%s5871_s13 + $0x10] sm:$0xff] }
 0x2d9   : > { %v2696_v30 = vadd.f32 %v2676_v47, %v2655_v16  ;;  %2785 = vst [vmem:[#allocation2 + $0x59] sm:$0x3] %v2765_v51  ;;  %v1096_v7 = vld [vmem:[#allocation2 + $0x60] sm:$0xff]  ;;  %v714_v54 = vmul.f32 %v7348_v56, %v6002_v39  ;;  %v2826_v47 = vmul.f32 %v7322_v6, %v8853_v59  ;;  %v693_v16 = vld [vmem:[#allocation2 + $0x75] sm:$0xff] }
 0x2da   : > { %2715 = vst [vmem:[#allocation2 + $0xb2] sm:$0xff] %v2695_v53  ;;  %v1097_v24 = vld [vmem:[#allocation2 + $0x68] sm:$0x3]  ;;  %v1137_v36 = vadd.f32 %v1117_v42, %v1096_v7  ;;  %v2756_v53 = vmul.f32 %v7235_v31, %v8880_v35 }
 0x2db   : > { %v4349_v27 = vld [vmem:[#allocation2 + $0x42] sm:$0xff]  ;;  %2716 = vst [vmem:[#allocation2 + $0xba] sm:$0x3] %v2696_v30  ;;  %v1138_v26 = vadd.f32 %v1118_v10, %v1097_v24  ;;  %v2757_v30 = vmul.f32 %v7261_v2, %v8880_v35 }
 0x2dc   : > { %v4350_v40 = vld [vmem:[#allocation2 + $0x4a] sm:$0x3]  ;;  %v4390_v37 = vadd.f32 %v4370_v13, %v4349_v27  ;;  %1157 = vst [vmem:[#allocation2 + $0x60] sm:$0xff] %v1137_v36  ;;  %v734_v13 = vadd.f32 %v714_v54, %v693_v16  ;;  %v1201_v36 = vmul.f32 %v7348_v56, %v6119_v5  ;;  %v1860_v54 = vmul.f32 %v7341_v44, %v6445_v58 }
 0x2dd   : > { %v4391_v3 = vadd.f32 %v4371_v50, %v4350_v40  ;;  %1158 = vst [vmem:[#allocation2 + $0x68] sm:$0x3] %v1138_v26  ;;  %v8886_v27 = vld [vmem:[#allocation19_spill] sm:$0xff]  ;;  %v715_v40 = vmul.f32 %v7092_v17, %v6002_v39 }
 0x2de   : > { %4410 = vst [vmem:[#allocation2 + $0x42] sm:$0xff] %v4390_v37  ;;  %v1758_v32 = vld [vmem:[#allocation2 + $0xa6] sm:$0xff]  ;;  %v4451_v50 = vmul.f32 %v7246_v52, %v8886_v27 }
 0x2df   : > { %4411 = vst [vmem:[#allocation2 + $0x4a] sm:$0x3] %v4391_v3  ;;  %v2804_v62 = vld [vmem:[#allocation2 + $0x50] sm:$0xff]  ;;  %v1799_v51 = vadd.f32 %v1779_v34, %v1758_v32 }
 0x2e0   : > { %v2805_v42 = vld [vmem:[#allocation2 + $0x58] sm:$0x3]  ;;  %v2845_v15 = vadd.f32 %v2825_v38, %v2804_v62  ;;  %674 = vst [vmem:[#allocation2 + $0x7e] sm:$0x3] %v654_v19  ;;  %v4452_v19 = vmul.f32 %v7144_v49, %v8886_v27  ;;  %v1861_v62 = vmul.f32 %v7230_v21, %v6445_v58 }
 0x2e1   : > { %v2735_v45 = vld [vmem:[#allocation2 + $0xb1] sm:$0xff]  ;;  %v2846_v7 = vadd.f32 %v2826_v47, %v2805_v42  ;;  %1819 = vst [vmem:[#allocation2 + $0xa6] sm:$0xff] %v1799_v51  ;;  %v2909_v42 = vmul.f32 %v7166_v22, %v8884_v57 }
 0x2e2   : > { %v2736_v10 = vld [vmem:[#allocation2 + $0xb9] sm:$0x3]  ;;  %v2776_v61 = vadd.f32 %v2756_v53, %v2735_v45  ;;  %2865 = vst [vmem:[#allocation2 + $0x50] sm:$0xff] %v2845_v15 }
 0x2e3   : > { %v2777_v24 = vadd.f32 %v2757_v30, %v2736_v10  ;;  %2866 = vst [vmem:[#allocation2 + $0x58] sm:$0x3] %v2846_v7  ;;  %v2837_v30 = vmul.f32 %v7235_v31, %v8853_v59  ;;  %v795_v10 = vmul.f32 %v7348_v56, %v6036_v29 }
 0x2e4   : > { %2796 = vst [vmem:[#allocation2 + $0xb1] sm:$0xff] %v2776_v61  ;;  %v1180_v26 = vld [vmem:[#allocation2 + $0x66] sm:$0xff] }
 0x2e5   : > { %v4430_v37 = vld [vmem:[#allocation2 + $0x41] sm:$0xff]  ;;  %2797 = vst [vmem:[#allocation2 + $0xb9] sm:$0x3] %v2777_v24  ;;  %v1221_v3 = vadd.f32 %v1201_v36, %v1180_v26 }
 0x2e6   : > { %v4431_v34 = vld [vmem:[#allocation2 + $0x49] sm:$0x3]  ;;  %v4471_v38 = vadd.f32 %v4451_v50, %v4430_v37  ;;  %754 = vst [vmem:[#allocation2 + $0x75] sm:$0xff] %v734_v13  ;;  %v2838_v13 = vmul.f32 %v7261_v2, %v8853_v59  ;;  %v5516_v37 = vld [vmem:[%s8650_s2 + $0x30] ss:$0 sm:$0xff] }
 0x2e7   : > { %v4472_v32 = vadd.f32 %v4452_v19, %v4431_v34  ;;  %1241 = vst [vmem:[#allocation2 + $0x66] sm:$0xff] %v1221_v3  ;;  %v694_v47 = vld [vmem:[#allocation2 + $0x7d] sm:$0x3]  ;;  %v4532_v19 = vmul.f32 %v5516_v37, %v7246_v52  ;;  %v1283_v34 = vmul.f32 %v7092_v17, %v6278_v23 }
 0x2e8   : > { %4491 = vst [vmem:[#allocation2 + $0x41] sm:$0xff] %v4471_v38  ;;  %v1839_v51 = vld [vmem:[#allocation2 + $0xa5] sm:$0xff]  ;;  %v1840_v16 = vld [vmem:[#allocation2 + $0xad] sm:$0x3]  ;;  %v735_v53 = vadd.f32 %v715_v40, %v694_v47  ;;  %v1282_v40 = vmul.f32 %v7348_v56, %v6278_v23 }
 0x2e9   : > { %4492 = vst [vmem:[#allocation2 + $0x49] sm:$0x3] %v4472_v32  ;;  %v1880_v15 = vadd.f32 %v1860_v54, %v1839_v51  ;;  %v1881_v45 = vadd.f32 %v1861_v62, %v1840_v16  ;;  %v4533_v32 = vmul.f32 %v5516_v37, %v7144_v49  ;;  %v7404_v37 = vld [vmem:[%s5871_s13 + $0x90] sm:$0xff] }
 0x2ea   : > { %v2888_v7 = vld [vmem:[#allocation2 + $0x56] sm:$0xff]  ;;  %755 = vst [vmem:[#allocation2 + $0x7d] sm:$0x3] %v735_v53 }
 0x2eb   : > { %v2816_v61 = vld [vmem:[#allocation2 + $0xb0] sm:$0xff]  ;;  %v2929_v24 = vadd.f32 %v2909_v42, %v2888_v7  ;;  %1900 = vst [vmem:[#allocation2 + $0xa5] sm:$0xff] %v1880_v15  ;;  %v8887_v42 = vld [vmem:[#allocation47_spill] sm:$0xff]  ;;  %v7394_v7 = vld [vmem:[%s5871_s13 + $0x38] sm:$0x3] }
 0x2ec   : > { %v2817_v36 = vld [vmem:[#allocation2 + $0xb8] sm:$0x3]  ;;  %v2857_v50 = vadd.f32 %v2837_v30, %v2816_v61  ;;  %1901 = vst [vmem:[#allocation2 + $0xad] sm:$0x3] %v1881_v45  ;;  %v1941_v52 = vmul.f32 %v7341_v44, %v8887_v42  ;;  %v1942_v15 = vmul.f32 %v7230_v21, %v8887_v42  ;;  %v8888_v45 = vld [vmem:[#allocation16_spill] sm:$0xff] }
 0x2ed   : > { %v2858_v26 = vadd.f32 %v2838_v13, %v2817_v36  ;;  %2949 = vst [vmem:[#allocation2 + $0x56] sm:$0xff] %v2929_v24  ;;  %v774_v31 = vld [vmem:[#allocation2 + $0x74] sm:$0xff]  ;;  %v2990_v30 = vmul.f32 %v7166_v22, %v8888_v45 }
 0x2ee   : > { %2877 = vst [vmem:[#allocation2 + $0xb0] sm:$0xff] %v2857_v50  ;;  %v1261_v3 = vld [vmem:[#allocation2 + $0x65] sm:$0xff]  ;;  %v1262_v2 = vld [vmem:[#allocation2 + $0x6d] sm:$0x3]  ;;  %v815_v38 = vadd.f32 %v795_v10, %v774_v31  ;;  %v2991_v10 = vmul.f32 %v7394_v7, %v8888_v45 }
 0x2ef   : > { %v4511_v54 = vld [vmem:[#allocation2 + $0x40] sm:$0xff]  ;;  %2878 = vst [vmem:[#allocation2 + $0xb8] sm:$0x3] %v2858_v26  ;;  %v1302_v62 = vadd.f32 %v1282_v40, %v1261_v3  ;;  %v1303_v16 = vadd.f32 %v1283_v34, %v1262_v2  ;;  %v7399_v40 = vld [vmem:[%s5871_s13 + $0x78] sm:$0x3] }
 0x2f0   : > { %v4512_v47 = vld [vmem:[#allocation2 + $0x48] sm:$0x3]  ;;  %v4552_v51 = vadd.f32 %v4532_v19, %v4511_v54  ;;  %835 = vst [vmem:[#allocation2 + $0x74] sm:$0xff] %v815_v38  ;;  %v2350_v31 = vmul.f32 %v7399_v40, %v6174_v8  ;;  %v2921_v19 = vmul.f32 %v7404_v37, %v8884_v57  ;;  %v7409_v54 = vld [vmem:[%s5871_s13 + $0x18] sm:$0x3] }
 0x2f1   : > { %v4553_v53 = vadd.f32 %v4533_v32, %v4512_v47  ;;  %1322 = vst [vmem:[#allocation2 + $0x65] sm:$0xff] %v1302_v62  ;;  %v775_v34 = vld [vmem:[#allocation2 + $0x7c] sm:$0x3]  ;;  %v796_v62 = vmul.f32 %v7409_v54, %v6036_v29 }
 0x2f2   : > { %4572 = vst [vmem:[#allocation2 + $0x40] sm:$0xff] %v4552_v51  ;;  %4632 = vadd.xlane.f32.xlu2 %v4552_v51  ;;  %v1920_v17 = vld [vmem:[#allocation2 + $0xa4] sm:$0xff]  ;;  %v1363_v51 = vmul.f32 %v7348_v56, %v6315_v18 }
 0x2f3   : > { %4573 = vst [vmem:[#allocation2 + $0x48] sm:$0x3] %v4553_v53  ;;  %v1921_v61 = vld [vmem:[#allocation2 + $0xac] sm:$0x3]  ;;  %v1961_v13 = vadd.f32 %v1941_v52, %v1920_v17  ;;  %v2329_v24 = vld [vmem:[#allocation2 + $0xae] sm:$0x3]  ;;  %v876_v53 = vmul.f32 %v7348_v56, %v8861_v25  ;;  %v816_v17 = vadd.f32 %v796_v62, %v775_v34 }
 0x2f4   : > { %v2969_v36 = vld [vmem:[#allocation2 + $0x55] sm:$0xff]  ;;  %v2970_v50 = vld [vmem:[#allocation2 + $0x5d] sm:$0x3]  ;;  %v1962_v26 = vadd.f32 %v1942_v15, %v1921_v61  ;;  %1323 = vst [vmem:[#allocation2 + $0x6d] sm:$0x3] %v1303_v16  ;;  %v2370_v32 = vadd.f32 %v2350_v31, %v2329_v24 }
 0x2f5   : > { %v3010_v3 = vadd.f32 %v2990_v30, %v2969_v36  ;;  %v3011_v2 = vadd.f32 %v2991_v10, %v2970_v50  ;;  %1981 = vst [vmem:[#allocation2 + $0xa4] sm:$0xff] %v1961_v13  ;;  %v7417_v10 = vpop.xlane.xlu0 %4676  ;;  %v1364_v13 = vmul.f32 %v7409_v54, %v6315_v18  ;;  %v8890_v24 = vld [vmem:[#allocation49_spill] sm:$0xff] }
 0x2f6   : > { %v2900_v38 = vld [vmem:[#allocation2 + $0xb6] sm:$0xff]  ;;  %1982 = vst [vmem:[#allocation2 + $0xac] sm:$0x3] %v1962_v26  ;;  %v2022_v36 = vmul.f32 %v7341_v44, %v8890_v24  ;;  %v2023_v31 = vmul.f32 %v7230_v21, %v8890_v24 }
 0x2f7   : > { %v2941_v47 = vadd.f32 %v2921_v19, %v2900_v38  ;;  %3030 = vst [vmem:[#allocation2 + $0x55] sm:$0xff] %v3010_v3  ;;  %v855_v16 = vld [vmem:[#allocation2 + $0x73] sm:$0xff] }
 0x2f8   : > { %3031 = vst [vmem:[#allocation2 + $0x5d] sm:$0x3] %v3011_v2  ;;  %v1342_v52 = vld [vmem:[#allocation2 + $0x64] sm:$0xff]  ;;  %v896_v30 = vadd.f32 %v876_v53, %v855_v16  ;;  %v8891_v3 = vld [vmem:[#allocation20_spill] sm:$0xff]  ;;  %v3002_v16 = vmul.f32 %v7404_v37, %v8888_v45  ;;  %v3003_v53 = vmul.f32 %v7126_v60, %v8888_v45  ;;  %v1772_v60 = vmul.f32 %v7322_v6, %v6382_v11 }
 0x2f9   : > { %2961 = vst [vmem:[#allocation2 + $0xb6] sm:$0xff] %v2941_v47  ;;  %v1383_v15 = vadd.f32 %v1363_v51, %v1342_v52  ;;  %v3071_v2 = vmul.f32 %v7166_v22, %v8891_v3  ;;  %v3072_v62 = vmul.f32 %v7394_v7, %v8891_v3 }
 0x2fa   : > { %8889 = vst [vmem:[#allocation31_spill] sm:$0xff] %v7417_v10  ;;  %v4593_v61 = vld [vmem:[#allocation2 + $0x48] sm:$0xff]  ;;  %v8896_v10 = vld [vmem:[#allocation58_spill] sm:$0xff] }
 0x2fb   : > { %2390 = vst [vmem:[#allocation2 + $0xae] sm:$0x3] %v2370_v32  ;;  %4634 = vadd.xlane.f32.xlu0 %v4593_v61  ;;  %v1343_v50 = vld [vmem:[#allocation2 + $0x6c] sm:$0x3]  ;;  %v1751_v51 = vld [vmem:[#allocation2 + $0x6e] sm:$0x3] }
 0x2fc   : > { %1403 = vst [vmem:[#allocation2 + $0x64] sm:$0xff] %v1383_v15  ;;  %v2001_v26 = vld [vmem:[#allocation2 + $0xa3] sm:$0xff]  ;;  %v1384_v19 = vadd.f32 %v1364_v13, %v1343_v50 }
 0x2fd   : > { %836 = vst [vmem:[#allocation2 + $0x7c] sm:$0x3] %v816_v17  ;;  %v2002_v34 = vld [vmem:[#allocation2 + $0xab] sm:$0x3]  ;;  %v2042_v38 = vadd.f32 %v2022_v36, %v2001_v26  ;;  %v1444_v26 = vmul.f32 %v7348_v56, %v6346_v63 }
 0x2fe   : > { %916 = vst [vmem:[#allocation2 + $0x73] sm:$0xff] %v896_v30  ;;  %v3050_v32 = vld [vmem:[#allocation2 + $0x54] sm:$0xff]  ;;  %v2043_v47 = vadd.f32 %v2023_v31, %v2002_v34  ;;  %v8892_v61 = vld [vmem:[#allocation7_spill] sm:$0xff] }
 0x2ff   : > { %1404 = vst [vmem:[#allocation2 + $0x6c] sm:$0x3] %v1384_v19  ;;  %v3051_v52 = vld [vmem:[#allocation2 + $0x5c] sm:$0x3]  ;;  %v3091_v17 = vadd.f32 %v3071_v2, %v3050_v32  ;;  %v3459_v15 = vld [vmem:[#allocation2 + $0x5e] sm:$0x3]  ;;  %v3480_v13 = vmul.f32 %v7144_v49, %v8892_v61  ;;  %v7439_v2 = vpop.permute.xlu0 %4992 }
 0x300   : > { %2062 = vst [vmem:[#allocation2 + $0xa3] sm:$0xff] %v2042_v38  ;;  %v2981_v30 = vld [vmem:[#allocation2 + $0xb5] sm:$0xff]  ;;  %v2982_v36 = vld [vmem:[#allocation2 + $0xbd] sm:$0x3]  ;;  %v3092_v50 = vadd.f32 %v3072_v62, %v3051_v52  ;;  %v1792_v38 = vadd.f32 %v1772_v60, %v1751_v51  ;;  %v1445_v62 = vmul.f32 %v7409_v54, %v6346_v63 }
 0x301   : > { %2063 = vst [vmem:[#allocation2 + $0xab] sm:$0x3] %v2043_v47  ;;  %v3022_v31 = vadd.f32 %v3002_v16, %v2981_v30  ;;  %v3023_v19 = vadd.f32 %v3003_v53, %v2982_v36  ;;  %v3500_v34 = vadd.f32 %v3480_v13, %v3459_v15  ;;  %v8894_v47 = vld [vmem:[#allocation51_spill] sm:$0xff] }
 0x302   : > { %3111 = vst [vmem:[#allocation2 + $0x54] sm:$0xff] %v3091_v17  ;;  %v2103_v16 = vmul.f32 %v7341_v44, %v8894_v47  ;;  %v2104_v17 = vmul.f32 %v7230_v21, %v8894_v47  ;;  %v8895_v13 = vld [vmem:[#allocation23_spill] sm:$0xff] }
 0x303   : > { %8893 = vst [vmem:[#allocation27_spill] sm:$0xff] %v7439_v2  ;;  %v1423_v32 = vld [vmem:[#allocation2 + $0x63] sm:$0xff]  ;;  %v3152_v30 = vmul.f32 %v7166_v22, %v8895_v13  ;;  %v877_v22 = vmul.f32 %v7409_v54, %v8861_v25 }
 0x304   : > { %3112 = vst [vmem:[#allocation2 + $0x5c] sm:$0x3] %v3092_v50  ;;  %v1464_v49 = vadd.f32 %v1444_v26, %v1423_v32  ;;  %v3153_v26 = vmul.f32 %v7394_v7, %v8895_v13 }
 0x305   : > { %3042 = vst [vmem:[#allocation2 + $0xb5] sm:$0xff] %v3022_v31 }
 0x306   : > { %3043 = vst [vmem:[#allocation2 + $0xbd] sm:$0x3] %v3023_v19  ;;  %v1424_v53 = vld [vmem:[#allocation2 + $0x6b] sm:$0x3]  ;;  %v856_v19 = vld [vmem:[#allocation2 + $0x7b] sm:$0x3] }
 0x307   : > { %3520 = vst [vmem:[#allocation2 + $0x5e] sm:$0x3] %v3500_v34  ;;  %v2082_v52 = vld [vmem:[#allocation2 + $0xa2] sm:$0xff]  ;;  %v1465_v15 = vadd.f32 %v1445_v62, %v1424_v53  ;;  %v3083_v34 = vmul.f32 %v7404_v37, %v8891_v3 }
 0x308   : > { %1484 = vst [vmem:[#allocation2 + $0x63] sm:$0xff] %v1464_v49  ;;  %v2083_v51 = vld [vmem:[#allocation2 + $0xaa] sm:$0x3]  ;;  %v2123_v36 = vadd.f32 %v2103_v16, %v2082_v52  ;;  %v4671_v49 = vpop.xlane.xlu0 %4670  ;;  %v7456_v16 = vld [vmem:[%s5871_s13 + $0x98] sm:$0x3] }
 0x309   : > { %1812 = vst [vmem:[#allocation2 + $0x6e] sm:$0x3] %v1792_v38  ;;  %v3131_v50 = vld [vmem:[#allocation2 + $0x53] sm:$0xff]  ;;  %v2124_v31 = vadd.f32 %v2104_v17, %v2083_v51  ;;  %v3084_v38 = vmul.f32 %v7456_v16, %v8891_v3  ;;  %v897_v51 = vadd.f32 %v877_v22, %v856_v19  ;;  %v4951_v27 = vmul.f32 %v8896_v10, %v4671_v49  ;;  %v8898_v49 = vld [vmem:[#allocation26_spill] sm:$0xff] }
 0x30a   : > { %1485 = vst [vmem:[#allocation2 + $0x6b] sm:$0x3] %v1465_v15  ;;  %v3172_v32 = vadd.f32 %v3152_v30, %v3131_v50  ;;  %v936_v52 = vld [vmem:[#allocation2 + $0x72] sm:$0xff]  ;;  %v957_v30 = vmul.f32 %v7348_v56, %v8866_v14  ;;  %v1525_v50 = vmul.f32 %v7348_v56, %v6374_v1 }
 0x30b   : > { %v3132_v60 = vld [vmem:[#allocation2 + $0x5b] sm:$0x3]  ;;  %2143 = vst [vmem:[#allocation2 + $0xa2] sm:$0xff] %v2123_v36  ;;  %v7472_v10 = vld [vmem:[%s5871_s13 + $0x30] sm:$0xff] }
 0x30c   : > { %v3062_v62 = vld [vmem:[#allocation2 + $0xb4] sm:$0xff]  ;;  %v3173_v53 = vadd.f32 %v3153_v26, %v3132_v60  ;;  %2144 = vst [vmem:[#allocation2 + $0xaa] sm:$0x3] %v2124_v31  ;;  %v977_v26 = vadd.f32 %v957_v30, %v936_v52  ;;  %v1526_v31 = vmul.f32 %v7409_v54, %v6374_v1 }
 0x30d   : > { %v3063_v17 = vld [vmem:[#allocation2 + $0xbc] sm:$0x3]  ;;  %v3103_v15 = vadd.f32 %v3083_v34, %v3062_v62  ;;  %3192 = vst [vmem:[#allocation2 + $0x53] sm:$0xff] %v3172_v32 }
 0x30e   : > { %v3104_v36 = vadd.f32 %v3084_v38, %v3063_v17  ;;  %3193 = vst [vmem:[#allocation2 + $0x5b] sm:$0x3] %v3173_v53  ;;  %v8897_v19 = vld [vmem:[#allocation53_spill] sm:$0xff]  ;;  %v3233_v53 = vmul.f32 %v7472_v10, %v8898_v49 }
 0x30f   : > { %3123 = vst [vmem:[#allocation2 + $0xb4] sm:$0xff] %v3103_v15  ;;  %v1504_v2 = vld [vmem:[#allocation2 + $0x62] sm:$0xff]  ;;  %5070 = vperm.xlu0 %5460, %v4951_v27   ;;  %v2184_v60 = vmul.f32 %v7341_v44, %v8897_v19  ;;  %v2185_v62 = vmul.f32 %v7230_v21, %v8897_v19 }
 0x310   : > { %3124 = vst [vmem:[#allocation2 + $0xbc] sm:$0x3] %v3104_v36  ;;  %v1545_v34 = vadd.f32 %v1525_v50, %v1504_v2  ;;  %v3234_v2 = vmul.f32 %v7394_v7, %v8898_v49 }
 0x311   : > { %v1505_v32 = vld [vmem:[#allocation2 + $0x6a] sm:$0x3]  ;;  %917 = vst [vmem:[#allocation2 + $0x7b] sm:$0x3] %v897_v51  ;;  %v3164_v51 = vmul.f32 %v7404_v37, %v8895_v13 }
 0x312   : > { %v2163_v22 = vld [vmem:[#allocation2 + $0xa1] sm:$0xff]  ;;  %v1546_v38 = vadd.f32 %v1526_v31, %v1505_v32  ;;  %1565 = vst [vmem:[#allocation2 + $0x62] sm:$0xff] %v1545_v34  ;;  %v3165_v31 = vmul.f32 %v7456_v16, %v8895_v13  ;;  %v958_v32 = vmul.f32 %v7409_v54, %v8866_v14 }
 0x313   : > { %v2164_v52 = vld [vmem:[#allocation2 + $0xa9] sm:$0x3]  ;;  %v2204_v17 = vadd.f32 %v2184_v60, %v2163_v22  ;;  %997 = vst [vmem:[#allocation2 + $0x72] sm:$0xff] %v977_v26  ;;  %v7484_v22 = vpop.permute.xlu2 %4995 }
 0x314   : > { %v3212_v27 = vld [vmem:[#allocation2 + $0x52] sm:$0xff]  ;;  %v2205_v15 = vadd.f32 %v2185_v62, %v2164_v52  ;;  %1566 = vst [vmem:[#allocation2 + $0x6a] sm:$0x3] %v1546_v38  ;;  %v1606_v38 = vmul.f32 %v7348_v56, %v6422_v28 }
 0x315   : > { %v3213_v30 = vld [vmem:[#allocation2 + $0x5a] sm:$0x3]  ;;  %v3253_v36 = vadd.f32 %v3233_v53, %v3212_v27  ;;  %2224 = vst [vmem:[#allocation2 + $0xa1] sm:$0xff] %v2204_v17  ;;  %v1038_v27 = vmul.f32 %v7348_v56, %v8871_v0 }
 0x316   : > { %v3143_v50 = vld [vmem:[#allocation2 + $0xb3] sm:$0xff]  ;;  %v3254_v34 = vadd.f32 %v3234_v2, %v3213_v30  ;;  %2225 = vst [vmem:[#allocation2 + $0xa9] sm:$0x3] %v2205_v15  ;;  %v1607_v2 = vmul.f32 %v7409_v54, %v6422_v28  ;;  %v8900_v30 = vld [vmem:[#allocation55_spill] sm:$0xff] }
 0x317   : > { %v3144_v60 = vld [vmem:[#allocation2 + $0xbb] sm:$0x3]  ;;  %v3184_v26 = vadd.f32 %v3164_v51, %v3143_v50  ;;  %3273 = vst [vmem:[#allocation2 + $0x52] sm:$0xff] %v3253_v36  ;;  %v2265_v36 = vmul.f32 %v7341_v44, %v8900_v30 }
 0x318   : > { %8899 = vst [vmem:[#allocation32_spill] sm:$0xff] %v7484_v22  ;;  %v3185_v62 = vadd.f32 %v3165_v31, %v3144_v60  ;;  %v937_v53 = vld [vmem:[#allocation2 + $0x7a] sm:$0x3]  ;;  %v2266_v60 = vmul.f32 %v7230_v21, %v8900_v30  ;;  %v3245_v21 = vmul.f32 %v7404_v37, %v8898_v49 }
 0x319   : > { %3274 = vst [vmem:[#allocation2 + $0x5a] sm:$0x3] %v3254_v34  ;;  %v1585_v52 = vld [vmem:[#allocation2 + $0x61] sm:$0xff]  ;;  %v978_v17 = vadd.f32 %v958_v32, %v937_v53  ;;  %v8901_v32 = vld [vmem:[#allocation28_spill] sm:$0xff] }
 0x31a   : > { %3204 = vst [vmem:[#allocation2 + $0xb3] sm:$0xff] %v3184_v26  ;;  %v1626_v15 = vadd.f32 %v1606_v38, %v1585_v52  ;;  %v1017_v51 = vld [vmem:[#allocation2 + $0x71] sm:$0xff]  ;;  %v3315_v52 = vmul.f32 %v7394_v7, %v8901_v32 }
 0x31b   : > { %3205 = vst [vmem:[#allocation2 + $0xbb] sm:$0x3] %v3185_v62  ;;  %v1586_v50 = vld [vmem:[#allocation2 + $0x69] sm:$0x3]  ;;  %v1058_v31 = vadd.f32 %v1038_v27, %v1017_v51  ;;  %v3314_v62 = vmul.f32 %v7472_v10, %v8901_v32 }
 0x31c   : > { %998 = vst [vmem:[#allocation2 + $0x7a] sm:$0x3] %v978_v17  ;;  %v2244_v34 = vld [vmem:[#allocation2 + $0xa0] sm:$0xff]  ;;  %v1627_v26 = vadd.f32 %v1607_v2, %v1586_v50  ;;  %v8902_v17 = vlaneseq  ;;  %v7507_v50 = vpop.permute.xlu2 %5073 }
 0x31d   : > { %1646 = vst [vmem:[#allocation2 + $0x61] sm:$0xff] %v1626_v15  ;;  %v2245_v53 = vld [vmem:[#allocation2 + $0xa8] sm:$0x3]  ;;  %v2285_v22 = vadd.f32 %v2265_v36, %v2244_v34  ;;  %v3246_v36 = vmul.f32 %v7456_v16, %v8898_v49 }
 0x31e   : > { %1078 = vst [vmem:[#allocation2 + $0x71] sm:$0xff] %v1058_v31  ;;  %v3293_v38 = vld [vmem:[#allocation2 + $0x51] sm:$0xff]  ;;  %v2286_v44 = vadd.f32 %v2266_v60, %v2245_v53  ;;  %v7501_v27 = vand.u32 127, %v8902_v17  ;;  %v4629_v53 = vpop.xlane.xlu0 %4628  ;;  %v1039_v17 = vmul.f32 %v7409_v54, %v8871_v0 }
 0x31f   : > { %1647 = vst [vmem:[#allocation2 + $0x69] sm:$0x3] %v1627_v26  ;;  %v3334_v15 = vadd.f32 %v3314_v62, %v3293_v38  ;;  %v8905_v38 = vld [vmem:[#allocation63_spill] sm:$0xff] }
 0x320   : > { %8903 = vst [vmem:[#allocation33_spill] sm:$0xff] %v7501_v27  ;;  %v3294_v2 = vld [vmem:[#allocation2 + $0x59] sm:$0x3]  ;;  %v4930_v46 = vmul.f32 %v8905_v38, %v4629_v53  ;;  %v617_v27 = vld [vmem:[#allocation2 + $0x9e] sm:$0x3] }
 0x321   : > { %2305 = vst [vmem:[#allocation2 + $0xa0] sm:$0xff] %v2285_v22  ;;  %v3224_v51 = vld [vmem:[#allocation2 + $0xb2] sm:$0xff]  ;;  %v3335_v31 = vadd.f32 %v3315_v52, %v3294_v2  ;;  %v1204_v22 = vmul.f32 %v7322_v6, %v6119_v5  ;;  %v1687_v52 = vmul.f32 %v7348_v56, %v6460_v41 }
 0x322   : > { %8904 = vst [vmem:[#allocation62_spill] sm:$0xff] %v7507_v50  ;;  %v3225_v34 = vld [vmem:[#allocation2 + $0xba] sm:$0x3]  ;;  %v3265_v60 = vadd.f32 %v3245_v21, %v3224_v51  ;;  %v1183_v21 = vld [vmem:[#allocation2 + $0x7e] sm:$0x3]  ;;  %5007 = vperm.xlu0 %5460, %v4930_v46   ;;  %v7523_v50 = vld [vmem:[%s5871_s13 + $0x70] sm:$0xff] }
 0x323   : > { %2306 = vst [vmem:[#allocation2 + $0xa8] sm:$0x3] %v2286_v44  ;;  %v3266_v62 = vadd.f32 %v3246_v36, %v3225_v34  ;;  %v1018_v44 = vld [vmem:[#allocation2 + $0x79] sm:$0x3]  ;;  %v1688_v36 = vmul.f32 %v7409_v54, %v6460_v41  ;;  %v1224_v26 = vadd.f32 %v1204_v22, %v1183_v21  ;;  %v637_v22 = vmul.f32 %v7472_v10, %v8868_v48 }
 0x324   : > { %3354 = vst [vmem:[#allocation2 + $0x51] sm:$0xff] %v3334_v15  ;;  %v1666_v2 = vld [vmem:[#allocation2 + $0x60] sm:$0xff]  ;;  %v1059_v51 = vadd.f32 %v1039_v17, %v1018_v44  ;;  %v1119_v15 = vmul.f32 %v7348_v56, %v6190_v4  ;;  %v8906_v44 = vld [vmem:[#allocation29_spill] sm:$0xff]  ;;  %v3326_v21 = vmul.f32 %v7404_v37, %v8901_v32 }
 0x325   : > { %3355 = vst [vmem:[#allocation2 + $0x59] sm:$0x3] %v3335_v31  ;;  %v1707_v34 = vadd.f32 %v1687_v52, %v1666_v2  ;;  %v1098_v53 = vld [vmem:[#allocation2 + $0x70] sm:$0xff]  ;;  %v3395_v56 = vmul.f32 %v7472_v10, %v8906_v44  ;;  %v3396_v52 = vmul.f32 %v7394_v7, %v8906_v44 }
 0x326   : > { %3285 = vst [vmem:[#allocation2 + $0xb2] sm:$0xff] %v3265_v60  ;;  %v1667_v31 = vld [vmem:[#allocation2 + $0x68] sm:$0x3]  ;;  %v1139_v38 = vadd.f32 %v1119_v15, %v1098_v53  ;;  %v2349_v60 = vmul.f32 %v7523_v50, %v6174_v8  ;;  %v638_v53 = vmul.f32 %v7394_v7, %v8868_v48 }
 0x327   : > { %3286 = vst [vmem:[#allocation2 + $0xba] sm:$0x3] %v3266_v62  ;;  %v1708_v17 = vadd.f32 %v1688_v36, %v1667_v31 }
 0x328   : > { %1079 = vst [vmem:[#allocation2 + $0x79] sm:$0x3] %v1059_v51  ;;  %v4665_v51 = vpop.xlane.xlu0 %4664  ;;  %v658_v13 = vadd.f32 %v638_v53, %v617_v27  ;;  %v7552_v27 = vld [vmem:[%s5871_s13 + $0x40] sm:$0xff] }
 0x329   : > { %1727 = vst [vmem:[#allocation2 + $0x60] sm:$0xff] %v1707_v34  ;;  %v616_v34 = vld [vmem:[#allocation2 + $0x96] sm:$0xff] }
 0x32a   : > { %v2328_v46 = vld [vmem:[#allocation2 + $0xa6] sm:$0xff]  ;;  %1159 = vst [vmem:[#allocation2 + $0x70] sm:$0xff] %v1139_v38  ;;  %v3327_v38 = vmul.f32 %v7456_v16, %v8901_v32  ;;  %v657_v33 = vadd.f32 %v637_v22, %v616_v34 }
 0x32b   : > { %v3374_v62 = vld [vmem:[#allocation2 + $0x50] sm:$0xff]  ;;  %v2369_v2 = vadd.f32 %v2349_v60, %v2328_v46  ;;  %1728 = vst [vmem:[#allocation2 + $0x68] sm:$0x3] %v1708_v17  ;;  %v8907_v60 = vld [vmem:[#allocation22_spill] sm:$0xff] }
 0x32c   : > { %v3375_v15 = vld [vmem:[#allocation2 + $0x58] sm:$0x3]  ;;  %v3415_v36 = vadd.f32 %v3395_v56, %v3374_v62  ;;  %1244 = vst [vmem:[#allocation2 + $0x7e] sm:$0x3] %v1224_v26  ;;  %v4948_v17 = vmul.f32 %v8907_v60, %v4665_v51  ;;  %v1120_v26 = vmul.f32 %v7409_v54, %v6190_v4  ;;  %v8908_v51 = vld [vmem:[#allocation30_spill] sm:$0xff] }
 0x32d   : > { %v3305_v31 = vld [vmem:[#allocation2 + $0xb1] sm:$0xff]  ;;  %v3416_v46 = vadd.f32 %v3396_v52, %v3375_v15  ;;  %2389 = vst [vmem:[#allocation2 + $0xa6] sm:$0xff] %v2369_v2  ;;  %v7543_v52 = vld [vmem:[%s5871_s13 + $0x20] sm:$0xff]  ;;  %v2430_v54 = vmul.f32 %v7523_v50, %v8908_v51 }
 0x32e   : > { %v3306_v55 = vld [vmem:[#allocation2 + $0xb9] sm:$0x3]  ;;  %v3346_v49 = vadd.f32 %v3326_v21, %v3305_v31  ;;  %3435 = vst [vmem:[#allocation2 + $0x50] sm:$0xff] %v3415_v36  ;;  %5061 = vperm.xlu0 %5460, %v4948_v17   ;;  %v1771_v2 = vmul.f32 %v7543_v52, %v6382_v11  ;;  %v3479_v36 = vmul.f32 %v7552_v27, %v8892_v61 }
 0x32f   : > { %v3347_v56 = vadd.f32 %v3327_v38, %v3306_v55  ;;  %3436 = vst [vmem:[#allocation2 + $0x58] sm:$0x3] %v3416_v46  ;;  %v1099_v62 = vld [vmem:[#allocation2 + $0x78] sm:$0x3]  ;;  %v2431_v55 = vmul.f32 %v7399_v40, %v8908_v51  ;;  %v3408_v38 = vmul.f32 %v7456_v16, %v8906_v44 }
 0x330   : > { %3366 = vst [vmem:[#allocation2 + $0xb1] sm:$0xff] %v3346_v49  ;;  %v1140_v32 = vadd.f32 %v1120_v26, %v1099_v62  ;;  %v1203_v26 = vmul.f32 %v7543_v52, %v6119_v5 }
 0x331   : > { %3367 = vst [vmem:[#allocation2 + $0xb9] sm:$0x3] %v3347_v56  ;;  %v719_v56 = vmul.f32 %v7394_v7, %v6002_v39 }
 0x332   : > { %v1750_v21 = vld [vmem:[#allocation2 + $0x66] sm:$0xff]  ;;  %1160 = vst [vmem:[#allocation2 + $0x78] sm:$0x3] %v1140_v32  ;;  %v3407_v32 = vmul.f32 %v7404_v37, %v8906_v44 }
 0x333   : > { %v1791_v15 = vadd.f32 %v1771_v2, %v1750_v21  ;;  %677 = vst [vmem:[#allocation2 + $0x96] sm:$0xff] %v657_v33 }
 0x334   : > { %v2409_v22 = vld [vmem:[#allocation2 + $0xa5] sm:$0xff]  ;;  %v2410_v49 = vld [vmem:[#allocation2 + $0xad] sm:$0x3]  ;;  %678 = vst [vmem:[#allocation2 + $0x9e] sm:$0x3] %v658_v13  ;;  %v718_v13 = vmul.f32 %v7472_v10, %v6002_v39 }
 0x335   : > { %v2450_v34 = vadd.f32 %v2430_v54, %v2409_v22  ;;  %v2451_v53 = vadd.f32 %v2431_v55, %v2410_v49  ;;  %1811 = vst [vmem:[#allocation2 + $0x66] sm:$0xff] %v1791_v15  ;;  %v1852_v54 = vmul.f32 %v7543_v52, %v6445_v58  ;;  %v1853_v55 = vmul.f32 %v7322_v6, %v6445_v58 }
 0x336   : > { %v3458_v31 = vld [vmem:[#allocation2 + $0x56] sm:$0xff] }
 0x337   : > { %v3386_v60 = vld [vmem:[#allocation2 + $0xb0] sm:$0xff]  ;;  %v3499_v33 = vadd.f32 %v3479_v36, %v3458_v31  ;;  %2470 = vst [vmem:[#allocation2 + $0xa5] sm:$0xff] %v2450_v34 }
 0x338   : > { %v3387_v17 = vld [vmem:[#allocation2 + $0xb8] sm:$0x3]  ;;  %v3427_v46 = vadd.f32 %v3407_v32, %v3386_v60  ;;  %2471 = vst [vmem:[#allocation2 + $0xad] sm:$0x3] %v2451_v53  ;;  %v2511_v53 = vmul.f32 %v7523_v50, %v8870_v20  ;;  %v2512_v60 = vmul.f32 %v7399_v40, %v8870_v20 }
 0x339   : > { %v3428_v37 = vadd.f32 %v3408_v38, %v3387_v17  ;;  %3519 = vst [vmem:[#allocation2 + $0x56] sm:$0xff] %v3499_v33  ;;  %v1182_v62 = vld [vmem:[#allocation2 + $0x76] sm:$0xff]  ;;  %v8909_v33 = vld [vmem:[#allocation10_spill] sm:$0xff] }
 0x33a   : > { %3447 = vst [vmem:[#allocation2 + $0xb0] sm:$0xff] %v3427_v46  ;;  %4660 = vadd.xlane.f32.xlu1 %v3427_v46  ;;  %v1223_v2 = vadd.f32 %v1203_v26, %v1182_v62  ;;  %v697_v21 = vld [vmem:[#allocation2 + $0x95] sm:$0xff]  ;;  %v3560_v17 = vmul.f32 %v7552_v27, %v8909_v33  ;;  %v7582_v62 = vld [vmem:[%s5871_s13 + $0x88] sm:$0x3] }
 0x33b   : > { %3448 = vst [vmem:[#allocation2 + $0xb8] sm:$0x3] %v3428_v37  ;;  %v698_v15 = vld [vmem:[#allocation2 + $0x9d] sm:$0x3]  ;;  %v738_v22 = vadd.f32 %v718_v13, %v697_v21  ;;  %v7577_v13 = vld [vmem:[%s5871_s13 + $0x48] sm:$0x3] }
 0x33c   : > { %v1831_v49 = vld [vmem:[#allocation2 + $0x65] sm:$0xff]  ;;  %v1832_v36 = vld [vmem:[#allocation2 + $0x6d] sm:$0x3]  ;;  %1243 = vst [vmem:[#allocation2 + $0x76] sm:$0xff] %v1223_v2  ;;  %v739_v34 = vadd.f32 %v719_v56, %v698_v15  ;;  %v3561_v46 = vmul.f32 %v7577_v13, %v8909_v33  ;;  %v2920_v2 = vmul.f32 %v7582_v62, %v8884_v57  ;;  %v1527_v33 = vmul.f32 %v7543_v52, %v6374_v1 }
 0x33d   : > { %v1872_v32 = vadd.f32 %v1852_v54, %v1831_v49  ;;  %v1873_v31 = vadd.f32 %v1853_v55, %v1832_v36  ;;  %758 = vst [vmem:[#allocation2 + $0x95] sm:$0xff] %v738_v22  ;;  %v799_v36 = vmul.f32 %v7472_v10, %v6036_v29 }
 0x33e   : > { %v2490_v38 = vld [vmem:[#allocation2 + $0xa4] sm:$0xff]  ;;  %759 = vst [vmem:[#allocation2 + $0x9d] sm:$0x3] %v739_v34 }
 0x33f   : > { %v2491_v26 = vld [vmem:[#allocation2 + $0xac] sm:$0x3]  ;;  %v2531_v56 = vadd.f32 %v2511_v53, %v2490_v38  ;;  %v2899_v37 = vld [vmem:[#allocation2 + $0xae] sm:$0x3]  ;;  %1892 = vst [vmem:[#allocation2 + $0x65] sm:$0xff] %v1872_v32  ;;  %v1284_v53 = vmul.f32 %v7543_v52, %v6278_v23  ;;  %v1285_v38 = vmul.f32 %v7322_v6, %v6278_v23 }
 0x340   : > { %v3539_v21 = vld [vmem:[#allocation2 + $0x55] sm:$0xff]  ;;  %v3540_v54 = vld [vmem:[#allocation2 + $0x5d] sm:$0x3]  ;;  %v2532_v55 = vadd.f32 %v2512_v60, %v2491_v26  ;;  %1893 = vst [vmem:[#allocation2 + $0x6d] sm:$0x3] %v1873_v31  ;;  %v2940_v49 = vadd.f32 %v2920_v2, %v2899_v37  ;;  %v1933_v26 = vmul.f32 %v7543_v52, %v8887_v42  ;;  %v1934_v2 = vmul.f32 %v7322_v6, %v8887_v42 }
 0x341   : > { %v3580_v15 = vadd.f32 %v3560_v17, %v3539_v21  ;;  %v3581_v22 = vadd.f32 %v3561_v46, %v3540_v54  ;;  %2551 = vst [vmem:[#allocation2 + $0xa4] sm:$0xff] %v2531_v56  ;;  %v2592_v21 = vmul.f32 %v7523_v50, %v8874_v9 }
 0x342   : > { %v4607_v34 = vld [vmem:[#allocation2 + $0xb8] sm:$0xff]  ;;  %2552 = vst [vmem:[#allocation2 + $0xac] sm:$0x3] %v2532_v55 }
 0x343   : > { %4662 = vadd.xlane.f32.xlu2 %v4607_v34  ;;  %3600 = vst [vmem:[#allocation2 + $0x55] sm:$0xff] %v3580_v15  ;;  %v1263_v32 = vld [vmem:[#allocation2 + $0x75] sm:$0xff]  ;;  %v1264_v60 = vld [vmem:[#allocation2 + $0x7d] sm:$0x3] }
 0x344   : > { %3601 = vst [vmem:[#allocation2 + $0x5d] sm:$0x3] %v3581_v22  ;;  %v1304_v31 = vadd.f32 %v1284_v53, %v1263_v32  ;;  %v1305_v17 = vadd.f32 %v1285_v38, %v1264_v60  ;;  %v778_v46 = vld [vmem:[#allocation2 + $0x94] sm:$0xff]  ;;  %v2593_v22 = vmul.f32 %v7399_v40, %v8874_v9  ;;  %v2342_v60 = vmul.f32 %v7394_v7, %v6174_v8 }
 0x345   : > { %2960 = vst [vmem:[#allocation2 + $0xae] sm:$0x3] %v2940_v49  ;;  %v819_v56 = vadd.f32 %v799_v36, %v778_v46  ;;  %v8910_v53 = vld [vmem:[#allocation12_spill] sm:$0xff] }
 0x346   : > { %v1912_v37 = vld [vmem:[#allocation2 + $0x64] sm:$0xff]  ;;  %1324 = vst [vmem:[#allocation2 + $0x75] sm:$0xff] %v1304_v31  ;;  %v3641_v36 = vmul.f32 %v7552_v27, %v8910_v53 }
 0x347   : > { %v1913_v54 = vld [vmem:[#allocation2 + $0x6c] sm:$0x3]  ;;  %v1953_v55 = vadd.f32 %v1933_v26, %v1912_v37  ;;  %1325 = vst [vmem:[#allocation2 + $0x7d] sm:$0x3] %v1305_v17  ;;  %v2321_v34 = vld [vmem:[#allocation2 + $0x6e] sm:$0x3]  ;;  %v3642_v17 = vmul.f32 %v7577_v13, %v8910_v53 }
 0x348   : > { %v2571_v15 = vld [vmem:[#allocation2 + $0xa3] sm:$0xff]  ;;  %v1954_v49 = vadd.f32 %v1934_v2, %v1913_v54  ;;  %839 = vst [vmem:[#allocation2 + $0x94] sm:$0xff] %v819_v56  ;;  %v2362_v2 = vadd.f32 %v2342_v60, %v2321_v34  ;;  %v1365_v54 = vmul.f32 %v7543_v52, %v6315_v18  ;;  %v2014_v34 = vmul.f32 %v7543_v52, %v8890_v24 }
 0x349   : > { %v2572_v38 = vld [vmem:[#allocation2 + $0xab] sm:$0x3]  ;;  %v2612_v32 = vadd.f32 %v2592_v21, %v2571_v15  ;;  %1973 = vst [vmem:[#allocation2 + $0x64] sm:$0xff] %v1953_v55  ;;  %v1366_v55 = vmul.f32 %v7322_v6, %v6315_v18  ;;  %v1774_v15 = vmul.f32 %v7394_v7, %v6382_v11 }
 0x34a   : > { %v3620_v31 = vld [vmem:[#allocation2 + $0x54] sm:$0xff]  ;;  %v2613_v46 = vadd.f32 %v2593_v22, %v2572_v38  ;;  %1974 = vst [vmem:[#allocation2 + $0x6c] sm:$0x3] %v1954_v49 }
 0x34b   : > { %v3621_v26 = vld [vmem:[#allocation2 + $0x5c] sm:$0x3]  ;;  %v3661_v37 = vadd.f32 %v3641_v36, %v3620_v31  ;;  %2632 = vst [vmem:[#allocation2 + $0xa3] sm:$0xff] %v2612_v32  ;;  %v2015_v31 = vmul.f32 %v7322_v6, %v8890_v24 }
 0x34c   : > { %v3662_v56 = vadd.f32 %v3642_v17, %v3621_v26  ;;  %2633 = vst [vmem:[#allocation2 + $0xab] sm:$0x3] %v2613_v46  ;;  %v2673_v17 = vmul.f32 %v7523_v50, %v8877_v43 }
 0x34d   : > { %3681 = vst [vmem:[#allocation2 + $0x54] sm:$0xff] %v3661_v37  ;;  %v1344_v21 = vld [vmem:[#allocation2 + $0x74] sm:$0xff]  ;;  %v800_v37 = vmul.f32 %v7394_v7, %v6036_v29 }
 0x34e   : > { %3682 = vst [vmem:[#allocation2 + $0x5c] sm:$0x3] %v3662_v56  ;;  %v1345_v22 = vld [vmem:[#allocation2 + $0x7c] sm:$0x3]  ;;  %v1385_v49 = vadd.f32 %v1365_v54, %v1344_v21  ;;  %v1753_v38 = vld [vmem:[#allocation2 + $0x7e] sm:$0x3] }
 0x34f   : > { %2382 = vst [vmem:[#allocation2 + $0x6e] sm:$0x3] %v2362_v2  ;;  %v1386_v36 = vadd.f32 %v1366_v55, %v1345_v22  ;;  %v1794_v32 = vadd.f32 %v1774_v15, %v1753_v38  ;;  %v2674_v2 = vmul.f32 %v7399_v40, %v8877_v43  ;;  %v779_v21 = vld [vmem:[#allocation2 + $0x9c] sm:$0x3]  ;;  %v8911_v55 = vld [vmem:[#allocation15_spill] sm:$0xff] }
 0x350   : > { %v1993_v60 = vld [vmem:[#allocation2 + $0x63] sm:$0xff]  ;;  %1405 = vst [vmem:[#allocation2 + $0x74] sm:$0xff] %v1385_v49  ;;  %v3722_v6 = vmul.f32 %v7552_v27, %v8911_v55  ;;  %v3723_v38 = vmul.f32 %v7577_v13, %v8911_v55 }
 0x351   : > { %v1994_v46 = vld [vmem:[#allocation2 + $0x6b] sm:$0x3]  ;;  %v2034_v26 = vadd.f32 %v2014_v34, %v1993_v60  ;;  %1406 = vst [vmem:[#allocation2 + $0x7c] sm:$0x3] %v1386_v36  ;;  %v880_v36 = vmul.f32 %v7472_v10, %v8861_v25 }
 0x352   : > { %v2652_v56 = vld [vmem:[#allocation2 + $0xa2] sm:$0xff]  ;;  %v2035_v54 = vadd.f32 %v2015_v31, %v1994_v46  ;;  %1814 = vst [vmem:[#allocation2 + $0x7e] sm:$0x3] %v1794_v32  ;;  %v820_v32 = vadd.f32 %v800_v37, %v779_v21  ;;  %v859_v46 = vld [vmem:[#allocation2 + $0x93] sm:$0xff]  ;;  %v2095_v37 = vmul.f32 %v7543_v52, %v8894_v47 }
 0x353   : > { %v2653_v15 = vld [vmem:[#allocation2 + $0xaa] sm:$0x3]  ;;  %v2693_v22 = vadd.f32 %v2673_v17, %v2652_v56  ;;  %2054 = vst [vmem:[#allocation2 + $0x63] sm:$0xff] %v2034_v26  ;;  %v1446_v17 = vmul.f32 %v7543_v52, %v6346_v63  ;;  %v7631_v56 = vld [vmem:[%s5871_s13 + $0x28] sm:$0x3]  ;;  %v900_v55 = vadd.f32 %v880_v36, %v859_v46  ;;  %v2755_v36 = vmul.f32 %v7399_v40, %v8880_v35 }
 0x354   : > { %v3701_v49 = vld [vmem:[#allocation2 + $0x53] sm:$0xff]  ;;  %v2694_v34 = vadd.f32 %v2674_v2, %v2653_v15  ;;  %2055 = vst [vmem:[#allocation2 + $0x6b] sm:$0x3] %v2035_v54  ;;  %v1447_v2 = vmul.f32 %v7631_v56, %v6346_v63 }
 0x355   : > { %v3702_v60 = vld [vmem:[#allocation2 + $0x5b] sm:$0x3]  ;;  %v3742_v31 = vadd.f32 %v3722_v6, %v3701_v49  ;;  %2713 = vst [vmem:[#allocation2 + $0xa2] sm:$0xff] %v2693_v22  ;;  %v2096_v22 = vmul.f32 %v7631_v56, %v8894_v47  ;;  %v2754_v49 = vmul.f32 %v7523_v50, %v8880_v35 }
 0x356   : > { %v3743_v53 = vadd.f32 %v3723_v38, %v3702_v60  ;;  %2714 = vst [vmem:[#allocation2 + $0xaa] sm:$0x3] %v2694_v34 }
 0x357   : > { %3762 = vst [vmem:[#allocation2 + $0x53] sm:$0xff] %v3742_v31  ;;  %v1425_v26 = vld [vmem:[#allocation2 + $0x73] sm:$0xff]  ;;  %v8912_v31 = vld [vmem:[#allocation18_spill] sm:$0xff] }
 0x358   : > { %3763 = vst [vmem:[#allocation2 + $0x5b] sm:$0x3] %v3743_v53  ;;  %v1426_v54 = vld [vmem:[#allocation2 + $0x7b] sm:$0x3]  ;;  %v1466_v15 = vadd.f32 %v1446_v17, %v1425_v26  ;;  %v4028_v26 = vld [vmem:[#allocation2 + $0x5e] sm:$0x3] }
 0x359   : > { %v1467_v21 = vadd.f32 %v1447_v2, %v1426_v54  ;;  %840 = vst [vmem:[#allocation2 + $0x9c] sm:$0x3] %v820_v32  ;;  %v3803_v32 = vmul.f32 %v7552_v27, %v8912_v31  ;;  %v7646_v2 = vld [vmem:[%s5871_s13 + $0x58] sm:$0x3]  ;;  %v8913_v54 = vld [vmem:[#allocation6_spill] sm:$0xff] }
 0x35a   : > { %v2074_v6 = vld [vmem:[#allocation2 + $0x62] sm:$0xff]  ;;  %1486 = vst [vmem:[#allocation2 + $0x73] sm:$0xff] %v1466_v15  ;;  %v4049_v15 = vmul.f32 %v7646_v2, %v8913_v54 }
 0x35b   : > { %v2075_v38 = vld [vmem:[#allocation2 + $0x6a] sm:$0x3]  ;;  %v2115_v34 = vadd.f32 %v2095_v37, %v2074_v6  ;;  %1487 = vst [vmem:[#allocation2 + $0x7b] sm:$0x3] %v1467_v21  ;;  %v3804_v21 = vmul.f32 %v7577_v13, %v8912_v31  ;;  %v1528_v31 = vmul.f32 %v7631_v56, %v6374_v1 }
 0x35c   : > { %v2733_v53 = vld [vmem:[#allocation2 + $0xa1] sm:$0xff]  ;;  %v2116_v60 = vadd.f32 %v2096_v22, %v2075_v38  ;;  %920 = vst [vmem:[#allocation2 + $0x93] sm:$0xff] %v900_v55  ;;  %v881_v55 = vmul.f32 %v7394_v7, %v8861_v25 }
 0x35d   : > { %v2734_v46 = vld [vmem:[#allocation2 + $0xa9] sm:$0x3]  ;;  %v2774_v17 = vadd.f32 %v2754_v49, %v2733_v53  ;;  %2135 = vst [vmem:[#allocation2 + $0x62] sm:$0xff] %v2115_v34  ;;  %v4069_v49 = vadd.f32 %v4049_v15, %v4028_v26  ;;  %v2177_v15 = vmul.f32 %v7631_v56, %v8897_v19 }
 0x35e   : > { %v3782_v37 = vld [vmem:[#allocation2 + $0x52] sm:$0xff]  ;;  %v2775_v6 = vadd.f32 %v2755_v36, %v2734_v46  ;;  %2136 = vst [vmem:[#allocation2 + $0x6a] sm:$0x3] %v2116_v60 }
 0x35f   : > { %v3783_v22 = vld [vmem:[#allocation2 + $0x5a] sm:$0x3]  ;;  %v3823_v38 = vadd.f32 %v3803_v32, %v3782_v37  ;;  %2794 = vst [vmem:[#allocation2 + $0xa1] sm:$0xff] %v2774_v17  ;;  %v2176_v32 = vmul.f32 %v7543_v52, %v8897_v19  ;;  %v2835_v37 = vmul.f32 %v7523_v50, %v8853_v59 }
 0x360   : > { %v3824_v53 = vadd.f32 %v3804_v21, %v3783_v22  ;;  %2795 = vst [vmem:[#allocation2 + $0xa9] sm:$0x3] %v2775_v6  ;;  %v860_v63 = vld [vmem:[#allocation2 + $0x9b] sm:$0x3] }
 0x361   : > { %3843 = vst [vmem:[#allocation2 + $0x52] sm:$0xff] %v3823_v38  ;;  %v1506_v34 = vld [vmem:[#allocation2 + $0x72] sm:$0xff]  ;;  %v901_v46 = vadd.f32 %v881_v55, %v860_v63  ;;  %v2836_v55 = vmul.f32 %v7399_v40, %v8853_v59 }
 0x362   : > { %3844 = vst [vmem:[#allocation2 + $0x5a] sm:$0x3] %v3824_v53  ;;  %v1507_v36 = vld [vmem:[#allocation2 + $0x7a] sm:$0x3]  ;;  %v1547_v60 = vadd.f32 %v1527_v33, %v1506_v34  ;;  %v961_v33 = vmul.f32 %v7472_v10, %v8866_v14 }
 0x363   : > { %4089 = vst [vmem:[#allocation2 + $0x5e] sm:$0x3] %v4069_v49  ;;  %v1548_v17 = vadd.f32 %v1528_v31, %v1507_v36  ;;  %v940_v31 = vld [vmem:[#allocation2 + $0x92] sm:$0xff] }
 0x364   : > { %v2155_v26 = vld [vmem:[#allocation2 + $0x61] sm:$0xff]  ;;  %1567 = vst [vmem:[#allocation2 + $0x72] sm:$0xff] %v1547_v60  ;;  %v8914_v38 = vld [vmem:[#allocation21_spill] sm:$0xff] }
 0x365   : > { %v2156_v21 = vld [vmem:[#allocation2 + $0x69] sm:$0x3]  ;;  %v2196_v6 = vadd.f32 %v2176_v32, %v2155_v26  ;;  %1568 = vst [vmem:[#allocation2 + $0x7a] sm:$0x3] %v1548_v17  ;;  %v3884_v49 = vmul.f32 %v7552_v27, %v8914_v38  ;;  %v3885_v36 = vmul.f32 %v7577_v13, %v8914_v38  ;;  %v981_v26 = vadd.f32 %v961_v33, %v940_v31 }
 0x366   : > { %v2814_v63 = vld [vmem:[#allocation2 + $0xa0] sm:$0xff]  ;;  %v2197_v22 = vadd.f32 %v2177_v15, %v2156_v21  ;;  %921 = vst [vmem:[#allocation2 + $0x9b] sm:$0x3] %v901_v46  ;;  %v1608_v46 = vmul.f32 %v7543_v52, %v6422_v28  ;;  %v1208_v21 = vmul.f32 %v7577_v13, %v6119_v5  ;;  %v962_v33 = vmul.f32 %v7394_v7, %v8866_v14 }
 0x367   : > { %v2815_v53 = vld [vmem:[#allocation2 + $0xa8] sm:$0x3]  ;;  %v2855_v34 = vadd.f32 %v2835_v37, %v2814_v63  ;;  %2216 = vst [vmem:[#allocation2 + $0x61] sm:$0xff] %v2196_v6  ;;  %v1609_v37 = vmul.f32 %v7631_v56, %v6422_v28 }
 0x368   : > { %v3863_v50 = vld [vmem:[#allocation2 + $0x51] sm:$0xff]  ;;  %v2856_v60 = vadd.f32 %v2836_v55, %v2815_v53  ;;  %2217 = vst [vmem:[#allocation2 + $0x69] sm:$0x3] %v2197_v22  ;;  %v1187_v55 = vld [vmem:[#allocation2 + $0x9e] sm:$0x3]  ;;  %v2257_v22 = vmul.f32 %v7543_v52, %v8900_v30 }
 0x369   : > { %v3864_v32 = vld [vmem:[#allocation2 + $0x59] sm:$0x3]  ;;  %v3904_v17 = vadd.f32 %v3884_v49, %v3863_v50  ;;  %2875 = vst [vmem:[#allocation2 + $0xa0] sm:$0xff] %v2855_v34  ;;  %v2258_v34 = vmul.f32 %v7631_v56, %v8900_v30 }
 0x36a   : > { %v3905_v40 = vadd.f32 %v3885_v36, %v3864_v32  ;;  %2876 = vst [vmem:[#allocation2 + $0xa8] sm:$0x3] %v2856_v60  ;;  %v1228_v32 = vadd.f32 %v1208_v21, %v1187_v55  ;;  %v1042_v55 = vmul.f32 %v7472_v10, %v8871_v0 }
 0x36b   : > { %3924 = vst [vmem:[#allocation2 + $0x51] sm:$0xff] %v3904_v17  ;;  %v1587_v15 = vld [vmem:[#allocation2 + $0x71] sm:$0xff]  ;;  %v7685_v17 = vld [vmem:[%s5871_s13 + $0x80] sm:$0xff] }
 0x36c   : > { %3925 = vst [vmem:[#allocation2 + $0x59] sm:$0x3] %v3905_v40  ;;  %v1588_v6 = vld [vmem:[#allocation2 + $0x79] sm:$0x3]  ;;  %v1628_v63 = vadd.f32 %v1608_v46, %v1587_v15  ;;  %v2919_v7 = vmul.f32 %v7685_v17, %v8884_v57  ;;  %v8915_v46 = vld [vmem:[#allocation24_spill] sm:$0xff] }
 0x36d   : > { %v1629_v31 = vadd.f32 %v1609_v37, %v1588_v6  ;;  %v941_v49 = vld [vmem:[#allocation2 + $0x9a] sm:$0x3]  ;;  %1001 = vst [vmem:[#allocation2 + $0x92] sm:$0xff] %v981_v26  ;;  %v3965_v26 = vmul.f32 %v7552_v27, %v8915_v46  ;;  %v3966_v6 = vmul.f32 %v7577_v13, %v8915_v46 }
 0x36e   : > { %v2236_v53 = vld [vmem:[#allocation2 + $0x60] sm:$0xff]  ;;  %1648 = vst [vmem:[#allocation2 + $0x71] sm:$0xff] %v1628_v63  ;;  %v982_v50 = vadd.f32 %v962_v33, %v941_v49  ;;  %v1689_v49 = vmul.f32 %v7543_v52, %v6460_v41 }
 0x36f   : > { %v2237_v36 = vld [vmem:[#allocation2 + $0x68] sm:$0x3]  ;;  %v2277_v60 = vadd.f32 %v2257_v22, %v2236_v53  ;;  %1649 = vst [vmem:[#allocation2 + $0x79] sm:$0x3] %v1629_v31  ;;  %v635_v22 = vmul.f32 %v7543_v52, %v8868_v48 }
 0x370   : > { %v2278_v40 = vadd.f32 %v2258_v34, %v2237_v36  ;;  %1002 = vst [vmem:[#allocation2 + $0x9a] sm:$0x3] %v982_v50  ;;  %v614_v34 = vld [vmem:[#allocation2 + $0x86] sm:$0xff]  ;;  %v1690_v36 = vmul.f32 %v7631_v56, %v6460_v41 }
 0x371   : > { %v2898_v15 = vld [vmem:[#allocation2 + $0xa6] sm:$0xff]  ;;  %2297 = vst [vmem:[#allocation2 + $0x60] sm:$0xff] %v2277_v60 }
 0x372   : > { %v3944_v37 = vld [vmem:[#allocation2 + $0x50] sm:$0xff]  ;;  %v2939_v63 = vadd.f32 %v2919_v7, %v2898_v15  ;;  %2298 = vst [vmem:[#allocation2 + $0x68] sm:$0x3] %v2278_v40  ;;  %v636_v7 = vmul.f32 %v7631_v56, %v8868_v48 }
 0x373   : > { %v3945_v33 = vld [vmem:[#allocation2 + $0x58] sm:$0x3]  ;;  %v3985_v21 = vadd.f32 %v3965_v26, %v3944_v37  ;;  %1248 = vst [vmem:[#allocation2 + $0x9e] sm:$0x3] %v1228_v32  ;;  %v615_v37 = vld [vmem:[#allocation2 + $0x8e] sm:$0x3] }
 0x374   : > { %v3986_v31 = vadd.f32 %v3966_v6, %v3945_v33  ;;  %2959 = vst [vmem:[#allocation2 + $0xa6] sm:$0xff] %v2939_v63  ;;  %v1021_v53 = vld [vmem:[#allocation2 + $0x91] sm:$0xff]  ;;  %v655_v33 = vadd.f32 %v635_v22, %v614_v34 }
 0x375   : > { %4005 = vst [vmem:[#allocation2 + $0x50] sm:$0xff] %v3985_v21  ;;  %v1668_v50 = vld [vmem:[#allocation2 + $0x70] sm:$0xff]  ;;  %v1062_v60 = vadd.f32 %v1042_v55, %v1021_v53  ;;  %v7704_v26 = vld [vmem:[%s5871_s13 + $0x38] sm:$0x3]  ;;  %v2341_v21 = vmul.f32 %v7472_v10, %v6174_v8  ;;  %v3001_v53 = vmul.f32 %v7582_v62, %v8888_v45 }
 0x376   : > { %4006 = vst [vmem:[#allocation2 + $0x58] sm:$0x3] %v3986_v31  ;;  %v1669_v32 = vld [vmem:[#allocation2 + $0x78] sm:$0x3]  ;;  %v1709_v40 = vadd.f32 %v1689_v49, %v1668_v50  ;;  %v1043_v15 = vmul.f32 %v7704_v26, %v8871_v0  ;;  %v656_v31 = vadd.f32 %v636_v7, %v615_v37  ;;  %v3000_v49 = vmul.f32 %v7685_v17, %v8888_v45  ;;  %v7715_v22 = vld [vmem:[%s5871_s13 + $0x50] sm:$0xff] }
 0x377   : > { %v1710_v6 = vadd.f32 %v1690_v36, %v1669_v32  ;;  %v1022_v63 = vld [vmem:[#allocation2 + $0x99] sm:$0x3]  ;;  %1082 = vst [vmem:[#allocation2 + $0x91] sm:$0xff] %v1062_v60  ;;  %v4048_v34 = vmul.f32 %v7715_v22, %v8913_v54 }
 0x378   : > { %1729 = vst [vmem:[#allocation2 + $0x70] sm:$0xff] %v1709_v40  ;;  %v1063_v55 = vadd.f32 %v1043_v15, %v1022_v63  ;;  %v1123_v15 = vmul.f32 %v7472_v10, %v6190_v4  ;;  %v1773_v63 = vmul.f32 %v7472_v10, %v6382_v11 }
 0x379   : > { %v2320_v48 = vld [vmem:[#allocation2 + $0x66] sm:$0xff]  ;;  %1730 = vst [vmem:[#allocation2 + $0x78] sm:$0x3] %v1710_v6 }
 0x37a   : > { %v2361_v50 = vadd.f32 %v2341_v21, %v2320_v48  ;;  %1083 = vst [vmem:[#allocation2 + $0x99] sm:$0x3] %v1063_v55  ;;  %v716_v21 = vmul.f32 %v7543_v52, %v6002_v39  ;;  %v1124_v48 = vmul.f32 %v7704_v26, %v6190_v4 }
 0x37b   : > { %v2979_v36 = vld [vmem:[#allocation2 + $0xa5] sm:$0xff]  ;;  %v2980_v32 = vld [vmem:[#allocation2 + $0xad] sm:$0x3]  ;;  %675 = vst [vmem:[#allocation2 + $0x86] sm:$0xff] %v655_v33 }
 0x37c   : > { %v3020_v60 = vadd.f32 %v3000_v49, %v2979_v36  ;;  %v3021_v40 = vadd.f32 %v3001_v53, %v2980_v32  ;;  %2381 = vst [vmem:[#allocation2 + $0x66] sm:$0xff] %v2361_v50  ;;  %v2423_v50 = vmul.f32 %v7704_v26, %v8908_v51 }
 0x37d   : > { %v4027_v7 = vld [vmem:[#allocation2 + $0x56] sm:$0xff]  ;;  %676 = vst [vmem:[#allocation2 + $0x8e] sm:$0x3] %v656_v31  ;;  %v2422_v31 = vmul.f32 %v7472_v10, %v8908_v51 }
 0x37e   : > { %v4068_v37 = vadd.f32 %v4048_v34, %v4027_v7  ;;  %3040 = vst [vmem:[#allocation2 + $0xa5] sm:$0xff] %v3020_v60  ;;  %v1102_v6 = vld [vmem:[#allocation2 + $0x90] sm:$0xff]  ;;  %v3081_v7 = vmul.f32 %v7685_v17, %v8891_v3 }
 0x37f   : > { %3041 = vst [vmem:[#allocation2 + $0xad] sm:$0x3] %v3021_v40  ;;  %v1143_v33 = vadd.f32 %v1123_v15, %v1102_v6  ;;  %v717_v6 = vmul.f32 %v7631_v56, %v6002_v39 }
 0x380   : > { %4088 = vst [vmem:[#allocation2 + $0x56] sm:$0xff] %v4068_v37  ;;  %v1752_v55 = vld [vmem:[#allocation2 + $0x76] sm:$0xff] }
 0x381   : > { %v1793_v49 = vadd.f32 %v1773_v63, %v1752_v55  ;;  %v1103_v53 = vld [vmem:[#allocation2 + $0x98] sm:$0x3]  ;;  %1163 = vst [vmem:[#allocation2 + $0x90] sm:$0xff] %v1143_v33  ;;  %v3082_v33 = vmul.f32 %v7582_v62, %v8891_v3  ;;  %v3490_v55 = vmul.f32 %v7456_v16, %v8892_v61  ;;  %v1854_v16 = vmul.f32 %v7472_v10, %v6445_v58 }
 0x382   : > { %v1144_v36 = vadd.f32 %v1124_v48, %v1103_v53  ;;  %v695_v32 = vld [vmem:[#allocation2 + $0x85] sm:$0xff] }
 0x383   : > { %v2401_v34 = vld [vmem:[#allocation2 + $0x65] sm:$0xff]  ;;  %v2402_v60 = vld [vmem:[#allocation2 + $0x6d] sm:$0x3]  ;;  %1813 = vst [vmem:[#allocation2 + $0x76] sm:$0xff] %v1793_v49  ;;  %v736_v40 = vadd.f32 %v716_v21, %v695_v32  ;;  %v4129_v21 = vmul.f32 %v7715_v22, %v5901_v12 }
 0x384   : > { %v2442_v15 = vadd.f32 %v2422_v31, %v2401_v34  ;;  %v2443_v37 = vadd.f32 %v2423_v50, %v2402_v60  ;;  %1164 = vst [vmem:[#allocation2 + $0x98] sm:$0x3] %v1144_v36  ;;  %v696_v48 = vld [vmem:[#allocation2 + $0x8d] sm:$0x3]  ;;  %v1855_v60 = vmul.f32 %v7704_v26, %v6445_v58 }
 0x385   : > { %v3060_v63 = vld [vmem:[#allocation2 + $0xa4] sm:$0xff]  ;;  %756 = vst [vmem:[#allocation2 + $0x85] sm:$0xff] %v736_v40  ;;  %v737_v34 = vadd.f32 %v717_v6, %v696_v48  ;;  %v2503_v6 = vmul.f32 %v7472_v10, %v8870_v20 }
 0x386   : > { %v3061_v49 = vld [vmem:[#allocation2 + $0xac] sm:$0x3]  ;;  %v3101_v53 = vadd.f32 %v3081_v7, %v3060_v63  ;;  %v3469_v31 = vld [vmem:[#allocation2 + $0xae] sm:$0x3]  ;;  %2462 = vst [vmem:[#allocation2 + $0x65] sm:$0xff] %v2442_v15  ;;  %v1207_v7 = vmul.f32 %v7552_v27, %v6119_v5 }
 0x387   : > { %v4108_v50 = vld [vmem:[#allocation2 + $0x55] sm:$0xff]  ;;  %v3102_v36 = vadd.f32 %v3082_v33, %v3061_v49  ;;  %v3510_v32 = vadd.f32 %v3490_v55, %v3469_v31  ;;  %2463 = vst [vmem:[#allocation2 + $0x6d] sm:$0x3] %v2443_v37  ;;  %v7747_v33 = vpop.permute.xlu1 %4989  ;;  %v8916_v49 = vld [vmem:[#allocation23_spill] sm:$0xff] }
 0x388   : > { %v4149_v39 = vadd.f32 %v4129_v21, %v4108_v50  ;;  %3121 = vst [vmem:[#allocation2 + $0xa4] sm:$0xff] %v3101_v53  ;;  %v2504_v21 = vmul.f32 %v7704_v26, %v8870_v20  ;;  %v3162_v53 = vmul.f32 %v7685_v17, %v8916_v49 }
 0x389   : > { %3122 = vst [vmem:[#allocation2 + $0xac] sm:$0x3] %v3102_v36 }
 0x38a   : > { %4169 = vst [vmem:[#allocation2 + $0x55] sm:$0xff] %v4149_v39  ;;  %v1833_v40 = vld [vmem:[#allocation2 + $0x75] sm:$0xff]  ;;  %v1834_v54 = vld [vmem:[#allocation2 + $0x7d] sm:$0x3]  ;;  %v3163_v39 = vmul.f32 %v7582_v62, %v8916_v49 }
 0x38b   : > { %3530 = vst [vmem:[#allocation2 + $0xae] sm:$0x3] %v3510_v32  ;;  %v1874_v15 = vadd.f32 %v1854_v16, %v1833_v40  ;;  %v1875_v63 = vadd.f32 %v1855_v60, %v1834_v54  ;;  %v1186_v37 = vld [vmem:[#allocation2 + $0x96] sm:$0xff]  ;;  %v797_v54 = vmul.f32 %v7543_v52, %v6036_v29  ;;  %v2912_v16 = vmul.f32 %v7577_v13, %v8884_v57  ;;  %v8917_v40 = vld [vmem:[#allocation11_spill] sm:$0xff] }
 0x38c   : > { %v1227_v55 = vadd.f32 %v1207_v7, %v1186_v37  ;;  %757 = vst [vmem:[#allocation2 + $0x8d] sm:$0x3] %v737_v34  ;;  %v776_v60 = vld [vmem:[#allocation2 + $0x84] sm:$0xff]  ;;  %v4210_v7 = vmul.f32 %v7715_v22, %v8917_v40 }
 0x38d   : > { %v2482_v48 = vld [vmem:[#allocation2 + $0x64] sm:$0xff]  ;;  %1894 = vst [vmem:[#allocation2 + $0x75] sm:$0xff] %v1874_v15  ;;  %v817_v46 = vadd.f32 %v797_v54, %v776_v60 }
 0x38e   : > { %v2483_v31 = vld [vmem:[#allocation2 + $0x6c] sm:$0x3]  ;;  %v2523_v50 = vadd.f32 %v2503_v6, %v2482_v48  ;;  %v2891_v36 = vld [vmem:[#allocation2 + $0x6e] sm:$0x3]  ;;  %1895 = vst [vmem:[#allocation2 + $0x7d] sm:$0x3] %v1875_v63 }
 0x38f   : > { %v3141_v32 = vld [vmem:[#allocation2 + $0xa3] sm:$0xff]  ;;  %v2524_v34 = vadd.f32 %v2504_v21, %v2483_v31  ;;  %1247 = vst [vmem:[#allocation2 + $0x96] sm:$0xff] %v1227_v55  ;;  %v2932_v52 = vadd.f32 %v2912_v16, %v2891_v36  ;;  %v1935_v21 = vmul.f32 %v7472_v10, %v8887_v42  ;;  %v7765_v55 = vpop.permute.xlu1 %4998 }
 0x390   : > { %v3142_v15 = vld [vmem:[#allocation2 + $0xab] sm:$0x3]  ;;  %v3182_v37 = vadd.f32 %v3162_v53, %v3141_v32  ;;  %2543 = vst [vmem:[#allocation2 + $0x64] sm:$0xff] %v2523_v50  ;;  %v1936_v53 = vmul.f32 %v7704_v26, %v8887_v42  ;;  %v2344_v50 = vmul.f32 %v7577_v13, %v6174_v8 }
 0x391   : > { %v4189_v63 = vld [vmem:[#allocation2 + $0x54] sm:$0xff]  ;;  %v3183_v6 = vadd.f32 %v3163_v39, %v3142_v15  ;;  %2544 = vst [vmem:[#allocation2 + $0x6c] sm:$0x3] %v2524_v34  ;;  %v8918_v15 = vld [vmem:[#allocation26_spill] sm:$0xff] }
 0x392   : > { %v4230_v48 = vadd.f32 %v4210_v7, %v4189_v63  ;;  %3202 = vst [vmem:[#allocation2 + $0xa3] sm:$0xff] %v3182_v37  ;;  %v7772_v34 = vld [vmem:[%s5871_s13 + $0x30] sm:$0xff]  ;;  %v2585_v7 = vmul.f32 %v7704_v26, %v8874_v9  ;;  %v3243_v37 = vmul.f32 %v7685_v17, %v8918_v15 }
 0x393   : > { %3203 = vst [vmem:[#allocation2 + $0xab] sm:$0x3] %v3183_v6  ;;  %v2584_v54 = vmul.f32 %v7772_v34, %v8874_v9 }
 0x394   : > { %4250 = vst [vmem:[#allocation2 + $0x54] sm:$0xff] %v4230_v48  ;;  %v1914_v31 = vld [vmem:[#allocation2 + $0x74] sm:$0xff]  ;;  %v3244_v48 = vmul.f32 %v7582_v62, %v8918_v15  ;;  %v2016_v15 = vmul.f32 %v7772_v34, %v8890_v24 }
 0x395   : > { %2952 = vst [vmem:[#allocation2 + $0x6e] sm:$0x3] %v2932_v52  ;;  %v1915_v32 = vld [vmem:[#allocation2 + $0x7c] sm:$0x3]  ;;  %v1955_v36 = vadd.f32 %v1935_v21, %v1914_v31  ;;  %v2323_v39 = vld [vmem:[#allocation2 + $0x7e] sm:$0x3]  ;;  %v4130_v31 = vmul.f32 %v7646_v2, %v5901_v12 }
 0x396   : > { %v1956_v10 = vadd.f32 %v1936_v53, %v1915_v32  ;;  %v2364_v16 = vadd.f32 %v2344_v50, %v2323_v39  ;;  %837 = vst [vmem:[#allocation2 + $0x84] sm:$0xff] %v817_v46  ;;  %v4109_v21 = vld [vmem:[#allocation2 + $0x5d] sm:$0x3]  ;;  %v1267_v53 = vld [vmem:[#allocation2 + $0x95] sm:$0xff] }
 0x397   : > { %v2563_v60 = vld [vmem:[#allocation2 + $0x63] sm:$0xff]  ;;  %1975 = vst [vmem:[#allocation2 + $0x74] sm:$0xff] %v1955_v36  ;;  %v8919_v50 = vld [vmem:[#allocation13_spill] sm:$0xff]  ;;  %v4150_v42 = vadd.f32 %v4130_v31, %v4109_v21  ;;  %v4631_v38 = vpop.xlane.xlu1 %4630 }
 0x398   : > { %v2564_v63 = vld [vmem:[#allocation2 + $0x6b] sm:$0x3]  ;;  %v2604_v6 = vadd.f32 %v2584_v54, %v2563_v60  ;;  %1976 = vst [vmem:[#allocation2 + $0x7c] sm:$0x3] %v1956_v10  ;;  %v4291_v32 = vmul.f32 %v7715_v22, %v8919_v50  ;;  %v1288_v54 = vmul.f32 %v7552_v27, %v6278_v23  ;;  %v1268_v12 = vld [vmem:[#allocation2 + $0x9d] sm:$0x3] }
 0x399   : > { %v3222_v52 = vld [vmem:[#allocation2 + $0xa2] sm:$0xff]  ;;  %v2605_v46 = vadd.f32 %v2585_v7, %v2564_v63  ;;  %2384 = vst [vmem:[#allocation2 + $0x7e] sm:$0x3] %v2364_v16  ;;  %v8920_v16 = vld [vmem:[#allocation45_spill] sm:$0xff] }
 0x39a   : > { %v3223_v36 = vld [vmem:[#allocation2 + $0xaa] sm:$0x3]  ;;  %v3263_v39 = vadd.f32 %v3243_v37, %v3222_v52  ;;  %2624 = vst [vmem:[#allocation2 + $0x63] sm:$0xff] %v2604_v6  ;;  %v1308_v7 = vadd.f32 %v1288_v54, %v1267_v53  ;;  %v4931_v63 = vmul.f32 %v8920_v16, %v4631_v38  ;;  %v1289_v37 = vmul.f32 %v7577_v13, %v6278_v23 }
 0x39b   : > { %v4270_v10 = vld [vmem:[#allocation2 + $0x53] sm:$0xff]  ;;  %v3264_v60 = vadd.f32 %v3244_v48, %v3223_v36  ;;  %2625 = vst [vmem:[#allocation2 + $0x6b] sm:$0x3] %v2605_v46  ;;  %v2017_v52 = vmul.f32 %v7704_v26, %v8890_v24  ;;  %v2665_v38 = vmul.f32 %v7772_v34, %v8877_v43 }
 0x39c   : > { %v4311_v58 = vadd.f32 %v4291_v32, %v4270_v10  ;;  %3283 = vst [vmem:[#allocation2 + $0xa2] sm:$0xff] %v3263_v39  ;;  %5010 = vperm.xlu2 %5461, %v4931_v63   ;;  %v1309_v31 = vadd.f32 %v1289_v37, %v1268_v12  ;;  %v2666_v32 = vmul.f32 %v7704_v26, %v8877_v43  ;;  %v8922_v10 = vld [vmem:[#allocation17_spill] sm:$0xff] }
 0x39d   : > { %3284 = vst [vmem:[#allocation2 + $0xaa] sm:$0x3] %v3264_v60  ;;  %v4372_v60 = vmul.f32 %v7715_v22, %v8922_v10  ;;  %v8923_v37 = vld [vmem:[#allocation33_spill] sm:$0xff] }
 0x39e   : > { %4331 = vst [vmem:[#allocation2 + $0x53] sm:$0xff] %v4311_v58  ;;  %v1995_v6 = vld [vmem:[#allocation2 + $0x73] sm:$0xff] }
 0x39f   : > { %4170 = vst [vmem:[#allocation2 + $0x5d] sm:$0x3] %v4150_v42  ;;  %v1996_v48 = vld [vmem:[#allocation2 + $0x7b] sm:$0x3]  ;;  %v2036_v21 = vadd.f32 %v2016_v15, %v1995_v6  ;;  %v8921_v58 = vld [vmem:[#allocation28_spill] sm:$0xff]  ;;  %v7808_v6 = vadd.s32 4294967288, %v8923_v37 }
 0x3a0   : > { %v2037_v46 = vadd.f32 %v2017_v52, %v1996_v48  ;;  %1328 = vst [vmem:[#allocation2 + $0x95] sm:$0xff] %v1308_v7  ;;  %v3324_v36 = vmul.f32 %v7685_v17, %v8921_v58  ;;  %v3325_v12 = vmul.f32 %v7582_v62, %v8921_v58  ;;  %v7805_v7 = vpop.xlane.xlu1 %4666 }
 0x3a1   : > { %v2644_v53 = vld [vmem:[#allocation2 + $0x62] sm:$0xff]  ;;  %2056 = vst [vmem:[#allocation2 + $0x73] sm:$0xff] %v2036_v21  ;;  %v4211_v21 = vmul.f32 %v7646_v2, %v8917_v40 }
 0x3a2   : > { %v2645_v39 = vld [vmem:[#allocation2 + $0x6a] sm:$0x3]  ;;  %v2685_v54 = vadd.f32 %v2665_v38, %v2644_v53  ;;  %2057 = vst [vmem:[#allocation2 + $0x7b] sm:$0x3] %v2037_v46  ;;  %v1369_v46 = vmul.f32 %v7552_v27, %v6315_v18 }
 0x3a3   : > { %v3303_v42 = vld [vmem:[#allocation2 + $0xa1] sm:$0xff]  ;;  %v2686_v15 = vadd.f32 %v2666_v32, %v2645_v39  ;;  %1329 = vst [vmem:[#allocation2 + $0x9d] sm:$0x3] %v1309_v31  ;;  %v2097_v32 = vmul.f32 %v7772_v34, %v8894_v47  ;;  %v5092_v39 = vperm.slane %v7765_v55, %v7808_v6  ;;  %v8925_v55 = vld [vmem:[#allocation32_spill] sm:$0xff] }
 0x3a4   : > { %v3304_v16 = vld [vmem:[#allocation2 + $0xa9] sm:$0x3]  ;;  %v3344_v63 = vadd.f32 %v3324_v36, %v3303_v42  ;;  %2705 = vst [vmem:[#allocation2 + $0x62] sm:$0xff] %v2685_v54  ;;  %v2098_v42 = vmul.f32 %v7704_v26, %v8894_v47 }
 0x3a5   : > { %v4351_v52 = vld [vmem:[#allocation2 + $0x52] sm:$0xff]  ;;  %v3345_v48 = vadd.f32 %v3325_v12, %v3304_v16  ;;  %2706 = vst [vmem:[#allocation2 + $0x6a] sm:$0x3] %v2686_v15  ;;  %v8924_v15 = vld [vmem:[#allocation27_spill] sm:$0xff] }
 0x3a6   : > { %v4392_v38 = vadd.f32 %v4372_v60, %v4351_v52  ;;  %3364 = vst [vmem:[#allocation2 + $0xa1] sm:$0xff] %v3344_v63  ;;  %v4190_v31 = vld [vmem:[#allocation2 + $0x5c] sm:$0x3]  ;;  %v5088_v60 = vperm.slane %v8924_v15, %v7808_v6  ;;  %v1370_v63 = vmul.f32 %v7577_v13, %v6315_v18  ;;  %v5086_v52 = vperm.slane %v7747_v33, %v8923_v37 }
 0x3a7   : > { %3365 = vst [vmem:[#allocation2 + $0xa9] sm:$0x3] %v3345_v48  ;;  %v4231_v53 = vadd.f32 %v4211_v21, %v4190_v31  ;;  %v1348_v36 = vld [vmem:[#allocation2 + $0x94] sm:$0xff]  ;;  %v5091_v48 = vperm.slane %v8925_v55, %v8923_v37  ;;  %v5002_v21 = vpop.permute.xlu2 %5001  ;;  %v3406_v55 = vmul.f32 %v7582_v62, %v8906_v44 }
 0x3a8   : > { %4412 = vst [vmem:[#allocation2 + $0x52] sm:$0xff] %v4392_v38  ;;  %v2076_v54 = vld [vmem:[#allocation2 + $0x72] sm:$0xff]  ;;  %v1389_v12 = vadd.f32 %v1369_v46, %v1348_v36  ;;  %v2746_v38 = vmul.f32 %v7772_v34, %v8880_v35  ;;  %v2747_v36 = vmul.f32 %v7704_v26, %v8880_v35  ;;  %v5005_v15 = vpop.permute.xlu1 %5004 }
 0x3a9   : > { %4251 = vst [vmem:[#allocation2 + $0x5c] sm:$0x3] %v4231_v53  ;;  %v2077_v27 = vld [vmem:[#allocation2 + $0x7a] sm:$0x3]  ;;  %v2117_v16 = vadd.f32 %v2097_v32, %v2076_v54  ;;  %v3405_v53 = vmul.f32 %v7685_v17, %v8906_v44  ;;  %v5093_v54 = vsel %vm5089_vm2, %v5092_v39, %v5091_v48  ;;  %v5095_v17 = vperm.slane %v5005_v15, %v7808_v6 }
 0x3aa   : > { %v2118_v31 = vadd.f32 %v2098_v42, %v2077_v27  ;;  %v1349_v46 = vld [vmem:[#allocation2 + $0x9c] sm:$0x3]  ;;  %1409 = vst [vmem:[#allocation2 + $0x94] sm:$0xff] %v1389_v12  ;;  %v5094_v12 = vperm.slane %v5002_v21, %v8923_v37  ;;  %v2178_v15 = vmul.f32 %v7772_v34, %v8897_v19 }
 0x3ab   : > { %v2725_v32 = vld [vmem:[#allocation2 + $0x61] sm:$0xff]  ;;  %2137 = vst [vmem:[#allocation2 + $0x72] sm:$0xff] %v2117_v16  ;;  %v1390_v33 = vadd.f32 %v1370_v63, %v1349_v46  ;;  %v5090_v16 = vsel %vm5089_vm2, %v5088_v60, %v5086_v52 }
 0x3ac   : > { %v2726_v42 = vld [vmem:[#allocation2 + $0x69] sm:$0x3]  ;;  %v2766_v27 = vadd.f32 %v2746_v38, %v2725_v32  ;;  %2138 = vst [vmem:[#allocation2 + $0x7a] sm:$0x3] %v2118_v31  ;;  %v5137_v62 = vsel %vm5136_vm3, %v5093_v54, %v5090_v16  ;;  %v5096_v21 = vsel %vm5089_vm2, %v5095_v17, %v5094_v12  ;;  %v4292_v32 = vmul.f32 %v7646_v2, %v8919_v50  ;;  %v7850_v52 = vld [vmem:[%s5871_s13 + $0x40] sm:$0xff] }
 0x3ad   : > { %v3384_v40 = vld [vmem:[#allocation2 + $0xa0] sm:$0xff]  ;;  %v2767_v18 = vadd.f32 %v2747_v36, %v2726_v42  ;;  %1410 = vst [vmem:[#allocation2 + $0x9c] sm:$0x3] %v1390_v33  ;;  %v8926_v63 = vld [vmem:[#allocation19_spill] sm:$0xff]  ;;  %v7847_v33 = vsel %vm5138_vm4, %v5096_v21, %v5137_v62 }
 0x3ae   : > { %v4453_v39 = vmul.f32 %v7715_v22, %v8926_v63  ;;  %v3385_v48 = vld [vmem:[#allocation2 + $0xa8] sm:$0x3]  ;;  %v3425_v46 = vadd.f32 %v3405_v53, %v3384_v40  ;;  %2786 = vst [vmem:[#allocation2 + $0x61] sm:$0xff] %v2766_v27 }
 0x3af   : > { %v4432_v38 = vld [vmem:[#allocation2 + $0x51] sm:$0xff]  ;;  %v3426_v31 = vadd.f32 %v3406_v55, %v3385_v48  ;;  %2787 = vst [vmem:[#allocation2 + $0x69] sm:$0x3] %v2767_v18  ;;  %v8927_v40 = vld [vmem:[#allocation35_spill] sm:$0xff]  ;;  %v2179_v18 = vmul.f32 %v7704_v26, %v8897_v19  ;;  %v2827_v48 = vmul.f32 %v7772_v34, %v8853_v59 }
 0x3b0   : > { %v4473_v36 = vadd.f32 %v4453_v39, %v4432_v38  ;;  %3445 = vst [vmem:[#allocation2 + $0xa0] sm:$0xff] %v3425_v46  ;;  %v4271_v60 = vld [vmem:[#allocation2 + $0x5b] sm:$0x3]  ;;  %v1450_v53 = vmul.f32 %v7850_v52, %v8927_v40  ;;  %v1451_v16 = vmul.f32 %v7577_v13, %v8927_v40  ;;  %v1757_v39 = vld [vmem:[#allocation2 + $0x9e] sm:$0x3]  ;;  %v1778_v38 = vmul.f32 %v7646_v2, %v6382_v11 }
 0x3b1   : > { %3446 = vst [vmem:[#allocation2 + $0xa8] sm:$0x3] %v3426_v31  ;;  %v4312_v54 = vadd.f32 %v4292_v32, %v4271_v60  ;;  %v1429_v55 = vld [vmem:[#allocation2 + $0x93] sm:$0xff]  ;;  %v2828_v31 = vmul.f32 %v7704_v26, %v8853_v59 }
 0x3b2   : > { %4493 = vst [vmem:[#allocation2 + $0x51] sm:$0xff] %v4473_v36  ;;  %v2157_v42 = vld [vmem:[#allocation2 + $0x71] sm:$0xff]  ;;  %v1470_v27 = vadd.f32 %v1450_v53, %v1429_v55  ;;  %v1798_v13 = vadd.f32 %v1778_v38, %v1757_v39  ;;  %v7874_v55 = vld [vmem:[%s8650_s2 + $0x30] ss:$0 sm:$0xff]  ;;  %v2259_v38 = vmul.f32 %v7772_v34, %v8900_v30 }
 0x3b3   : > { %4332 = vst [vmem:[#allocation2 + $0x5b] sm:$0x3] %v4312_v54  ;;  %v2158_v12 = vld [vmem:[#allocation2 + $0x79] sm:$0x3]  ;;  %v2198_v17 = vadd.f32 %v2178_v15, %v2157_v42  ;;  %v7867_v53 = vld [vmem:[%s5871_s13 + $0x90] sm:$0xff]  ;;  %v4534_v42 = vmul.f32 %v7874_v55, %v7715_v22 }
 0x3b4   : > { %v2199_v46 = vadd.f32 %v2179_v18, %v2158_v12  ;;  %v1430_v62 = vld [vmem:[#allocation2 + $0x9b] sm:$0x3]  ;;  %1490 = vst [vmem:[#allocation2 + $0x93] sm:$0xff] %v1470_v27  ;;  %v3489_v54 = vmul.f32 %v7867_v53, %v8892_v61 }
 0x3b5   : > { %v2806_v21 = vld [vmem:[#allocation2 + $0x60] sm:$0xff]  ;;  %2218 = vst [vmem:[#allocation2 + $0x71] sm:$0xff] %v2198_v17  ;;  %v1471_v32 = vadd.f32 %v1451_v16, %v1430_v62  ;;  %v4373_v17 = vmul.f32 %v7646_v2, %v8922_v10 }
 0x3b6   : > { %v2807_v36 = vld [vmem:[#allocation2 + $0x68] sm:$0x3]  ;;  %v2847_v60 = vadd.f32 %v2827_v48, %v2806_v21  ;;  %2219 = vst [vmem:[#allocation2 + $0x79] sm:$0x3] %v2199_v46  ;;  %v1531_v48 = vmul.f32 %v7850_v52, %v6374_v1  ;;  %v798_v46 = vmul.f32 %v7631_v56, %v6036_v29  ;;  %v8928_v10 = vld [vmem:[#allocation10_spill] sm:$0xff] }
 0x3b7   : > { %v2848_v15 = vadd.f32 %v2828_v31, %v2807_v36  ;;  %1491 = vst [vmem:[#allocation2 + $0x9b] sm:$0x3] %v1471_v32  ;;  %v777_v31 = vld [vmem:[#allocation2 + $0x8c] sm:$0x3]  ;;  %v2260_v36 = vmul.f32 %v7704_v26, %v8900_v30 }
 0x3b8   : > { %v3468_v18 = vld [vmem:[#allocation2 + $0xa6] sm:$0xff]  ;;  %2867 = vst [vmem:[#allocation2 + $0x60] sm:$0xff] %v2847_v60 }
 0x3b9   : > { %v4513_v27 = vld [vmem:[#allocation2 + $0x50] sm:$0xff]  ;;  %v3509_v12 = vadd.f32 %v3489_v54, %v3468_v18  ;;  %2868 = vst [vmem:[#allocation2 + $0x68] sm:$0x3] %v2848_v15  ;;  %v7889_v54 = vld [vmem:[%s5871_s13 + $0x20] sm:$0xff] }
 0x3ba   : > { %v4554_v16 = vadd.f32 %v4534_v42, %v4513_v27  ;;  %v4352_v39 = vld [vmem:[#allocation2 + $0x5a] sm:$0x3]  ;;  %1818 = vst [vmem:[#allocation2 + $0x9e] sm:$0x3] %v1798_v13  ;;  %v878_v29 = vmul.f32 %v7889_v54, %v8861_v25  ;;  %v7894_v42 = vld [vmem:[%s5871_s13 + $0x48] sm:$0x3] }
 0x3bb   : > { %3529 = vst [vmem:[#allocation2 + $0xa6] sm:$0xff] %v3509_v12  ;;  %v4393_v62 = vadd.f32 %v4373_v17, %v4352_v39  ;;  %v1510_v21 = vld [vmem:[#allocation2 + $0x92] sm:$0xff]  ;;  %v1532_v18 = vmul.f32 %v7894_v42, %v6374_v1  ;;  %v857_v27 = vld [vmem:[#allocation2 + $0x83] sm:$0xff]  ;;  %v2911_v39 = vmul.f32 %v7850_v52, %v8884_v57 }
 0x3bc   : > { %4574 = vst [vmem:[#allocation2 + $0x50] sm:$0xff] %v4554_v16  ;;  %4636 = vadd.xlane.f32.xlu1 %v4554_v16  ;;  %v2238_v32 = vld [vmem:[#allocation2 + $0x70] sm:$0xff]  ;;  %v1551_v60 = vadd.f32 %v1531_v48, %v1510_v21  ;;  %v818_v16 = vadd.f32 %v798_v46, %v777_v31  ;;  %v1206_v46 = vmul.f32 %v7704_v26, %v6119_v5 }
 0x3bd   : > { %4413 = vst [vmem:[#allocation2 + $0x5a] sm:$0x3] %v4393_v62  ;;  %v2239_v13 = vld [vmem:[#allocation2 + $0x78] sm:$0x3]  ;;  %v2279_v15 = vadd.f32 %v2259_v38, %v2238_v32  ;;  %v898_v62 = vadd.f32 %v878_v29, %v857_v27  ;;  %v3570_v38 = vmul.f32 %v7867_v53, %v8928_v10  ;;  %v4454_v29 = vmul.f32 %v7646_v2, %v8926_v63 }
 0x3be   : > { %v2280_v12 = vadd.f32 %v2260_v36, %v2239_v13  ;;  %v1511_v17 = vld [vmem:[#allocation2 + $0x9a] sm:$0x3]  ;;  %1571 = vst [vmem:[#allocation2 + $0x92] sm:$0xff] %v1551_v60  ;;  %v7903_v32 = vld [vmem:[%s5871_s13 + $0x98] sm:$0x3]  ;;  %v2343_v26 = vmul.f32 %v7850_v52, %v6174_v8 }
 0x3bf   : > { %2299 = vst [vmem:[#allocation2 + $0x70] sm:$0xff] %v2279_v15  ;;  %v1552_v48 = vadd.f32 %v1532_v18, %v1511_v17  ;;  %v3571_v50 = vmul.f32 %v7903_v32, %v8928_v10  ;;  %v1185_v60 = vld [vmem:[#allocation2 + $0x8e] sm:$0x3] }
 0x3c0   : > { %v2890_v21 = vld [vmem:[#allocation2 + $0x66] sm:$0xff]  ;;  %2300 = vst [vmem:[#allocation2 + $0x78] sm:$0x3] %v2280_v12  ;;  %v1612_v12 = vmul.f32 %v7850_v52, %v6422_v28 }
 0x3c1   : > { %v2931_v36 = vadd.f32 %v2911_v39, %v2890_v21  ;;  %1572 = vst [vmem:[#allocation2 + $0x9a] sm:$0x3] %v1552_v48  ;;  %v1226_v48 = vadd.f32 %v1206_v46, %v1185_v60  ;;  %v2993_v60 = vmul.f32 %v7894_v42, %v8888_v45 }
 0x3c2   : > { %v3549_v31 = vld [vmem:[#allocation2 + $0xa5] sm:$0xff]  ;;  %v3550_v13 = vld [vmem:[#allocation2 + $0xad] sm:$0x3]  ;;  %838 = vst [vmem:[#allocation2 + $0x8c] sm:$0x3] %v818_v16 }
 0x3c3   : > { %v3590_v15 = vadd.f32 %v3570_v38, %v3549_v31  ;;  %v3591_v18 = vadd.f32 %v3571_v50, %v3550_v13  ;;  %2951 = vst [vmem:[#allocation2 + $0x66] sm:$0xff] %v2931_v36  ;;  %v879_v50 = vmul.f32 %v7631_v56, %v8861_v25  ;;  %v1613_v38 = vmul.f32 %v7894_v42, %v6422_v28  ;;  %v8929_v56 = vld [vmem:[#allocation12_spill] sm:$0xff] }
 0x3c4   : > { %v4433_v27 = vld [vmem:[#allocation2 + $0x59] sm:$0x3]  ;;  %918 = vst [vmem:[#allocation2 + $0x83] sm:$0xff] %v898_v62  ;;  %v2992_v62 = vmul.f32 %v7850_v52, %v8888_v45 }
 0x3c5   : > { %3610 = vst [vmem:[#allocation2 + $0xa5] sm:$0xff] %v3590_v15  ;;  %v4474_v17 = vadd.f32 %v4454_v29, %v4433_v27  ;;  %v1591_v39 = vld [vmem:[#allocation2 + $0x91] sm:$0xff]  ;;  %v3651_v29 = vmul.f32 %v7867_v53, %v8929_v56 }
 0x3c6   : > { %3611 = vst [vmem:[#allocation2 + $0xad] sm:$0x3] %v3591_v18  ;;  %v1632_v16 = vadd.f32 %v1612_v12, %v1591_v39 }
 0x3c7   : > { %4494 = vst [vmem:[#allocation2 + $0x59] sm:$0x3] %v4474_v17  ;;  %v2322_v21 = vld [vmem:[#allocation2 + $0x76] sm:$0xff]  ;;  %v959_v17 = vmul.f32 %v7889_v54, %v8866_v14 }
 0x3c8   : > { %v2363_v36 = vadd.f32 %v2343_v26, %v2322_v21  ;;  %v1592_v31 = vld [vmem:[#allocation2 + $0x99] sm:$0x3]  ;;  %1652 = vst [vmem:[#allocation2 + $0x91] sm:$0xff] %v1632_v16  ;;  %v3652_v26 = vmul.f32 %v7903_v32, %v8929_v56 }
 0x3c9   : > { %v1633_v46 = vadd.f32 %v1613_v38, %v1592_v31  ;;  %v858_v13 = vld [vmem:[#allocation2 + $0x8b] sm:$0x3]  ;;  %1246 = vst [vmem:[#allocation2 + $0x8e] sm:$0x3] %v1226_v48  ;;  %v1693_v31 = vmul.f32 %v7850_v52, %v6460_v41 }
 0x3ca   : > { %v2971_v15 = vld [vmem:[#allocation2 + $0x65] sm:$0xff]  ;;  %v2972_v18 = vld [vmem:[#allocation2 + $0x6d] sm:$0x3]  ;;  %2383 = vst [vmem:[#allocation2 + $0x76] sm:$0xff] %v2363_v36  ;;  %v899_v25 = vadd.f32 %v879_v50, %v858_v13  ;;  %v4535_v50 = vmul.f32 %v7874_v55, %v7646_v2  ;;  %v2424_v13 = vmul.f32 %v7850_v52, %v8908_v51 }
 0x3cb   : > { %v3012_v27 = vadd.f32 %v2992_v62, %v2971_v15  ;;  %v3013_v12 = vadd.f32 %v2993_v60, %v2972_v18  ;;  %1653 = vst [vmem:[#allocation2 + $0x99] sm:$0x3] %v1633_v46  ;;  %v938_v16 = vld [vmem:[#allocation2 + $0x82] sm:$0xff]  ;;  %v2425_v15 = vmul.f32 %v7894_v42, %v8908_v51 }
 0x3cc   : > { %v3630_v39 = vld [vmem:[#allocation2 + $0xa4] sm:$0xff]  ;;  %919 = vst [vmem:[#allocation2 + $0x8b] sm:$0x3] %v899_v25  ;;  %v979_v46 = vadd.f32 %v959_v17, %v938_v16  ;;  %v3073_v17 = vmul.f32 %v7850_v52, %v8891_v3 }
 0x3cd   : > { %v3631_v48 = vld [vmem:[#allocation2 + $0xac] sm:$0x3]  ;;  %v3671_v21 = vadd.f32 %v3651_v29, %v3630_v39  ;;  %3032 = vst [vmem:[#allocation2 + $0x65] sm:$0xff] %v3012_v27  ;;  %v1694_v29 = vmul.f32 %v7894_v42, %v6460_v41 }
 0x3ce   : > { %v3672_v38 = vadd.f32 %v3652_v26, %v3631_v48  ;;  %v4514_v36 = vld [vmem:[#allocation2 + $0x58] sm:$0x3]  ;;  %3033 = vst [vmem:[#allocation2 + $0x6d] sm:$0x3] %v3013_v12  ;;  %v3074_v48 = vmul.f32 %v7894_v42, %v8891_v3 }
 0x3cf   : > { %3691 = vst [vmem:[#allocation2 + $0xa4] sm:$0xff] %v3671_v21  ;;  %v4555_v62 = vadd.f32 %v4535_v50, %v4514_v36  ;;  %v1672_v60 = vld [vmem:[#allocation2 + $0x90] sm:$0xff]  ;;  %v7944_v50 = vld [vmem:[%s5871_s13 + $0x28] sm:$0x3] }
 0x3d0   : > { %3692 = vst [vmem:[#allocation2 + $0xac] sm:$0x3] %v3672_v38  ;;  %v1713_v18 = vadd.f32 %v1693_v31, %v1672_v60  ;;  %v960_v38 = vmul.f32 %v7944_v50, %v8866_v14  ;;  %v8930_v36 = vld [vmem:[#allocation15_spill] sm:$0xff] }
 0x3d1   : > { %4575 = vst [vmem:[#allocation2 + $0x58] sm:$0x3] %v4555_v62  ;;  %v2403_v55 = vld [vmem:[#allocation2 + $0x75] sm:$0xff]  ;;  %v2404_v25 = vld [vmem:[#allocation2 + $0x7d] sm:$0x3]  ;;  %v3732_v31 = vmul.f32 %v7867_v53, %v8930_v36 }
 0x3d2   : > { %v2444_v27 = vadd.f32 %v2424_v13, %v2403_v55  ;;  %v2445_v12 = vadd.f32 %v2425_v15, %v2404_v25  ;;  %v1673_v39 = vld [vmem:[#allocation2 + $0x98] sm:$0x3]  ;;  %1733 = vst [vmem:[#allocation2 + $0x90] sm:$0xff] %v1713_v18  ;;  %v3733_v18 = vmul.f32 %v7903_v32, %v8930_v36 }
 0x3d3   : > { %v1714_v26 = vadd.f32 %v1694_v29, %v1673_v39  ;;  %999 = vst [vmem:[#allocation2 + $0x82] sm:$0xff] %v979_v46  ;;  %v939_v21 = vld [vmem:[#allocation2 + $0x8a] sm:$0x3]  ;;  %v3482_v46 = vmul.f32 %v7646_v2, %v8892_v61  ;;  %v2505_v2 = vmul.f32 %v7850_v52, %v8870_v20 }
 0x3d4   : > { %v3052_v16 = vld [vmem:[#allocation2 + $0x64] sm:$0xff]  ;;  %2464 = vst [vmem:[#allocation2 + $0x75] sm:$0xff] %v2444_v27  ;;  %v1040_v27 = vmul.f32 %v7889_v54, %v8871_v0 }
 0x3d5   : > { %v3053_v62 = vld [vmem:[#allocation2 + $0x6c] sm:$0x3]  ;;  %v3093_v60 = vadd.f32 %v3073_v17, %v3052_v16  ;;  %v3461_v13 = vld [vmem:[#allocation2 + $0x6e] sm:$0x3]  ;;  %2465 = vst [vmem:[#allocation2 + $0x7d] sm:$0x3] %v2445_v12  ;;  %v980_v16 = vadd.f32 %v960_v38, %v939_v21 }
 0x3d6   : > { %v3711_v15 = vld [vmem:[#allocation2 + $0xa3] sm:$0xff]  ;;  %v3094_v55 = vadd.f32 %v3074_v48, %v3053_v62  ;;  %1734 = vst [vmem:[#allocation2 + $0x98] sm:$0x3] %v1714_v26  ;;  %v3502_v14 = vadd.f32 %v3482_v46, %v3461_v13  ;;  %v2506_v48 = vmul.f32 %v7894_v42, %v8870_v20  ;;  %v3154_v46 = vmul.f32 %v7850_v52, %v8916_v49 }
 0x3d7   : > { %v3712_v25 = vld [vmem:[#allocation2 + $0xab] sm:$0x3]  ;;  %v3752_v29 = vadd.f32 %v3732_v31, %v3711_v15  ;;  %3113 = vst [vmem:[#allocation2 + $0x64] sm:$0xff] %v3093_v60  ;;  %v7961_v31 = vld [vmem:[%s5871_s13 + $0x58] sm:$0x3] }
 0x3d8   : > { %v3753_v39 = vadd.f32 %v3733_v18, %v3712_v25  ;;  %v4595_v17 = vld [vmem:[#allocation2 + $0x58] sm:$0xff]  ;;  %3114 = vst [vmem:[#allocation2 + $0x6c] sm:$0x3] %v3094_v55  ;;  %v2914_v62 = vmul.f32 %v7961_v31, %v8884_v57  ;;  %v3155_v25 = vmul.f32 %v7894_v42, %v8916_v49 }
 0x3d9   : > { %3772 = vst [vmem:[#allocation2 + $0xa3] sm:$0xff] %v3752_v29  ;;  %4638 = vadd.xlane.f32.xlu2 %v4595_v17 }
 0x3da   : > { %3773 = vst [vmem:[#allocation2 + $0xab] sm:$0x3] %v3753_v39  ;;  %v1019_v12 = vld [vmem:[#allocation2 + $0x81] sm:$0xff] }
 0x3db   : > { %3522 = vst [vmem:[#allocation2 + $0x6e] sm:$0x3] %v3502_v14  ;;  %v2484_v26 = vld [vmem:[#allocation2 + $0x74] sm:$0xff]  ;;  %v1060_v60 = vadd.f32 %v1040_v27, %v1019_v12  ;;  %v8931_v14 = vld [vmem:[#allocation18_spill] sm:$0xff] }
 0x3dc   : > { %v2485_v13 = vld [vmem:[#allocation2 + $0x7c] sm:$0x3]  ;;  %v2525_v21 = vadd.f32 %v2505_v2, %v2484_v26  ;;  %v2893_v38 = vld [vmem:[#allocation2 + $0x7e] sm:$0x3]  ;;  %1000 = vst [vmem:[#allocation2 + $0x8a] sm:$0x3] %v980_v16  ;;  %v3813_v39 = vmul.f32 %v7867_v53, %v8931_v14  ;;  %v1777_v16 = vmul.f32 %v7715_v22, %v6382_v11  ;;  %v3814_v12 = vmul.f32 %v7903_v32, %v8931_v14  ;;  %v7975_v26 = vpop.permute.xlu1 %5067 }
 0x3dd   : > { %v2526_v15 = vadd.f32 %v2506_v48, %v2485_v13  ;;  %v2934_v18 = vadd.f32 %v2914_v62, %v2893_v38  ;;  %1080 = vst [vmem:[#allocation2 + $0x81] sm:$0xff] %v1060_v60  ;;  %v1756_v29 = vld [vmem:[#allocation2 + $0x96] sm:$0xff] }
 0x3de   : > { %v3133_v55 = vld [vmem:[#allocation2 + $0x63] sm:$0xff]  ;;  %2545 = vst [vmem:[#allocation2 + $0x74] sm:$0xff] %v2525_v21  ;;  %v1797_v21 = vadd.f32 %v1777_v16, %v1756_v29  ;;  %v2587_v29 = vmul.f32 %v7894_v42, %v8874_v9  ;;  %v8935_v13 = vld [vmem:[#allocation57_spill] sm:$0xff] }
 0x3df   : > { %v3134_v27 = vld [vmem:[#allocation2 + $0x6b] sm:$0x3]  ;;  %v3174_v17 = vadd.f32 %v3154_v46, %v3133_v55  ;;  %2546 = vst [vmem:[#allocation2 + $0x7c] sm:$0x3] %v2526_v15  ;;  %v1041_v46 = vmul.f32 %v7944_v50, %v8871_v0  ;;  %v1121_v55 = vmul.f32 %v7889_v54, %v6190_v4  ;;  %v8932_v0 = vld [vmem:[#allocation26_spill] sm:$0xff] }
 0x3e0   : > { %v3792_v2 = vld [vmem:[#allocation2 + $0xa2] sm:$0xff]  ;;  %v3175_v48 = vadd.f32 %v3155_v25, %v3134_v27  ;;  %2954 = vst [vmem:[#allocation2 + $0x7e] sm:$0x3] %v2934_v18  ;;  %v2586_v18 = vmul.f32 %v7850_v52, %v8874_v9 }
 0x3e1   : > { %v3793_v62 = vld [vmem:[#allocation2 + $0xaa] sm:$0x3]  ;;  %v3833_v60 = vadd.f32 %v3813_v39, %v3792_v2  ;;  %3194 = vst [vmem:[#allocation2 + $0x63] sm:$0xff] %v3174_v17 }
 0x3e2   : > { %v3834_v38 = vadd.f32 %v3814_v12, %v3793_v62  ;;  %3195 = vst [vmem:[#allocation2 + $0x6b] sm:$0x3] %v3175_v48  ;;  %v3235_v12 = vmul.f32 %v7850_v52, %v8932_v0  ;;  %v3236_v62 = vmul.f32 %v7894_v42, %v8932_v0 }
 0x3e3   : > { %3853 = vst [vmem:[#allocation2 + $0xa2] sm:$0xff] %v3833_v60  ;;  %v1020_v15 = vld [vmem:[#allocation2 + $0x89] sm:$0x3]  ;;  %v8933_v60 = vld [vmem:[#allocation21_spill] sm:$0xff] }
 0x3e4   : > { %3854 = vst [vmem:[#allocation2 + $0xaa] sm:$0x3] %v3834_v38  ;;  %v1061_v25 = vadd.f32 %v1041_v46, %v1020_v15  ;;  %v1100_v39 = vld [vmem:[#allocation2 + $0x80] sm:$0xff]  ;;  %v3894_v38 = vmul.f32 %v7867_v53, %v8933_v60 }
 0x3e5   : > { %v2565_v27 = vld [vmem:[#allocation2 + $0x73] sm:$0xff]  ;;  %1817 = vst [vmem:[#allocation2 + $0x96] sm:$0xff] %v1797_v21  ;;  %v1141_v17 = vadd.f32 %v1121_v55, %v1100_v39  ;;  %v3895_v55 = vmul.f32 %v7903_v32, %v8933_v60 }
 0x3e6   : > { %v2566_v16 = vld [vmem:[#allocation2 + $0x7b] sm:$0x3]  ;;  %v2606_v2 = vadd.f32 %v2586_v18, %v2565_v27  ;;  %1081 = vst [vmem:[#allocation2 + $0x89] sm:$0x3] %v1061_v25  ;;  %v8934_v27 = vld [vmem:[#allocation42_spill] sm:$0xff] }
 0x3e7   : > { %v2607_v48 = vadd.f32 %v2587_v29, %v2566_v16  ;;  %1161 = vst [vmem:[#allocation2 + $0x80] sm:$0xff] %v1141_v17  ;;  %v1858_v29 = vmul.f32 %v7715_v22, %v8934_v27  ;;  %v1859_v17 = vmul.f32 %v7961_v31, %v8934_v27 }
 0x3e8   : > { %v3214_v54 = vld [vmem:[#allocation2 + $0x62] sm:$0xff]  ;;  %2626 = vst [vmem:[#allocation2 + $0x73] sm:$0xff] %v2606_v2  ;;  %v7999_v2 = vpop.xlane.xlu0 %4634 }
 0x3e9   : > { %v3215_v46 = vld [vmem:[#allocation2 + $0x6a] sm:$0x3]  ;;  %v3255_v15 = vadd.f32 %v3235_v12, %v3214_v54  ;;  %2627 = vst [vmem:[#allocation2 + $0x7b] sm:$0x3] %v2607_v48  ;;  %v1122_v54 = vmul.f32 %v7944_v50, %v6190_v4  ;;  %v3316_v4 = vmul.f32 %v7850_v52, %v8921_v58 }
 0x3ea   : > { %v3873_v21 = vld [vmem:[#allocation2 + $0xa1] sm:$0xff]  ;;  %v3256_v18 = vadd.f32 %v3236_v62, %v3215_v46 }
 0x3eb   : > { %v3874_v25 = vld [vmem:[#allocation2 + $0xa9] sm:$0x3]  ;;  %v3914_v39 = vadd.f32 %v3894_v38, %v3873_v21  ;;  %3275 = vst [vmem:[#allocation2 + $0x62] sm:$0xff] %v3255_v15  ;;  %v2667_v15 = vmul.f32 %v7850_v52, %v8877_v43 }
 0x3ec   : > { %v3915_v16 = vadd.f32 %v3895_v55, %v3874_v25  ;;  %3276 = vst [vmem:[#allocation2 + $0x6a] sm:$0x3] %v3256_v18  ;;  %v1837_v12 = vld [vmem:[#allocation2 + $0x95] sm:$0xff]  ;;  %v1838_v48 = vld [vmem:[#allocation2 + $0x9d] sm:$0x3]  ;;  %v4949_v55 = vmul.f32 %v8935_v13, %v7805_v7  ;;  %v2668_v18 = vmul.f32 %v7894_v42, %v8877_v43 }
 0x3ed   : > { %3934 = vst [vmem:[#allocation2 + $0xa1] sm:$0xff] %v3914_v39  ;;  %v1878_v62 = vadd.f32 %v1858_v29, %v1837_v12  ;;  %v1879_v46 = vadd.f32 %v1859_v17, %v1838_v48  ;;  %v1101_v38 = vld [vmem:[#allocation2 + $0x88] sm:$0x3]  ;;  %v3317_v29 = vmul.f32 %v7894_v42, %v8921_v58  ;;  %v8936_v17 = vld [vmem:[#allocation24_spill] sm:$0xff]  ;;  %v4633_v48 = vpop.xlane.xlu2 %4632 }
 0x3ee   : > { %3935 = vst [vmem:[#allocation2 + $0xa9] sm:$0x3] %v3915_v16  ;;  %v1142_v21 = vadd.f32 %v1122_v54, %v1101_v38  ;;  %v3976_v16 = vmul.f32 %v7903_v32, %v8936_v17 }
 0x3ef   : > { %v2646_v25 = vld [vmem:[#allocation2 + $0x72] sm:$0xff]  ;;  %1898 = vst [vmem:[#allocation2 + $0x95] sm:$0xff] %v1878_v62 }
 0x3f0   : > { %v2647_v63 = vld [vmem:[#allocation2 + $0x7a] sm:$0x3]  ;;  %v2687_v27 = vadd.f32 %v2667_v15, %v2646_v25  ;;  %1899 = vst [vmem:[#allocation2 + $0x9d] sm:$0x3] %v1879_v46  ;;  %v5071_v12 = vpop.permute.xlu0 %5070  ;;  %v8938_v15 = vld [vmem:[#allocation47_spill] sm:$0xff] }
 0x3f1   : > { %5064 = vperm.xlu2 %5461, %v4949_v55   ;;  %v2688_v50 = vadd.f32 %v2668_v18, %v2647_v63  ;;  %1162 = vst [vmem:[#allocation2 + $0x88] sm:$0x3] %v1142_v21  ;;  %v5128_v46 = vperm.slane %v5071_v12, %v7808_v6  ;;  %v8937_v63 = vld [vmem:[#allocation41_spill] sm:$0xff]  ;;  %v1939_v21 = vmul.f32 %v7715_v22, %v8938_v15  ;;  %v8022_v18 = vld [vmem:[%s5871_s13 + $0x68] sm:$0x3] }
 0x3f2   : > { %v3295_v39 = vld [vmem:[#allocation2 + $0x61] sm:$0xff]  ;;  %2707 = vst [vmem:[#allocation2 + $0x72] sm:$0xff] %v2687_v27  ;;  %v4932_v38 = vmul.f32 %v8937_v63, %v4633_v48  ;;  %v1940_v25 = vmul.f32 %v7961_v31, %v8938_v15  ;;  %v2348_v32 = vmul.f32 %v8022_v18, %v6174_v8  ;;  %v1205_v48 = vmul.f32 %v7772_v34, %v6119_v5 }
 0x3f3   : > { %v3296_v7 = vld [vmem:[#allocation2 + $0x69] sm:$0x3]  ;;  %v3336_v13 = vadd.f32 %v3316_v4, %v3295_v39  ;;  %2708 = vst [vmem:[#allocation2 + $0x7a] sm:$0x3] %v2688_v50  ;;  %v8939_v4 = vperm.slane %v7975_v26, %v8923_v37  ;;  %v2749_v26 = vmul.f32 %v7894_v42, %v8880_v35  ;;  %v3398_v5 = vmul.f32 %v7894_v42, %v8906_v44 }
 0x3f4   : > { %v3337_v54 = vadd.f32 %v3317_v29, %v3296_v7  ;;  %5013 = vperm.xlu1 %5459, %v4932_v38   ;;  %v2748_v7 = vmul.f32 %v7850_v52, %v8880_v35  ;;  %v3397_v38 = vmul.f32 %v7850_v52, %v8906_v44 }
 0x3f5   : > { %v3955_v62 = vld [vmem:[#allocation2 + $0xa8] sm:$0x3]  ;;  %3356 = vst [vmem:[#allocation2 + $0x61] sm:$0xff] %v3336_v13  ;;  %v8030_v50 = vsel %vm5089_vm2, %v5128_v46, %v8939_v4 }
 0x3f6   : > { %v3996_v27 = vadd.f32 %v3976_v16, %v3955_v62  ;;  %3357 = vst [vmem:[#allocation2 + $0x69] sm:$0x3] %v3337_v54  ;;  %v1918_v55 = vld [vmem:[#allocation2 + $0x94] sm:$0xff] }
 0x3f7   : > { %v1919_v39 = vld [vmem:[#allocation2 + $0x9c] sm:$0x3]  ;;  %v1959_v22 = vadd.f32 %v1939_v21, %v1918_v55  ;;  %v2327_v29 = vld [vmem:[#allocation2 + $0x9e] sm:$0x3] }
 0x3f8   : > { %4016 = vst [vmem:[#allocation2 + $0xa8] sm:$0x3] %v3996_v27  ;;  %v1960_v13 = vadd.f32 %v1940_v25, %v1919_v39  ;;  %v2368_v16 = vadd.f32 %v2348_v32, %v2327_v29  ;;  %v1184_v12 = vld [vmem:[#allocation2 + $0x86] sm:$0xff]  ;;  %v4663_v27 = vpop.xlane.xlu2 %4662 }
 0x3f9   : > { %v2727_v54 = vld [vmem:[#allocation2 + $0x71] sm:$0xff]  ;;  %1979 = vst [vmem:[#allocation2 + $0x94] sm:$0xff] %v1959_v22  ;;  %v1225_v63 = vadd.f32 %v1205_v48, %v1184_v12  ;;  %v8940_v25 = vld [vmem:[#allocation39_spill] sm:$0xff]  ;;  %v2021_v12 = vmul.f32 %v7961_v31, %v8890_v24 }
 0x3fa   : > { %v2728_v62 = vld [vmem:[#allocation2 + $0x79] sm:$0x3]  ;;  %v2768_v46 = vadd.f32 %v2748_v7, %v2727_v54  ;;  %1980 = vst [vmem:[#allocation2 + $0x9c] sm:$0x3] %v1960_v13  ;;  %v4947_v32 = vmul.f32 %v8940_v25, %v4663_v27  ;;  %v8044_v7 = vld [vmem:[%s5871_s13 + $0x50] sm:$0xff] }
 0x3fb   : > { %v2769_v21 = vadd.f32 %v2749_v26, %v2728_v62  ;;  %2388 = vst [vmem:[#allocation2 + $0x9e] sm:$0x3] %v2368_v16  ;;  %v2020_v13 = vmul.f32 %v8044_v7, %v8890_v24  ;;  %v5008_v26 = vpop.permute.xlu0 %5007  ;;  %v2829_v62 = vmul.f32 %v7850_v52, %v8853_v59  ;;  %v8057_v25 = vld [vmem:[%s5871_s13 + $0x38] sm:$0x3] }
 0x3fc   : > { %v3376_v55 = vld [vmem:[#allocation2 + $0x60] sm:$0xff]  ;;  %2788 = vst [vmem:[#allocation2 + $0x71] sm:$0xff] %v2768_v46  ;;  %5058 = vperm.xlu1 %5459, %v4947_v32   ;;  %v1287_v32 = vmul.f32 %v8057_v25, %v6278_v23  ;;  %v5097_v52 = vperm.slane %v5008_v26, %v8923_v37 }
 0x3fd   : > { %v3377_v4 = vld [vmem:[#allocation2 + $0x68] sm:$0x3]  ;;  %v3417_v39 = vadd.f32 %v3397_v38, %v3376_v55  ;;  %2789 = vst [vmem:[#allocation2 + $0x79] sm:$0x3] %v2769_v21  ;;  %v2830_v38 = vmul.f32 %v7894_v42, %v8853_v59 }
 0x3fe   : > { %v3418_v22 = vadd.f32 %v3398_v5, %v3377_v4  ;;  %1245 = vst [vmem:[#allocation2 + $0x86] sm:$0xff] %v1225_v63  ;;  %v1286_v5 = vmul.f32 %v7772_v34, %v6278_v23 }
 0x3ff   : > { %v4605_v29 = vld [vmem:[#allocation2 + $0xa8] sm:$0xff]  ;;  %3437 = vst [vmem:[#allocation2 + $0x60] sm:$0xff] %v3417_v39 }
 0x400   : > { %4658 = vadd.xlane.f32.xlu0 %v4605_v29  ;;  %3438 = vst [vmem:[#allocation2 + $0x68] sm:$0x3] %v3418_v22  ;;  %v1999_v16 = vld [vmem:[#allocation2 + $0x93] sm:$0xff]  ;;  %v5011_v21 = vpop.permute.xlu2 %5010 }
 0x401   : > { %v2000_v48 = vld [vmem:[#allocation2 + $0x9b] sm:$0x3]  ;;  %v2040_v54 = vadd.f32 %v2020_v13, %v1999_v16  ;;  %v5098_v4 = vperm.slane %v5011_v21, %v7808_v6  ;;  %v3481_v13 = vmul.f32 %v8044_v7, %v8892_v61 }
 0x402   : > { %v2041_v46 = vadd.f32 %v2021_v12, %v2000_v48 }
 0x403   : > { %v2808_v63 = vld [vmem:[#allocation2 + $0x70] sm:$0xff]  ;;  %2060 = vst [vmem:[#allocation2 + $0x93] sm:$0xff] %v2040_v54  ;;  %v5099_v48 = vsel %vm5089_vm2, %v5098_v4, %v5097_v52 }
 0x404   : > { %v2809_v27 = vld [vmem:[#allocation2 + $0x78] sm:$0x3]  ;;  %v2849_v55 = vadd.f32 %v2829_v62, %v2808_v63  ;;  %2061 = vst [vmem:[#allocation2 + $0x9b] sm:$0x3] %v2041_v46  ;;  %v8068_v23 = vsel %vm5140_vm5, %v5099_v48, %v7847_v33  ;;  %v2101_v62 = vmul.f32 %v8044_v7, %v8894_v47  ;;  %v2102_v63 = vmul.f32 %v7961_v31, %v8894_v47 }
 0x405   : > { %v2850_v39 = vadd.f32 %v2830_v38, %v2809_v27  ;;  %v1265_v22 = vld [vmem:[#allocation2 + $0x85] sm:$0xff]  ;;  %v1266_v29 = vld [vmem:[#allocation2 + $0x8d] sm:$0x3]  ;;  %v1776_v48 = vmul.f32 %v7894_v42, %v6382_v11  ;;  %v2183_v42 = vmul.f32 %v7961_v31, %v8897_v19 }
 0x406   : > { %2869 = vst [vmem:[#allocation2 + $0x70] sm:$0xff] %v2849_v55  ;;  %v1306_v16 = vadd.f32 %v1286_v5, %v1265_v22  ;;  %v1307_v12 = vadd.f32 %v1287_v32, %v1266_v29  ;;  %v2913_v55 = vmul.f32 %v8044_v7, %v8884_v57  ;;  %v8941_v5 = vld [vmem:[#allocation34_spill] sm:$0xff]  ;;  %v3562_v22 = vmul.f32 %v8044_v7, %v8928_v10 }
 0x407   : > { %v3460_v54 = vld [vmem:[#allocation2 + $0x66] sm:$0xff]  ;;  %2870 = vst [vmem:[#allocation2 + $0x78] sm:$0x3] %v2850_v39  ;;  %v1367_v32 = vmul.f32 %v7772_v34, %v8941_v5  ;;  %v1368_v39 = vmul.f32 %v8057_v25, %v8941_v5  ;;  %v3563_v29 = vmul.f32 %v7961_v31, %v8928_v10 }
 0x408   : > { %v3501_v26 = vadd.f32 %v3481_v13, %v3460_v54  ;;  %1326 = vst [vmem:[#allocation2 + $0x85] sm:$0xff] %v1306_v16 }
 0x409   : > { %1327 = vst [vmem:[#allocation2 + $0x8d] sm:$0x3] %v1307_v12 }
 0x40a   : > { %3521 = vst [vmem:[#allocation2 + $0x66] sm:$0xff] %v3501_v26  ;;  %v2080_v46 = vld [vmem:[#allocation2 + $0x92] sm:$0xff] }
 0x40b   : > { %v2081_v38 = vld [vmem:[#allocation2 + $0x9a] sm:$0x3]  ;;  %v2121_v21 = vadd.f32 %v2101_v62, %v2080_v46  ;;  %v8942_v62 = vld [vmem:[#allocation64_spill] sm:$0xff] }
 0x40c   : > { %v2122_v27 = vadd.f32 %v2102_v63, %v2081_v38  ;;  %v4933_v46 = vmul.f32 %v8942_v62, %v7999_v2  ;;  %v2994_v2 = vmul.f32 %v8044_v7, %v8888_v45 }
 0x40d   : > { %2141 = vst [vmem:[#allocation2 + $0x92] sm:$0xff] %v2121_v21 }
 0x40e   : > { %v2892_v33 = vld [vmem:[#allocation2 + $0x76] sm:$0xff]  ;;  %2142 = vst [vmem:[#allocation2 + $0x9a] sm:$0x3] %v2122_v27  ;;  %v2182_v27 = vmul.f32 %v8044_v7, %v8897_v19 }
 0x40f   : > { %v2933_v52 = vadd.f32 %v2913_v55, %v2892_v33  ;;  %v1346_v4 = vld [vmem:[#allocation2 + $0x84] sm:$0xff] }
 0x410   : > { %v1347_v13 = vld [vmem:[#allocation2 + $0x8c] sm:$0x3]  ;;  %v1387_v16 = vadd.f32 %v1367_v32, %v1346_v4  ;;  %v1755_v12 = vld [vmem:[#allocation2 + $0x8e] sm:$0x3] }
 0x411   : > { %v3541_v54 = vld [vmem:[#allocation2 + $0x65] sm:$0xff]  ;;  %v3542_v26 = vld [vmem:[#allocation2 + $0x6d] sm:$0x3]  ;;  %2953 = vst [vmem:[#allocation2 + $0x76] sm:$0xff] %v2933_v52  ;;  %v1388_v34 = vadd.f32 %v1368_v39, %v1347_v13  ;;  %v1796_v21 = vadd.f32 %v1776_v48, %v1755_v12  ;;  %v2995_v52 = vmul.f32 %v7961_v31, %v8888_v45  ;;  %v3643_v48 = vmul.f32 %v8044_v7, %v8929_v56 }
 0x412   : > { %v3582_v63 = vadd.f32 %v3562_v22, %v3541_v54  ;;  %v3583_v38 = vadd.f32 %v3563_v29, %v3542_v26  ;;  %1407 = vst [vmem:[#allocation2 + $0x84] sm:$0xff] %v1387_v16  ;;  %v8097_v22 = vld [vmem:[%s5871_s13 + $0x30] sm:$0xff]  ;;  %v1449_v26 = vmul.f32 %v8057_v25, %v8927_v40 }
 0x413   : > { %1408 = vst [vmem:[#allocation2 + $0x8c] sm:$0x3] %v1388_v34  ;;  %v1448_v29 = vmul.f32 %v8097_v22, %v8927_v40  ;;  %v2264_v40 = vmul.f32 %v7961_v31, %v8900_v30 }
 0x414   : > { %5016 = vperm.xlu0 %5460, %v4933_v46   ;;  %3602 = vst [vmem:[#allocation2 + $0x65] sm:$0xff] %v3582_v63  ;;  %v2161_v55 = vld [vmem:[#allocation2 + $0x91] sm:$0xff]  ;;  %v3644_v46 = vmul.f32 %v7961_v31, %v8929_v56 }
 0x415   : > { %3603 = vst [vmem:[#allocation2 + $0x6d] sm:$0x3] %v3583_v38  ;;  %v2162_v33 = vld [vmem:[#allocation2 + $0x99] sm:$0x3]  ;;  %v2202_v5 = vadd.f32 %v2182_v27, %v2161_v55  ;;  %v2263_v55 = vmul.f32 %v8044_v7, %v8900_v30 }
 0x416   : > { %v2203_v32 = vadd.f32 %v2183_v42, %v2162_v33  ;;  %1816 = vst [vmem:[#allocation2 + $0x8e] sm:$0x3] %v1796_v21 }
 0x417   : > { %2222 = vst [vmem:[#allocation2 + $0x91] sm:$0xff] %v2202_v5 }
 0x418   : > { %v2973_v4 = vld [vmem:[#allocation2 + $0x75] sm:$0xff]  ;;  %v2974_v39 = vld [vmem:[#allocation2 + $0x7d] sm:$0x3]  ;;  %2223 = vst [vmem:[#allocation2 + $0x99] sm:$0x3] %v2203_v32 }
 0x419   : > { %v3014_v13 = vadd.f32 %v2994_v2, %v2973_v4  ;;  %v3015_v16 = vadd.f32 %v2995_v52, %v2974_v39  ;;  %v1427_v12 = vld [vmem:[#allocation2 + $0x83] sm:$0xff]  ;;  %v3075_v2 = vmul.f32 %v8044_v7, %v8891_v3  ;;  %v3076_v4 = vmul.f32 %v7961_v31, %v8891_v3 }
 0x41a   : > { %v1428_v54 = vld [vmem:[#allocation2 + $0x8b] sm:$0x3]  ;;  %v1468_v34 = vadd.f32 %v1448_v29, %v1427_v12  ;;  %v3484_v39 = vmul.f32 %v8022_v18, %v8892_v61  ;;  %v3724_v12 = vmul.f32 %v8044_v7, %v8930_v36 }
 0x41b   : > { %v3622_v62 = vld [vmem:[#allocation2 + $0x64] sm:$0xff]  ;;  %3034 = vst [vmem:[#allocation2 + $0x75] sm:$0xff] %v3014_v13  ;;  %v1469_v21 = vadd.f32 %v1449_v26, %v1428_v54 }
 0x41c   : > { %v3623_v63 = vld [vmem:[#allocation2 + $0x6c] sm:$0x3]  ;;  %v3663_v38 = vadd.f32 %v3643_v48, %v3622_v62  ;;  %3035 = vst [vmem:[#allocation2 + $0x7d] sm:$0x3] %v3015_v16 }
 0x41d   : > { %v3664_v27 = vadd.f32 %v3644_v46, %v3623_v63  ;;  %1488 = vst [vmem:[#allocation2 + $0x83] sm:$0xff] %v1468_v34  ;;  %v1529_v34 = vmul.f32 %v8097_v22, %v6374_v1  ;;  %v3725_v46 = vmul.f32 %v7961_v31, %v8930_v36 }
 0x41e   : > { %3683 = vst [vmem:[#allocation2 + $0x64] sm:$0xff] %v3663_v38  ;;  %v2242_v42 = vld [vmem:[#allocation2 + $0x90] sm:$0xff] }
 0x41f   : > { %3684 = vst [vmem:[#allocation2 + $0x6c] sm:$0x3] %v3664_v27  ;;  %v2243_v33 = vld [vmem:[#allocation2 + $0x98] sm:$0x3]  ;;  %v2283_v5 = vadd.f32 %v2263_v55, %v2242_v42 }
 0x420   : > { %v2284_v32 = vadd.f32 %v2264_v40, %v2243_v33  ;;  %1489 = vst [vmem:[#allocation2 + $0x8b] sm:$0x3] %v1469_v21  ;;  %v1530_v21 = vmul.f32 %v8057_v25, %v6374_v1  ;;  %v8126_v40 = vld [vmem:[%s5871_s13 + $0x60] sm:$0xff] }
 0x421   : > { %2303 = vst [vmem:[#allocation2 + $0x90] sm:$0xff] %v2283_v5  ;;  %v2347_v33 = vmul.f32 %v8126_v40, %v6174_v8 }
 0x422   : > { %v3054_v52 = vld [vmem:[#allocation2 + $0x74] sm:$0xff]  ;;  %2304 = vst [vmem:[#allocation2 + $0x98] sm:$0x3] %v2284_v32 }
 0x423   : > { %v3055_v29 = vld [vmem:[#allocation2 + $0x7c] sm:$0x3]  ;;  %v3095_v13 = vadd.f32 %v3075_v2, %v3054_v52  ;;  %v3463_v16 = vld [vmem:[#allocation2 + $0x7e] sm:$0x3]  ;;  %v3156_v52 = vmul.f32 %v8044_v7, %v8916_v49 }
 0x424   : > { %v3096_v48 = vadd.f32 %v3076_v4, %v3055_v29  ;;  %v3504_v54 = vadd.f32 %v3484_v39, %v3463_v16  ;;  %v1508_v26 = vld [vmem:[#allocation2 + $0x82] sm:$0xff]  ;;  %v3157_v4 = vmul.f32 %v7961_v31, %v8916_v49 }
 0x425   : > { %v3703_v62 = vld [vmem:[#allocation2 + $0x63] sm:$0xff]  ;;  %3115 = vst [vmem:[#allocation2 + $0x74] sm:$0xff] %v3095_v13  ;;  %v1549_v27 = vadd.f32 %v1529_v34, %v1508_v26  ;;  %v3805_v13 = vmul.f32 %v8044_v7, %v8931_v14  ;;  %v1610_v34 = vmul.f32 %v8097_v22, %v6422_v28 }
 0x426   : > { %v3704_v63 = vld [vmem:[#allocation2 + $0x6b] sm:$0x3]  ;;  %v3744_v38 = vadd.f32 %v3724_v12, %v3703_v62  ;;  %3116 = vst [vmem:[#allocation2 + $0x7c] sm:$0x3] %v3096_v48  ;;  %v3806_v48 = vmul.f32 %v7961_v31, %v8931_v14 }
 0x427   : > { %v3745_v55 = vadd.f32 %v3725_v46, %v3704_v63  ;;  %3524 = vst [vmem:[#allocation2 + $0x7e] sm:$0x3] %v3504_v54  ;;  %v1509_v42 = vld [vmem:[#allocation2 + $0x8a] sm:$0x3]  ;;  %v1611_v63 = vmul.f32 %v8057_v25, %v6422_v28 }
 0x428   : > { %3764 = vst [vmem:[#allocation2 + $0x63] sm:$0xff] %v3744_v38  ;;  %v1550_v5 = vadd.f32 %v1530_v21, %v1509_v42  ;;  %v2428_v38 = vmul.f32 %v8126_v40, %v8908_v51  ;;  %v2429_v21 = vmul.f32 %v8022_v18, %v8908_v51 }
 0x429   : > { %3765 = vst [vmem:[#allocation2 + $0x6b] sm:$0x3] %v3745_v55  ;;  %v2326_v32 = vld [vmem:[#allocation2 + $0x96] sm:$0xff] }
 0x42a   : > { %v2367_v2 = vadd.f32 %v2347_v33, %v2326_v32  ;;  %1569 = vst [vmem:[#allocation2 + $0x82] sm:$0xff] %v1549_v27 }
 0x42b   : > { %1570 = vst [vmem:[#allocation2 + $0x8a] sm:$0x3] %v1550_v5 }
 0x42c   : > { %v3135_v1 = vld [vmem:[#allocation2 + $0x73] sm:$0xff]  ;;  %2387 = vst [vmem:[#allocation2 + $0x96] sm:$0xff] %v2367_v2 }
 0x42d   : > { %v3136_v39 = vld [vmem:[#allocation2 + $0x7b] sm:$0x3]  ;;  %v3176_v29 = vadd.f32 %v3156_v52, %v3135_v1  ;;  %v3237_v52 = vmul.f32 %v8044_v7, %v8932_v0  ;;  %v3238_v1 = vmul.f32 %v7961_v31, %v8932_v0 }
 0x42e   : > { %v3177_v16 = vadd.f32 %v3157_v4, %v3136_v39 }
 0x42f   : > { %v3784_v12 = vld [vmem:[#allocation2 + $0x62] sm:$0xff]  ;;  %3196 = vst [vmem:[#allocation2 + $0x73] sm:$0xff] %v3176_v29  ;;  %v3886_v29 = vmul.f32 %v8044_v7, %v8933_v60 }
 0x430   : > { %v3785_v54 = vld [vmem:[#allocation2 + $0x6a] sm:$0x3]  ;;  %v3825_v26 = vadd.f32 %v3805_v13, %v3784_v12  ;;  %3197 = vst [vmem:[#allocation2 + $0x7b] sm:$0x3] %v3177_v16  ;;  %v3887_v12 = vmul.f32 %v7961_v31, %v8933_v60 }
 0x431   : > { %v3826_v62 = vadd.f32 %v3806_v48, %v3785_v54  ;;  %v1589_v46 = vld [vmem:[#allocation2 + $0x81] sm:$0xff] }
 0x432   : > { %3845 = vst [vmem:[#allocation2 + $0x62] sm:$0xff] %v3825_v26  ;;  %v1590_v27 = vld [vmem:[#allocation2 + $0x89] sm:$0x3]  ;;  %v1630_v55 = vadd.f32 %v1610_v34, %v1589_v46  ;;  %v1691_v26 = vmul.f32 %v8097_v22, %v6460_v41 }
 0x433   : > { %3846 = vst [vmem:[#allocation2 + $0x6a] sm:$0x3] %v3826_v62  ;;  %v2407_v42 = vld [vmem:[#allocation2 + $0x95] sm:$0xff]  ;;  %v2408_v33 = vld [vmem:[#allocation2 + $0x9d] sm:$0x3]  ;;  %v1631_v5 = vadd.f32 %v1611_v63, %v1590_v27  ;;  %v3975_v62 = vmul.f32 %v7867_v53, %v8936_v17  ;;  %v3954_v63 = vld [vmem:[#allocation2 + $0xa0] sm:$0xff]  ;;  %v3318_v53 = vmul.f32 %v8044_v7, %v8921_v58 }
 0x434   : > { %v2448_v32 = vadd.f32 %v2428_v38, %v2407_v42  ;;  %v2449_v2 = vadd.f32 %v2429_v21, %v2408_v33  ;;  %1650 = vst [vmem:[#allocation2 + $0x81] sm:$0xff] %v1630_v55  ;;  %v2509_v38 = vmul.f32 %v8126_v40, %v8870_v20  ;;  %v2510_v42 = vmul.f32 %v8022_v18, %v8870_v20  ;;  %v8163_v33 = vld [vmem:[%s5871_s13 + $0x78] sm:$0x3] }
 0x435   : > { %1651 = vst [vmem:[#allocation2 + $0x89] sm:$0x3] %v1631_v5  ;;  %v3995_v27 = vadd.f32 %v3975_v62, %v3954_v63  ;;  %v2918_v22 = vmul.f32 %v8163_v33, %v8884_v57 }
 0x436   : > { %v3216_v28 = vld [vmem:[#allocation2 + $0x72] sm:$0xff]  ;;  %2468 = vst [vmem:[#allocation2 + $0x95] sm:$0xff] %v2448_v32 }
 0x437   : > { %v3217_v4 = vld [vmem:[#allocation2 + $0x7a] sm:$0x3]  ;;  %v3257_v39 = vadd.f32 %v3237_v52, %v3216_v28  ;;  %2469 = vst [vmem:[#allocation2 + $0x9d] sm:$0x3] %v2449_v2  ;;  %4656 = vadd.xlane.f32.xlu2 %v3995_v27 }
 0x438   : > { %v3258_v13 = vadd.f32 %v3238_v1, %v3217_v4  ;;  %4015 = vst [vmem:[#allocation2 + $0xa0] sm:$0xff] %v3995_v27  ;;  %v1692_v4 = vmul.f32 %v8057_v25, %v6460_v41 }
 0x439   : > { %v3865_v16 = vld [vmem:[#allocation2 + $0x61] sm:$0xff]  ;;  %3277 = vst [vmem:[#allocation2 + $0x72] sm:$0xff] %v3257_v39 }
 0x43a   : > { %v3866_v48 = vld [vmem:[#allocation2 + $0x69] sm:$0x3]  ;;  %v3906_v54 = vadd.f32 %v3886_v29, %v3865_v16  ;;  %3278 = vst [vmem:[#allocation2 + $0x7a] sm:$0x3] %v3258_v13  ;;  %v3319_v29 = vmul.f32 %v7961_v31, %v8921_v58 }
 0x43b   : > { %v3907_v34 = vadd.f32 %v3887_v12, %v3866_v48  ;;  %v1670_v46 = vld [vmem:[#allocation2 + $0x80] sm:$0xff]  ;;  %v3967_v48 = vmul.f32 %v8044_v7, %v8936_v17 }
 0x43c   : > { %3926 = vst [vmem:[#allocation2 + $0x61] sm:$0xff] %v3906_v54  ;;  %v1711_v21 = vadd.f32 %v1691_v26, %v1670_v46  ;;  %v1671_v5 = vld [vmem:[#allocation2 + $0x88] sm:$0x3]  ;;  %v2590_v46 = vmul.f32 %v8126_v40, %v8874_v9 }
 0x43d   : > { %3927 = vst [vmem:[#allocation2 + $0x69] sm:$0x3] %v3907_v34  ;;  %v2488_v55 = vld [vmem:[#allocation2 + $0x94] sm:$0xff]  ;;  %v1712_v12 = vadd.f32 %v1692_v4, %v1671_v5  ;;  %v3968_v34 = vmul.f32 %v7961_v31, %v8936_v17  ;;  %v3400_v5 = vmul.f32 %v7961_v31, %v8906_v44  ;;  %v8943_v4 = vld [vmem:[#allocation6_spill] sm:$0xff] }
 0x43e   : > { %v2489_v32 = vld [vmem:[#allocation2 + $0x9c] sm:$0x3]  ;;  %v2529_v2 = vadd.f32 %v2509_v38, %v2488_v55  ;;  %v2897_v52 = vld [vmem:[#allocation2 + $0x9e] sm:$0x3]  ;;  %1731 = vst [vmem:[#allocation2 + $0x80] sm:$0xff] %v1711_v21  ;;  %v2591_v38 = vmul.f32 %v8022_v18, %v8874_v9  ;;  %v3399_v55 = vmul.f32 %v8044_v7, %v8906_v44 }
 0x43f   : > { %v2530_v28 = vadd.f32 %v2510_v42, %v2489_v32  ;;  %v2938_v1 = vadd.f32 %v2918_v22, %v2897_v52  ;;  %1732 = vst [vmem:[#allocation2 + $0x88] sm:$0x3] %v1712_v12  ;;  %v2671_v12 = vmul.f32 %v8126_v40, %v8877_v43 }
 0x440   : > { %v3297_v39 = vld [vmem:[#allocation2 + $0x71] sm:$0xff]  ;;  %2549 = vst [vmem:[#allocation2 + $0x94] sm:$0xff] %v2529_v2  ;;  %v8186_v2 = vld [vmem:[%s5871_s13 + $0x40] sm:$0xff] }
 0x441   : > { %v3298_v13 = vld [vmem:[#allocation2 + $0x79] sm:$0x3]  ;;  %v3338_v16 = vadd.f32 %v3318_v53, %v3297_v39  ;;  %2550 = vst [vmem:[#allocation2 + $0x9c] sm:$0x3] %v2530_v28  ;;  %v1775_v52 = vmul.f32 %v8186_v2, %v6382_v11  ;;  %v4050_v39 = vmul.f32 %v8126_v40, %v8943_v4  ;;  %v2672_v11 = vmul.f32 %v8022_v18, %v8877_v43 }
 0x442   : > { %v3339_v54 = vadd.f32 %v3319_v29, %v3298_v13  ;;  %2958 = vst [vmem:[#allocation2 + $0x9e] sm:$0x3] %v2938_v1 }
 0x443   : > { %v3946_v26 = vld [vmem:[#allocation2 + $0x60] sm:$0xff]  ;;  %3358 = vst [vmem:[#allocation2 + $0x71] sm:$0xff] %v3338_v16 }
 0x444   : > { %v3947_v41 = vld [vmem:[#allocation2 + $0x68] sm:$0x3]  ;;  %v3987_v25 = vadd.f32 %v3967_v48, %v3946_v26  ;;  %3359 = vst [vmem:[#allocation2 + $0x79] sm:$0x3] %v3339_v54  ;;  %v4661_v54 = vpop.xlane.xlu1 %4660 }
 0x445   : > { %v3988_v62 = vadd.f32 %v3968_v34, %v3947_v41 }
 0x446   : > { %4007 = vst [vmem:[#allocation2 + $0x60] sm:$0xff] %v3987_v25  ;;  %v1754_v1 = vld [vmem:[#allocation2 + $0x86] sm:$0xff]  ;;  %v3483_v25 = vmul.f32 %v8126_v40, %v8892_v61 }
 0x447   : > { %4008 = vst [vmem:[#allocation2 + $0x68] sm:$0x3] %v3988_v62  ;;  %v2569_v63 = vld [vmem:[#allocation2 + $0x93] sm:$0xff]  ;;  %v1795_v29 = vadd.f32 %v1775_v52, %v1754_v1 }
 0x448   : > { %v2570_v21 = vld [vmem:[#allocation2 + $0x9b] sm:$0x3]  ;;  %v2610_v27 = vadd.f32 %v2590_v46, %v2569_v63  ;;  %v8944_v62 = vld [vmem:[#allocation56_spill] sm:$0xff] }
 0x449   : > { %v2611_v42 = vadd.f32 %v2591_v38, %v2570_v21  ;;  %1815 = vst [vmem:[#allocation2 + $0x86] sm:$0xff] %v1795_v29  ;;  %v4946_v46 = vmul.f32 %v8944_v62, %v4661_v54  ;;  %v8945_v38 = vld [vmem:[#allocation42_spill] sm:$0xff]  ;;  %v2752_v29 = vmul.f32 %v8126_v40, %v8880_v35  ;;  %v3564_v54 = vmul.f32 %v8126_v40, %v8928_v10 }
 0x44a   : > { %v3378_v22 = vld [vmem:[#allocation2 + $0x70] sm:$0xff]  ;;  %2630 = vst [vmem:[#allocation2 + $0x93] sm:$0xff] %v2610_v27  ;;  %v1856_v21 = vmul.f32 %v8186_v2, %v8945_v38  ;;  %v8202_v27 = vld [vmem:[%s5871_s13 + $0x48] sm:$0x3] }
 0x44b   : > { %v3379_v53 = vld [vmem:[#allocation2 + $0x78] sm:$0x3]  ;;  %v3419_v32 = vadd.f32 %v3399_v55, %v3378_v22  ;;  %2631 = vst [vmem:[#allocation2 + $0x9b] sm:$0x3] %v2611_v42  ;;  %v1857_v55 = vmul.f32 %v8202_v27, %v8945_v38  ;;  %v8947_v38 = vld [vmem:[#allocation11_spill] sm:$0xff] }
 0x44c   : > { %v3420_v28 = vadd.f32 %v3400_v5, %v3379_v53  ;;  %v8946_v53 = vld [vmem:[#allocation9_spill] sm:$0xff] }
 0x44d   : > { %3439 = vst [vmem:[#allocation2 + $0x70] sm:$0xff] %v3419_v32  ;;  %v4131_v32 = vmul.f32 %v8126_v40, %v8946_v53 }
 0x44e   : > { %v4029_v13 = vld [vmem:[#allocation2 + $0x66] sm:$0xff]  ;;  %3440 = vst [vmem:[#allocation2 + $0x78] sm:$0x3] %v3420_v28 }
 0x44f   : > { %v4070_v16 = vadd.f32 %v4050_v39, %v4029_v13  ;;  %5055 = vperm.xlu2 %5461, %v4946_v46  }
 0x450   : > { %v1835_v22 = vld [vmem:[#allocation2 + $0x85] sm:$0xff]  ;;  %v1836_v5 = vld [vmem:[#allocation2 + $0x8d] sm:$0x3] }
 0x451   : > { %4090 = vst [vmem:[#allocation2 + $0x66] sm:$0xff] %v4070_v16  ;;  %v2650_v48 = vld [vmem:[#allocation2 + $0x92] sm:$0xff]  ;;  %v1876_v52 = vadd.f32 %v1856_v21, %v1835_v22  ;;  %v1877_v28 = vadd.f32 %v1857_v55, %v1836_v5  ;;  %v2753_v16 = vmul.f32 %v8022_v18, %v8880_v35  ;;  %v4212_v21 = vmul.f32 %v8126_v40, %v8947_v38 }
 0x452   : > { %v2651_v26 = vld [vmem:[#allocation2 + $0x9a] sm:$0x3]  ;;  %v2691_v34 = vadd.f32 %v2671_v12, %v2650_v48 }
 0x453   : > { %v2692_v41 = vadd.f32 %v2672_v11, %v2651_v26  ;;  %1896 = vst [vmem:[#allocation2 + $0x85] sm:$0xff] %v1876_v52  ;;  %v3565_v26 = vmul.f32 %v8022_v18, %v8928_v10 }
 0x454   : > { %2711 = vst [vmem:[#allocation2 + $0x92] sm:$0xff] %v2691_v34 }
 0x455   : > { %v3462_v63 = vld [vmem:[#allocation2 + $0x76] sm:$0xff]  ;;  %2712 = vst [vmem:[#allocation2 + $0x9a] sm:$0x3] %v2692_v41 }
 0x456   : > { %v3503_v42 = vadd.f32 %v3483_v25, %v3462_v63  ;;  %1897 = vst [vmem:[#allocation2 + $0x8d] sm:$0x3] %v1877_v28  ;;  %v1937_v25 = vmul.f32 %v8186_v2, %v8938_v15  ;;  %v4030_v28 = vld [vmem:[#allocation2 + $0x6e] sm:$0x3] }
 0x458   : > { %v4110_v1 = vld [vmem:[#allocation2 + $0x65] sm:$0xff]  ;;  %3523 = vst [vmem:[#allocation2 + $0x76] sm:$0xff] %v3503_v42  ;;  %v1938_v42 = vmul.f32 %v8202_v27, %v8938_v15 }
 0x459   : > { %v4151_v39 = vadd.f32 %v4131_v32, %v4110_v1  ;;  %v4051_v32 = vmul.f32 %v8022_v18, %v8943_v4 }
 0x45a   : > { %v1916_v63 = vld [vmem:[#allocation2 + $0x84] sm:$0xff] }
 0x45b   : > { %4171 = vst [vmem:[#allocation2 + $0x65] sm:$0xff] %v4151_v39  ;;  %v2731_v13 = vld [vmem:[#allocation2 + $0x91] sm:$0xff]  ;;  %v1957_v22 = vadd.f32 %v1937_v25, %v1916_v63  ;;  %v3646_v25 = vmul.f32 %v8022_v18, %v8929_v56 }
 0x45c   : > { %v2732_v12 = vld [vmem:[#allocation2 + $0x99] sm:$0x3]  ;;  %v2772_v48 = vadd.f32 %v2752_v29, %v2731_v13  ;;  %v4071_v29 = vadd.f32 %v4051_v32, %v4030_v28  ;;  %v2833_v13 = vmul.f32 %v8126_v40, %v8853_v59 }
 0x45d   : > { %v2773_v11 = vadd.f32 %v2753_v16, %v2732_v12  ;;  %v1917_v55 = vld [vmem:[#allocation2 + $0x8c] sm:$0x3]  ;;  %v2325_v39 = vld [vmem:[#allocation2 + $0x8e] sm:$0x3]  ;;  %1977 = vst [vmem:[#allocation2 + $0x84] sm:$0xff] %v1957_v22  ;;  %v2346_v16 = vmul.f32 %v7961_v31, %v6174_v8  ;;  %v2834_v12 = vmul.f32 %v8022_v18, %v8853_v59  ;;  %v4053_v31 = vmul.f32 %v8163_v33, %v8943_v4 }
 0x45e   : > { %2792 = vst [vmem:[#allocation2 + $0x91] sm:$0xff] %v2772_v48  ;;  %v1958_v1 = vadd.f32 %v1938_v42, %v1917_v55  ;;  %v8948_v55 = vld [vmem:[#allocation13_spill] sm:$0xff] }
 0x45f   : > { %v3543_v34 = vld [vmem:[#allocation2 + $0x75] sm:$0xff]  ;;  %v3544_v41 = vld [vmem:[#allocation2 + $0x7d] sm:$0x3]  ;;  %2793 = vst [vmem:[#allocation2 + $0x99] sm:$0x3] %v2773_v11  ;;  %v4293_v42 = vmul.f32 %v8126_v40, %v8948_v55 }
 0x460   : > { %v3584_v62 = vadd.f32 %v3564_v54, %v3543_v34  ;;  %v3585_v46 = vadd.f32 %v3565_v26, %v3544_v41  ;;  %4091 = vst [vmem:[#allocation2 + $0x6e] sm:$0x3] %v4071_v29  ;;  %v2366_v54 = vadd.f32 %v2346_v16, %v2325_v39  ;;  %v3645_v34 = vmul.f32 %v8126_v40, %v8929_v56 }
 0x461   : > { %1978 = vst [vmem:[#allocation2 + $0x8c] sm:$0x3] %v1958_v1  ;;  %v2019_v39 = vmul.f32 %v8202_v27, %v8890_v24 }
 0x462   : > { %v4191_v5 = vld [vmem:[#allocation2 + $0x64] sm:$0xff]  ;;  %3604 = vst [vmem:[#allocation2 + $0x75] sm:$0xff] %v3584_v62 }
 0x463   : > { %v4232_v52 = vadd.f32 %v4212_v21, %v4191_v5  ;;  %3605 = vst [vmem:[#allocation2 + $0x7d] sm:$0x3] %v3585_v46  ;;  %v2018_v21 = vmul.f32 %v8186_v2, %v8890_v24  ;;  %v3727_v24 = vmul.f32 %v8022_v18, %v8930_v36 }
 0x464   : > { %2386 = vst [vmem:[#allocation2 + $0x8e] sm:$0x3] %v2366_v54  ;;  %v1997_v32 = vld [vmem:[#allocation2 + $0x83] sm:$0xff] }
 0x465   : > { %4252 = vst [vmem:[#allocation2 + $0x64] sm:$0xff] %v4232_v52  ;;  %v2812_v15 = vld [vmem:[#allocation2 + $0x90] sm:$0xff]  ;;  %v2038_v28 = vadd.f32 %v2018_v21, %v1997_v32 }
 0x466   : > { %v2813_v48 = vld [vmem:[#allocation2 + $0x98] sm:$0x3]  ;;  %v2853_v11 = vadd.f32 %v2833_v13, %v2812_v15  ;;  %v8243_v13 = vld [vmem:[%s5871_s13 + $0x70] sm:$0xff] }
 0x467   : > { %v2854_v26 = vadd.f32 %v2834_v12, %v2813_v48  ;;  %v2917_v16 = vmul.f32 %v8243_v13, %v8884_v57  ;;  %2058 = vst [vmem:[#allocation2 + $0x83] sm:$0xff] %v2038_v28  ;;  %v2998_v32 = vmul.f32 %v8243_v13, %v8888_v45 }
 0x468   : > { %2873 = vst [vmem:[#allocation2 + $0x90] sm:$0xff] %v2853_v11  ;;  %v1998_v29 = vld [vmem:[#allocation2 + $0x8b] sm:$0x3]  ;;  %v3726_v11 = vmul.f32 %v8126_v40, %v8930_v36 }
 0x469   : > { %v3624_v41 = vld [vmem:[#allocation2 + $0x74] sm:$0xff]  ;;  %2874 = vst [vmem:[#allocation2 + $0x98] sm:$0x3] %v2854_v26  ;;  %v2039_v15 = vadd.f32 %v2019_v39, %v1998_v29 }
 0x46a   : > { %v3625_v62 = vld [vmem:[#allocation2 + $0x7c] sm:$0x3]  ;;  %v3665_v46 = vadd.f32 %v3645_v34, %v3624_v41  ;;  %v4032_v63 = vld [vmem:[#allocation2 + $0x7e] sm:$0x3] }
 0x46b   : > { %v3666_v22 = vadd.f32 %v3646_v25, %v3625_v62  ;;  %v4073_v5 = vadd.f32 %v4053_v31, %v4032_v63  ;;  %2059 = vst [vmem:[#allocation2 + $0x8b] sm:$0x3] %v2039_v15  ;;  %v8949_v41 = vld [vmem:[#allocation17_spill] sm:$0xff]  ;;  %v3807_v15 = vmul.f32 %v8126_v40, %v8931_v14 }
 0x46c   : > { %v4272_v52 = vld [vmem:[#allocation2 + $0x63] sm:$0xff]  ;;  %3685 = vst [vmem:[#allocation2 + $0x74] sm:$0xff] %v3665_v46  ;;  %v4374_v25 = vmul.f32 %v8126_v40, %v8949_v41  ;;  %v2099_v46 = vmul.f32 %v8186_v2, %v8894_v47 }
 0x46d   : > { %v4313_v1 = vadd.f32 %v4293_v42, %v4272_v52  ;;  %3686 = vst [vmem:[#allocation2 + $0x7c] sm:$0x3] %v3666_v22  ;;  %v2100_v42 = vmul.f32 %v8202_v27, %v8894_v47  ;;  %v2999_v52 = vmul.f32 %v8163_v33, %v8888_v45 }
 0x46e   : > { %4093 = vst [vmem:[#allocation2 + $0x7e] sm:$0x3] %v4073_v5  ;;  %v2078_v21 = vld [vmem:[#allocation2 + $0x82] sm:$0xff] }
 0x46f   : > { %4333 = vst [vmem:[#allocation2 + $0x63] sm:$0xff] %v4313_v1  ;;  %v2119_v5 = vadd.f32 %v2099_v46, %v2078_v21  ;;  %v2181_v46 = vmul.f32 %v8202_v27, %v8897_v19 }
 0x470   : > { %v2896_v12 = vld [vmem:[#allocation2 + $0x96] sm:$0xff] }
 0x471   : > { %v2937_v48 = vadd.f32 %v2917_v16, %v2896_v12  ;;  %2139 = vst [vmem:[#allocation2 + $0x82] sm:$0xff] %v2119_v5  ;;  %v3808_v12 = vmul.f32 %v8022_v18, %v8931_v14 }
 0x472   : > { %v2079_v22 = vld [vmem:[#allocation2 + $0x8a] sm:$0x3] }
 0x473   : > { %v3705_v54 = vld [vmem:[#allocation2 + $0x73] sm:$0xff]  ;;  %2957 = vst [vmem:[#allocation2 + $0x96] sm:$0xff] %v2937_v48  ;;  %v2120_v28 = vadd.f32 %v2100_v42, %v2079_v22  ;;  %v3079_v42 = vmul.f32 %v8243_v13, %v8891_v3 }
 0x474   : > { %v3706_v26 = vld [vmem:[#allocation2 + $0x7b] sm:$0x3]  ;;  %v3746_v34 = vadd.f32 %v3726_v11, %v3705_v54  ;;  %v8950_v54 = vld [vmem:[#allocation19_spill] sm:$0xff] }
 0x475   : > { %v3747_v31 = vadd.f32 %v3727_v24, %v3706_v26  ;;  %2140 = vst [vmem:[#allocation2 + $0x8a] sm:$0x3] %v2120_v28  ;;  %v4455_v24 = vmul.f32 %v8126_v40, %v8950_v54 }
 0x476   : > { %v4353_v62 = vld [vmem:[#allocation2 + $0x62] sm:$0xff]  ;;  %3766 = vst [vmem:[#allocation2 + $0x73] sm:$0xff] %v3746_v34 }
 0x477   : > { %v4394_v63 = vadd.f32 %v4374_v25, %v4353_v62  ;;  %3767 = vst [vmem:[#allocation2 + $0x7b] sm:$0x3] %v3747_v31  ;;  %v2180_v25 = vmul.f32 %v8186_v2, %v8897_v19 }
 0x478   : > { %v2159_v62 = vld [vmem:[#allocation2 + $0x81] sm:$0xff] }
 0x479   : > { %4414 = vst [vmem:[#allocation2 + $0x62] sm:$0xff] %v4394_v63  ;;  %v2200_v21 = vadd.f32 %v2180_v25, %v2159_v62 }
 0x47a   : > { %v2977_v1 = vld [vmem:[#allocation2 + $0x95] sm:$0xff]  ;;  %v2978_v39 = vld [vmem:[#allocation2 + $0x9d] sm:$0x3] }
 0x47b   : > { %v3018_v29 = vadd.f32 %v2998_v32, %v2977_v1  ;;  %v3019_v16 = vadd.f32 %v2999_v52, %v2978_v39  ;;  %v3080_v32 = vmul.f32 %v8163_v33, %v8891_v3  ;;  %v8276_v52 = vld [vmem:[%s5871_s13 + $0x88] sm:$0x3]  ;;  %2220 = vst [vmem:[#allocation2 + $0x81] sm:$0xff] %v2200_v21 }
 0x47c   : > { %v2160_v63 = vld [vmem:[#allocation2 + $0x89] sm:$0x3]  ;;  %v3488_v28 = vmul.f32 %v8276_v52, %v8892_v61 }
 0x47d   : > { %v3786_v47 = vld [vmem:[#allocation2 + $0x72] sm:$0xff]  ;;  %3038 = vst [vmem:[#allocation2 + $0x95] sm:$0xff] %v3018_v29  ;;  %v2201_v22 = vadd.f32 %v2181_v46, %v2160_v63  ;;  %v3888_v29 = vmul.f32 %v8126_v40, %v8933_v60  ;;  %v2262_v63 = vmul.f32 %v8202_v27, %v8900_v30 }
 0x47e   : > { %v3787_v48 = vld [vmem:[#allocation2 + $0x7a] sm:$0x3]  ;;  %v3827_v11 = vadd.f32 %v3807_v15, %v3786_v47  ;;  %3039 = vst [vmem:[#allocation2 + $0x9d] sm:$0x3] %v3019_v16 }
 0x47f   : > { %v3828_v26 = vadd.f32 %v3808_v12, %v3787_v48  ;;  %2221 = vst [vmem:[#allocation2 + $0x89] sm:$0x3] %v2201_v22  ;;  %v3889_v12 = vmul.f32 %v8022_v18, %v8933_v60  ;;  %v3160_v22 = vmul.f32 %v8243_v13, %v8916_v49 }
 0x480   : > { %v4434_v34 = vld [vmem:[#allocation2 + $0x61] sm:$0xff]  ;;  %3847 = vst [vmem:[#allocation2 + $0x72] sm:$0xff] %v3827_v11 }
 0x481   : > { %v4475_v31 = vadd.f32 %v4455_v24, %v4434_v34  ;;  %3848 = vst [vmem:[#allocation2 + $0x7a] sm:$0x3] %v3828_v26  ;;  %v8287_v24 = vld [vmem:[%s8650_s2 + $0x30] ss:$0 sm:$0xff] }
 0x482   : > { %v4536_v26 = vmul.f32 %v8287_v24, %v8126_v40  ;;  %v2240_v46 = vld [vmem:[#allocation2 + $0x80] sm:$0xff] }
 0x483   : > { %4495 = vst [vmem:[#allocation2 + $0x61] sm:$0xff] %v4475_v31  ;;  %v2261_v31 = vmul.f32 %v8186_v2, %v8900_v30 }
 0x484   : > { %v3058_v5 = vld [vmem:[#allocation2 + $0x94] sm:$0xff] }
 0x485   : > { %v3059_v1 = vld [vmem:[#allocation2 + $0x9c] sm:$0x3]  ;;  %v3099_v39 = vadd.f32 %v3079_v42, %v3058_v5  ;;  %v3467_v19 = vld [vmem:[#allocation2 + $0x9e] sm:$0x3]  ;;  %v2281_v42 = vadd.f32 %v2261_v31, %v2240_v46  ;;  %v4052_v46 = vmul.f32 %v8243_v13, %v8943_v4 }
 0x486   : > { %v3100_v16 = vadd.f32 %v3080_v32, %v3059_v1  ;;  %v3508_v15 = vadd.f32 %v3488_v28, %v3467_v19  ;;  %v2241_v21 = vld [vmem:[#allocation2 + $0x88] sm:$0x3]  ;;  %v3161_v28 = vmul.f32 %v8163_v33, %v8916_v49  ;;  %v3970_v19 = vmul.f32 %v8022_v18, %v8936_v17 }
 0x487   : > { %v3867_v47 = vld [vmem:[#allocation2 + $0x71] sm:$0xff]  ;;  %3119 = vst [vmem:[#allocation2 + $0x94] sm:$0xff] %v3099_v39  ;;  %v2282_v5 = vadd.f32 %v2262_v63, %v2241_v21  ;;  %v3969_v39 = vmul.f32 %v8126_v40, %v8936_v17  ;;  %v4132_v21 = vmul.f32 %v8022_v18, %v8946_v53 }
 0x488   : > { %v3868_v48 = vld [vmem:[#allocation2 + $0x79] sm:$0x3]  ;;  %v3908_v11 = vadd.f32 %v3888_v29, %v3867_v47  ;;  %3120 = vst [vmem:[#allocation2 + $0x9c] sm:$0x3] %v3100_v16  ;;  %v2345_v47 = vmul.f32 %v8044_v7, %v6174_v8 }
 0x489   : > { %v3909_v34 = vadd.f32 %v3889_v12, %v3868_v48  ;;  %3528 = vst [vmem:[#allocation2 + $0x9e] sm:$0x3] %v3508_v15  ;;  %v3241_v48 = vmul.f32 %v8243_v13, %v8932_v0 }
 0x48a   : > { %v4515_v25 = vld [vmem:[#allocation2 + $0x60] sm:$0xff]  ;;  %3928 = vst [vmem:[#allocation2 + $0x71] sm:$0xff] %v3908_v11 }
 0x48b   : > { %v4556_v62 = vadd.f32 %v4536_v26, %v4515_v25  ;;  %3929 = vst [vmem:[#allocation2 + $0x79] sm:$0x3] %v3909_v34  ;;  %v3242_v34 = vmul.f32 %v8163_v33, %v8932_v0 }
 0x48c   : > { %2301 = vst [vmem:[#allocation2 + $0x80] sm:$0xff] %v2281_v42  ;;  %v4111_v42 = vld [vmem:[#allocation2 + $0x6d] sm:$0x3] }
 0x48d   : > { %4576 = vst [vmem:[#allocation2 + $0x60] sm:$0xff] %v4556_v62  ;;  %4640 = vadd.xlane.f32.xlu0 %v4556_v62 }
 0x48e   : > { %v3139_v32 = vld [vmem:[#allocation2 + $0x93] sm:$0xff]  ;;  %2302 = vst [vmem:[#allocation2 + $0x88] sm:$0x3] %v2282_v5 }
 0x48f   : > { %v3140_v2 = vld [vmem:[#allocation2 + $0x9b] sm:$0x3]  ;;  %v3180_v1 = vadd.f32 %v3160_v22, %v3139_v32  ;;  %v2426_v22 = vmul.f32 %v8044_v7, %v8908_v51  ;;  %v8316_v5 = vld [vmem:[%s5871_s13 + $0x58] sm:$0x3] }
 0x490   : > { %v3181_v30 = vadd.f32 %v3161_v28, %v3140_v2  ;;  %v2427_v32 = vmul.f32 %v8316_v5, %v8908_v51  ;;  %v4152_v28 = vadd.f32 %v4132_v21, %v4111_v42  ;;  %v4133_v51 = vmul.f32 %v8243_v13, %v8946_v53 }
 0x491   : > { %v3948_v27 = vld [vmem:[#allocation2 + $0x70] sm:$0xff]  ;;  %3200 = vst [vmem:[#allocation2 + $0x93] sm:$0xff] %v3180_v1  ;;  %v3403_v21 = vmul.f32 %v8243_v13, %v8906_v44 }
 0x492   : > { %v3949_v29 = vld [vmem:[#allocation2 + $0x78] sm:$0x3]  ;;  %v3989_v16 = vadd.f32 %v3969_v39, %v3948_v27  ;;  %3201 = vst [vmem:[#allocation2 + $0x9b] sm:$0x3] %v3181_v30  ;;  %v3322_v39 = vmul.f32 %v8243_v13, %v8921_v58 }
 0x493   : > { %v3990_v15 = vadd.f32 %v3970_v19, %v3949_v29  ;;  %4172 = vst [vmem:[#allocation2 + $0x6d] sm:$0x3] %v4152_v28  ;;  %v3323_v19 = vmul.f32 %v8163_v33, %v8921_v58 }
 0x494   : > { %4009 = vst [vmem:[#allocation2 + $0x70] sm:$0xff] %v3989_v16 }
 0x495   : > { %4010 = vst [vmem:[#allocation2 + $0x78] sm:$0x3] %v3990_v15  ;;  %v2324_v12 = vld [vmem:[#allocation2 + $0x86] sm:$0xff] }
 0x496   : > { %v2365_v11 = vadd.f32 %v2345_v47, %v2324_v12  ;;  %v4134_v47 = vmul.f32 %v8163_v33, %v8946_v53 }
 0x498   : > { %v3220_v26 = vld [vmem:[#allocation2 + $0x92] sm:$0xff]  ;;  %2385 = vst [vmem:[#allocation2 + $0x86] sm:$0xff] %v2365_v11 }
 0x499   : > { %v3221_v25 = vld [vmem:[#allocation2 + $0x9a] sm:$0x3]  ;;  %v3261_v31 = vadd.f32 %v3241_v48, %v3220_v26 }
 0x49a   : > { %v3262_v62 = vadd.f32 %v3242_v34, %v3221_v25  ;;  %v8329_v34 = vld [vmem:[%s5871_s13 + $0x68] sm:$0x3] }
 0x49b   : > { %3281 = vst [vmem:[#allocation2 + $0x92] sm:$0xff] %v3261_v31  ;;  %v4213_v25 = vmul.f32 %v8329_v34, %v8947_v38  ;;  %v4192_v31 = vld [vmem:[#allocation2 + $0x6c] sm:$0x3]  ;;  %v2916_v28 = vmul.f32 %v8329_v34, %v8884_v57 }
 0x49c   : > { %v4031_v63 = vld [vmem:[#allocation2 + $0x76] sm:$0xff]  ;;  %3282 = vst [vmem:[#allocation2 + $0x9a] sm:$0x3] %v3262_v62  ;;  %v2507_v62 = vmul.f32 %v8044_v7, %v8870_v20  ;;  %v3404_v7 = vmul.f32 %v8163_v33, %v8906_v44 }
 0x49d   : > { %v4072_v8 = vadd.f32 %v4052_v46, %v4031_v63  ;;  %v4233_v46 = vadd.f32 %v4213_v25, %v4192_v31  ;;  %v2589_v31 = vmul.f32 %v8316_v5, %v8874_v9 }
 0x49f   : > { %4092 = vst [vmem:[#allocation2 + $0x76] sm:$0xff] %v4072_v8  ;;  %v2405_v2 = vld [vmem:[#allocation2 + $0x85] sm:$0xff]  ;;  %v2406_v1 = vld [vmem:[#allocation2 + $0x8d] sm:$0x3]  ;;  %v2508_v8 = vmul.f32 %v8316_v5, %v8870_v20 }
 0x4a0   : > { %v2446_v30 = vadd.f32 %v2426_v22, %v2405_v2  ;;  %v2447_v27 = vadd.f32 %v2427_v32, %v2406_v1  ;;  %4253 = vst [vmem:[#allocation2 + $0x6c] sm:$0x3] %v4233_v46 }
 0x4a2   : > { %v3301_v18 = vld [vmem:[#allocation2 + $0x91] sm:$0xff]  ;;  %2466 = vst [vmem:[#allocation2 + $0x85] sm:$0xff] %v2446_v30 }
 0x4a3   : > { %v3302_v29 = vld [vmem:[#allocation2 + $0x99] sm:$0x3]  ;;  %v3342_v16 = vadd.f32 %v3322_v39, %v3301_v18  ;;  %2467 = vst [vmem:[#allocation2 + $0x8d] sm:$0x3] %v2447_v27  ;;  %v4214_v18 = vmul.f32 %v8243_v13, %v8947_v38 }
 0x4a4   : > { %v3343_v15 = vadd.f32 %v3323_v19, %v3302_v29  ;;  %v4215_v29 = vmul.f32 %v8163_v33, %v8947_v38 }
 0x4a5   : > { %3362 = vst [vmem:[#allocation2 + $0x91] sm:$0xff] %v3342_v16 }
 0x4a6   : > { %v4112_v12 = vld [vmem:[#allocation2 + $0x75] sm:$0xff]  ;;  %v4113_v48 = vld [vmem:[#allocation2 + $0x7d] sm:$0x3]  ;;  %3363 = vst [vmem:[#allocation2 + $0x99] sm:$0x3] %v3343_v15 }
 0x4a7   : > { %v4153_v11 = vadd.f32 %v4133_v51, %v4112_v12  ;;  %v4154_v26 = vadd.f32 %v4134_v47, %v4113_v48  ;;  %v4294_v47 = vmul.f32 %v8329_v34, %v8948_v55  ;;  %v4273_v12 = vld [vmem:[#allocation2 + $0x6b] sm:$0x3]  ;;  %v8350_v48 = vld [vmem:[%s5871_s13 + $0x50] sm:$0xff] }
 0x4a9   : > { %4173 = vst [vmem:[#allocation2 + $0x75] sm:$0xff] %v4153_v11  ;;  %v2486_v63 = vld [vmem:[#allocation2 + $0x84] sm:$0xff]  ;;  %v2588_v11 = vmul.f32 %v8350_v48, %v8874_v9  ;;  %v4296_v9 = vmul.f32 %v8163_v33, %v8948_v55 }
 0x4aa   : > { %4174 = vst [vmem:[#allocation2 + $0x7d] sm:$0x3] %v4154_v26  ;;  %v2487_v42 = vld [vmem:[#allocation2 + $0x8c] sm:$0x3]  ;;  %v2527_v22 = vadd.f32 %v2507_v62, %v2486_v63  ;;  %v2895_v32 = vld [vmem:[#allocation2 + $0x8e] sm:$0x3]  ;;  %v4314_v26 = vadd.f32 %v4294_v47, %v4273_v12 }
 0x4ab   : > { %v2528_v1 = vadd.f32 %v2508_v8, %v2487_v42  ;;  %v2936_v20 = vadd.f32 %v2916_v28, %v2895_v32  ;;  %v8357_v63 = vld [vmem:[%s5871_s13 + $0x80] sm:$0xff]  ;;  %v4295_v32 = vmul.f32 %v8243_v13, %v8948_v55 }
 0x4ac   : > { %v3382_v2 = vld [vmem:[#allocation2 + $0x90] sm:$0xff]  ;;  %2547 = vst [vmem:[#allocation2 + $0x84] sm:$0xff] %v2527_v22  ;;  %v3487_v8 = vmul.f32 %v8357_v63, %v8892_v61 }
 0x4ad   : > { %v3383_v39 = vld [vmem:[#allocation2 + $0x98] sm:$0x3]  ;;  %v3423_v30 = vadd.f32 %v3403_v21, %v3382_v2  ;;  %2548 = vst [vmem:[#allocation2 + $0x8c] sm:$0x3] %v2528_v1 }
 0x4ae   : > { %v3424_v27 = vadd.f32 %v3404_v7, %v3383_v39  ;;  %2956 = vst [vmem:[#allocation2 + $0x8e] sm:$0x3] %v2936_v20  ;;  %v4375_v39 = vmul.f32 %v8329_v34, %v8949_v41  ;;  %v2669_v20 = vmul.f32 %v8350_v48, %v8877_v43 }
 0x4af   : > { %3443 = vst [vmem:[#allocation2 + $0x90] sm:$0xff] %v3423_v30 }
 0x4b0   : > { %v4193_v19 = vld [vmem:[#allocation2 + $0x74] sm:$0xff]  ;;  %3444 = vst [vmem:[#allocation2 + $0x98] sm:$0x3] %v3424_v27 }
 0x4b1   : > { %v4194_v16 = vld [vmem:[#allocation2 + $0x7c] sm:$0x3]  ;;  %v4234_v15 = vadd.f32 %v4214_v18, %v4193_v19  ;;  %4334 = vst [vmem:[#allocation2 + $0x6b] sm:$0x3] %v4314_v26  ;;  %v2670_v19 = vmul.f32 %v8316_v5, %v8877_v43 }
 0x4b2   : > { %v4235_v51 = vadd.f32 %v4215_v29, %v4194_v16 }
 0x4b3   : > { %4254 = vst [vmem:[#allocation2 + $0x74] sm:$0xff] %v4234_v15  ;;  %v2567_v25 = vld [vmem:[#allocation2 + $0x83] sm:$0xff]  ;;  %v3568_v15 = vmul.f32 %v8357_v63, %v8928_v10 }
 0x4b4   : > { %4255 = vst [vmem:[#allocation2 + $0x7c] sm:$0x3] %v4235_v51  ;;  %v2568_v62 = vld [vmem:[#allocation2 + $0x8b] sm:$0x3]  ;;  %v2608_v46 = vadd.f32 %v2588_v11, %v2567_v25  ;;  %v3569_v51 = vmul.f32 %v8276_v52, %v8928_v10 }
 0x4b5   : > { %v2609_v21 = vadd.f32 %v2589_v31, %v2568_v62  ;;  %v4376_v31 = vmul.f32 %v8243_v13, %v8949_v41  ;;  %v4377_v62 = vmul.f32 %v8163_v33, %v8949_v41 }
 0x4b6   : > { %2628 = vst [vmem:[#allocation2 + $0x83] sm:$0xff] %v2608_v46 }
 0x4b7   : > { %v3466_v42 = vld [vmem:[#allocation2 + $0x96] sm:$0xff]  ;;  %2629 = vst [vmem:[#allocation2 + $0x8b] sm:$0x3] %v2609_v21 }
 0x4b8   : > { %v3507_v22 = vadd.f32 %v3487_v8, %v3466_v42  ;;  %v4354_v30 = vld [vmem:[#allocation2 + $0x6a] sm:$0x3]  ;;  %v4456_v42 = vmul.f32 %v8329_v34, %v8950_v54 }
 0x4b9   : > { %v4395_v27 = vadd.f32 %v4375_v39, %v4354_v30  ;;  %v3649_v39 = vmul.f32 %v8357_v63, %v8929_v56 }
 0x4ba   : > { %v4274_v28 = vld [vmem:[#allocation2 + $0x73] sm:$0xff]  ;;  %3527 = vst [vmem:[#allocation2 + $0x96] sm:$0xff] %v3507_v22 }
 0x4bb   : > { %v4275_v2 = vld [vmem:[#allocation2 + $0x7b] sm:$0x3]  ;;  %v4315_v7 = vadd.f32 %v4295_v32, %v4274_v28  ;;  %4415 = vst [vmem:[#allocation2 + $0x6a] sm:$0x3] %v4395_v27  ;;  %v2750_v32 = vmul.f32 %v8350_v48, %v8880_v35  ;;  %v3650_v27 = vmul.f32 %v8276_v52, %v8929_v56 }
 0x4bc   : > { %v4316_v1 = vadd.f32 %v4296_v9, %v4275_v2  ;;  %v2751_v2 = vmul.f32 %v8316_v5, %v8880_v35 }
 0x4bd   : > { %4335 = vst [vmem:[#allocation2 + $0x73] sm:$0xff] %v4315_v7  ;;  %v2648_v18 = vld [vmem:[#allocation2 + $0x82] sm:$0xff] }
 0x4be   : > { %4336 = vst [vmem:[#allocation2 + $0x7b] sm:$0x3] %v4316_v1  ;;  %v2649_v29 = vld [vmem:[#allocation2 + $0x8a] sm:$0x3]  ;;  %v2689_v16 = vadd.f32 %v2669_v20, %v2648_v18 }
 0x4bf   : > { %v2690_v47 = vadd.f32 %v2670_v19, %v2649_v29  ;;  %v4457_v29 = vmul.f32 %v8243_v13, %v8950_v54 }
 0x4c0   : > { %2709 = vst [vmem:[#allocation2 + $0x82] sm:$0xff] %v2689_v16 }
 0x4c1   : > { %v3547_v12 = vld [vmem:[#allocation2 + $0x95] sm:$0xff]  ;;  %v3548_v11 = vld [vmem:[#allocation2 + $0x9d] sm:$0x3]  ;;  %2710 = vst [vmem:[#allocation2 + $0x8a] sm:$0x3] %v2690_v47 }
 0x4c2   : > { %v3588_v26 = vadd.f32 %v3568_v15, %v3547_v12  ;;  %v3589_v25 = vadd.f32 %v3569_v51, %v3548_v11  ;;  %v4435_v22 = vld [vmem:[#allocation2 + $0x69] sm:$0x3]  ;;  %v4458_v15 = vmul.f32 %v8163_v33, %v8950_v54  ;;  %v4537_v11 = vmul.f32 %v8329_v34, %v8287_v24 }
 0x4c3   : > { %v4476_v28 = vadd.f32 %v4456_v42, %v4435_v22 }
 0x4c4   : > { %v4355_v43 = vld [vmem:[#allocation2 + $0x72] sm:$0xff]  ;;  %3608 = vst [vmem:[#allocation2 + $0x95] sm:$0xff] %v3588_v26 }
 0x4c5   : > { %v4356_v46 = vld [vmem:[#allocation2 + $0x7a] sm:$0x3]  ;;  %v4396_v8 = vadd.f32 %v4376_v31, %v4355_v43  ;;  %3609 = vst [vmem:[#allocation2 + $0x9d] sm:$0x3] %v3589_v25  ;;  %v2831_v25 = vmul.f32 %v8350_v48, %v8853_v59 }
 0x4c6   : > { %v4397_v21 = vadd.f32 %v4377_v62, %v4356_v46  ;;  %4496 = vst [vmem:[#allocation2 + $0x69] sm:$0x3] %v4476_v28  ;;  %v2832_v62 = vmul.f32 %v8316_v5, %v8853_v59 }
 0x4c7   : > { %4416 = vst [vmem:[#allocation2 + $0x72] sm:$0xff] %v4396_v8  ;;  %v2729_v9 = vld [vmem:[#allocation2 + $0x81] sm:$0xff] }
 0x4c8   : > { %4417 = vst [vmem:[#allocation2 + $0x7a] sm:$0x3] %v4397_v21  ;;  %v2730_v7 = vld [vmem:[#allocation2 + $0x89] sm:$0x3]  ;;  %v2770_v1 = vadd.f32 %v2750_v32, %v2729_v9  ;;  %v3730_v21 = vmul.f32 %v8357_v63, %v8930_v36  ;;  %v3731_v32 = vmul.f32 %v8276_v52, %v8930_v36 }
 0x4c9   : > { %v2771_v30 = vadd.f32 %v2751_v2, %v2730_v7  ;;  %v4539_v2 = vmul.f32 %v8287_v24, %v8163_v33 }
 0x4ca   : > { %2790 = vst [vmem:[#allocation2 + $0x81] sm:$0xff] %v2770_v1  ;;  %v2915_v1 = vmul.f32 %v8126_v40, %v8884_v57  ;;  %v2997_v40 = vmul.f32 %v8329_v34, %v8888_v45 }
 0x4cb   : > { %v3628_v20 = vld [vmem:[#allocation2 + $0x94] sm:$0xff]  ;;  %2791 = vst [vmem:[#allocation2 + $0x89] sm:$0x3] %v2771_v30  ;;  %v3811_v30 = vmul.f32 %v8357_v63, %v8931_v14 }
 0x4cc   : > { %v3629_v18 = vld [vmem:[#allocation2 + $0x9c] sm:$0x3]  ;;  %v3669_v19 = vadd.f32 %v3649_v39, %v3628_v20 }
 0x4cd   : > { %v3670_v16 = vadd.f32 %v3650_v27, %v3629_v18  ;;  %v4516_v26 = vld [vmem:[#allocation2 + $0x68] sm:$0x3]  ;;  %v3812_v18 = vmul.f32 %v8276_v52, %v8931_v14 }
 0x4ce   : > { %v4436_v35 = vld [vmem:[#allocation2 + $0x71] sm:$0xff]  ;;  %3689 = vst [vmem:[#allocation2 + $0x94] sm:$0xff] %v3669_v19  ;;  %v4557_v31 = vadd.f32 %v4537_v11, %v4516_v26 }
 0x4cf   : > { %v4437_v51 = vld [vmem:[#allocation2 + $0x79] sm:$0x3]  ;;  %v4477_v47 = vadd.f32 %v4457_v29, %v4436_v35  ;;  %3690 = vst [vmem:[#allocation2 + $0x9c] sm:$0x3] %v3670_v16 }
 0x4d0   : > { %v4478_v12 = vadd.f32 %v4458_v15, %v4437_v51  ;;  %4577 = vst [vmem:[#allocation2 + $0x68] sm:$0x3] %v4557_v31  ;;  %v8412_v15 = vld [vmem:[%s5871_s13 + $0x60] sm:$0xff]  ;;  %v3893_v31 = vmul.f32 %v8276_v52, %v8933_v60 }
 0x4d1   : > { %4497 = vst [vmem:[#allocation2 + $0x71] sm:$0xff] %v4477_v47  ;;  %v2810_v43 = vld [vmem:[#allocation2 + $0x80] sm:$0xff]  ;;  %v2996_v57 = vmul.f32 %v8412_v15, %v8888_v45  ;;  %v3077_v45 = vmul.f32 %v8412_v15, %v8891_v3 }
 0x4d2   : > { %4498 = vst [vmem:[#allocation2 + $0x79] sm:$0x3] %v4478_v12  ;;  %v2811_v46 = vld [vmem:[#allocation2 + $0x88] sm:$0x3]  ;;  %v2851_v8 = vadd.f32 %v2831_v25, %v2810_v43  ;;  %v3892_v12 = vmul.f32 %v8357_v63, %v8933_v60 }
 0x4d3   : > { %v2852_v42 = vadd.f32 %v2832_v62, %v2811_v46 }
 0x4d4   : > { %2871 = vst [vmem:[#allocation2 + $0x80] sm:$0xff] %v2851_v8 }
 0x4d5   : > { %v3709_v22 = vld [vmem:[#allocation2 + $0x93] sm:$0xff]  ;;  %2872 = vst [vmem:[#allocation2 + $0x88] sm:$0x3] %v2852_v42  ;;  %v3973_v42 = vmul.f32 %v8357_v63, %v8936_v17 }
 0x4d6   : > { %v3710_v28 = vld [vmem:[#allocation2 + $0x9b] sm:$0x3]  ;;  %v3750_v48 = vadd.f32 %v3730_v21, %v3709_v22  ;;  %v3078_v21 = vmul.f32 %v8329_v34, %v8891_v3 }
 0x4d7   : > { %v3751_v9 = vadd.f32 %v3731_v32, %v3710_v28  ;;  %v4597_v7 = vld [vmem:[#allocation2 + $0x68] sm:$0xff] }
 0x4d8   : > { %3770 = vst [vmem:[#allocation2 + $0x93] sm:$0xff] %v3750_v48  ;;  %4642 = vadd.xlane.f32.xlu1 %v4597_v7  ;;  %v3486_v48 = vmul.f32 %v8163_v33, %v8892_v61  ;;  %v3159_v33 = vmul.f32 %v8329_v34, %v8916_v49 }
 0x4d9   : > { %v4518_v59 = vld [vmem:[#allocation2 + $0x78] sm:$0x3]  ;;  %3771 = vst [vmem:[#allocation2 + $0x9b] sm:$0x3] %v3751_v9 }
 0x4da   : > { %v4559_v5 = vadd.f32 %v4539_v2, %v4518_v59  ;;  %v3974_v2 = vmul.f32 %v8276_v52, %v8936_v17 }
 0x4dc   : > { %4579 = vst [vmem:[#allocation2 + $0x78] sm:$0x3] %v4559_v5  ;;  %v2894_v39 = vld [vmem:[#allocation2 + $0x86] sm:$0xff] }
 0x4dd   : > { %v2935_v20 = vadd.f32 %v2915_v1, %v2894_v39  ;;  %v3158_v39 = vmul.f32 %v8412_v15, %v8916_v49  ;;  %v3240_v49 = vmul.f32 %v8329_v34, %v8932_v0 }
 0x4df   : > { %v3790_v27 = vld [vmem:[#allocation2 + $0x92] sm:$0xff]  ;;  %2955 = vst [vmem:[#allocation2 + $0x86] sm:$0xff] %v2935_v20 }
 0x4e0   : > { %v3791_v19 = vld [vmem:[#allocation2 + $0x9a] sm:$0x3]  ;;  %v3831_v29 = vadd.f32 %v3811_v30, %v3790_v27 }
 0x4e1   : > { %v3832_v16 = vadd.f32 %v3812_v18, %v3791_v19  ;;  %v8437_v18 = vld [vmem:[%s5871_s13 + $0x90] sm:$0xff] }
 0x4e2   : > { %3851 = vst [vmem:[#allocation2 + $0x92] sm:$0xff] %v3831_v29  ;;  %v4056_v19 = vmul.f32 %v8437_v18, %v8943_v4 }
 0x4e3   : > { %v4599_v35 = vld [vmem:[#allocation2 + $0x78] sm:$0xff]  ;;  %3852 = vst [vmem:[#allocation2 + $0x9a] sm:$0x3] %v3832_v16 }
 0x4e4   : > { %4646 = vadd.xlane.f32.xlu0 %v4599_v35 }
 0x4e6   : > { %v2975_v51 = vld [vmem:[#allocation2 + $0x85] sm:$0xff]  ;;  %v2976_v47 = vld [vmem:[#allocation2 + $0x8d] sm:$0x3] }
 0x4e7   : > { %v3016_v11 = vadd.f32 %v2996_v57, %v2975_v51  ;;  %v3017_v26 = vadd.f32 %v2997_v40, %v2976_v47  ;;  %v3239_v57 = vmul.f32 %v8412_v15, %v8932_v0 }
 0x4e9   : > { %v3871_v25 = vld [vmem:[#allocation2 + $0x91] sm:$0xff]  ;;  %3036 = vst [vmem:[#allocation2 + $0x85] sm:$0xff] %v3016_v11 }
 0x4ea   : > { %v3872_v43 = vld [vmem:[#allocation2 + $0x99] sm:$0x3]  ;;  %v3912_v62 = vadd.f32 %v3892_v12, %v3871_v25  ;;  %3037 = vst [vmem:[#allocation2 + $0x8d] sm:$0x3] %v3017_v26  ;;  %v4137_v12 = vmul.f32 %v8437_v18, %v8946_v53 }
 0x4eb   : > { %v3913_v46 = vadd.f32 %v3893_v31, %v3872_v43  ;;  %v3320_v31 = vmul.f32 %v8412_v15, %v8921_v58 }
 0x4ec   : > { %3932 = vst [vmem:[#allocation2 + $0x91] sm:$0xff] %v3912_v62  ;;  %v3321_v62 = vmul.f32 %v8329_v34, %v8921_v58 }
 0x4ed   : > { %3933 = vst [vmem:[#allocation2 + $0x99] sm:$0x3] %v3913_v46 }
 0x4f0   : > { %v3056_v8 = vld [vmem:[#allocation2 + $0x84] sm:$0xff] }
 0x4f1   : > { %v3057_v22 = vld [vmem:[#allocation2 + $0x8c] sm:$0x3]  ;;  %v3097_v32 = vadd.f32 %v3077_v45, %v3056_v8  ;;  %v3465_v28 = vld [vmem:[#allocation2 + $0x8e] sm:$0x3]  ;;  %v4218_v45 = vmul.f32 %v8437_v18, %v8947_v38 }
 0x4f2   : > { %v3098_v59 = vadd.f32 %v3078_v21, %v3057_v22  ;;  %v3506_v1 = vadd.f32 %v3486_v48, %v3465_v28  ;;  %v3401_v22 = vmul.f32 %v8412_v15, %v8906_v44  ;;  %v3402_v28 = vmul.f32 %v8329_v34, %v8906_v44 }
 0x4f3   : > { %v3952_v9 = vld [vmem:[#allocation2 + $0x90] sm:$0xff]  ;;  %3117 = vst [vmem:[#allocation2 + $0x84] sm:$0xff] %v3097_v32  ;;  %v3485_v44 = vmul.f32 %v8243_v13, %v8892_v61  ;;  %v4461_v61 = vmul.f32 %v8437_v18, %v8950_v54 }
 0x4f4   : > { %v3953_v5 = vld [vmem:[#allocation2 + $0x98] sm:$0x3]  ;;  %v3993_v7 = vadd.f32 %v3973_v42, %v3952_v9  ;;  %3118 = vst [vmem:[#allocation2 + $0x8c] sm:$0x3] %v3098_v59  ;;  %v4299_v59 = vmul.f32 %v8437_v18, %v8948_v55 }
 0x4f5   : > { %v3994_v3 = vadd.f32 %v3974_v2, %v3953_v5  ;;  %3526 = vst [vmem:[#allocation2 + $0x8e] sm:$0x3] %v3506_v1  ;;  %v8458_v9 = vld [vmem:[%s5871_s13 + $0x98] sm:$0x3] }
 0x4f6   : > { %4013 = vst [vmem:[#allocation2 + $0x90] sm:$0xff] %v3993_v7  ;;  %v4057_v2 = vmul.f32 %v8458_v9, %v8943_v4  ;;  %v4036_v7 = vld [vmem:[#allocation2 + $0x9e] sm:$0x3] }
 0x4f7   : > { %4014 = vst [vmem:[#allocation2 + $0x98] sm:$0x3] %v3994_v3 }
 0x4f8   : > { %v4077_v15 = vadd.f32 %v4057_v2, %v4036_v7 }
 0x4fa   : > { %v3137_v30 = vld [vmem:[#allocation2 + $0x83] sm:$0xff]  ;;  %4097 = vst [vmem:[#allocation2 + $0x9e] sm:$0x3] %v4077_v15 }
 0x4fb   : > { %v3138_v20 = vld [vmem:[#allocation2 + $0x8b] sm:$0x3]  ;;  %v3178_v27 = vadd.f32 %v3158_v39, %v3137_v30  ;;  %v4380_v39 = vmul.f32 %v8437_v18, %v8949_v41 }
 0x4fc   : > { %v3179_v29 = vadd.f32 %v3159_v33, %v3138_v20 }
 0x4fd   : > { %3198 = vst [vmem:[#allocation2 + $0x83] sm:$0xff] %v3178_v27  ;;  %v3566_v27 = vmul.f32 %v8243_v13, %v8928_v10 }
 0x4fe   : > { %v4035_v16 = vld [vmem:[#allocation2 + $0x96] sm:$0xff]  ;;  %3199 = vst [vmem:[#allocation2 + $0x8b] sm:$0x3] %v3179_v29 }
 0x4ff   : > { %v4076_v35 = vadd.f32 %v4056_v19, %v4035_v16  ;;  %v5560_v19 = vld [vmem:[%s5871_s13 + $0x78] sm:$0x3]  ;;  %s223_s13 = sand.u32 1, %s5615_s19  }
 0x500   : > { %v3567_v29 = vmul.f32 %v5560_v19, %v8928_v10  ;;  %v4055_v10 = vmul.f32 %v8276_v52, %v8943_v4  ;;  %v3891_v7 = vmul.f32 %v5560_v19, %v8933_v60  ;;  %s5277_s8 = sshll.u32 %s223_s13, 4  ;;  %s5168_s15 = scalar_lea.sflag [#allocation4], %s223_s13 }
 0x501   : > { %4096 = vst [vmem:[#allocation2 + $0x96] sm:$0xff] %v4076_v35  ;;  %s8581_s9 = scalar_lea.vmem [#allocation3], %s5277_s8 }
 0x502   : > { %s5183_s22 = sshll.u32 %s8581_s9, 4  ;;  %s5184_s22 = int_to_ptr.vmem [resolvable:$true] %s5183_s22 }
 0x504   : > { %v3218_v40 = vld [vmem:[#allocation2 + $0x82] sm:$0xff] }
 0x505   : > { %v3219_v51 = vld [vmem:[#allocation2 + $0x8a] sm:$0x3]  ;;  %v3259_v47 = vadd.f32 %v3239_v57, %v3218_v40 }
 0x506   : > { %v3260_v11 = vadd.f32 %v3240_v49, %v3219_v51 }
 0x507   : > { %3279 = vst [vmem:[#allocation2 + $0x82] sm:$0xff] %v3259_v47  ;;  %v3647_v47 = vmul.f32 %v8243_v13, %v8929_v56 }
 0x508   : > { %v4116_v26 = vld [vmem:[#allocation2 + $0x95] sm:$0xff]  ;;  %3280 = vst [vmem:[#allocation2 + $0x8a] sm:$0x3] %v3260_v11  ;;  %v3648_v11 = vmul.f32 %v5560_v19, %v8929_v56  ;;  %v3728_v56 = vmul.f32 %v8243_v13, %v8930_v36 }
 0x509   : > { %v4157_v25 = vadd.f32 %v4137_v12, %v4116_v26  ;;  %v4542_v26 = vmul.f32 %v8437_v18, %v8287_v24 }
 0x50b   : > { %4177 = vst [vmem:[#allocation2 + $0x95] sm:$0xff] %v4157_v25 }
 0x50e   : > { %v3299_v43 = vld [vmem:[#allocation2 + $0x81] sm:$0xff] }
 0x50f   : > { %v3300_v0 = vld [vmem:[#allocation2 + $0x89] sm:$0x3]  ;;  %v3340_v46 = vadd.f32 %v3320_v31, %v3299_v43 }
 0x510   : > { %v3341_v8 = vadd.f32 %v3321_v62, %v3300_v0 }
 0x511   : > { %3360 = vst [vmem:[#allocation2 + $0x81] sm:$0xff] %v3340_v46 }
 0x512   : > { %v4197_v21 = vld [vmem:[#allocation2 + $0x94] sm:$0xff]  ;;  %3361 = vst [vmem:[#allocation2 + $0x89] sm:$0x3] %v3341_v8 }
 0x513   : > { %v4238_v42 = vadd.f32 %v4218_v45, %v4197_v21  ;;  %v3729_v21 = vmul.f32 %v5560_v19, %v8930_v36 }
 0x515   : > { %4258 = vst [vmem:[#allocation2 + $0x94] sm:$0xff] %v4238_v42 }
 0x518   : > { %v3380_v32 = vld [vmem:[#allocation2 + $0x80] sm:$0xff] }
 0x519   : > { %v3381_v48 = vld [vmem:[#allocation2 + $0x88] sm:$0x3]  ;;  %v3421_v58 = vadd.f32 %v3401_v22, %v3380_v32  ;;  %v3809_v32 = vmul.f32 %v8243_v13, %v8931_v14 }
 0x51a   : > { %v3422_v5 = vadd.f32 %v3402_v28, %v3381_v48  ;;  %v3810_v48 = vmul.f32 %v5560_v19, %v8931_v14  ;;  %v3971_v14 = vmul.f32 %v8243_v13, %v8936_v17 }
 0x51b   : > { %3441 = vst [vmem:[#allocation2 + $0x80] sm:$0xff] %v3421_v58 }
 0x51c   : > { %v4278_v1 = vld [vmem:[#allocation2 + $0x93] sm:$0xff]  ;;  %3442 = vst [vmem:[#allocation2 + $0x88] sm:$0x3] %v3422_v5  ;;  %v3890_v5 = vmul.f32 %v8243_v13, %v8933_v60  ;;  %v4219_v60 = vmul.f32 %v8458_v9, %v8947_v38 }
 0x51d   : > { %v4319_v3 = vadd.f32 %v4299_v59, %v4278_v1  ;;  %v4138_v1 = vmul.f32 %v8458_v9, %v8946_v53 }
 0x51f   : > { %4339 = vst [vmem:[#allocation2 + $0x93] sm:$0xff] %v4319_v3 }
 0x523   : > { %v3464_v34 = vld [vmem:[#allocation2 + $0x86] sm:$0xff] }
 0x524   : > { %v3505_v30 = vadd.f32 %v3485_v44, %v3464_v34  ;;  %v4117_v44 = vld [vmem:[#allocation2 + $0x9d] sm:$0x3] }
 0x526   : > { %v4359_v33 = vld [vmem:[#allocation2 + $0x92] sm:$0xff]  ;;  %3525 = vst [vmem:[#allocation2 + $0x86] sm:$0xff] %v3505_v30 }
 0x527   : > { %v4400_v20 = vadd.f32 %v4380_v39, %v4359_v33  ;;  %v4158_v39 = vadd.f32 %v4138_v1, %v4117_v44  ;;  %v3972_v33 = vmul.f32 %v5560_v19, %v8936_v17 }
 0x529   : > { %4420 = vst [vmem:[#allocation2 + $0x92] sm:$0xff] %v4400_v20 }
 0x52a   : > { %4178 = vst [vmem:[#allocation2 + $0x9d] sm:$0x3] %v4158_v39 }
 0x52d   : > { %v3545_v16 = vld [vmem:[#allocation2 + $0x85] sm:$0xff]  ;;  %v3546_v35 = vld [vmem:[#allocation2 + $0x8d] sm:$0x3] }
 0x52e   : > { %v3586_v57 = vadd.f32 %v3566_v27, %v3545_v16  ;;  %v3587_v40 = vadd.f32 %v3567_v29, %v3546_v35 }
 0x530   : > { %v4440_v49 = vld [vmem:[#allocation2 + $0x91] sm:$0xff]  ;;  %3606 = vst [vmem:[#allocation2 + $0x85] sm:$0xff] %v3586_v57 }
 0x531   : > { %v4481_v51 = vadd.f32 %v4461_v61, %v4440_v49  ;;  %3607 = vst [vmem:[#allocation2 + $0x8d] sm:$0x3] %v3587_v40  ;;  %v4198_v16 = vld [vmem:[#allocation2 + $0x9c] sm:$0x3]  ;;  %v4054_v61 = vmul.f32 %v8357_v63, %v8943_v4  ;;  %v4300_v40 = vmul.f32 %v8458_v9, %v8948_v55 }
 0x532   : > { %v4239_v35 = vadd.f32 %v4219_v60, %v4198_v16  ;;  %v4637_v16 = vpop.xlane.xlu1 %4636 }
 0x533   : > { %4501 = vst [vmem:[#allocation2 + $0x91] sm:$0xff] %v4481_v51  ;;  %v4135_v51 = vmul.f32 %v8357_v63, %v8946_v53 }
 0x534   : > { %4259 = vst [vmem:[#allocation2 + $0x9c] sm:$0x3] %v4239_v35 }
 0x537   : > { %v3626_v12 = vld [vmem:[#allocation2 + $0x84] sm:$0xff] }
 0x538   : > { %v3627_v25 = vld [vmem:[#allocation2 + $0x8c] sm:$0x3]  ;;  %v3667_v31 = vadd.f32 %v3647_v47, %v3626_v12  ;;  %v4034_v43 = vld [vmem:[#allocation2 + $0x8e] sm:$0x3]  ;;  %v4136_v47 = vmul.f32 %v8276_v52, %v8946_v53 }
 0x539   : > { %v3668_v0 = vadd.f32 %v3648_v11, %v3627_v25  ;;  %v4075_v46 = vadd.f32 %v4055_v10, %v4034_v43  ;;  %v4381_v11 = vmul.f32 %v8458_v9, %v8949_v41  ;;  %v4216_v43 = vmul.f32 %v8357_v63, %v8947_v38 }
 0x53a   : > { %v4521_v62 = vld [vmem:[#allocation2 + $0x90] sm:$0xff]  ;;  %3687 = vst [vmem:[#allocation2 + $0x84] sm:$0xff] %v3667_v31 }
 0x53b   : > { %v4562_v45 = vadd.f32 %v4542_v26, %v4521_v62  ;;  %3688 = vst [vmem:[#allocation2 + $0x8c] sm:$0x3] %v3668_v0  ;;  %v4279_v17 = vld [vmem:[#allocation2 + $0x9b] sm:$0x3]  ;;  %v4462_v0 = vmul.f32 %v8458_v9, %v8950_v54 }
 0x53c   : > { %4095 = vst [vmem:[#allocation2 + $0x8e] sm:$0x3] %v4075_v46  ;;  %v4320_v19 = vadd.f32 %v4300_v40, %v4279_v17 }
 0x53d   : > { %4582 = vst [vmem:[#allocation2 + $0x90] sm:$0xff] %v4562_v45  ;;  %4652 = vadd.xlane.f32.xlu0 %v4562_v45  ;;  %v4217_v45 = vmul.f32 %v8276_v52, %v8947_v38  ;;  %v4543_v38 = vmul.f32 %v8458_v9, %v8287_v24 }
 0x53e   : > { %4340 = vst [vmem:[#allocation2 + $0x9b] sm:$0x3] %v4320_v19 }
 0x541   : > { %v3707_v8 = vld [vmem:[#allocation2 + $0x83] sm:$0xff] }
 0x542   : > { %v3708_v42 = vld [vmem:[#allocation2 + $0x8b] sm:$0x3]  ;;  %v3748_v18 = vadd.f32 %v3728_v56, %v3707_v8 }
 0x543   : > { %v3749_v22 = vadd.f32 %v3729_v21, %v3708_v42  ;;  %v4538_v21 = vmul.f32 %v8287_v24, %v8243_v13  ;;  %v4298_v13 = vmul.f32 %v8276_v52, %v8948_v55 }
 0x544   : > { %3768 = vst [vmem:[#allocation2 + $0x83] sm:$0xff] %v3748_v18  ;;  %v4517_v18 = vld [vmem:[#allocation2 + $0x70] sm:$0xff] }
 0x545   : > { %3769 = vst [vmem:[#allocation2 + $0x8b] sm:$0x3] %v3749_v22  ;;  %v4360_v26 = vld [vmem:[#allocation2 + $0x9a] sm:$0x3]  ;;  %v4558_v22 = vadd.f32 %v4538_v21, %v4517_v18 }
 0x546   : > { %v4401_v31 = vadd.f32 %v4381_v11, %v4360_v26 }
 0x547   : > { %4578 = vst [vmem:[#allocation2 + $0x70] sm:$0xff] %v4558_v22  ;;  %4644 = vadd.xlane.f32.xlu2 %v4558_v22  ;;  %v8955_v22 = vld [vmem:[#allocation40_spill] sm:$0xff] }
 0x548   : > { %4421 = vst [vmem:[#allocation2 + $0x9a] sm:$0x3] %v4401_v31 }
 0x54b   : > { %v3788_v28 = vld [vmem:[#allocation2 + $0x82] sm:$0xff] }
 0x54c   : > { %v3789_v58 = vld [vmem:[#allocation2 + $0x8a] sm:$0x3]  ;;  %v3829_v2 = vadd.f32 %v3809_v32, %v3788_v28  ;;  %v4297_v32 = vmul.f32 %v8357_v63, %v8948_v55 }
 0x54d   : > { %v3830_v59 = vadd.f32 %v3810_v48, %v3789_v58  ;;  %v5062_v48 = vpop.permute.xlu0 %5061 }
 0x54e   : > { %3849 = vst [vmem:[#allocation2 + $0x82] sm:$0xff] %v3829_v2  ;;  %v5124_v19 = vperm.slane %v5062_v48, %v8923_v37  ;;  %v8957_v48 = vld [vmem:[#allocation31_spill] sm:$0xff] }
 0x54f   : > { %3850 = vst [vmem:[#allocation2 + $0x8a] sm:$0x3] %v3830_v59  ;;  %v4441_v46 = vld [vmem:[#allocation2 + $0x99] sm:$0x3] }
 0x550   : > { %v4482_v56 = vadd.f32 %v4462_v0, %v4441_v46 }
 0x552   : > { %4502 = vst [vmem:[#allocation2 + $0x99] sm:$0x3] %v4482_v56 }
 0x555   : > { %v3869_v36 = vld [vmem:[#allocation2 + $0x81] sm:$0xff]  ;;  %v4659_v1 = vpop.xlane.xlu0 %4658 }
 0x556   : > { %v3870_v15 = vld [vmem:[#allocation2 + $0x89] sm:$0x3]  ;;  %v3910_v3 = vadd.f32 %v3890_v5, %v3869_v36 }
 0x557   : > { %v3911_v34 = vadd.f32 %v3891_v7, %v3870_v15  ;;  %v4378_v7 = vmul.f32 %v8357_v63, %v8949_v41 }
 0x558   : > { %3930 = vst [vmem:[#allocation2 + $0x81] sm:$0xff] %v3910_v3  ;;  %v8951_v3 = vld [vmem:[#allocation67_spill] sm:$0xff] }
 0x559   : > { %3931 = vst [vmem:[#allocation2 + $0x89] sm:$0x3] %v3911_v34  ;;  %v4522_v2 = vld [vmem:[#allocation2 + $0x98] sm:$0x3]  ;;  %v4945_v44 = vmul.f32 %v8951_v3, %v4659_v1  ;;  %v4379_v34 = vmul.f32 %v8276_v52, %v8949_v41  ;;  %v4540_v41 = vmul.f32 %v8357_v63, %v8287_v24 }
 0x55a   : > { %v4563_v59 = vadd.f32 %v4543_v38, %v4522_v2 }
 0x55b   : > { %5052 = vperm.xlu0 %5460, %v4945_v44  }
 0x55c   : > { %4583 = vst [vmem:[#allocation2 + $0x98] sm:$0x3] %v4563_v59  ;;  %v8959_v59 = vld [vmem:[#allocation54_spill] sm:$0xff] }
 0x55f   : > { %v3950_v30 = vld [vmem:[#allocation2 + $0x80] sm:$0xff] }
 0x560   : > { %v3951_v20 = vld [vmem:[#allocation2 + $0x88] sm:$0x3]  ;;  %v3991_v27 = vadd.f32 %v3971_v14, %v3950_v30  ;;  %v4459_v14 = vmul.f32 %v8357_v63, %v8950_v54 }
 0x561   : > { %v3992_v29 = vadd.f32 %v3972_v33, %v3951_v20  ;;  %v4460_v20 = vmul.f32 %v8276_v52, %v8950_v54  ;;  %v5017_v54 = vpop.permute.xlu0 %5016 }
 0x562   : > { %4011 = vst [vmem:[#allocation2 + $0x80] sm:$0xff] %v3991_v27 }
 0x563   : > { %4012 = vst [vmem:[#allocation2 + $0x88] sm:$0x3] %v3992_v29  ;;  %v4639_v29 = vpop.xlane.xlu2 %4638 }
 0x569   : > { %v4641_v26 = vpop.xlane.xlu0 %4640 }
 0x56a   : > { %v4033_v57 = vld [vmem:[#allocation2 + $0x86] sm:$0xff] }
 0x56b   : > { %v4074_v49 = vadd.f32 %v4054_v61, %v4033_v57  ;;  %v4541_v57 = vmul.f32 %v8287_v24, %v8276_v52  ;;  %v5065_v17 = vpop.permute.xlu2 %5064 }
 0x56d   : > { %4094 = vst [vmem:[#allocation2 + $0x86] sm:$0xff] %v4074_v49 }
 0x574   : > { %v4114_v12 = vld [vmem:[#allocation2 + $0x85] sm:$0xff]  ;;  %v4115_v4 = vld [vmem:[#allocation2 + $0x8d] sm:$0x3] }
 0x575   : > { %v4155_v10 = vadd.f32 %v4135_v51, %v4114_v12  ;;  %v4156_v25 = vadd.f32 %v4136_v47, %v4115_v4  ;;  %v5125_v51 = vperm.slane %v5065_v17, %v7808_v6  ;;  %v5101_v47 = vperm.slane %v5017_v54, %v7808_v6  ;;  %v5014_v12 = vpop.permute.xlu1 %5013  ;;  %v4603_v4 = vld [vmem:[#allocation2 + $0x98] sm:$0xff] }
 0x576   : > { %v5100_v63 = vperm.slane %v5014_v12, %v8923_v37 }
 0x577   : > { %4175 = vst [vmem:[#allocation2 + $0x85] sm:$0xff] %v4155_v10  ;;  %v8539_v11 = vsel %vm5089_vm2, %v5125_v51, %v5124_v19 }
 0x578   : > { %4176 = vst [vmem:[#allocation2 + $0x8d] sm:$0x3] %v4156_v25  ;;  %v5102_v52 = vsel %vm5089_vm2, %v5101_v47, %v5100_v63  ;;  %v4657_v25 = vpop.xlane.xlu2 %4656 }
 0x579   : > { %v5143_v24 = vsel %vm5142_vm6, %v5102_v52, %v8068_v23 }
 0x57d   : > { %v5059_v31 = vpop.permute.xlu1 %5058 }
 0x57e   : > { %v4195_v62 = vld [vmem:[#allocation2 + $0x84] sm:$0xff]  ;;  %v5122_v0 = vperm.slane %v5059_v31, %v7808_v6 }
 0x57f   : > { %v4236_v53 = vadd.f32 %v4216_v43, %v4195_v62  ;;  %v4196_v8 = vld [vmem:[#allocation2 + $0x8c] sm:$0x3]  ;;  %v8952_v43 = vld [vmem:[#allocation48_spill] sm:$0xff] }
 0x580   : > { %v4237_v42 = vadd.f32 %v4217_v45, %v4196_v8  ;;  %v4936_v62 = vmul.f32 %v8952_v43, %v4641_v26  ;;  %v5056_v46 = vpop.permute.xlu2 %5055  ;;  %v8953_v45 = vld [vmem:[#allocation50_spill] sm:$0xff] }
 0x581   : > { %4256 = vst [vmem:[#allocation2 + $0x84] sm:$0xff] %v4236_v53  ;;  %v4647_v53 = vpop.xlane.xlu0 %4646  ;;  %v5121_v8 = vperm.slane %v5056_v46, %v8923_v37 }
 0x582   : > { %4257 = vst [vmem:[#allocation2 + $0x8c] sm:$0x3] %v4237_v42  ;;  %5025 = vperm.xlu0 %5460, %v4936_v62   ;;  %v4939_v56 = vmul.f32 %v8953_v45, %v4647_v53  ;;  %v8954_v42 = vld [vmem:[#allocation44_spill] sm:$0xff] }
 0x583   : > { %v8549_v23 = vsel %vm5089_vm2, %v5122_v0, %v5121_v8 }
 0x588   : > { %v4276_v28 = vld [vmem:[#allocation2 + $0x83] sm:$0xff] }
 0x589   : > { %v4317_v58 = vadd.f32 %v4297_v32, %v4276_v28  ;;  %v4277_v5 = vld [vmem:[#allocation2 + $0x8b] sm:$0x3]  ;;  %v4935_v32 = vmul.f32 %v8955_v22, %v4639_v29  ;;  %v8956_v28 = vld [vmem:[#allocation46_spill] sm:$0xff] }
 0x58a   : > { %v4318_v36 = vadd.f32 %v4298_v13, %v4277_v5  ;;  %5034 = vperm.xlu0 %5460, %v4939_v56   ;;  %v4934_v38 = vmul.f32 %v8956_v28, %v4637_v16  ;;  %v4643_v13 = vpop.xlane.xlu1 %4642  ;;  %v4944_v5 = vmul.f32 %v8959_v59, %v4657_v25  ;;  %v8967_v16 = vld [vmem:[#allocation14_spill] sm:$0xff] }
 0x58b   : > { %4337 = vst [vmem:[#allocation2 + $0x83] sm:$0xff] %v4317_v58  ;;  %v8958_v58 = vld [vmem:[#allocation59_spill] sm:$0xff] }
 0x58c   : > { %4338 = vst [vmem:[#allocation2 + $0x8b] sm:$0x3] %v4318_v36  ;;  %v4954_v2 = vmul.f32 %v8958_v58, %v8957_v48  ;;  %v8960_v36 = vld [vmem:[#allocation37_spill] sm:$0xff] }
 0x592   : > { %v4357_v15 = vld [vmem:[#allocation2 + $0x82] sm:$0xff] }
 0x593   : > { %v4398_v9 = vadd.f32 %v4378_v7, %v4357_v15  ;;  %v4358_v39 = vld [vmem:[#allocation2 + $0x8a] sm:$0x3]  ;;  %v4937_v7 = vmul.f32 %v8960_v36, %v4643_v13  ;;  %v8961_v15 = vld [vmem:[#allocation65_spill] sm:$0xff] }
 0x594   : > { %v4399_v55 = vadd.f32 %v4379_v34, %v4358_v39 }
 0x595   : > { %4418 = vst [vmem:[#allocation2 + $0x82] sm:$0xff] %v4398_v9  ;;  %v8962_v9 = vld [vmem:[#allocation38_spill] sm:$0xff] }
 0x596   : > { %4419 = vst [vmem:[#allocation2 + $0x8a] sm:$0x3] %v4399_v55  ;;  %v8963_v55 = vld [vmem:[#allocation66_spill] sm:$0xff] }
 0x59c   : > { %v4438_v30 = vld [vmem:[#allocation2 + $0x81] sm:$0xff] }
 0x59d   : > { %v4479_v33 = vadd.f32 %v4459_v14, %v4438_v30  ;;  %v4439_v27 = vld [vmem:[#allocation2 + $0x89] sm:$0x3] }
 0x59e   : > { %v4480_v60 = vadd.f32 %v4460_v20, %v4439_v27  ;;  %v8965_v27 = vld [vmem:[#allocation60_spill] sm:$0xff] }
 0x59f   : > { %4499 = vst [vmem:[#allocation2 + $0x81] sm:$0xff] %v4479_v33  ;;  %v8964_v33 = vld [vmem:[#allocation52_spill] sm:$0xff] }
 0x5a0   : > { %4500 = vst [vmem:[#allocation2 + $0x89] sm:$0x3] %v4480_v60  ;;  %v8966_v60 = vld [vmem:[#allocation25_spill] sm:$0xff] }
 0x5a1   : > { %v4955_v29 = vmul.f32 %v8966_v60, %v8965_v27 }
 0x5a6   : > { %v4519_v35 = vld [vmem:[#allocation2 + $0x80] sm:$0xff] }
 0x5a7   : > { %v4560_v61 = vadd.f32 %v4540_v41, %v4519_v35  ;;  %v4520_v40 = vld [vmem:[#allocation2 + $0x88] sm:$0x3]  ;;  %v8968_v41 = vld [vmem:[#allocation61_spill] sm:$0xff] }
 0x5a8   : > { %v4561_v49 = vadd.f32 %v4541_v57, %v4520_v40  ;;  %v4953_v35 = vmul.f32 %v8968_v41, %v8967_v16 }
 0x5a9   : > { %4580 = vst [vmem:[#allocation2 + $0x80] sm:$0xff] %v4560_v61  ;;  %4648 = vadd.xlane.f32.xlu1 %v4560_v61 }
 0x5aa   : > { %4581 = vst [vmem:[#allocation2 + $0x88] sm:$0x3] %v4561_v49 }
 0x5b0   : > { %v4653_v21 = vpop.xlane.xlu0 %4652 }
 0x5b1   : > { %4654 = vadd.xlane.f32.xlu1 %v4603_v4  ;;  %v4601_v10 = vld [vmem:[#allocation2 + $0x88] sm:$0xff]  ;;  %v4942_v18 = vmul.f32 %v8954_v42, %v4653_v21 }
 0x5b2   : > { %4650 = vadd.xlane.f32.xlu2 %v4601_v10 }
 0x5b3   : > { %5043 = vperm.xlu0 %5460, %v4942_v18  }
 0x5ba   : > { %v4645_v44 = vpop.xlane.xlu2 %4644 }
 0x5bb   : > { %5079 = vperm.xlu0 %5460, %v4954_v2   ;;  %v4938_v34 = vmul.f32 %v8962_v9, %v4645_v44 }
 0x5ca   : > { %5022 = vperm.xlu1 %5459, %v4935_v32   ;;  %5019 = vperm.xlu2 %5461, %v4934_v38  }
 0x5cd   : > { %v5053_v19 = vpop.permute.xlu0 %5052 }
 0x5ce   : > { %v5119_v22 = vperm.slane %v5053_v19, %v7808_v6 }
 0x5d2   : > { %5049 = vperm.xlu1 %5459, %v4944_v5   ;;  %5028 = vperm.xlu2 %5461, %v4937_v7  }
 0x5da   : > { %5031 = vperm.xlu1 %5459, %v4938_v34  }
 0x5f4   : > { %v5026_v47 = vpop.permute.xlu0 %5025 }
 0x5f5   : > { %v5106_v63 = vperm.slane %v5026_v47, %v8923_v37 }
 0x5fc   : > { %v5035_v26 = vpop.permute.xlu0 %5034 }
 0x61c   : > { %v4649_v1 = vpop.xlane.xlu1 %4648 }
 0x61d   : > { %v4940_v3 = vmul.f32 %v8961_v15, %v4649_v1 }
 0x61f   : > { %5037 = vperm.xlu2 %5461, %v4940_v3  }
 0x624   : > { %v4655_v39 = vpop.xlane.xlu1 %4654 }
 0x625   : > { %v4943_v14 = vmul.f32 %v8963_v55, %v4655_v39  ;;  %v4651_v30 = vpop.xlane.xlu2 %4650  ;;  %v5044_v0 = vpop.permute.xlu0 %5043 }
 0x626   : > { %v4941_v20 = vmul.f32 %v8964_v33, %v4651_v30  ;;  %v5115_v45 = vperm.slane %v5044_v0, %v8923_v37 }
 0x627   : > { %5046 = vperm.xlu2 %5461, %v4943_v14  }
 0x628   : > { %5040 = vperm.xlu1 %5459, %v4941_v20  }
 0x62d   : > { %v5020_v61 = vpop.permute.xlu2 %5019  ;;  %v5080_v58 = vpop.permute.xlu0 %5079 }
 0x62e   : > { %v5103_v57 = vperm.slane %v5020_v61, %v8923_v37  ;;  %v5133_v36 = vperm.slane %v5080_v58, %v8923_v37 }
 0x62f   : > { %5082 = vperm.xlu2 %5461, %v4955_v29  }
 0x630   : > { %5076 = vperm.xlu1 %5459, %v4953_v35  }
 0x635   : > { %v5029_v51 = vpop.permute.xlu2 %5028 }
 0x636   : > { %v5107_v12 = vperm.slane %v5029_v51, %v7808_v6 }
 0x638   : > { %v5108_v52 = vsel %vm5089_vm2, %v5107_v12, %v5106_v63 }
 0x63c   : > { %v5023_v40 = vpop.permute.xlu1 %5022 }
 0x63d   : > { %v5104_v49 = vperm.slane %v5023_v40, %v7808_v6 }
 0x63f   : > { %v5105_v17 = vsel %vm5089_vm2, %v5104_v49, %v5103_v57 }
 0x640   : > { %v5145_v54 = vsel %vm5144_vm7, %v5105_v17, %v5143_v24  ;;  %v5110_v24 = vperm.slane %v5035_v26, %v7808_v6 }
 0x641   : > { %v5147_v4 = vsel %vm5146_vm8, %v5108_v52, %v5145_v54 }
 0x644   : > { %v5050_v10 = vpop.permute.xlu1 %5049 }
 0x645   : > { %v5118_v56 = vperm.slane %v5050_v10, %v8923_v37 }
 0x647   : > { %v5120_v38 = vsel %vm5089_vm2, %v5119_v22, %v5118_v56 }
 0x64c   : > { %v5032_v31 = vpop.permute.xlu1 %5031 }
 0x64d   : > { %v5109_v43 = vperm.slane %v5032_v31, %v8923_v37 }
 0x64f   : > { %v5111_v62 = vsel %vm5089_vm2, %v5110_v24, %v5109_v43 }
 0x650   : > { %v5149_v53 = vsel %vm5148_vm9, %v5111_v62, %v5147_v4 }
 0x651   : > { %5160 = vst.msk [vmem:[%s8581_s9] sm:$0xff] %vm5159_vm10, %v5149_v53 }
 0x679   : > { %v5038_v25 = vpop.permute.xlu2 %5037 }
 0x67a   : > { %v5112_v21 = vperm.slane %v5038_v25, %v8923_v37 }
 0x681   : > { %v5047_v46 = vpop.permute.xlu2 %5046 }
 0x682   : > { %v5116_v42 = vperm.slane %v5047_v46, %v7808_v6 }
 0x684   : > { %v5117_v32 = vsel %vm5089_vm2, %v5116_v42, %v5115_v45 }
 0x689   : > { %v5083_v59 = vpop.permute.xlu2 %5082 }
 0x68a   : > { %v5134_v3 = vperm.slane %v5083_v59, %v7808_v6 }
 0x69a   : > { %v5041_v8 = vpop.permute.xlu1 %5040 }
 0x69b   : > { %v5113_v18 = vperm.slane %v5041_v8, %v7808_v6 }
 0x69d   : > { %v5114_v28 = vsel %vm5089_vm2, %v5113_v18, %v5112_v21 }
 0x69e   : > { %v5150_v48 = vsel %vm5136_vm3, %v5117_v32, %v5114_v28 }
 0x69f   : > { %v5151_v2 = vsel %vm5138_vm4, %v5120_v38, %v5150_v48 }
 0x6a0   : > { %v5152_v13 = vsel %vm5140_vm5, %v8549_v23, %v5151_v2  ;;  %v8969_v23 = vld [vmem:[#allocation62_spill] sm:$0xff] }
 0x6a1   : > { %v5153_v5 = vsel %vm5142_vm6, %v8539_v11, %v5152_v13  ;;  %v8970_v44 = vperm.slane %v8969_v23, %v8923_v37  ;;  %v5135_v11 = vsel %vm5089_vm2, %v5134_v3, %v5133_v36 }
 0x6a2   : > { %v5077_v7 = vpop.permute.xlu1 %5076  ;;  %v5154_v1 = vsel %vm5144_vm7, %v8030_v50, %v5153_v5 }
 0x6a3   : > { %v5131_v15 = vperm.slane %v5077_v7, %v7808_v6 }
 0x6a5   : > { %v5132_v9 = vsel %vm5089_vm2, %v5131_v15, %v8970_v44 }
 0x6a6   : > { %v5155_v34 = vsel %vm5146_vm8, %v5132_v9, %v5154_v1 }
 0x6a7   : > { %v5156_v50 = vsel %vm5148_vm9, %v5135_v11, %v5155_v34 }
 0x6a8   : > { %5161 = vst.msk [vmem:[%s8581_s9 + $0x8] sm:$0xff] %vm5159_vm10, %v5156_v50 }
 0x6a9   : > { %5588 = shalt.err (!%p5585_p3)
}
 0x6aa   : > { %s5627_s13 = smov 128   ;;  %s5628_s8 = smov 8  }
 0x6ab   : > { %5399 = dma.vmem_to_hbm [thread:$0]  (%p5697_p5), %s5184_s22, 256, %s5186_s14, %s5168_s15, %s5627_s13, %s5627_s13, %s5628_s8  }
 0x6ac PF: > { %p5405_p4 = scmp.ge.s32.totalorder %s5623_s21, 2  ;;  %s5208_s9 = sand.u32 1, %s5611_s18  }
 0x6ad   : > { %s5209_s10 = scalar_lea.sflag [#allocation4], %s5208_s9 }
 0x6ae   : > { %p5402_p7 = pnand %p5405_p4, %p5701_p6 }
 0x6b0   : > { %p5403_p8 = pneg %p5402_p7 }
 0x6b2   : > { %5606 = dma.done.wait (%p5403_p8), %s5209_s10, 256  }
 0x6b3   : > { %5608 = vsyncadd (%p5403_p8), %s5209_s10, 4294967040  ;;  %p16_p9 = scmp.ge.s32.totalorder %s5684_s24, 4   ;;  %s8971_s18 = smov %s5615_s19 }
 0x6b4   : > { %s8972_s19 = smov %s5619_s20  ;;  %s8973_s20 = smov %s5695_s27 }
 0x6b5   : > { %s8974_s21 = smov %s5684_s24  ;;  %18 = sbr.rel (!%p16_p9) target bundleno = 3 (0x3), region = 107 }
 0x6ba   :  { %5215 = vsyncpa [#allocation4], 1 }
 0x6bb   :  { %5217 = vsyncpa [#allocation4 + $0x1], 1 }

</bundles_post_ra>
